<compile_context>
chip_gen: v6e
topology: v6e:2x2x1
jax: 0.10.0
libtpu: 0.0.40
codegen_flags: <defaults>
</compile_context>

<pallas_src>
import math
import numpy as np
import jax
import jax.numpy as jnp
from jax import lax
from jax.experimental import pallas as pl
from jax.experimental.pallas import tpu as pltpu

# ----------------------------- hyper-parameters ------------------------------
INPUT_SIZE = 32
HIDDEN_SIZE = 32
INHIBITION_SIZE = 32          # must equal HIDDEN_SIZE (see note above)
SEQ_LEN = 8
BATCH = 2
FEEDBACK_DELAY = 3
TAU_TRACE = 20.0
TAU_MEM = 10.0
ETA = 0.05                    # Hebbian learning rate of the plasticity rule

DECAY_TRACE = math.exp(-1.0 / TAU_TRACE)
ALPHA_MEM = math.exp(-1.0 / TAU_MEM)
HIGHEST = jax.lax.Precision.HIGHEST

assert HIDDEN_SIZE == INHIBITION_SIZE


# ------------------------------- Pallas kernel -------------------------------
def _make_kernel(batch: int, seq_len: int, hidden: int, fd: int, recall: bool):
    a, d, e = ALPHA_MEM, DECAY_TRACE, ETA

    def kernel(x_ref, wt_ref, memT_ref, ei_ref, ieT_ref,
               mats_o, kvseq_o, states_o):
        row = lax.broadcasted_iota(jnp.int32, (hidden, hidden), 0)
        col = lax.broadcasted_iota(jnp.int32, (hidden, hidden), 1)
        eye = row == col

        def col_of(r):
            # exact (1,H) row -> (H,1) column; single masked cross-lane reduce
            return jnp.sum(jnp.where(eye, r, 0.0), axis=1, keepdims=True)

        wt = wt_ref[...]                                    # (Din, 2H)
        zrow = jnp.zeros((1, hidden), jnp.float32)

        # TODO(synk): wire externally provided `states` (membrane states,
        # traces, inhibitory feedback buffer) into the kernel instead of always
        # re-initializing to zero.  NOTE: the static skip of inh_out for
        # t < feedback_delay below bakes this zero-init assumption in.

        # Both batches processed in one invocation; the two independent chains
        # live in one basic block so the scheduler can interleave them.
        # (Re-check the bundle dump for vreg spills if B grows.)
        for b in range(batch):
            # ---- one fused key/value projection dot (off the serial chain) ----
            proj = jnp.dot(x_ref[b], wt, precision=HIGHEST,
                           preferred_element_type=jnp.float32)      # (T, 2H)
            ik_mat = proj[:, :hidden]                                # (T, H)
            iv_mat = proj[:, hidden:]                                # (T, H)

            # ---- hoisted key pathway (depends only on ik) ----
            key_v = zrow
            kv_rows = []
            for t in range(seq_len):
                key_v = a * key_v + (1.0 - a) * ik_mat[t:t + 1, :]
                kv_rows.append(key_v)
            keys_mat = jnp.tanh(jnp.concatenate(kv_rows, axis=0))    # (T, H)

            if not recall:
                key_tr = zrow
                ktr_rows = []
                for t in range(seq_len):
                    key_tr = d * key_tr + (1.0 - d) * keys_mat[t:t + 1, :]
                    ktr_rows.append(key_tr)
                key_trs_mat = jnp.concatenate(ktr_rows, axis=0)      # (T, H)
            # recall mode never updates the key trace.

            # mem and IE carried TRANSPOSED (memT[j,i] = mem[i,j]) so every
            # per-step contraction is an exact-f32 VPU multiply + sublane
            # reduce that directly yields a lane-oriented (1,H) row.
            # IE is carried diagonal-free (its diagonal is re-zeroed at the
            # top of every step anyway); EI is carried as its diagonal only.
            memT = memT_ref[b]                                       # (H, H)
            ieT = jnp.where(eye, 0.0, ieT_ref[b])                    # (H, H)
            ei_diag = jnp.sum(jnp.where(eye, ei_ref[b], 0.0),
                              axis=0, keepdims=True)                 # (1, H)

            if recall:
                # mem is never updated in recall mode: hoist all key.mem
                # matvecs into ONE batched MXU dot before the loop.
                ikv_all = lax.dot_general(
                    keys_mat, memT, (((1,), (0,)), ((), ())),
                    precision=HIGHEST,
                    preferred_element_type=jnp.float32)              # (T, H)

            val_v = inh_v = val_tr = inh_tr = zrow
            buf = [zrow] * fd       # feedback rows carried as plain values
            val_rows = []

            # Fully unrolled timestep loop (T small & static).
            for t in range(seq_len):
                # ikv[i] = sum_j key[j]*mem[i,j] = sum_j memT[j,i]*key[j]
                if recall:
                    ikv = ikv_all[t:t + 1, :]
                else:
                    key_col = col_of(keys_mat[t:t + 1, :])
                    ikv = jnp.sum(memT * key_col, axis=0, keepdims=True)

                # inh_out[i] = sum_j buf[j]*ie[i,j]; statically zero for the
                # first `fd` steps (zero-initialized feedback buffer).
                if t >= fd:
                    buf_col = col_of(buf[t % fd])
                    inh_out = jnp.sum(ieT * buf_col, axis=0, keepdims=True)
                else:
                    inh_out = None

                if recall:
                    val_in = ikv if inh_out is None else ikv - inh_out
                else:
                    val_in = iv_mat[t:t + 1, :] + 0.2 * ikv
                    if inh_out is not None:
                        val_in = val_in - inh_out

                # value neuron dynamics
                val_v = a * val_v + (1.0 - a) * val_in
                val = jnp.tanh(val_v)

                # (val . EI) with diagonal-only EI == elementwise product
                inh_in = ei_diag * val
                inh_v = a * inh_v + (1.0 - a) * inh_in
                inh = jnp.tanh(inh_v)

                buf[t % fd] = inh

                val_tr = d * val_tr + (1.0 - d) * val
                inh_tr = d * inh_tr + (1.0 - d) * inh
                val_tr_col = col_of(val_tr)

                if not recall:
                    # mem[i,j] += eta*(key_tr[i]*val_tr[j] - mem[i,j])
                    memT = memT + e * (val_tr_col * key_trs_mat[t:t + 1, :]
                                       - memT)
                # EI (diag) / IE (off-diagonal) plasticity
                ei_diag = ei_diag + e * (val_tr * inh_tr - ei_diag)
                ieT_outer = jnp.where(eye, 0.0, val_tr_col * inh_tr)
                ieT = ieT + e * (ieT_outer - ieT)

                val_rows.append(val)

            vals_mat = jnp.concatenate(val_rows, axis=0)             # (T, H)

            # Materialize full EI and the IE diagonal from the last update.
            val_tr_col = col_of(val_tr)
            ei_full = jnp.where(eye, ei_diag, e * (val_tr_col * inh_tr))
            ieT_full = jnp.where(eye, e * (inh_tr * val_tr), ieT)

            mats_o[b, 0, :, :] = memT         # transposed; wrapper swaps back
            mats_o[b, 1, :, :] = ei_full
            mats_o[b, 2, :, :] = ieT_full     # transposed; wrapper swaps back
            kvseq_o[b, 0, :, :] = keys_mat
            kvseq_o[b, 1, :, :] = vals_mat

            key_tr_out = zrow if recall else key_trs_mat[seq_len - 1:seq_len, :]
            states_o[b, :, :] = jnp.concatenate(
                [key_v, val_v, inh_v, key_tr_out, val_tr, inh_tr] + buf,
                axis=0)

    return kernel


def inhibition_memory_forward(x, W, mem, ei, ie, *, recall=False):
    B, T, Din = x.shape
    H = mem.shape[-1]
    FD = FEEDBACK_DELAY
    f32 = jnp.float32

    # Wrapper-side layout plumbing: fused transposed weight slab, and
    # transposed mem / IE so in-kernel contractions are lane-oriented.
    wt = jnp.asarray(W.T)                        # (Din, 2H)
    memT = jnp.swapaxes(mem, -1, -2)
    ieT = jnp.swapaxes(ie, -1, -2)

    kernel = _make_kernel(B, T, H, FD, recall)

    out_shape = (
        jax.ShapeDtypeStruct((B, 3, H, H), f32),     # [mem^T, EI, IE^T]
        jax.ShapeDtypeStruct((B, 2, T, H), f32),     # [key seq, val seq]
        jax.ShapeDtypeStruct((B, 6 + FD, H), f32),   # 6 state/trace rows + buffer
    )
    in_specs = [
        pl.BlockSpec((B, T, Din), lambda i: (0, 0, 0)),       # x
        pl.BlockSpec((Din, 2 * H), lambda i: (0, 0)),         # W^T (shared)
        pl.BlockSpec((B, H, H), lambda i: (0, 0, 0)),         # mem^T
        pl.BlockSpec((B, H, H), lambda i: (0, 0, 0)),         # excitatory_inhibitory
        pl.BlockSpec((B, H, H), lambda i: (0, 0, 0)),         # inhibitory_excitatory^T
    ]
    out_specs = (
        pl.BlockSpec((B, 3, H, H), lambda i: (0, 0, 0, 0)),
        pl.BlockSpec((B, 2, T, H), lambda i: (0, 0, 0, 0)),
        pl.BlockSpec((B, 6 + FD, H), lambda i: (0, 0, 0)),
    )

    # Single invocation with the batch folded in: on single-TC v5e/v6e this
    # removes the grid-step overhead and lets the two batch chains interleave.
    # (On v7x, a CORE_PARALLEL batch axis or pl.core_map would instead give
    # each TensorCore one batch.)
    mats, kvseq, st = pl.pallas_call(
        kernel,
        out_shape=out_shape,
        grid=(1,),
        in_specs=in_specs,
        out_specs=out_specs,
        compiler_params=pltpu.CompilerParams(
            dimension_semantics=("arbitrary",)),
    )(x, wt, memT, ei, ieT)

    mem_o = jnp.swapaxes(mats[:, 0], -1, -2)
    ei_o = mats[:, 1]
    ie_o = jnp.swapaxes(mats[:, 2], -1, -2)
    kseq, vseq = kvseq[:, 0], kvseq[:, 1]
    states = [st[:, 0], st[:, 1], st[:, 2], st[:, 3], st[:, 4], st[:, 5],
              st[:, 6:6 + FD]]
    return mem_o, ei_o, ie_o, kseq, vseq, states


# --------------------------- pure-JAX reference ------------------------------
def reference_forward(x, W, mem, ei, ie, *, recall=False):
    B, T, Din = x.shape
    H = mem.shape[-1]
    FD = FEEDBACK_DELAY
    a, d, e = ALPHA_MEM, DECAY_TRACE, ETA
    Wk, Wv = W[:H], W[H:]
    ik = jnp.einsum("btd,hd->bth", x, Wk, precision=HIGHEST)
    iv = jnp.einsum("btd,hd->bth", x, Wv, precision=HIGHEST)
    eye = jnp.eye(H, dtype=bool)[None]
    z = jnp.zeros((B, H), jnp.float32)
    key_v, val_v, inh_v, key_tr, val_tr, inh_tr = z, z, z, z, z, z
    buf = jnp.zeros((B, FD, H), jnp.float32)
    keys, vals = [], []
    for t in range(T):
        ei = jnp.where(eye, ei, 0.0)
        ie = jnp.where(eye, 0.0, ie)
        key_v = a * key_v + (1 - a) * ik[:, t]
        key = jnp.tanh(key_v)
        scale = 1.0 if recall else 0.2
        ikv = scale * (key[:, None, :] * mem).sum(2)
        inh_out = (buf[:, t % FD][:, None, :] * ie).sum(2)
        val_in = (ikv - inh_out) if recall else (iv[:, t] + ikv - inh_out)
        val_v = a * val_v + (1 - a) * val_in
        val = jnp.tanh(val_v)
        inh_in = (val[:, None, :] * ei).sum(1)
        inh_v = a * inh_v + (1 - a) * inh_in
        inh = jnp.tanh(inh_v)
        if recall:
            val_tr = d * val_tr + (1 - d) * val
            inh_tr = d * inh_tr + (1 - d) * inh
            ei = ei + e * (val_tr[:, :, None] * inh_tr[:, None, :] - ei)
            ie = ie + e * (inh_tr[:, :, None] * val_tr[:, None, :] - ie)
            buf = buf.at[:, t % FD].set(inh)
        else:
            buf = buf.at[:, t % FD].set(inh)
            key_tr = d * key_tr + (1 - d) * key
            val_tr = d * val_tr + (1 - d) * val
            mem = mem + e * (key_tr[:, :, None] * val_tr[:, None, :] - mem)
            inh_tr = d * inh_tr + (1 - d) * inh
            ei = ei + e * (val_tr[:, :, None] * inh_tr[:, None, :] - ei)
            ie = ie + e * (inh_tr[:, :, None] * val_tr[:, None, :] - ie)
        keys.append(key)
        vals.append(val)
    return (mem, ei, ie, jnp.stack(keys, 1), jnp.stack(vals, 1),
            [key_v, val_v, inh_v, key_tr, val_tr, inh_tr, buf])


def _check(got, want):
    g = jax.tree_util.tree_leaves(got)
    w = jax.tree_util.tree_leaves(want)
    assert len(g) == len(w)
    for gi, wi in zip(g, w):
        np.testing.assert_allclose(np.asarray(gi), np.asarray(wi),
                                   rtol=1e-3, atol=1e-4)


# ----------------------------------- main -------------------------------------
if __name__ == "__main__":
    B, T, Din, H = BATCH, SEQ_LEN, INPUT_SIZE, HIDDEN_SIZE
    key = jax.random.PRNGKey(0)
    kx, kw, kei = jax.random.split(key, 3)

    x = jax.random.normal(kx, (B, T, Din), jnp.float32)

    # xavier_uniform_ with gain sqrt(2) on W of shape (2H, Din)
    bound = math.sqrt(2.0) * math.sqrt(6.0 / (2 * H + Din))
    W = jax.random.uniform(kw, (2 * H, Din), jnp.float32, -bound, bound)

    # module defaults: mem = 0, EI = diag(rand), IE = 0
    eye = jnp.eye(H, dtype=bool)[None]
    ei0 = jnp.where(eye, jax.random.uniform(kei, (B, H, H), jnp.float32), 0.0)
    mem0 = jnp.zeros((B, H, H), jnp.float32)
    ie0 = jnp.zeros((B, H, H), jnp.float32)

    # write (store) phase
    out_w = inhibition_memory_forward(x, W, mem0, ei0, ie0, recall=False)
    jax.block_until_ready(out_w)
    ref_w = reference_forward(x, W, mem0, ei0, ie0, recall=False)
    _check(out_w, ref_w)

    # recall phase, reusing the memory written in the first phase
    out_r = inhibition_memory_forward(x, W, out_w[0], out_w[1], out_w[2], recall=True)
    jax.block_until_ready(out_r)
    ref_r = reference_forward(x, W, ref_w[0], ref_w[1], ref_w[2], recall=True)
    _check(out_r, ref_r)

    print("KERNEL_OK")
</pallas_src>

<mosaic_0001>
module attributes {stable_mosaic.version = 11 : i64} {
  func.func @kernel(%arg0: i32, %arg1: memref<2x8x32xf32, #tpu.memory_space<vmem>>, %arg2: memref<32x64xf32, #tpu.memory_space<vmem>>, %arg3: memref<2x32x32xf32, #tpu.memory_space<vmem>>, %arg4: memref<2x32x32xf32, #tpu.memory_space<vmem>>, %arg5: memref<2x32x32xf32, #tpu.memory_space<vmem>>, %arg6: memref<2x3x32x32xf32, #tpu.memory_space<vmem>>, %arg7: memref<2x2x8x32xf32, #tpu.memory_space<vmem>>, %arg8: memref<2x9x32xf32, #tpu.memory_space<vmem>>) attributes {dimension_semantics = [#tpu.dimension_semantics<arbitrary>], iteration_bounds = array<i64: 1>, scalar_prefetch = 0 : i64, scratch_operands = 0 : i64, tpu.core_type = #tpu.core_type<tc>, window_params = [{pipeline_mode = #tpu.pipeline_mode<synchronous>, transform_indices = @transform_0, window_bounds = array<i64: 2, 8, 32>}, {pipeline_mode = #tpu.pipeline_mode<synchronous>, transform_indices = @transform_1, window_bounds = array<i64: 32, 64>}, {pipeline_mode = #tpu.pipeline_mode<synchronous>, transform_indices = @transform_2, window_bounds = array<i64: 2, 32, 32>}, {pipeline_mode = #tpu.pipeline_mode<synchronous>, transform_indices = @transform_3, window_bounds = array<i64: 2, 32, 32>}, {pipeline_mode = #tpu.pipeline_mode<synchronous>, transform_indices = @transform_4, window_bounds = array<i64: 2, 32, 32>}, {pipeline_mode = #tpu.pipeline_mode<synchronous>, transform_indices = @transform_5, window_bounds = array<i64: 2, 3, 32, 32>}, {pipeline_mode = #tpu.pipeline_mode<synchronous>, transform_indices = @transform_6, window_bounds = array<i64: 2, 2, 8, 32>}, {pipeline_mode = #tpu.pipeline_mode<synchronous>, transform_indices = @transform_7, window_bounds = array<i64: 2, 9, 32>}]} {
    %0 = tpu.iota {dimensions = array<i32: 0>} : vector<32x32xi32>
    %1 = tpu.iota {dimensions = array<i32: 1>} : vector<32x32xi32>
    %2 = arith.cmpi eq, %0, %1 : vector<32x32xi32>
    %c0 = arith.constant 0 : index
    %c0_0 = arith.constant 0 : index
    %3 = vector.load %arg2[%c0, %c0_0] : memref<32x64xf32, #tpu.memory_space<vmem>>, vector<32x64xf32>
    %cst = arith.constant 0.000000e+00 : f32
    %4 = vector.broadcast %cst : f32 to vector<1x32xf32>
    %c0_1 = arith.constant 0 : index
    %c0_2 = arith.constant 0 : index
    %c0_3 = arith.constant 0 : index
    %5 = vector.load %arg1[%c0_1, %c0_2, %c0_3] : memref<2x8x32xf32, #tpu.memory_space<vmem>>, vector<1x8x32xf32>
    %6 = vector.shape_cast %5 : vector<1x8x32xf32> to vector<8x32xf32>
    %cst_4 = arith.constant dense<0.000000e+00> : vector<8x64xf32>
    %7 = tpu.matmul %6, %3, %cst_4 {dimension_numbers = #tpu.dot_dimension_numbers<[1], [0], [0], [1], [0, 0, 1, 1], [], []>, precision = #tpu.contract_precision<fp32>} : vector<8x32xf32>, vector<32x64xf32>, vector<8x64xf32> -> vector<8x64xf32>
    %8 = vector.extract_strided_slice %7 {offsets = [0, 0], sizes = [8, 32], strides = [1, 1]} : vector<8x64xf32> to vector<8x32xf32>
    %9 = vector.extract_strided_slice %7 {offsets = [0, 32], sizes = [8, 32], strides = [1, 1]} : vector<8x64xf32> to vector<8x32xf32>
    %cst_5 = arith.constant 0.904837429 : f32
    %10 = vector.broadcast %cst_5 : f32 to vector<1x32xf32>
    %11 = arith.mulf %10, %4 : vector<1x32xf32>
    %12 = vector.extract_strided_slice %8 {offsets = [0, 0], sizes = [1, 32], strides = [1, 1]} : vector<8x32xf32> to vector<1x32xf32>
    %cst_6 = arith.constant 0.0951625854 : f32
    %13 = vector.broadcast %cst_6 : f32 to vector<1x32xf32>
    %14 = arith.mulf %13, %12 : vector<1x32xf32>
    %15 = arith.addf %11, %14 : vector<1x32xf32>
    %cst_7 = arith.constant 0.904837429 : f32
    %16 = vector.broadcast %cst_7 : f32 to vector<1x32xf32>
    %17 = arith.mulf %16, %15 : vector<1x32xf32>
    %18 = vector.extract_strided_slice %8 {offsets = [1, 0], sizes = [1, 32], strides = [1, 1]} : vector<8x32xf32> to vector<1x32xf32>
    %cst_8 = arith.constant 0.0951625854 : f32
    %19 = vector.broadcast %cst_8 : f32 to vector<1x32xf32>
    %20 = arith.mulf %19, %18 : vector<1x32xf32>
    %21 = arith.addf %17, %20 : vector<1x32xf32>
    %cst_9 = arith.constant 0.904837429 : f32
    %22 = vector.broadcast %cst_9 : f32 to vector<1x32xf32>
    %23 = arith.mulf %22, %21 : vector<1x32xf32>
    %24 = vector.extract_strided_slice %8 {offsets = [2, 0], sizes = [1, 32], strides = [1, 1]} : vector<8x32xf32> to vector<1x32xf32>
    %cst_10 = arith.constant 0.0951625854 : f32
    %25 = vector.broadcast %cst_10 : f32 to vector<1x32xf32>
    %26 = arith.mulf %25, %24 : vector<1x32xf32>
    %27 = arith.addf %23, %26 : vector<1x32xf32>
    %cst_11 = arith.constant 0.904837429 : f32
    %28 = vector.broadcast %cst_11 : f32 to vector<1x32xf32>
    %29 = arith.mulf %28, %27 : vector<1x32xf32>
    %30 = vector.extract_strided_slice %8 {offsets = [3, 0], sizes = [1, 32], strides = [1, 1]} : vector<8x32xf32> to vector<1x32xf32>
    %cst_12 = arith.constant 0.0951625854 : f32
    %31 = vector.broadcast %cst_12 : f32 to vector<1x32xf32>
    %32 = arith.mulf %31, %30 : vector<1x32xf32>
    %33 = arith.addf %29, %32 : vector<1x32xf32>
    %cst_13 = arith.constant 0.904837429 : f32
    %34 = vector.broadcast %cst_13 : f32 to vector<1x32xf32>
    %35 = arith.mulf %34, %33 : vector<1x32xf32>
    %36 = vector.extract_strided_slice %8 {offsets = [4, 0], sizes = [1, 32], strides = [1, 1]} : vector<8x32xf32> to vector<1x32xf32>
    %cst_14 = arith.constant 0.0951625854 : f32
    %37 = vector.broadcast %cst_14 : f32 to vector<1x32xf32>
    %38 = arith.mulf %37, %36 : vector<1x32xf32>
    %39 = arith.addf %35, %38 : vector<1x32xf32>
    %cst_15 = arith.constant 0.904837429 : f32
    %40 = vector.broadcast %cst_15 : f32 to vector<1x32xf32>
    %41 = arith.mulf %40, %39 : vector<1x32xf32>
    %42 = vector.extract_strided_slice %8 {offsets = [5, 0], sizes = [1, 32], strides = [1, 1]} : vector<8x32xf32> to vector<1x32xf32>
    %cst_16 = arith.constant 0.0951625854 : f32
    %43 = vector.broadcast %cst_16 : f32 to vector<1x32xf32>
    %44 = arith.mulf %43, %42 : vector<1x32xf32>
    %45 = arith.addf %41, %44 : vector<1x32xf32>
    %cst_17 = arith.constant 0.904837429 : f32
    %46 = vector.broadcast %cst_17 : f32 to vector<1x32xf32>
    %47 = arith.mulf %46, %45 : vector<1x32xf32>
    %48 = vector.extract_strided_slice %8 {offsets = [6, 0], sizes = [1, 32], strides = [1, 1]} : vector<8x32xf32> to vector<1x32xf32>
    %cst_18 = arith.constant 0.0951625854 : f32
    %49 = vector.broadcast %cst_18 : f32 to vector<1x32xf32>
    %50 = arith.mulf %49, %48 : vector<1x32xf32>
    %51 = arith.addf %47, %50 : vector<1x32xf32>
    %cst_19 = arith.constant 0.904837429 : f32
    %52 = vector.broadcast %cst_19 : f32 to vector<1x32xf32>
    %53 = arith.mulf %52, %51 : vector<1x32xf32>
    %54 = vector.extract_strided_slice %8 {offsets = [7, 0], sizes = [1, 32], strides = [1, 1]} : vector<8x32xf32> to vector<1x32xf32>
    %cst_20 = arith.constant 0.0951625854 : f32
    %55 = vector.broadcast %cst_20 : f32 to vector<1x32xf32>
    %56 = arith.mulf %55, %54 : vector<1x32xf32>
    %57 = arith.addf %53, %56 : vector<1x32xf32>
    %58 = tpu.concatenate %15, %21, %27, %33, %39, %45, %51, %57 in 0 : vector<1x32xf32>, vector<1x32xf32>, vector<1x32xf32>, vector<1x32xf32>, vector<1x32xf32>, vector<1x32xf32>, vector<1x32xf32>, vector<1x32xf32> -> vector<8x32xf32>
    %59 = math.tanh %58 : vector<8x32xf32>
    %cst_21 = arith.constant 0.951229453 : f32
    %60 = vector.broadcast %cst_21 : f32 to vector<1x32xf32>
    %61 = arith.mulf %60, %4 : vector<1x32xf32>
    %62 = vector.extract_strided_slice %59 {offsets = [0, 0], sizes = [1, 32], strides = [1, 1]} : vector<8x32xf32> to vector<1x32xf32>
    %cst_22 = arith.constant 0.0487705767 : f32
    %63 = vector.broadcast %cst_22 : f32 to vector<1x32xf32>
    %64 = arith.mulf %63, %62 : vector<1x32xf32>
    %65 = arith.addf %61, %64 : vector<1x32xf32>
    %cst_23 = arith.constant 0.951229453 : f32
    %66 = vector.broadcast %cst_23 : f32 to vector<1x32xf32>
    %67 = arith.mulf %66, %65 : vector<1x32xf32>
    %68 = vector.extract_strided_slice %59 {offsets = [1, 0], sizes = [1, 32], strides = [1, 1]} : vector<8x32xf32> to vector<1x32xf32>
    %cst_24 = arith.constant 0.0487705767 : f32
    %69 = vector.broadcast %cst_24 : f32 to vector<1x32xf32>
    %70 = arith.mulf %69, %68 : vector<1x32xf32>
    %71 = arith.addf %67, %70 : vector<1x32xf32>
    %cst_25 = arith.constant 0.951229453 : f32
    %72 = vector.broadcast %cst_25 : f32 to vector<1x32xf32>
    %73 = arith.mulf %72, %71 : vector<1x32xf32>
    %74 = vector.extract_strided_slice %59 {offsets = [2, 0], sizes = [1, 32], strides = [1, 1]} : vector<8x32xf32> to vector<1x32xf32>
    %cst_26 = arith.constant 0.0487705767 : f32
    %75 = vector.broadcast %cst_26 : f32 to vector<1x32xf32>
    %76 = arith.mulf %75, %74 : vector<1x32xf32>
    %77 = arith.addf %73, %76 : vector<1x32xf32>
    %cst_27 = arith.constant 0.951229453 : f32
    %78 = vector.broadcast %cst_27 : f32 to vector<1x32xf32>
    %79 = arith.mulf %78, %77 : vector<1x32xf32>
    %80 = vector.extract_strided_slice %59 {offsets = [3, 0], sizes = [1, 32], strides = [1, 1]} : vector<8x32xf32> to vector<1x32xf32>
    %cst_28 = arith.constant 0.0487705767 : f32
    %81 = vector.broadcast %cst_28 : f32 to vector<1x32xf32>
    %82 = arith.mulf %81, %80 : vector<1x32xf32>
    %83 = arith.addf %79, %82 : vector<1x32xf32>
    %cst_29 = arith.constant 0.951229453 : f32
    %84 = vector.broadcast %cst_29 : f32 to vector<1x32xf32>
    %85 = arith.mulf %84, %83 : vector<1x32xf32>
    %86 = vector.extract_strided_slice %59 {offsets = [4, 0], sizes = [1, 32], strides = [1, 1]} : vector<8x32xf32> to vector<1x32xf32>
    %cst_30 = arith.constant 0.0487705767 : f32
    %87 = vector.broadcast %cst_30 : f32 to vector<1x32xf32>
    %88 = arith.mulf %87, %86 : vector<1x32xf32>
    %89 = arith.addf %85, %88 : vector<1x32xf32>
    %cst_31 = arith.constant 0.951229453 : f32
    %90 = vector.broadcast %cst_31 : f32 to vector<1x32xf32>
    %91 = arith.mulf %90, %89 : vector<1x32xf32>
    %92 = vector.extract_strided_slice %59 {offsets = [5, 0], sizes = [1, 32], strides = [1, 1]} : vector<8x32xf32> to vector<1x32xf32>
    %cst_32 = arith.constant 0.0487705767 : f32
    %93 = vector.broadcast %cst_32 : f32 to vector<1x32xf32>
    %94 = arith.mulf %93, %92 : vector<1x32xf32>
    %95 = arith.addf %91, %94 : vector<1x32xf32>
    %cst_33 = arith.constant 0.951229453 : f32
    %96 = vector.broadcast %cst_33 : f32 to vector<1x32xf32>
    %97 = arith.mulf %96, %95 : vector<1x32xf32>
    %98 = vector.extract_strided_slice %59 {offsets = [6, 0], sizes = [1, 32], strides = [1, 1]} : vector<8x32xf32> to vector<1x32xf32>
    %cst_34 = arith.constant 0.0487705767 : f32
    %99 = vector.broadcast %cst_34 : f32 to vector<1x32xf32>
    %100 = arith.mulf %99, %98 : vector<1x32xf32>
    %101 = arith.addf %97, %100 : vector<1x32xf32>
    %cst_35 = arith.constant 0.951229453 : f32
    %102 = vector.broadcast %cst_35 : f32 to vector<1x32xf32>
    %103 = arith.mulf %102, %101 : vector<1x32xf32>
    %104 = vector.extract_strided_slice %59 {offsets = [7, 0], sizes = [1, 32], strides = [1, 1]} : vector<8x32xf32> to vector<1x32xf32>
    %cst_36 = arith.constant 0.0487705767 : f32
    %105 = vector.broadcast %cst_36 : f32 to vector<1x32xf32>
    %106 = arith.mulf %105, %104 : vector<1x32xf32>
    %107 = arith.addf %103, %106 : vector<1x32xf32>
    %108 = tpu.concatenate %65, %71, %77, %83, %89, %95, %101, %107 in 0 : vector<1x32xf32>, vector<1x32xf32>, vector<1x32xf32>, vector<1x32xf32>, vector<1x32xf32>, vector<1x32xf32>, vector<1x32xf32>, vector<1x32xf32> -> vector<8x32xf32>
    %c0_37 = arith.constant 0 : index
    %c0_38 = arith.constant 0 : index
    %c0_39 = arith.constant 0 : index
    %109 = vector.load %arg3[%c0_37, %c0_38, %c0_39] : memref<2x32x32xf32, #tpu.memory_space<vmem>>, vector<1x32x32xf32>
    %110 = vector.shape_cast %109 : vector<1x32x32xf32> to vector<32x32xf32>
    %c0_40 = arith.constant 0 : index
    %c0_41 = arith.constant 0 : index
    %c0_42 = arith.constant 0 : index
    %111 = vector.load %arg5[%c0_40, %c0_41, %c0_42] : memref<2x32x32xf32, #tpu.memory_space<vmem>>, vector<1x32x32xf32>
    %112 = vector.shape_cast %111 : vector<1x32x32xf32> to vector<32x32xf32>
    %cst_43 = arith.constant 0.000000e+00 : f32
    %113 = vector.broadcast %cst_43 : f32 to vector<32x32xf32>
    %114 = arith.select %2, %113, %112 : vector<32x32xi1>, vector<32x32xf32>
    %c0_44 = arith.constant 0 : index
    %c0_45 = arith.constant 0 : index
    %c0_46 = arith.constant 0 : index
    %115 = vector.load %arg4[%c0_44, %c0_45, %c0_46] : memref<2x32x32xf32, #tpu.memory_space<vmem>>, vector<1x32x32xf32>
    %116 = vector.shape_cast %115 : vector<1x32x32xf32> to vector<32x32xf32>
    %cst_47 = arith.constant 0.000000e+00 : f32
    %117 = vector.broadcast %cst_47 : f32 to vector<32x32xf32>
    %118 = arith.select %2, %116, %117 : vector<32x32xi1>, vector<32x32xf32>
    %cst_48 = arith.constant dense<0.000000e+00> : vector<32xf32>
    %119 = vector.multi_reduction <add>, %118, %cst_48 [0] : vector<32x32xf32> to vector<32xf32>
    %120 = vector.shape_cast %119 : vector<32xf32> to vector<1x32xf32>
    %121 = vector.extract_strided_slice %59 {offsets = [0, 0], sizes = [1, 32], strides = [1, 1]} : vector<8x32xf32> to vector<1x32xf32>
    %cst_49 = arith.constant 0.000000e+00 : f32
    %122 = vector.shape_cast %121 : vector<1x32xf32> to vector<1x32xf32>
    %123 = vector.broadcast %122 : vector<1x32xf32> to vector<32x32xf32>
    %124 = vector.broadcast %cst_49 : f32 to vector<32x32xf32>
    %125 = arith.select %2, %123, %124 : vector<32x32xi1>, vector<32x32xf32>
    %cst_50 = arith.constant dense<0.000000e+00> : vector<32xf32>
    %126 = vector.multi_reduction <add>, %125, %cst_50 [1] : vector<32x32xf32> to vector<32xf32>
    %127 = vector.shape_cast %126 : vector<32xf32> to vector<32x1xf32>
    %128 = vector.broadcast %127 : vector<32x1xf32> to vector<32x32xf32>
    %129 = arith.mulf %110, %128 : vector<32x32xf32>
    %cst_51 = arith.constant dense<0.000000e+00> : vector<32xf32>
    %130 = vector.multi_reduction <add>, %129, %cst_51 [0] : vector<32x32xf32> to vector<32xf32>
    %131 = vector.shape_cast %130 : vector<32xf32> to vector<1x32xf32>
    %132 = vector.extract_strided_slice %9 {offsets = [0, 0], sizes = [1, 32], strides = [1, 1]} : vector<8x32xf32> to vector<1x32xf32>
    %cst_52 = arith.constant 2.000000e-01 : f32
    %133 = vector.broadcast %cst_52 : f32 to vector<1x32xf32>
    %134 = arith.mulf %133, %131 : vector<1x32xf32>
    %135 = arith.addf %132, %134 : vector<1x32xf32>
    %cst_53 = arith.constant 0.904837429 : f32
    %136 = vector.broadcast %cst_53 : f32 to vector<1x32xf32>
    %137 = arith.mulf %136, %4 : vector<1x32xf32>
    %cst_54 = arith.constant 0.0951625854 : f32
    %138 = vector.broadcast %cst_54 : f32 to vector<1x32xf32>
    %139 = arith.mulf %138, %135 : vector<1x32xf32>
    %140 = arith.addf %137, %139 : vector<1x32xf32>
    %141 = math.tanh %140 : vector<1x32xf32>
    %142 = arith.mulf %120, %141 : vector<1x32xf32>
    %cst_55 = arith.constant 0.904837429 : f32
    %143 = vector.broadcast %cst_55 : f32 to vector<1x32xf32>
    %144 = arith.mulf %143, %4 : vector<1x32xf32>
    %cst_56 = arith.constant 0.0951625854 : f32
    %145 = vector.broadcast %cst_56 : f32 to vector<1x32xf32>
    %146 = arith.mulf %145, %142 : vector<1x32xf32>
    %147 = arith.addf %144, %146 : vector<1x32xf32>
    %148 = math.tanh %147 : vector<1x32xf32>
    %cst_57 = arith.constant 0.951229453 : f32
    %149 = vector.broadcast %cst_57 : f32 to vector<1x32xf32>
    %150 = arith.mulf %149, %4 : vector<1x32xf32>
    %cst_58 = arith.constant 0.0487705767 : f32
    %151 = vector.broadcast %cst_58 : f32 to vector<1x32xf32>
    %152 = arith.mulf %151, %141 : vector<1x32xf32>
    %153 = arith.addf %150, %152 : vector<1x32xf32>
    %cst_59 = arith.constant 0.951229453 : f32
    %154 = vector.broadcast %cst_59 : f32 to vector<1x32xf32>
    %155 = arith.mulf %154, %4 : vector<1x32xf32>
    %cst_60 = arith.constant 0.0487705767 : f32
    %156 = vector.broadcast %cst_60 : f32 to vector<1x32xf32>
    %157 = arith.mulf %156, %148 : vector<1x32xf32>
    %158 = arith.addf %155, %157 : vector<1x32xf32>
    %cst_61 = arith.constant 0.000000e+00 : f32
    %159 = vector.shape_cast %153 : vector<1x32xf32> to vector<1x32xf32>
    %160 = vector.broadcast %159 : vector<1x32xf32> to vector<32x32xf32>
    %161 = vector.broadcast %cst_61 : f32 to vector<32x32xf32>
    %162 = arith.select %2, %160, %161 : vector<32x32xi1>, vector<32x32xf32>
    %cst_62 = arith.constant dense<0.000000e+00> : vector<32xf32>
    %163 = vector.multi_reduction <add>, %162, %cst_62 [1] : vector<32x32xf32> to vector<32xf32>
    %164 = vector.shape_cast %163 : vector<32xf32> to vector<32x1xf32>
    %165 = vector.extract_strided_slice %108 {offsets = [0, 0], sizes = [1, 32], strides = [1, 1]} : vector<8x32xf32> to vector<1x32xf32>
    %166 = vector.broadcast %164 : vector<32x1xf32> to vector<32x32xf32>
    %167 = vector.broadcast %165 : vector<1x32xf32> to vector<32x32xf32>
    %168 = arith.mulf %166, %167 : vector<32x32xf32>
    %169 = arith.subf %168, %110 : vector<32x32xf32>
    %cst_63 = arith.constant 5.000000e-02 : f32
    %170 = vector.broadcast %cst_63 : f32 to vector<32x32xf32>
    %171 = arith.mulf %170, %169 : vector<32x32xf32>
    %172 = arith.addf %110, %171 : vector<32x32xf32>
    %173 = arith.mulf %153, %158 : vector<1x32xf32>
    %174 = arith.subf %173, %120 : vector<1x32xf32>
    %cst_64 = arith.constant 5.000000e-02 : f32
    %175 = vector.broadcast %cst_64 : f32 to vector<1x32xf32>
    %176 = arith.mulf %175, %174 : vector<1x32xf32>
    %177 = arith.addf %120, %176 : vector<1x32xf32>
    %178 = vector.broadcast %164 : vector<32x1xf32> to vector<32x32xf32>
    %179 = vector.broadcast %158 : vector<1x32xf32> to vector<32x32xf32>
    %180 = arith.mulf %178, %179 : vector<32x32xf32>
    %cst_65 = arith.constant 0.000000e+00 : f32
    %181 = vector.broadcast %cst_65 : f32 to vector<32x32xf32>
    %182 = arith.select %2, %181, %180 : vector<32x32xi1>, vector<32x32xf32>
    %183 = arith.subf %182, %114 : vector<32x32xf32>
    %cst_66 = arith.constant 5.000000e-02 : f32
    %184 = vector.broadcast %cst_66 : f32 to vector<32x32xf32>
    %185 = arith.mulf %184, %183 : vector<32x32xf32>
    %186 = arith.addf %114, %185 : vector<32x32xf32>
    %187 = vector.extract_strided_slice %59 {offsets = [1, 0], sizes = [1, 32], strides = [1, 1]} : vector<8x32xf32> to vector<1x32xf32>
    %cst_67 = arith.constant 0.000000e+00 : f32
    %188 = vector.shape_cast %187 : vector<1x32xf32> to vector<1x32xf32>
    %189 = vector.broadcast %188 : vector<1x32xf32> to vector<32x32xf32>
    %190 = vector.broadcast %cst_67 : f32 to vector<32x32xf32>
    %191 = arith.select %2, %189, %190 : vector<32x32xi1>, vector<32x32xf32>
    %cst_68 = arith.constant dense<0.000000e+00> : vector<32xf32>
    %192 = vector.multi_reduction <add>, %191, %cst_68 [1] : vector<32x32xf32> to vector<32xf32>
    %193 = vector.shape_cast %192 : vector<32xf32> to vector<32x1xf32>
    %194 = vector.broadcast %193 : vector<32x1xf32> to vector<32x32xf32>
    %195 = arith.mulf %172, %194 : vector<32x32xf32>
    %cst_69 = arith.constant dense<0.000000e+00> : vector<32xf32>
    %196 = vector.multi_reduction <add>, %195, %cst_69 [0] : vector<32x32xf32> to vector<32xf32>
    %197 = vector.shape_cast %196 : vector<32xf32> to vector<1x32xf32>
    %198 = vector.extract_strided_slice %9 {offsets = [1, 0], sizes = [1, 32], strides = [1, 1]} : vector<8x32xf32> to vector<1x32xf32>
    %cst_70 = arith.constant 2.000000e-01 : f32
    %199 = vector.broadcast %cst_70 : f32 to vector<1x32xf32>
    %200 = arith.mulf %199, %197 : vector<1x32xf32>
    %201 = arith.addf %198, %200 : vector<1x32xf32>
    %cst_71 = arith.constant 0.904837429 : f32
    %202 = vector.broadcast %cst_71 : f32 to vector<1x32xf32>
    %203 = arith.mulf %202, %140 : vector<1x32xf32>
    %cst_72 = arith.constant 0.0951625854 : f32
    %204 = vector.broadcast %cst_72 : f32 to vector<1x32xf32>
    %205 = arith.mulf %204, %201 : vector<1x32xf32>
    %206 = arith.addf %203, %205 : vector<1x32xf32>
    %207 = math.tanh %206 : vector<1x32xf32>
    %208 = arith.mulf %177, %207 : vector<1x32xf32>
    %cst_73 = arith.constant 0.904837429 : f32
    %209 = vector.broadcast %cst_73 : f32 to vector<1x32xf32>
    %210 = arith.mulf %209, %147 : vector<1x32xf32>
    %cst_74 = arith.constant 0.0951625854 : f32
    %211 = vector.broadcast %cst_74 : f32 to vector<1x32xf32>
    %212 = arith.mulf %211, %208 : vector<1x32xf32>
    %213 = arith.addf %210, %212 : vector<1x32xf32>
    %214 = math.tanh %213 : vector<1x32xf32>
    %cst_75 = arith.constant 0.951229453 : f32
    %215 = vector.broadcast %cst_75 : f32 to vector<1x32xf32>
    %216 = arith.mulf %215, %153 : vector<1x32xf32>
    %cst_76 = arith.constant 0.0487705767 : f32
    %217 = vector.broadcast %cst_76 : f32 to vector<1x32xf32>
    %218 = arith.mulf %217, %207 : vector<1x32xf32>
    %219 = arith.addf %216, %218 : vector<1x32xf32>
    %cst_77 = arith.constant 0.951229453 : f32
    %220 = vector.broadcast %cst_77 : f32 to vector<1x32xf32>
    %221 = arith.mulf %220, %158 : vector<1x32xf32>
    %cst_78 = arith.constant 0.0487705767 : f32
    %222 = vector.broadcast %cst_78 : f32 to vector<1x32xf32>
    %223 = arith.mulf %222, %214 : vector<1x32xf32>
    %224 = arith.addf %221, %223 : vector<1x32xf32>
    %cst_79 = arith.constant 0.000000e+00 : f32
    %225 = vector.shape_cast %219 : vector<1x32xf32> to vector<1x32xf32>
    %226 = vector.broadcast %225 : vector<1x32xf32> to vector<32x32xf32>
    %227 = vector.broadcast %cst_79 : f32 to vector<32x32xf32>
    %228 = arith.select %2, %226, %227 : vector<32x32xi1>, vector<32x32xf32>
    %cst_80 = arith.constant dense<0.000000e+00> : vector<32xf32>
    %229 = vector.multi_reduction <add>, %228, %cst_80 [1] : vector<32x32xf32> to vector<32xf32>
    %230 = vector.shape_cast %229 : vector<32xf32> to vector<32x1xf32>
    %231 = vector.extract_strided_slice %108 {offsets = [1, 0], sizes = [1, 32], strides = [1, 1]} : vector<8x32xf32> to vector<1x32xf32>
    %232 = vector.broadcast %230 : vector<32x1xf32> to vector<32x32xf32>
    %233 = vector.broadcast %231 : vector<1x32xf32> to vector<32x32xf32>
    %234 = arith.mulf %232, %233 : vector<32x32xf32>
    %235 = arith.subf %234, %172 : vector<32x32xf32>
    %cst_81 = arith.constant 5.000000e-02 : f32
    %236 = vector.broadcast %cst_81 : f32 to vector<32x32xf32>
    %237 = arith.mulf %236, %235 : vector<32x32xf32>
    %238 = arith.addf %172, %237 : vector<32x32xf32>
    %239 = arith.mulf %219, %224 : vector<1x32xf32>
    %240 = arith.subf %239, %177 : vector<1x32xf32>
    %cst_82 = arith.constant 5.000000e-02 : f32
    %241 = vector.broadcast %cst_82 : f32 to vector<1x32xf32>
    %242 = arith.mulf %241, %240 : vector<1x32xf32>
    %243 = arith.addf %177, %242 : vector<1x32xf32>
    %244 = vector.broadcast %230 : vector<32x1xf32> to vector<32x32xf32>
    %245 = vector.broadcast %224 : vector<1x32xf32> to vector<32x32xf32>
    %246 = arith.mulf %244, %245 : vector<32x32xf32>
    %cst_83 = arith.constant 0.000000e+00 : f32
    %247 = vector.broadcast %cst_83 : f32 to vector<32x32xf32>
    %248 = arith.select %2, %247, %246 : vector<32x32xi1>, vector<32x32xf32>
    %249 = arith.subf %248, %186 : vector<32x32xf32>
    %cst_84 = arith.constant 5.000000e-02 : f32
    %250 = vector.broadcast %cst_84 : f32 to vector<32x32xf32>
    %251 = arith.mulf %250, %249 : vector<32x32xf32>
    %252 = arith.addf %186, %251 : vector<32x32xf32>
    %253 = vector.extract_strided_slice %59 {offsets = [2, 0], sizes = [1, 32], strides = [1, 1]} : vector<8x32xf32> to vector<1x32xf32>
    %cst_85 = arith.constant 0.000000e+00 : f32
    %254 = vector.shape_cast %253 : vector<1x32xf32> to vector<1x32xf32>
    %255 = vector.broadcast %254 : vector<1x32xf32> to vector<32x32xf32>
    %256 = vector.broadcast %cst_85 : f32 to vector<32x32xf32>
    %257 = arith.select %2, %255, %256 : vector<32x32xi1>, vector<32x32xf32>
    %cst_86 = arith.constant dense<0.000000e+00> : vector<32xf32>
    %258 = vector.multi_reduction <add>, %257, %cst_86 [1] : vector<32x32xf32> to vector<32xf32>
    %259 = vector.shape_cast %258 : vector<32xf32> to vector<32x1xf32>
    %260 = vector.broadcast %259 : vector<32x1xf32> to vector<32x32xf32>
    %261 = arith.mulf %238, %260 : vector<32x32xf32>
    %cst_87 = arith.constant dense<0.000000e+00> : vector<32xf32>
    %262 = vector.multi_reduction <add>, %261, %cst_87 [0] : vector<32x32xf32> to vector<32xf32>
    %263 = vector.shape_cast %262 : vector<32xf32> to vector<1x32xf32>
    %264 = vector.extract_strided_slice %9 {offsets = [2, 0], sizes = [1, 32], strides = [1, 1]} : vector<8x32xf32> to vector<1x32xf32>
    %cst_88 = arith.constant 2.000000e-01 : f32
    %265 = vector.broadcast %cst_88 : f32 to vector<1x32xf32>
    %266 = arith.mulf %265, %263 : vector<1x32xf32>
    %267 = arith.addf %264, %266 : vector<1x32xf32>
    %cst_89 = arith.constant 0.904837429 : f32
    %268 = vector.broadcast %cst_89 : f32 to vector<1x32xf32>
    %269 = arith.mulf %268, %206 : vector<1x32xf32>
    %cst_90 = arith.constant 0.0951625854 : f32
    %270 = vector.broadcast %cst_90 : f32 to vector<1x32xf32>
    %271 = arith.mulf %270, %267 : vector<1x32xf32>
    %272 = arith.addf %269, %271 : vector<1x32xf32>
    %273 = math.tanh %272 : vector<1x32xf32>
    %274 = arith.mulf %243, %273 : vector<1x32xf32>
    %cst_91 = arith.constant 0.904837429 : f32
    %275 = vector.broadcast %cst_91 : f32 to vector<1x32xf32>
    %276 = arith.mulf %275, %213 : vector<1x32xf32>
    %cst_92 = arith.constant 0.0951625854 : f32
    %277 = vector.broadcast %cst_92 : f32 to vector<1x32xf32>
    %278 = arith.mulf %277, %274 : vector<1x32xf32>
    %279 = arith.addf %276, %278 : vector<1x32xf32>
    %280 = math.tanh %279 : vector<1x32xf32>
    %cst_93 = arith.constant 0.951229453 : f32
    %281 = vector.broadcast %cst_93 : f32 to vector<1x32xf32>
    %282 = arith.mulf %281, %219 : vector<1x32xf32>
    %cst_94 = arith.constant 0.0487705767 : f32
    %283 = vector.broadcast %cst_94 : f32 to vector<1x32xf32>
    %284 = arith.mulf %283, %273 : vector<1x32xf32>
    %285 = arith.addf %282, %284 : vector<1x32xf32>
    %cst_95 = arith.constant 0.951229453 : f32
    %286 = vector.broadcast %cst_95 : f32 to vector<1x32xf32>
    %287 = arith.mulf %286, %224 : vector<1x32xf32>
    %cst_96 = arith.constant 0.0487705767 : f32
    %288 = vector.broadcast %cst_96 : f32 to vector<1x32xf32>
    %289 = arith.mulf %288, %280 : vector<1x32xf32>
    %290 = arith.addf %287, %289 : vector<1x32xf32>
    %cst_97 = arith.constant 0.000000e+00 : f32
    %291 = vector.shape_cast %285 : vector<1x32xf32> to vector<1x32xf32>
    %292 = vector.broadcast %291 : vector<1x32xf32> to vector<32x32xf32>
    %293 = vector.broadcast %cst_97 : f32 to vector<32x32xf32>
    %294 = arith.select %2, %292, %293 : vector<32x32xi1>, vector<32x32xf32>
    %cst_98 = arith.constant dense<0.000000e+00> : vector<32xf32>
    %295 = vector.multi_reduction <add>, %294, %cst_98 [1] : vector<32x32xf32> to vector<32xf32>
    %296 = vector.shape_cast %295 : vector<32xf32> to vector<32x1xf32>
    %297 = vector.extract_strided_slice %108 {offsets = [2, 0], sizes = [1, 32], strides = [1, 1]} : vector<8x32xf32> to vector<1x32xf32>
    %298 = vector.broadcast %296 : vector<32x1xf32> to vector<32x32xf32>
    %299 = vector.broadcast %297 : vector<1x32xf32> to vector<32x32xf32>
    %300 = arith.mulf %298, %299 : vector<32x32xf32>
    %301 = arith.subf %300, %238 : vector<32x32xf32>
    %cst_99 = arith.constant 5.000000e-02 : f32
    %302 = vector.broadcast %cst_99 : f32 to vector<32x32xf32>
    %303 = arith.mulf %302, %301 : vector<32x32xf32>
    %304 = arith.addf %238, %303 : vector<32x32xf32>
    %305 = arith.mulf %285, %290 : vector<1x32xf32>
    %306 = arith.subf %305, %243 : vector<1x32xf32>
    %cst_100 = arith.constant 5.000000e-02 : f32
    %307 = vector.broadcast %cst_100 : f32 to vector<1x32xf32>
    %308 = arith.mulf %307, %306 : vector<1x32xf32>
    %309 = arith.addf %243, %308 : vector<1x32xf32>
    %310 = vector.broadcast %296 : vector<32x1xf32> to vector<32x32xf32>
    %311 = vector.broadcast %290 : vector<1x32xf32> to vector<32x32xf32>
    %312 = arith.mulf %310, %311 : vector<32x32xf32>
    %cst_101 = arith.constant 0.000000e+00 : f32
    %313 = vector.broadcast %cst_101 : f32 to vector<32x32xf32>
    %314 = arith.select %2, %313, %312 : vector<32x32xi1>, vector<32x32xf32>
    %315 = arith.subf %314, %252 : vector<32x32xf32>
    %cst_102 = arith.constant 5.000000e-02 : f32
    %316 = vector.broadcast %cst_102 : f32 to vector<32x32xf32>
    %317 = arith.mulf %316, %315 : vector<32x32xf32>
    %318 = arith.addf %252, %317 : vector<32x32xf32>
    %319 = vector.extract_strided_slice %59 {offsets = [3, 0], sizes = [1, 32], strides = [1, 1]} : vector<8x32xf32> to vector<1x32xf32>
    %cst_103 = arith.constant 0.000000e+00 : f32
    %320 = vector.shape_cast %319 : vector<1x32xf32> to vector<1x32xf32>
    %321 = vector.broadcast %320 : vector<1x32xf32> to vector<32x32xf32>
    %322 = vector.broadcast %cst_103 : f32 to vector<32x32xf32>
    %323 = arith.select %2, %321, %322 : vector<32x32xi1>, vector<32x32xf32>
    %cst_104 = arith.constant dense<0.000000e+00> : vector<32xf32>
    %324 = vector.multi_reduction <add>, %323, %cst_104 [1] : vector<32x32xf32> to vector<32xf32>
    %325 = vector.shape_cast %324 : vector<32xf32> to vector<32x1xf32>
    %326 = vector.broadcast %325 : vector<32x1xf32> to vector<32x32xf32>
    %327 = arith.mulf %304, %326 : vector<32x32xf32>
    %cst_105 = arith.constant dense<0.000000e+00> : vector<32xf32>
    %328 = vector.multi_reduction <add>, %327, %cst_105 [0] : vector<32x32xf32> to vector<32xf32>
    %329 = vector.shape_cast %328 : vector<32xf32> to vector<1x32xf32>
    %cst_106 = arith.constant 0.000000e+00 : f32
    %330 = vector.shape_cast %148 : vector<1x32xf32> to vector<1x32xf32>
    %331 = vector.broadcast %330 : vector<1x32xf32> to vector<32x32xf32>
    %332 = vector.broadcast %cst_106 : f32 to vector<32x32xf32>
    %333 = arith.select %2, %331, %332 : vector<32x32xi1>, vector<32x32xf32>
    %cst_107 = arith.constant dense<0.000000e+00> : vector<32xf32>
    %334 = vector.multi_reduction <add>, %333, %cst_107 [1] : vector<32x32xf32> to vector<32xf32>
    %335 = vector.shape_cast %334 : vector<32xf32> to vector<32x1xf32>
    %336 = vector.broadcast %335 : vector<32x1xf32> to vector<32x32xf32>
    %337 = arith.mulf %318, %336 : vector<32x32xf32>
    %cst_108 = arith.constant dense<0.000000e+00> : vector<32xf32>
    %338 = vector.multi_reduction <add>, %337, %cst_108 [0] : vector<32x32xf32> to vector<32xf32>
    %339 = vector.shape_cast %338 : vector<32xf32> to vector<1x32xf32>
    %340 = vector.extract_strided_slice %9 {offsets = [3, 0], sizes = [1, 32], strides = [1, 1]} : vector<8x32xf32> to vector<1x32xf32>
    %cst_109 = arith.constant 2.000000e-01 : f32
    %341 = vector.broadcast %cst_109 : f32 to vector<1x32xf32>
    %342 = arith.mulf %341, %329 : vector<1x32xf32>
    %343 = arith.addf %340, %342 : vector<1x32xf32>
    %344 = arith.subf %343, %339 : vector<1x32xf32>
    %cst_110 = arith.constant 0.904837429 : f32
    %345 = vector.broadcast %cst_110 : f32 to vector<1x32xf32>
    %346 = arith.mulf %345, %272 : vector<1x32xf32>
    %cst_111 = arith.constant 0.0951625854 : f32
    %347 = vector.broadcast %cst_111 : f32 to vector<1x32xf32>
    %348 = arith.mulf %347, %344 : vector<1x32xf32>
    %349 = arith.addf %346, %348 : vector<1x32xf32>
    %350 = math.tanh %349 : vector<1x32xf32>
    %351 = arith.mulf %309, %350 : vector<1x32xf32>
    %cst_112 = arith.constant 0.904837429 : f32
    %352 = vector.broadcast %cst_112 : f32 to vector<1x32xf32>
    %353 = arith.mulf %352, %279 : vector<1x32xf32>
    %cst_113 = arith.constant 0.0951625854 : f32
    %354 = vector.broadcast %cst_113 : f32 to vector<1x32xf32>
    %355 = arith.mulf %354, %351 : vector<1x32xf32>
    %356 = arith.addf %353, %355 : vector<1x32xf32>
    %357 = math.tanh %356 : vector<1x32xf32>
    %cst_114 = arith.constant 0.951229453 : f32
    %358 = vector.broadcast %cst_114 : f32 to vector<1x32xf32>
    %359 = arith.mulf %358, %285 : vector<1x32xf32>
    %cst_115 = arith.constant 0.0487705767 : f32
    %360 = vector.broadcast %cst_115 : f32 to vector<1x32xf32>
    %361 = arith.mulf %360, %350 : vector<1x32xf32>
    %362 = arith.addf %359, %361 : vector<1x32xf32>
    %cst_116 = arith.constant 0.951229453 : f32
    %363 = vector.broadcast %cst_116 : f32 to vector<1x32xf32>
    %364 = arith.mulf %363, %290 : vector<1x32xf32>
    %cst_117 = arith.constant 0.0487705767 : f32
    %365 = vector.broadcast %cst_117 : f32 to vector<1x32xf32>
    %366 = arith.mulf %365, %357 : vector<1x32xf32>
    %367 = arith.addf %364, %366 : vector<1x32xf32>
    %cst_118 = arith.constant 0.000000e+00 : f32
    %368 = vector.shape_cast %362 : vector<1x32xf32> to vector<1x32xf32>
    %369 = vector.broadcast %368 : vector<1x32xf32> to vector<32x32xf32>
    %370 = vector.broadcast %cst_118 : f32 to vector<32x32xf32>
    %371 = arith.select %2, %369, %370 : vector<32x32xi1>, vector<32x32xf32>
    %cst_119 = arith.constant dense<0.000000e+00> : vector<32xf32>
    %372 = vector.multi_reduction <add>, %371, %cst_119 [1] : vector<32x32xf32> to vector<32xf32>
    %373 = vector.shape_cast %372 : vector<32xf32> to vector<32x1xf32>
    %374 = vector.extract_strided_slice %108 {offsets = [3, 0], sizes = [1, 32], strides = [1, 1]} : vector<8x32xf32> to vector<1x32xf32>
    %375 = vector.broadcast %373 : vector<32x1xf32> to vector<32x32xf32>
    %376 = vector.broadcast %374 : vector<1x32xf32> to vector<32x32xf32>
    %377 = arith.mulf %375, %376 : vector<32x32xf32>
    %378 = arith.subf %377, %304 : vector<32x32xf32>
    %cst_120 = arith.constant 5.000000e-02 : f32
    %379 = vector.broadcast %cst_120 : f32 to vector<32x32xf32>
    %380 = arith.mulf %379, %378 : vector<32x32xf32>
    %381 = arith.addf %304, %380 : vector<32x32xf32>
    %382 = arith.mulf %362, %367 : vector<1x32xf32>
    %383 = arith.subf %382, %309 : vector<1x32xf32>
    %cst_121 = arith.constant 5.000000e-02 : f32
    %384 = vector.broadcast %cst_121 : f32 to vector<1x32xf32>
    %385 = arith.mulf %384, %383 : vector<1x32xf32>
    %386 = arith.addf %309, %385 : vector<1x32xf32>
    %387 = vector.broadcast %373 : vector<32x1xf32> to vector<32x32xf32>
    %388 = vector.broadcast %367 : vector<1x32xf32> to vector<32x32xf32>
    %389 = arith.mulf %387, %388 : vector<32x32xf32>
    %cst_122 = arith.constant 0.000000e+00 : f32
    %390 = vector.broadcast %cst_122 : f32 to vector<32x32xf32>
    %391 = arith.select %2, %390, %389 : vector<32x32xi1>, vector<32x32xf32>
    %392 = arith.subf %391, %318 : vector<32x32xf32>
    %cst_123 = arith.constant 5.000000e-02 : f32
    %393 = vector.broadcast %cst_123 : f32 to vector<32x32xf32>
    %394 = arith.mulf %393, %392 : vector<32x32xf32>
    %395 = arith.addf %318, %394 : vector<32x32xf32>
    %396 = vector.extract_strided_slice %59 {offsets = [4, 0], sizes = [1, 32], strides = [1, 1]} : vector<8x32xf32> to vector<1x32xf32>
    %cst_124 = arith.constant 0.000000e+00 : f32
    %397 = vector.shape_cast %396 : vector<1x32xf32> to vector<1x32xf32>
    %398 = vector.broadcast %397 : vector<1x32xf32> to vector<32x32xf32>
    %399 = vector.broadcast %cst_124 : f32 to vector<32x32xf32>
    %400 = arith.select %2, %398, %399 : vector<32x32xi1>, vector<32x32xf32>
    %cst_125 = arith.constant dense<0.000000e+00> : vector<32xf32>
    %401 = vector.multi_reduction <add>, %400, %cst_125 [1] : vector<32x32xf32> to vector<32xf32>
    %402 = vector.shape_cast %401 : vector<32xf32> to vector<32x1xf32>
    %403 = vector.broadcast %402 : vector<32x1xf32> to vector<32x32xf32>
    %404 = arith.mulf %381, %403 : vector<32x32xf32>
    %cst_126 = arith.constant dense<0.000000e+00> : vector<32xf32>
    %405 = vector.multi_reduction <add>, %404, %cst_126 [0] : vector<32x32xf32> to vector<32xf32>
    %406 = vector.shape_cast %405 : vector<32xf32> to vector<1x32xf32>
    %cst_127 = arith.constant 0.000000e+00 : f32
    %407 = vector.shape_cast %214 : vector<1x32xf32> to vector<1x32xf32>
    %408 = vector.broadcast %407 : vector<1x32xf32> to vector<32x32xf32>
    %409 = vector.broadcast %cst_127 : f32 to vector<32x32xf32>
    %410 = arith.select %2, %408, %409 : vector<32x32xi1>, vector<32x32xf32>
    %cst_128 = arith.constant dense<0.000000e+00> : vector<32xf32>
    %411 = vector.multi_reduction <add>, %410, %cst_128 [1] : vector<32x32xf32> to vector<32xf32>
    %412 = vector.shape_cast %411 : vector<32xf32> to vector<32x1xf32>
    %413 = vector.broadcast %412 : vector<32x1xf32> to vector<32x32xf32>
    %414 = arith.mulf %395, %413 : vector<32x32xf32>
    %cst_129 = arith.constant dense<0.000000e+00> : vector<32xf32>
    %415 = vector.multi_reduction <add>, %414, %cst_129 [0] : vector<32x32xf32> to vector<32xf32>
    %416 = vector.shape_cast %415 : vector<32xf32> to vector<1x32xf32>
    %417 = vector.extract_strided_slice %9 {offsets = [4, 0], sizes = [1, 32], strides = [1, 1]} : vector<8x32xf32> to vector<1x32xf32>
    %cst_130 = arith.constant 2.000000e-01 : f32
    %418 = vector.broadcast %cst_130 : f32 to vector<1x32xf32>
    %419 = arith.mulf %418, %406 : vector<1x32xf32>
    %420 = arith.addf %417, %419 : vector<1x32xf32>
    %421 = arith.subf %420, %416 : vector<1x32xf32>
    %cst_131 = arith.constant 0.904837429 : f32
    %422 = vector.broadcast %cst_131 : f32 to vector<1x32xf32>
    %423 = arith.mulf %422, %349 : vector<1x32xf32>
    %cst_132 = arith.constant 0.0951625854 : f32
    %424 = vector.broadcast %cst_132 : f32 to vector<1x32xf32>
    %425 = arith.mulf %424, %421 : vector<1x32xf32>
    %426 = arith.addf %423, %425 : vector<1x32xf32>
    %427 = math.tanh %426 : vector<1x32xf32>
    %428 = arith.mulf %386, %427 : vector<1x32xf32>
    %cst_133 = arith.constant 0.904837429 : f32
    %429 = vector.broadcast %cst_133 : f32 to vector<1x32xf32>
    %430 = arith.mulf %429, %356 : vector<1x32xf32>
    %cst_134 = arith.constant 0.0951625854 : f32
    %431 = vector.broadcast %cst_134 : f32 to vector<1x32xf32>
    %432 = arith.mulf %431, %428 : vector<1x32xf32>
    %433 = arith.addf %430, %432 : vector<1x32xf32>
    %434 = math.tanh %433 : vector<1x32xf32>
    %cst_135 = arith.constant 0.951229453 : f32
    %435 = vector.broadcast %cst_135 : f32 to vector<1x32xf32>
    %436 = arith.mulf %435, %362 : vector<1x32xf32>
    %cst_136 = arith.constant 0.0487705767 : f32
    %437 = vector.broadcast %cst_136 : f32 to vector<1x32xf32>
    %438 = arith.mulf %437, %427 : vector<1x32xf32>
    %439 = arith.addf %436, %438 : vector<1x32xf32>
    %cst_137 = arith.constant 0.951229453 : f32
    %440 = vector.broadcast %cst_137 : f32 to vector<1x32xf32>
    %441 = arith.mulf %440, %367 : vector<1x32xf32>
    %cst_138 = arith.constant 0.0487705767 : f32
    %442 = vector.broadcast %cst_138 : f32 to vector<1x32xf32>
    %443 = arith.mulf %442, %434 : vector<1x32xf32>
    %444 = arith.addf %441, %443 : vector<1x32xf32>
    %cst_139 = arith.constant 0.000000e+00 : f32
    %445 = vector.shape_cast %439 : vector<1x32xf32> to vector<1x32xf32>
    %446 = vector.broadcast %445 : vector<1x32xf32> to vector<32x32xf32>
    %447 = vector.broadcast %cst_139 : f32 to vector<32x32xf32>
    %448 = arith.select %2, %446, %447 : vector<32x32xi1>, vector<32x32xf32>
    %cst_140 = arith.constant dense<0.000000e+00> : vector<32xf32>
    %449 = vector.multi_reduction <add>, %448, %cst_140 [1] : vector<32x32xf32> to vector<32xf32>
    %450 = vector.shape_cast %449 : vector<32xf32> to vector<32x1xf32>
    %451 = vector.extract_strided_slice %108 {offsets = [4, 0], sizes = [1, 32], strides = [1, 1]} : vector<8x32xf32> to vector<1x32xf32>
    %452 = vector.broadcast %450 : vector<32x1xf32> to vector<32x32xf32>
    %453 = vector.broadcast %451 : vector<1x32xf32> to vector<32x32xf32>
    %454 = arith.mulf %452, %453 : vector<32x32xf32>
    %455 = arith.subf %454, %381 : vector<32x32xf32>
    %cst_141 = arith.constant 5.000000e-02 : f32
    %456 = vector.broadcast %cst_141 : f32 to vector<32x32xf32>
    %457 = arith.mulf %456, %455 : vector<32x32xf32>
    %458 = arith.addf %381, %457 : vector<32x32xf32>
    %459 = arith.mulf %439, %444 : vector<1x32xf32>
    %460 = arith.subf %459, %386 : vector<1x32xf32>
    %cst_142 = arith.constant 5.000000e-02 : f32
    %461 = vector.broadcast %cst_142 : f32 to vector<1x32xf32>
    %462 = arith.mulf %461, %460 : vector<1x32xf32>
    %463 = arith.addf %386, %462 : vector<1x32xf32>
    %464 = vector.broadcast %450 : vector<32x1xf32> to vector<32x32xf32>
    %465 = vector.broadcast %444 : vector<1x32xf32> to vector<32x32xf32>
    %466 = arith.mulf %464, %465 : vector<32x32xf32>
    %cst_143 = arith.constant 0.000000e+00 : f32
    %467 = vector.broadcast %cst_143 : f32 to vector<32x32xf32>
    %468 = arith.select %2, %467, %466 : vector<32x32xi1>, vector<32x32xf32>
    %469 = arith.subf %468, %395 : vector<32x32xf32>
    %cst_144 = arith.constant 5.000000e-02 : f32
    %470 = vector.broadcast %cst_144 : f32 to vector<32x32xf32>
    %471 = arith.mulf %470, %469 : vector<32x32xf32>
    %472 = arith.addf %395, %471 : vector<32x32xf32>
    %473 = vector.extract_strided_slice %59 {offsets = [5, 0], sizes = [1, 32], strides = [1, 1]} : vector<8x32xf32> to vector<1x32xf32>
    %cst_145 = arith.constant 0.000000e+00 : f32
    %474 = vector.shape_cast %473 : vector<1x32xf32> to vector<1x32xf32>
    %475 = vector.broadcast %474 : vector<1x32xf32> to vector<32x32xf32>
    %476 = vector.broadcast %cst_145 : f32 to vector<32x32xf32>
    %477 = arith.select %2, %475, %476 : vector<32x32xi1>, vector<32x32xf32>
    %cst_146 = arith.constant dense<0.000000e+00> : vector<32xf32>
    %478 = vector.multi_reduction <add>, %477, %cst_146 [1] : vector<32x32xf32> to vector<32xf32>
    %479 = vector.shape_cast %478 : vector<32xf32> to vector<32x1xf32>
    %480 = vector.broadcast %479 : vector<32x1xf32> to vector<32x32xf32>
    %481 = arith.mulf %458, %480 : vector<32x32xf32>
    %cst_147 = arith.constant dense<0.000000e+00> : vector<32xf32>
    %482 = vector.multi_reduction <add>, %481, %cst_147 [0] : vector<32x32xf32> to vector<32xf32>
    %483 = vector.shape_cast %482 : vector<32xf32> to vector<1x32xf32>
    %cst_148 = arith.constant 0.000000e+00 : f32
    %484 = vector.shape_cast %280 : vector<1x32xf32> to vector<1x32xf32>
    %485 = vector.broadcast %484 : vector<1x32xf32> to vector<32x32xf32>
    %486 = vector.broadcast %cst_148 : f32 to vector<32x32xf32>
    %487 = arith.select %2, %485, %486 : vector<32x32xi1>, vector<32x32xf32>
    %cst_149 = arith.constant dense<0.000000e+00> : vector<32xf32>
    %488 = vector.multi_reduction <add>, %487, %cst_149 [1] : vector<32x32xf32> to vector<32xf32>
    %489 = vector.shape_cast %488 : vector<32xf32> to vector<32x1xf32>
    %490 = vector.broadcast %489 : vector<32x1xf32> to vector<32x32xf32>
    %491 = arith.mulf %472, %490 : vector<32x32xf32>
    %cst_150 = arith.constant dense<0.000000e+00> : vector<32xf32>
    %492 = vector.multi_reduction <add>, %491, %cst_150 [0] : vector<32x32xf32> to vector<32xf32>
    %493 = vector.shape_cast %492 : vector<32xf32> to vector<1x32xf32>
    %494 = vector.extract_strided_slice %9 {offsets = [5, 0], sizes = [1, 32], strides = [1, 1]} : vector<8x32xf32> to vector<1x32xf32>
    %cst_151 = arith.constant 2.000000e-01 : f32
    %495 = vector.broadcast %cst_151 : f32 to vector<1x32xf32>
    %496 = arith.mulf %495, %483 : vector<1x32xf32>
    %497 = arith.addf %494, %496 : vector<1x32xf32>
    %498 = arith.subf %497, %493 : vector<1x32xf32>
    %cst_152 = arith.constant 0.904837429 : f32
    %499 = vector.broadcast %cst_152 : f32 to vector<1x32xf32>
    %500 = arith.mulf %499, %426 : vector<1x32xf32>
    %cst_153 = arith.constant 0.0951625854 : f32
    %501 = vector.broadcast %cst_153 : f32 to vector<1x32xf32>
    %502 = arith.mulf %501, %498 : vector<1x32xf32>
    %503 = arith.addf %500, %502 : vector<1x32xf32>
    %504 = math.tanh %503 : vector<1x32xf32>
    %505 = arith.mulf %463, %504 : vector<1x32xf32>
    %cst_154 = arith.constant 0.904837429 : f32
    %506 = vector.broadcast %cst_154 : f32 to vector<1x32xf32>
    %507 = arith.mulf %506, %433 : vector<1x32xf32>
    %cst_155 = arith.constant 0.0951625854 : f32
    %508 = vector.broadcast %cst_155 : f32 to vector<1x32xf32>
    %509 = arith.mulf %508, %505 : vector<1x32xf32>
    %510 = arith.addf %507, %509 : vector<1x32xf32>
    %511 = math.tanh %510 : vector<1x32xf32>
    %cst_156 = arith.constant 0.951229453 : f32
    %512 = vector.broadcast %cst_156 : f32 to vector<1x32xf32>
    %513 = arith.mulf %512, %439 : vector<1x32xf32>
    %cst_157 = arith.constant 0.0487705767 : f32
    %514 = vector.broadcast %cst_157 : f32 to vector<1x32xf32>
    %515 = arith.mulf %514, %504 : vector<1x32xf32>
    %516 = arith.addf %513, %515 : vector<1x32xf32>
    %cst_158 = arith.constant 0.951229453 : f32
    %517 = vector.broadcast %cst_158 : f32 to vector<1x32xf32>
    %518 = arith.mulf %517, %444 : vector<1x32xf32>
    %cst_159 = arith.constant 0.0487705767 : f32
    %519 = vector.broadcast %cst_159 : f32 to vector<1x32xf32>
    %520 = arith.mulf %519, %511 : vector<1x32xf32>
    %521 = arith.addf %518, %520 : vector<1x32xf32>
    %cst_160 = arith.constant 0.000000e+00 : f32
    %522 = vector.shape_cast %516 : vector<1x32xf32> to vector<1x32xf32>
    %523 = vector.broadcast %522 : vector<1x32xf32> to vector<32x32xf32>
    %524 = vector.broadcast %cst_160 : f32 to vector<32x32xf32>
    %525 = arith.select %2, %523, %524 : vector<32x32xi1>, vector<32x32xf32>
    %cst_161 = arith.constant dense<0.000000e+00> : vector<32xf32>
    %526 = vector.multi_reduction <add>, %525, %cst_161 [1] : vector<32x32xf32> to vector<32xf32>
    %527 = vector.shape_cast %526 : vector<32xf32> to vector<32x1xf32>
    %528 = vector.extract_strided_slice %108 {offsets = [5, 0], sizes = [1, 32], strides = [1, 1]} : vector<8x32xf32> to vector<1x32xf32>
    %529 = vector.broadcast %527 : vector<32x1xf32> to vector<32x32xf32>
    %530 = vector.broadcast %528 : vector<1x32xf32> to vector<32x32xf32>
    %531 = arith.mulf %529, %530 : vector<32x32xf32>
    %532 = arith.subf %531, %458 : vector<32x32xf32>
    %cst_162 = arith.constant 5.000000e-02 : f32
    %533 = vector.broadcast %cst_162 : f32 to vector<32x32xf32>
    %534 = arith.mulf %533, %532 : vector<32x32xf32>
    %535 = arith.addf %458, %534 : vector<32x32xf32>
    %536 = arith.mulf %516, %521 : vector<1x32xf32>
    %537 = arith.subf %536, %463 : vector<1x32xf32>
    %cst_163 = arith.constant 5.000000e-02 : f32
    %538 = vector.broadcast %cst_163 : f32 to vector<1x32xf32>
    %539 = arith.mulf %538, %537 : vector<1x32xf32>
    %540 = arith.addf %463, %539 : vector<1x32xf32>
    %541 = vector.broadcast %527 : vector<32x1xf32> to vector<32x32xf32>
    %542 = vector.broadcast %521 : vector<1x32xf32> to vector<32x32xf32>
    %543 = arith.mulf %541, %542 : vector<32x32xf32>
    %cst_164 = arith.constant 0.000000e+00 : f32
    %544 = vector.broadcast %cst_164 : f32 to vector<32x32xf32>
    %545 = arith.select %2, %544, %543 : vector<32x32xi1>, vector<32x32xf32>
    %546 = arith.subf %545, %472 : vector<32x32xf32>
    %cst_165 = arith.constant 5.000000e-02 : f32
    %547 = vector.broadcast %cst_165 : f32 to vector<32x32xf32>
    %548 = arith.mulf %547, %546 : vector<32x32xf32>
    %549 = arith.addf %472, %548 : vector<32x32xf32>
    %550 = vector.extract_strided_slice %59 {offsets = [6, 0], sizes = [1, 32], strides = [1, 1]} : vector<8x32xf32> to vector<1x32xf32>
    %cst_166 = arith.constant 0.000000e+00 : f32
    %551 = vector.shape_cast %550 : vector<1x32xf32> to vector<1x32xf32>
    %552 = vector.broadcast %551 : vector<1x32xf32> to vector<32x32xf32>
    %553 = vector.broadcast %cst_166 : f32 to vector<32x32xf32>
    %554 = arith.select %2, %552, %553 : vector<32x32xi1>, vector<32x32xf32>
    %cst_167 = arith.constant dense<0.000000e+00> : vector<32xf32>
    %555 = vector.multi_reduction <add>, %554, %cst_167 [1] : vector<32x32xf32> to vector<32xf32>
    %556 = vector.shape_cast %555 : vector<32xf32> to vector<32x1xf32>
    %557 = vector.broadcast %556 : vector<32x1xf32> to vector<32x32xf32>
    %558 = arith.mulf %535, %557 : vector<32x32xf32>
    %cst_168 = arith.constant dense<0.000000e+00> : vector<32xf32>
    %559 = vector.multi_reduction <add>, %558, %cst_168 [0] : vector<32x32xf32> to vector<32xf32>
    %560 = vector.shape_cast %559 : vector<32xf32> to vector<1x32xf32>
    %cst_169 = arith.constant 0.000000e+00 : f32
    %561 = vector.shape_cast %357 : vector<1x32xf32> to vector<1x32xf32>
    %562 = vector.broadcast %561 : vector<1x32xf32> to vector<32x32xf32>
    %563 = vector.broadcast %cst_169 : f32 to vector<32x32xf32>
    %564 = arith.select %2, %562, %563 : vector<32x32xi1>, vector<32x32xf32>
    %cst_170 = arith.constant dense<0.000000e+00> : vector<32xf32>
    %565 = vector.multi_reduction <add>, %564, %cst_170 [1] : vector<32x32xf32> to vector<32xf32>
    %566 = vector.shape_cast %565 : vector<32xf32> to vector<32x1xf32>
    %567 = vector.broadcast %566 : vector<32x1xf32> to vector<32x32xf32>
    %568 = arith.mulf %549, %567 : vector<32x32xf32>
    %cst_171 = arith.constant dense<0.000000e+00> : vector<32xf32>
    %569 = vector.multi_reduction <add>, %568, %cst_171 [0] : vector<32x32xf32> to vector<32xf32>
    %570 = vector.shape_cast %569 : vector<32xf32> to vector<1x32xf32>
    %571 = vector.extract_strided_slice %9 {offsets = [6, 0], sizes = [1, 32], strides = [1, 1]} : vector<8x32xf32> to vector<1x32xf32>
    %cst_172 = arith.constant 2.000000e-01 : f32
    %572 = vector.broadcast %cst_172 : f32 to vector<1x32xf32>
    %573 = arith.mulf %572, %560 : vector<1x32xf32>
    %574 = arith.addf %571, %573 : vector<1x32xf32>
    %575 = arith.subf %574, %570 : vector<1x32xf32>
    %cst_173 = arith.constant 0.904837429 : f32
    %576 = vector.broadcast %cst_173 : f32 to vector<1x32xf32>
    %577 = arith.mulf %576, %503 : vector<1x32xf32>
    %cst_174 = arith.constant 0.0951625854 : f32
    %578 = vector.broadcast %cst_174 : f32 to vector<1x32xf32>
    %579 = arith.mulf %578, %575 : vector<1x32xf32>
    %580 = arith.addf %577, %579 : vector<1x32xf32>
    %581 = math.tanh %580 : vector<1x32xf32>
    %582 = arith.mulf %540, %581 : vector<1x32xf32>
    %cst_175 = arith.constant 0.904837429 : f32
    %583 = vector.broadcast %cst_175 : f32 to vector<1x32xf32>
    %584 = arith.mulf %583, %510 : vector<1x32xf32>
    %cst_176 = arith.constant 0.0951625854 : f32
    %585 = vector.broadcast %cst_176 : f32 to vector<1x32xf32>
    %586 = arith.mulf %585, %582 : vector<1x32xf32>
    %587 = arith.addf %584, %586 : vector<1x32xf32>
    %588 = math.tanh %587 : vector<1x32xf32>
    %cst_177 = arith.constant 0.951229453 : f32
    %589 = vector.broadcast %cst_177 : f32 to vector<1x32xf32>
    %590 = arith.mulf %589, %516 : vector<1x32xf32>
    %cst_178 = arith.constant 0.0487705767 : f32
    %591 = vector.broadcast %cst_178 : f32 to vector<1x32xf32>
    %592 = arith.mulf %591, %581 : vector<1x32xf32>
    %593 = arith.addf %590, %592 : vector<1x32xf32>
    %cst_179 = arith.constant 0.951229453 : f32
    %594 = vector.broadcast %cst_179 : f32 to vector<1x32xf32>
    %595 = arith.mulf %594, %521 : vector<1x32xf32>
    %cst_180 = arith.constant 0.0487705767 : f32
    %596 = vector.broadcast %cst_180 : f32 to vector<1x32xf32>
    %597 = arith.mulf %596, %588 : vector<1x32xf32>
    %598 = arith.addf %595, %597 : vector<1x32xf32>
    %cst_181 = arith.constant 0.000000e+00 : f32
    %599 = vector.shape_cast %593 : vector<1x32xf32> to vector<1x32xf32>
    %600 = vector.broadcast %599 : vector<1x32xf32> to vector<32x32xf32>
    %601 = vector.broadcast %cst_181 : f32 to vector<32x32xf32>
    %602 = arith.select %2, %600, %601 : vector<32x32xi1>, vector<32x32xf32>
    %cst_182 = arith.constant dense<0.000000e+00> : vector<32xf32>
    %603 = vector.multi_reduction <add>, %602, %cst_182 [1] : vector<32x32xf32> to vector<32xf32>
    %604 = vector.shape_cast %603 : vector<32xf32> to vector<32x1xf32>
    %605 = vector.extract_strided_slice %108 {offsets = [6, 0], sizes = [1, 32], strides = [1, 1]} : vector<8x32xf32> to vector<1x32xf32>
    %606 = vector.broadcast %604 : vector<32x1xf32> to vector<32x32xf32>
    %607 = vector.broadcast %605 : vector<1x32xf32> to vector<32x32xf32>
    %608 = arith.mulf %606, %607 : vector<32x32xf32>
    %609 = arith.subf %608, %535 : vector<32x32xf32>
    %cst_183 = arith.constant 5.000000e-02 : f32
    %610 = vector.broadcast %cst_183 : f32 to vector<32x32xf32>
    %611 = arith.mulf %610, %609 : vector<32x32xf32>
    %612 = arith.addf %535, %611 : vector<32x32xf32>
    %613 = arith.mulf %593, %598 : vector<1x32xf32>
    %614 = arith.subf %613, %540 : vector<1x32xf32>
    %cst_184 = arith.constant 5.000000e-02 : f32
    %615 = vector.broadcast %cst_184 : f32 to vector<1x32xf32>
    %616 = arith.mulf %615, %614 : vector<1x32xf32>
    %617 = arith.addf %540, %616 : vector<1x32xf32>
    %618 = vector.broadcast %604 : vector<32x1xf32> to vector<32x32xf32>
    %619 = vector.broadcast %598 : vector<1x32xf32> to vector<32x32xf32>
    %620 = arith.mulf %618, %619 : vector<32x32xf32>
    %cst_185 = arith.constant 0.000000e+00 : f32
    %621 = vector.broadcast %cst_185 : f32 to vector<32x32xf32>
    %622 = arith.select %2, %621, %620 : vector<32x32xi1>, vector<32x32xf32>
    %623 = arith.subf %622, %549 : vector<32x32xf32>
    %cst_186 = arith.constant 5.000000e-02 : f32
    %624 = vector.broadcast %cst_186 : f32 to vector<32x32xf32>
    %625 = arith.mulf %624, %623 : vector<32x32xf32>
    %626 = arith.addf %549, %625 : vector<32x32xf32>
    %627 = vector.extract_strided_slice %59 {offsets = [7, 0], sizes = [1, 32], strides = [1, 1]} : vector<8x32xf32> to vector<1x32xf32>
    %cst_187 = arith.constant 0.000000e+00 : f32
    %628 = vector.shape_cast %627 : vector<1x32xf32> to vector<1x32xf32>
    %629 = vector.broadcast %628 : vector<1x32xf32> to vector<32x32xf32>
    %630 = vector.broadcast %cst_187 : f32 to vector<32x32xf32>
    %631 = arith.select %2, %629, %630 : vector<32x32xi1>, vector<32x32xf32>
    %cst_188 = arith.constant dense<0.000000e+00> : vector<32xf32>
    %632 = vector.multi_reduction <add>, %631, %cst_188 [1] : vector<32x32xf32> to vector<32xf32>
    %633 = vector.shape_cast %632 : vector<32xf32> to vector<32x1xf32>
    %634 = vector.broadcast %633 : vector<32x1xf32> to vector<32x32xf32>
    %635 = arith.mulf %612, %634 : vector<32x32xf32>
    %cst_189 = arith.constant dense<0.000000e+00> : vector<32xf32>
    %636 = vector.multi_reduction <add>, %635, %cst_189 [0] : vector<32x32xf32> to vector<32xf32>
    %637 = vector.shape_cast %636 : vector<32xf32> to vector<1x32xf32>
    %cst_190 = arith.constant 0.000000e+00 : f32
    %638 = vector.shape_cast %434 : vector<1x32xf32> to vector<1x32xf32>
    %639 = vector.broadcast %638 : vector<1x32xf32> to vector<32x32xf32>
    %640 = vector.broadcast %cst_190 : f32 to vector<32x32xf32>
    %641 = arith.select %2, %639, %640 : vector<32x32xi1>, vector<32x32xf32>
    %cst_191 = arith.constant dense<0.000000e+00> : vector<32xf32>
    %642 = vector.multi_reduction <add>, %641, %cst_191 [1] : vector<32x32xf32> to vector<32xf32>
    %643 = vector.shape_cast %642 : vector<32xf32> to vector<32x1xf32>
    %644 = vector.broadcast %643 : vector<32x1xf32> to vector<32x32xf32>
    %645 = arith.mulf %626, %644 : vector<32x32xf32>
    %cst_192 = arith.constant dense<0.000000e+00> : vector<32xf32>
    %646 = vector.multi_reduction <add>, %645, %cst_192 [0] : vector<32x32xf32> to vector<32xf32>
    %647 = vector.shape_cast %646 : vector<32xf32> to vector<1x32xf32>
    %648 = vector.extract_strided_slice %9 {offsets = [7, 0], sizes = [1, 32], strides = [1, 1]} : vector<8x32xf32> to vector<1x32xf32>
    %cst_193 = arith.constant 2.000000e-01 : f32
    %649 = vector.broadcast %cst_193 : f32 to vector<1x32xf32>
    %650 = arith.mulf %649, %637 : vector<1x32xf32>
    %651 = arith.addf %648, %650 : vector<1x32xf32>
    %652 = arith.subf %651, %647 : vector<1x32xf32>
    %cst_194 = arith.constant 0.904837429 : f32
    %653 = vector.broadcast %cst_194 : f32 to vector<1x32xf32>
    %654 = arith.mulf %653, %580 : vector<1x32xf32>
    %cst_195 = arith.constant 0.0951625854 : f32
    %655 = vector.broadcast %cst_195 : f32 to vector<1x32xf32>
    %656 = arith.mulf %655, %652 : vector<1x32xf32>
    %657 = arith.addf %654, %656 : vector<1x32xf32>
    %658 = math.tanh %657 : vector<1x32xf32>
    %659 = arith.mulf %617, %658 : vector<1x32xf32>
    %cst_196 = arith.constant 0.904837429 : f32
    %660 = vector.broadcast %cst_196 : f32 to vector<1x32xf32>
    %661 = arith.mulf %660, %587 : vector<1x32xf32>
    %cst_197 = arith.constant 0.0951625854 : f32
    %662 = vector.broadcast %cst_197 : f32 to vector<1x32xf32>
    %663 = arith.mulf %662, %659 : vector<1x32xf32>
    %664 = arith.addf %661, %663 : vector<1x32xf32>
    %665 = math.tanh %664 : vector<1x32xf32>
    %cst_198 = arith.constant 0.951229453 : f32
    %666 = vector.broadcast %cst_198 : f32 to vector<1x32xf32>
    %667 = arith.mulf %666, %593 : vector<1x32xf32>
    %cst_199 = arith.constant 0.0487705767 : f32
    %668 = vector.broadcast %cst_199 : f32 to vector<1x32xf32>
    %669 = arith.mulf %668, %658 : vector<1x32xf32>
    %670 = arith.addf %667, %669 : vector<1x32xf32>
    %cst_200 = arith.constant 0.951229453 : f32
    %671 = vector.broadcast %cst_200 : f32 to vector<1x32xf32>
    %672 = arith.mulf %671, %598 : vector<1x32xf32>
    %cst_201 = arith.constant 0.0487705767 : f32
    %673 = vector.broadcast %cst_201 : f32 to vector<1x32xf32>
    %674 = arith.mulf %673, %665 : vector<1x32xf32>
    %675 = arith.addf %672, %674 : vector<1x32xf32>
    %cst_202 = arith.constant 0.000000e+00 : f32
    %676 = vector.shape_cast %670 : vector<1x32xf32> to vector<1x32xf32>
    %677 = vector.broadcast %676 : vector<1x32xf32> to vector<32x32xf32>
    %678 = vector.broadcast %cst_202 : f32 to vector<32x32xf32>
    %679 = arith.select %2, %677, %678 : vector<32x32xi1>, vector<32x32xf32>
    %cst_203 = arith.constant dense<0.000000e+00> : vector<32xf32>
    %680 = vector.multi_reduction <add>, %679, %cst_203 [1] : vector<32x32xf32> to vector<32xf32>
    %681 = vector.shape_cast %680 : vector<32xf32> to vector<32x1xf32>
    %682 = vector.extract_strided_slice %108 {offsets = [7, 0], sizes = [1, 32], strides = [1, 1]} : vector<8x32xf32> to vector<1x32xf32>
    %683 = vector.broadcast %681 : vector<32x1xf32> to vector<32x32xf32>
    %684 = vector.broadcast %682 : vector<1x32xf32> to vector<32x32xf32>
    %685 = arith.mulf %683, %684 : vector<32x32xf32>
    %686 = arith.subf %685, %612 : vector<32x32xf32>
    %cst_204 = arith.constant 5.000000e-02 : f32
    %687 = vector.broadcast %cst_204 : f32 to vector<32x32xf32>
    %688 = arith.mulf %687, %686 : vector<32x32xf32>
    %689 = arith.addf %612, %688 : vector<32x32xf32>
    %690 = arith.mulf %670, %675 : vector<1x32xf32>
    %691 = arith.subf %690, %617 : vector<1x32xf32>
    %cst_205 = arith.constant 5.000000e-02 : f32
    %692 = vector.broadcast %cst_205 : f32 to vector<1x32xf32>
    %693 = arith.mulf %692, %691 : vector<1x32xf32>
    %694 = arith.addf %617, %693 : vector<1x32xf32>
    %695 = vector.broadcast %681 : vector<32x1xf32> to vector<32x32xf32>
    %696 = vector.broadcast %675 : vector<1x32xf32> to vector<32x32xf32>
    %697 = arith.mulf %695, %696 : vector<32x32xf32>
    %cst_206 = arith.constant 0.000000e+00 : f32
    %698 = vector.broadcast %cst_206 : f32 to vector<32x32xf32>
    %699 = arith.select %2, %698, %697 : vector<32x32xi1>, vector<32x32xf32>
    %700 = arith.subf %699, %626 : vector<32x32xf32>
    %cst_207 = arith.constant 5.000000e-02 : f32
    %701 = vector.broadcast %cst_207 : f32 to vector<32x32xf32>
    %702 = arith.mulf %701, %700 : vector<32x32xf32>
    %703 = arith.addf %626, %702 : vector<32x32xf32>
    %704 = tpu.concatenate %141, %207, %273, %350, %427, %504, %581, %658 in 0 : vector<1x32xf32>, vector<1x32xf32>, vector<1x32xf32>, vector<1x32xf32>, vector<1x32xf32>, vector<1x32xf32>, vector<1x32xf32>, vector<1x32xf32> -> vector<8x32xf32>
    %cst_208 = arith.constant 0.000000e+00 : f32
    %705 = vector.shape_cast %670 : vector<1x32xf32> to vector<1x32xf32>
    %706 = vector.broadcast %705 : vector<1x32xf32> to vector<32x32xf32>
    %707 = vector.broadcast %cst_208 : f32 to vector<32x32xf32>
    %708 = arith.select %2, %706, %707 : vector<32x32xi1>, vector<32x32xf32>
    %cst_209 = arith.constant dense<0.000000e+00> : vector<32xf32>
    %709 = vector.multi_reduction <add>, %708, %cst_209 [1] : vector<32x32xf32> to vector<32xf32>
    %710 = vector.shape_cast %709 : vector<32xf32> to vector<32x1xf32>
    %711 = vector.broadcast %710 : vector<32x1xf32> to vector<32x32xf32>
    %712 = vector.broadcast %675 : vector<1x32xf32> to vector<32x32xf32>
    %713 = arith.mulf %711, %712 : vector<32x32xf32>
    %cst_210 = arith.constant 5.000000e-02 : f32
    %714 = vector.broadcast %cst_210 : f32 to vector<32x32xf32>
    %715 = arith.mulf %714, %713 : vector<32x32xf32>
    %716 = vector.shape_cast %694 : vector<1x32xf32> to vector<1x32xf32>
    %717 = vector.broadcast %716 : vector<1x32xf32> to vector<32x32xf32>
    %718 = arith.select %2, %717, %715 : vector<32x32xi1>, vector<32x32xf32>
    %719 = arith.mulf %675, %670 : vector<1x32xf32>
    %cst_211 = arith.constant 5.000000e-02 : f32
    %720 = vector.broadcast %cst_211 : f32 to vector<1x32xf32>
    %721 = arith.mulf %720, %719 : vector<1x32xf32>
    %722 = vector.shape_cast %721 : vector<1x32xf32> to vector<1x32xf32>
    %723 = vector.broadcast %722 : vector<1x32xf32> to vector<32x32xf32>
    %724 = arith.select %2, %723, %703 : vector<32x32xi1>, vector<32x32xf32>
    %c0_212 = arith.constant 0 : index
    %c0_213 = arith.constant 0 : index
    %c0_214 = arith.constant 0 : index
    %c0_215 = arith.constant 0 : index
    %725 = vector.load %arg6[%c0_212, %c0_213, %c0_214, %c0_215] : memref<2x3x32x32xf32, #tpu.memory_space<vmem>>, vector<1x1x32x32xf32>
    %726 = vector.shape_cast %725 : vector<1x1x32x32xf32> to vector<32x32xf32>
    %727 = vector.shape_cast %689 : vector<32x32xf32> to vector<1x1x32x32xf32>
    tpu.vector_store %arg6[%c0_212, %c0_213, %c0_214, %c0_215], %727 {strides = array<i32>} : memref<2x3x32x32xf32, #tpu.memory_space<vmem>>, vector<1x1x32x32xf32>,
    %c0_216 = arith.constant 0 : index
    %c1 = arith.constant 1 : index
    %c0_217 = arith.constant 0 : index
    %c0_218 = arith.constant 0 : index
    %728 = vector.load %arg6[%c0_216, %c1, %c0_217, %c0_218] : memref<2x3x32x32xf32, #tpu.memory_space<vmem>>, vector<1x1x32x32xf32>
    %729 = vector.shape_cast %728 : vector<1x1x32x32xf32> to vector<32x32xf32>
    %730 = vector.shape_cast %718 : vector<32x32xf32> to vector<1x1x32x32xf32>
    tpu.vector_store %arg6[%c0_216, %c1, %c0_217, %c0_218], %730 {strides = array<i32>} : memref<2x3x32x32xf32, #tpu.memory_space<vmem>>, vector<1x1x32x32xf32>,
    %c0_219 = arith.constant 0 : index
    %c2 = arith.constant 2 : index
    %c0_220 = arith.constant 0 : index
    %c0_221 = arith.constant 0 : index
    %731 = vector.load %arg6[%c0_219, %c2, %c0_220, %c0_221] : memref<2x3x32x32xf32, #tpu.memory_space<vmem>>, vector<1x1x32x32xf32>
    %732 = vector.shape_cast %731 : vector<1x1x32x32xf32> to vector<32x32xf32>
    %733 = vector.shape_cast %724 : vector<32x32xf32> to vector<1x1x32x32xf32>
    tpu.vector_store %arg6[%c0_219, %c2, %c0_220, %c0_221], %733 {strides = array<i32>} : memref<2x3x32x32xf32, #tpu.memory_space<vmem>>, vector<1x1x32x32xf32>,
    %c0_222 = arith.constant 0 : index
    %c0_223 = arith.constant 0 : index
    %c0_224 = arith.constant 0 : index
    %c0_225 = arith.constant 0 : index
    %734 = vector.load %arg7[%c0_222, %c0_223, %c0_224, %c0_225] : memref<2x2x8x32xf32, #tpu.memory_space<vmem>>, vector<1x1x8x32xf32>
    %735 = vector.shape_cast %734 : vector<1x1x8x32xf32> to vector<8x32xf32>
    %736 = vector.shape_cast %59 : vector<8x32xf32> to vector<1x1x8x32xf32>
    tpu.vector_store %arg7[%c0_222, %c0_223, %c0_224, %c0_225], %736 {strides = array<i32>} : memref<2x2x8x32xf32, #tpu.memory_space<vmem>>, vector<1x1x8x32xf32>,
    %c0_226 = arith.constant 0 : index
    %c1_227 = arith.constant 1 : index
    %c0_228 = arith.constant 0 : index
    %c0_229 = arith.constant 0 : index
    %737 = vector.load %arg7[%c0_226, %c1_227, %c0_228, %c0_229] : memref<2x2x8x32xf32, #tpu.memory_space<vmem>>, vector<1x1x8x32xf32>
    %738 = vector.shape_cast %737 : vector<1x1x8x32xf32> to vector<8x32xf32>
    %739 = vector.shape_cast %704 : vector<8x32xf32> to vector<1x1x8x32xf32>
    tpu.vector_store %arg7[%c0_226, %c1_227, %c0_228, %c0_229], %739 {strides = array<i32>} : memref<2x2x8x32xf32, #tpu.memory_space<vmem>>, vector<1x1x8x32xf32>,
    %740 = vector.extract_strided_slice %108 {offsets = [7, 0], sizes = [1, 32], strides = [1, 1]} : vector<8x32xf32> to vector<1x32xf32>
    %741 = tpu.concatenate %57, %657, %664, %740, %670, %675, %588, %665, %511 in 0 : vector<1x32xf32>, vector<1x32xf32>, vector<1x32xf32>, vector<1x32xf32>, vector<1x32xf32>, vector<1x32xf32>, vector<1x32xf32>, vector<1x32xf32>, vector<1x32xf32> -> vector<9x32xf32>
    %c0_230 = arith.constant 0 : index
    %c0_231 = arith.constant 0 : index
    %c0_232 = arith.constant 0 : index
    %742 = vector.load %arg8[%c0_230, %c0_231, %c0_232] : memref<2x9x32xf32, #tpu.memory_space<vmem>>, vector<1x9x32xf32>
    %743 = vector.shape_cast %742 : vector<1x9x32xf32> to vector<9x32xf32>
    %744 = vector.shape_cast %741 : vector<9x32xf32> to vector<1x9x32xf32>
    tpu.vector_store %arg8[%c0_230, %c0_231, %c0_232], %744 {strides = array<i32>} : memref<2x9x32xf32, #tpu.memory_space<vmem>>, vector<1x9x32xf32>,
    %c1_233 = arith.constant 1 : index
    %c0_234 = arith.constant 0 : index
    %c0_235 = arith.constant 0 : index
    %745 = vector.load %arg1[%c1_233, %c0_234, %c0_235] : memref<2x8x32xf32, #tpu.memory_space<vmem>>, vector<1x8x32xf32>
    %746 = vector.shape_cast %745 : vector<1x8x32xf32> to vector<8x32xf32>
    %cst_236 = arith.constant dense<0.000000e+00> : vector<8x64xf32>
    %747 = tpu.matmul %746, %3, %cst_236 {dimension_numbers = #tpu.dot_dimension_numbers<[1], [0], [0], [1], [0, 0, 1, 1], [], []>, precision = #tpu.contract_precision<fp32>} : vector<8x32xf32>, vector<32x64xf32>, vector<8x64xf32> -> vector<8x64xf32>
    %748 = vector.extract_strided_slice %747 {offsets = [0, 0], sizes = [8, 32], strides = [1, 1]} : vector<8x64xf32> to vector<8x32xf32>
    %749 = vector.extract_strided_slice %747 {offsets = [0, 32], sizes = [8, 32], strides = [1, 1]} : vector<8x64xf32> to vector<8x32xf32>
    %cst_237 = arith.constant 0.904837429 : f32
    %750 = vector.broadcast %cst_237 : f32 to vector<1x32xf32>
    %751 = arith.mulf %750, %4 : vector<1x32xf32>
    %752 = vector.extract_strided_slice %748 {offsets = [0, 0], sizes = [1, 32], strides = [1, 1]} : vector<8x32xf32> to vector<1x32xf32>
    %cst_238 = arith.constant 0.0951625854 : f32
    %753 = vector.broadcast %cst_238 : f32 to vector<1x32xf32>
    %754 = arith.mulf %753, %752 : vector<1x32xf32>
    %755 = arith.addf %751, %754 : vector<1x32xf32>
    %cst_239 = arith.constant 0.904837429 : f32
    %756 = vector.broadcast %cst_239 : f32 to vector<1x32xf32>
    %757 = arith.mulf %756, %755 : vector<1x32xf32>
    %758 = vector.extract_strided_slice %748 {offsets = [1, 0], sizes = [1, 32], strides = [1, 1]} : vector<8x32xf32> to vector<1x32xf32>
    %cst_240 = arith.constant 0.0951625854 : f32
    %759 = vector.broadcast %cst_240 : f32 to vector<1x32xf32>
    %760 = arith.mulf %759, %758 : vector<1x32xf32>
    %761 = arith.addf %757, %760 : vector<1x32xf32>
    %cst_241 = arith.constant 0.904837429 : f32
    %762 = vector.broadcast %cst_241 : f32 to vector<1x32xf32>
    %763 = arith.mulf %762, %761 : vector<1x32xf32>
    %764 = vector.extract_strided_slice %748 {offsets = [2, 0], sizes = [1, 32], strides = [1, 1]} : vector<8x32xf32> to vector<1x32xf32>
    %cst_242 = arith.constant 0.0951625854 : f32
    %765 = vector.broadcast %cst_242 : f32 to vector<1x32xf32>
    %766 = arith.mulf %765, %764 : vector<1x32xf32>
    %767 = arith.addf %763, %766 : vector<1x32xf32>
    %cst_243 = arith.constant 0.904837429 : f32
    %768 = vector.broadcast %cst_243 : f32 to vector<1x32xf32>
    %769 = arith.mulf %768, %767 : vector<1x32xf32>
    %770 = vector.extract_strided_slice %748 {offsets = [3, 0], sizes = [1, 32], strides = [1, 1]} : vector<8x32xf32> to vector<1x32xf32>
    %cst_244 = arith.constant 0.0951625854 : f32
    %771 = vector.broadcast %cst_244 : f32 to vector<1x32xf32>
    %772 = arith.mulf %771, %770 : vector<1x32xf32>
    %773 = arith.addf %769, %772 : vector<1x32xf32>
    %cst_245 = arith.constant 0.904837429 : f32
    %774 = vector.broadcast %cst_245 : f32 to vector<1x32xf32>
    %775 = arith.mulf %774, %773 : vector<1x32xf32>
    %776 = vector.extract_strided_slice %748 {offsets = [4, 0], sizes = [1, 32], strides = [1, 1]} : vector<8x32xf32> to vector<1x32xf32>
    %cst_246 = arith.constant 0.0951625854 : f32
    %777 = vector.broadcast %cst_246 : f32 to vector<1x32xf32>
    %778 = arith.mulf %777, %776 : vector<1x32xf32>
    %779 = arith.addf %775, %778 : vector<1x32xf32>
    %cst_247 = arith.constant 0.904837429 : f32
    %780 = vector.broadcast %cst_247 : f32 to vector<1x32xf32>
    %781 = arith.mulf %780, %779 : vector<1x32xf32>
    %782 = vector.extract_strided_slice %748 {offsets = [5, 0], sizes = [1, 32], strides = [1, 1]} : vector<8x32xf32> to vector<1x32xf32>
    %cst_248 = arith.constant 0.0951625854 : f32
    %783 = vector.broadcast %cst_248 : f32 to vector<1x32xf32>
    %784 = arith.mulf %783, %782 : vector<1x32xf32>
    %785 = arith.addf %781, %784 : vector<1x32xf32>
    %cst_249 = arith.constant 0.904837429 : f32
    %786 = vector.broadcast %cst_249 : f32 to vector<1x32xf32>
    %787 = arith.mulf %786, %785 : vector<1x32xf32>
    %788 = vector.extract_strided_slice %748 {offsets = [6, 0], sizes = [1, 32], strides = [1, 1]} : vector<8x32xf32> to vector<1x32xf32>
    %cst_250 = arith.constant 0.0951625854 : f32
    %789 = vector.broadcast %cst_250 : f32 to vector<1x32xf32>
    %790 = arith.mulf %789, %788 : vector<1x32xf32>
    %791 = arith.addf %787, %790 : vector<1x32xf32>
    %cst_251 = arith.constant 0.904837429 : f32
    %792 = vector.broadcast %cst_251 : f32 to vector<1x32xf32>
    %793 = arith.mulf %792, %791 : vector<1x32xf32>
    %794 = vector.extract_strided_slice %748 {offsets = [7, 0], sizes = [1, 32], strides = [1, 1]} : vector<8x32xf32> to vector<1x32xf32>
    %cst_252 = arith.constant 0.0951625854 : f32
    %795 = vector.broadcast %cst_252 : f32 to vector<1x32xf32>
    %796 = arith.mulf %795, %794 : vector<1x32xf32>
    %797 = arith.addf %793, %796 : vector<1x32xf32>
    %798 = tpu.concatenate %755, %761, %767, %773, %779, %785, %791, %797 in 0 : vector<1x32xf32>, vector<1x32xf32>, vector<1x32xf32>, vector<1x32xf32>, vector<1x32xf32>, vector<1x32xf32>, vector<1x32xf32>, vector<1x32xf32> -> vector<8x32xf32>
    %799 = math.tanh %798 : vector<8x32xf32>
    %cst_253 = arith.constant 0.951229453 : f32
    %800 = vector.broadcast %cst_253 : f32 to vector<1x32xf32>
    %801 = arith.mulf %800, %4 : vector<1x32xf32>
    %802 = vector.extract_strided_slice %799 {offsets = [0, 0], sizes = [1, 32], strides = [1, 1]} : vector<8x32xf32> to vector<1x32xf32>
    %cst_254 = arith.constant 0.0487705767 : f32
    %803 = vector.broadcast %cst_254 : f32 to vector<1x32xf32>
    %804 = arith.mulf %803, %802 : vector<1x32xf32>
    %805 = arith.addf %801, %804 : vector<1x32xf32>
    %cst_255 = arith.constant 0.951229453 : f32
    %806 = vector.broadcast %cst_255 : f32 to vector<1x32xf32>
    %807 = arith.mulf %806, %805 : vector<1x32xf32>
    %808 = vector.extract_strided_slice %799 {offsets = [1, 0], sizes = [1, 32], strides = [1, 1]} : vector<8x32xf32> to vector<1x32xf32>
    %cst_256 = arith.constant 0.0487705767 : f32
    %809 = vector.broadcast %cst_256 : f32 to vector<1x32xf32>
    %810 = arith.mulf %809, %808 : vector<1x32xf32>
    %811 = arith.addf %807, %810 : vector<1x32xf32>
    %cst_257 = arith.constant 0.951229453 : f32
    %812 = vector.broadcast %cst_257 : f32 to vector<1x32xf32>
    %813 = arith.mulf %812, %811 : vector<1x32xf32>
    %814 = vector.extract_strided_slice %799 {offsets = [2, 0], sizes = [1, 32], strides = [1, 1]} : vector<8x32xf32> to vector<1x32xf32>
    %cst_258 = arith.constant 0.0487705767 : f32
    %815 = vector.broadcast %cst_258 : f32 to vector<1x32xf32>
    %816 = arith.mulf %815, %814 : vector<1x32xf32>
    %817 = arith.addf %813, %816 : vector<1x32xf32>
    %cst_259 = arith.constant 0.951229453 : f32
    %818 = vector.broadcast %cst_259 : f32 to vector<1x32xf32>
    %819 = arith.mulf %818, %817 : vector<1x32xf32>
    %820 = vector.extract_strided_slice %799 {offsets = [3, 0], sizes = [1, 32], strides = [1, 1]} : vector<8x32xf32> to vector<1x32xf32>
    %cst_260 = arith.constant 0.0487705767 : f32
    %821 = vector.broadcast %cst_260 : f32 to vector<1x32xf32>
    %822 = arith.mulf %821, %820 : vector<1x32xf32>
    %823 = arith.addf %819, %822 : vector<1x32xf32>
    %cst_261 = arith.constant 0.951229453 : f32
    %824 = vector.broadcast %cst_261 : f32 to vector<1x32xf32>
    %825 = arith.mulf %824, %823 : vector<1x32xf32>
    %826 = vector.extract_strided_slice %799 {offsets = [4, 0], sizes = [1, 32], strides = [1, 1]} : vector<8x32xf32> to vector<1x32xf32>
    %cst_262 = arith.constant 0.0487705767 : f32
    %827 = vector.broadcast %cst_262 : f32 to vector<1x32xf32>
    %828 = arith.mulf %827, %826 : vector<1x32xf32>
    %829 = arith.addf %825, %828 : vector<1x32xf32>
    %cst_263 = arith.constant 0.951229453 : f32
    %830 = vector.broadcast %cst_263 : f32 to vector<1x32xf32>
    %831 = arith.mulf %830, %829 : vector<1x32xf32>
    %832 = vector.extract_strided_slice %799 {offsets = [5, 0], sizes = [1, 32], strides = [1, 1]} : vector<8x32xf32> to vector<1x32xf32>
    %cst_264 = arith.constant 0.0487705767 : f32
    %833 = vector.broadcast %cst_264 : f32 to vector<1x32xf32>
    %834 = arith.mulf %833, %832 : vector<1x32xf32>
    %835 = arith.addf %831, %834 : vector<1x32xf32>
    %cst_265 = arith.constant 0.951229453 : f32
    %836 = vector.broadcast %cst_265 : f32 to vector<1x32xf32>
    %837 = arith.mulf %836, %835 : vector<1x32xf32>
    %838 = vector.extract_strided_slice %799 {offsets = [6, 0], sizes = [1, 32], strides = [1, 1]} : vector<8x32xf32> to vector<1x32xf32>
    %cst_266 = arith.constant 0.0487705767 : f32
    %839 = vector.broadcast %cst_266 : f32 to vector<1x32xf32>
    %840 = arith.mulf %839, %838 : vector<1x32xf32>
    %841 = arith.addf %837, %840 : vector<1x32xf32>
    %cst_267 = arith.constant 0.951229453 : f32
    %842 = vector.broadcast %cst_267 : f32 to vector<1x32xf32>
    %843 = arith.mulf %842, %841 : vector<1x32xf32>
    %844 = vector.extract_strided_slice %799 {offsets = [7, 0], sizes = [1, 32], strides = [1, 1]} : vector<8x32xf32> to vector<1x32xf32>
    %cst_268 = arith.constant 0.0487705767 : f32
    %845 = vector.broadcast %cst_268 : f32 to vector<1x32xf32>
    %846 = arith.mulf %845, %844 : vector<1x32xf32>
    %847 = arith.addf %843, %846 : vector<1x32xf32>
    %848 = tpu.concatenate %805, %811, %817, %823, %829, %835, %841, %847 in 0 : vector<1x32xf32>, vector<1x32xf32>, vector<1x32xf32>, vector<1x32xf32>, vector<1x32xf32>, vector<1x32xf32>, vector<1x32xf32>, vector<1x32xf32> -> vector<8x32xf32>
    %c1_269 = arith.constant 1 : index
    %c0_270 = arith.constant 0 : index
    %c0_271 = arith.constant 0 : index
    %849 = vector.load %arg3[%c1_269, %c0_270, %c0_271] : memref<2x32x32xf32, #tpu.memory_space<vmem>>, vector<1x32x32xf32>
    %850 = vector.shape_cast %849 : vector<1x32x32xf32> to vector<32x32xf32>
    %c1_272 = arith.constant 1 : index
    %c0_273 = arith.constant 0 : index
    %c0_274 = arith.constant 0 : index
    %851 = vector.load %arg5[%c1_272, %c0_273, %c0_274] : memref<2x32x32xf32, #tpu.memory_space<vmem>>, vector<1x32x32xf32>
    %852 = vector.shape_cast %851 : vector<1x32x32xf32> to vector<32x32xf32>
    %cst_275 = arith.constant 0.000000e+00 : f32
    %853 = vector.broadcast %cst_275 : f32 to vector<32x32xf32>
    %854 = arith.select %2, %853, %852 : vector<32x32xi1>, vector<32x32xf32>
    %c1_276 = arith.constant 1 : index
    %c0_277 = arith.constant 0 : index
    %c0_278 = arith.constant 0 : index
    %855 = vector.load %arg4[%c1_276, %c0_277, %c0_278] : memref<2x32x32xf32, #tpu.memory_space<vmem>>, vector<1x32x32xf32>
    %856 = vector.shape_cast %855 : vector<1x32x32xf32> to vector<32x32xf32>
    %cst_279 = arith.constant 0.000000e+00 : f32
    %857 = vector.broadcast %cst_279 : f32 to vector<32x32xf32>
    %858 = arith.select %2, %856, %857 : vector<32x32xi1>, vector<32x32xf32>
    %cst_280 = arith.constant dense<0.000000e+00> : vector<32xf32>
    %859 = vector.multi_reduction <add>, %858, %cst_280 [0] : vector<32x32xf32> to vector<32xf32>
    %860 = vector.shape_cast %859 : vector<32xf32> to vector<1x32xf32>
    %861 = vector.extract_strided_slice %799 {offsets = [0, 0], sizes = [1, 32], strides = [1, 1]} : vector<8x32xf32> to vector<1x32xf32>
    %cst_281 = arith.constant 0.000000e+00 : f32
    %862 = vector.shape_cast %861 : vector<1x32xf32> to vector<1x32xf32>
    %863 = vector.broadcast %862 : vector<1x32xf32> to vector<32x32xf32>
    %864 = vector.broadcast %cst_281 : f32 to vector<32x32xf32>
    %865 = arith.select %2, %863, %864 : vector<32x32xi1>, vector<32x32xf32>
    %cst_282 = arith.constant dense<0.000000e+00> : vector<32xf32>
    %866 = vector.multi_reduction <add>, %865, %cst_282 [1] : vector<32x32xf32> to vector<32xf32>
    %867 = vector.shape_cast %866 : vector<32xf32> to vector<32x1xf32>
    %868 = vector.broadcast %867 : vector<32x1xf32> to vector<32x32xf32>
    %869 = arith.mulf %850, %868 : vector<32x32xf32>
    %cst_283 = arith.constant dense<0.000000e+00> : vector<32xf32>
    %870 = vector.multi_reduction <add>, %869, %cst_283 [0] : vector<32x32xf32> to vector<32xf32>
    %871 = vector.shape_cast %870 : vector<32xf32> to vector<1x32xf32>
    %872 = vector.extract_strided_slice %749 {offsets = [0, 0], sizes = [1, 32], strides = [1, 1]} : vector<8x32xf32> to vector<1x32xf32>
    %cst_284 = arith.constant 2.000000e-01 : f32
    %873 = vector.broadcast %cst_284 : f32 to vector<1x32xf32>
    %874 = arith.mulf %873, %871 : vector<1x32xf32>
    %875 = arith.addf %872, %874 : vector<1x32xf32>
    %cst_285 = arith.constant 0.904837429 : f32
    %876 = vector.broadcast %cst_285 : f32 to vector<1x32xf32>
    %877 = arith.mulf %876, %4 : vector<1x32xf32>
    %cst_286 = arith.constant 0.0951625854 : f32
    %878 = vector.broadcast %cst_286 : f32 to vector<1x32xf32>
    %879 = arith.mulf %878, %875 : vector<1x32xf32>
    %880 = arith.addf %877, %879 : vector<1x32xf32>
    %881 = math.tanh %880 : vector<1x32xf32>
    %882 = arith.mulf %860, %881 : vector<1x32xf32>
    %cst_287 = arith.constant 0.904837429 : f32
    %883 = vector.broadcast %cst_287 : f32 to vector<1x32xf32>
    %884 = arith.mulf %883, %4 : vector<1x32xf32>
    %cst_288 = arith.constant 0.0951625854 : f32
    %885 = vector.broadcast %cst_288 : f32 to vector<1x32xf32>
    %886 = arith.mulf %885, %882 : vector<1x32xf32>
    %887 = arith.addf %884, %886 : vector<1x32xf32>
    %888 = math.tanh %887 : vector<1x32xf32>
    %cst_289 = arith.constant 0.951229453 : f32
    %889 = vector.broadcast %cst_289 : f32 to vector<1x32xf32>
    %890 = arith.mulf %889, %4 : vector<1x32xf32>
    %cst_290 = arith.constant 0.0487705767 : f32
    %891 = vector.broadcast %cst_290 : f32 to vector<1x32xf32>
    %892 = arith.mulf %891, %881 : vector<1x32xf32>
    %893 = arith.addf %890, %892 : vector<1x32xf32>
    %cst_291 = arith.constant 0.951229453 : f32
    %894 = vector.broadcast %cst_291 : f32 to vector<1x32xf32>
    %895 = arith.mulf %894, %4 : vector<1x32xf32>
    %cst_292 = arith.constant 0.0487705767 : f32
    %896 = vector.broadcast %cst_292 : f32 to vector<1x32xf32>
    %897 = arith.mulf %896, %888 : vector<1x32xf32>
    %898 = arith.addf %895, %897 : vector<1x32xf32>
    %cst_293 = arith.constant 0.000000e+00 : f32
    %899 = vector.shape_cast %893 : vector<1x32xf32> to vector<1x32xf32>
    %900 = vector.broadcast %899 : vector<1x32xf32> to vector<32x32xf32>
    %901 = vector.broadcast %cst_293 : f32 to vector<32x32xf32>
    %902 = arith.select %2, %900, %901 : vector<32x32xi1>, vector<32x32xf32>
    %cst_294 = arith.constant dense<0.000000e+00> : vector<32xf32>
    %903 = vector.multi_reduction <add>, %902, %cst_294 [1] : vector<32x32xf32> to vector<32xf32>
    %904 = vector.shape_cast %903 : vector<32xf32> to vector<32x1xf32>
    %905 = vector.extract_strided_slice %848 {offsets = [0, 0], sizes = [1, 32], strides = [1, 1]} : vector<8x32xf32> to vector<1x32xf32>
    %906 = vector.broadcast %904 : vector<32x1xf32> to vector<32x32xf32>
    %907 = vector.broadcast %905 : vector<1x32xf32> to vector<32x32xf32>
    %908 = arith.mulf %906, %907 : vector<32x32xf32>
    %909 = arith.subf %908, %850 : vector<32x32xf32>
    %cst_295 = arith.constant 5.000000e-02 : f32
    %910 = vector.broadcast %cst_295 : f32 to vector<32x32xf32>
    %911 = arith.mulf %910, %909 : vector<32x32xf32>
    %912 = arith.addf %850, %911 : vector<32x32xf32>
    %913 = arith.mulf %893, %898 : vector<1x32xf32>
    %914 = arith.subf %913, %860 : vector<1x32xf32>
    %cst_296 = arith.constant 5.000000e-02 : f32
    %915 = vector.broadcast %cst_296 : f32 to vector<1x32xf32>
    %916 = arith.mulf %915, %914 : vector<1x32xf32>
    %917 = arith.addf %860, %916 : vector<1x32xf32>
    %918 = vector.broadcast %904 : vector<32x1xf32> to vector<32x32xf32>
    %919 = vector.broadcast %898 : vector<1x32xf32> to vector<32x32xf32>
    %920 = arith.mulf %918, %919 : vector<32x32xf32>
    %cst_297 = arith.constant 0.000000e+00 : f32
    %921 = vector.broadcast %cst_297 : f32 to vector<32x32xf32>
    %922 = arith.select %2, %921, %920 : vector<32x32xi1>, vector<32x32xf32>
    %923 = arith.subf %922, %854 : vector<32x32xf32>
    %cst_298 = arith.constant 5.000000e-02 : f32
    %924 = vector.broadcast %cst_298 : f32 to vector<32x32xf32>
    %925 = arith.mulf %924, %923 : vector<32x32xf32>
    %926 = arith.addf %854, %925 : vector<32x32xf32>
    %927 = vector.extract_strided_slice %799 {offsets = [1, 0], sizes = [1, 32], strides = [1, 1]} : vector<8x32xf32> to vector<1x32xf32>
    %cst_299 = arith.constant 0.000000e+00 : f32
    %928 = vector.shape_cast %927 : vector<1x32xf32> to vector<1x32xf32>
    %929 = vector.broadcast %928 : vector<1x32xf32> to vector<32x32xf32>
    %930 = vector.broadcast %cst_299 : f32 to vector<32x32xf32>
    %931 = arith.select %2, %929, %930 : vector<32x32xi1>, vector<32x32xf32>
    %cst_300 = arith.constant dense<0.000000e+00> : vector<32xf32>
    %932 = vector.multi_reduction <add>, %931, %cst_300 [1] : vector<32x32xf32> to vector<32xf32>
    %933 = vector.shape_cast %932 : vector<32xf32> to vector<32x1xf32>
    %934 = vector.broadcast %933 : vector<32x1xf32> to vector<32x32xf32>
    %935 = arith.mulf %912, %934 : vector<32x32xf32>
    %cst_301 = arith.constant dense<0.000000e+00> : vector<32xf32>
    %936 = vector.multi_reduction <add>, %935, %cst_301 [0] : vector<32x32xf32> to vector<32xf32>
    %937 = vector.shape_cast %936 : vector<32xf32> to vector<1x32xf32>
    %938 = vector.extract_strided_slice %749 {offsets = [1, 0], sizes = [1, 32], strides = [1, 1]} : vector<8x32xf32> to vector<1x32xf32>
    %cst_302 = arith.constant 2.000000e-01 : f32
    %939 = vector.broadcast %cst_302 : f32 to vector<1x32xf32>
    %940 = arith.mulf %939, %937 : vector<1x32xf32>
    %941 = arith.addf %938, %940 : vector<1x32xf32>
    %cst_303 = arith.constant 0.904837429 : f32
    %942 = vector.broadcast %cst_303 : f32 to vector<1x32xf32>
    %943 = arith.mulf %942, %880 : vector<1x32xf32>
    %cst_304 = arith.constant 0.0951625854 : f32
    %944 = vector.broadcast %cst_304 : f32 to vector<1x32xf32>
    %945 = arith.mulf %944, %941 : vector<1x32xf32>
    %946 = arith.addf %943, %945 : vector<1x32xf32>
    %947 = math.tanh %946 : vector<1x32xf32>
    %948 = arith.mulf %917, %947 : vector<1x32xf32>
    %cst_305 = arith.constant 0.904837429 : f32
    %949 = vector.broadcast %cst_305 : f32 to vector<1x32xf32>
    %950 = arith.mulf %949, %887 : vector<1x32xf32>
    %cst_306 = arith.constant 0.0951625854 : f32
    %951 = vector.broadcast %cst_306 : f32 to vector<1x32xf32>
    %952 = arith.mulf %951, %948 : vector<1x32xf32>
    %953 = arith.addf %950, %952 : vector<1x32xf32>
    %954 = math.tanh %953 : vector<1x32xf32>
    %cst_307 = arith.constant 0.951229453 : f32
    %955 = vector.broadcast %cst_307 : f32 to vector<1x32xf32>
    %956 = arith.mulf %955, %893 : vector<1x32xf32>
    %cst_308 = arith.constant 0.0487705767 : f32
    %957 = vector.broadcast %cst_308 : f32 to vector<1x32xf32>
    %958 = arith.mulf %957, %947 : vector<1x32xf32>
    %959 = arith.addf %956, %958 : vector<1x32xf32>
    %cst_309 = arith.constant 0.951229453 : f32
    %960 = vector.broadcast %cst_309 : f32 to vector<1x32xf32>
    %961 = arith.mulf %960, %898 : vector<1x32xf32>
    %cst_310 = arith.constant 0.0487705767 : f32
    %962 = vector.broadcast %cst_310 : f32 to vector<1x32xf32>
    %963 = arith.mulf %962, %954 : vector<1x32xf32>
    %964 = arith.addf %961, %963 : vector<1x32xf32>
    %cst_311 = arith.constant 0.000000e+00 : f32
    %965 = vector.shape_cast %959 : vector<1x32xf32> to vector<1x32xf32>
    %966 = vector.broadcast %965 : vector<1x32xf32> to vector<32x32xf32>
    %967 = vector.broadcast %cst_311 : f32 to vector<32x32xf32>
    %968 = arith.select %2, %966, %967 : vector<32x32xi1>, vector<32x32xf32>
    %cst_312 = arith.constant dense<0.000000e+00> : vector<32xf32>
    %969 = vector.multi_reduction <add>, %968, %cst_312 [1] : vector<32x32xf32> to vector<32xf32>
    %970 = vector.shape_cast %969 : vector<32xf32> to vector<32x1xf32>
    %971 = vector.extract_strided_slice %848 {offsets = [1, 0], sizes = [1, 32], strides = [1, 1]} : vector<8x32xf32> to vector<1x32xf32>
    %972 = vector.broadcast %970 : vector<32x1xf32> to vector<32x32xf32>
    %973 = vector.broadcast %971 : vector<1x32xf32> to vector<32x32xf32>
    %974 = arith.mulf %972, %973 : vector<32x32xf32>
    %975 = arith.subf %974, %912 : vector<32x32xf32>
    %cst_313 = arith.constant 5.000000e-02 : f32
    %976 = vector.broadcast %cst_313 : f32 to vector<32x32xf32>
    %977 = arith.mulf %976, %975 : vector<32x32xf32>
    %978 = arith.addf %912, %977 : vector<32x32xf32>
    %979 = arith.mulf %959, %964 : vector<1x32xf32>
    %980 = arith.subf %979, %917 : vector<1x32xf32>
    %cst_314 = arith.constant 5.000000e-02 : f32
    %981 = vector.broadcast %cst_314 : f32 to vector<1x32xf32>
    %982 = arith.mulf %981, %980 : vector<1x32xf32>
    %983 = arith.addf %917, %982 : vector<1x32xf32>
    %984 = vector.broadcast %970 : vector<32x1xf32> to vector<32x32xf32>
    %985 = vector.broadcast %964 : vector<1x32xf32> to vector<32x32xf32>
    %986 = arith.mulf %984, %985 : vector<32x32xf32>
    %cst_315 = arith.constant 0.000000e+00 : f32
    %987 = vector.broadcast %cst_315 : f32 to vector<32x32xf32>
    %988 = arith.select %2, %987, %986 : vector<32x32xi1>, vector<32x32xf32>
    %989 = arith.subf %988, %926 : vector<32x32xf32>
    %cst_316 = arith.constant 5.000000e-02 : f32
    %990 = vector.broadcast %cst_316 : f32 to vector<32x32xf32>
    %991 = arith.mulf %990, %989 : vector<32x32xf32>
    %992 = arith.addf %926, %991 : vector<32x32xf32>
    %993 = vector.extract_strided_slice %799 {offsets = [2, 0], sizes = [1, 32], strides = [1, 1]} : vector<8x32xf32> to vector<1x32xf32>
    %cst_317 = arith.constant 0.000000e+00 : f32
    %994 = vector.shape_cast %993 : vector<1x32xf32> to vector<1x32xf32>
    %995 = vector.broadcast %994 : vector<1x32xf32> to vector<32x32xf32>
    %996 = vector.broadcast %cst_317 : f32 to vector<32x32xf32>
    %997 = arith.select %2, %995, %996 : vector<32x32xi1>, vector<32x32xf32>
    %cst_318 = arith.constant dense<0.000000e+00> : vector<32xf32>
    %998 = vector.multi_reduction <add>, %997, %cst_318 [1] : vector<32x32xf32> to vector<32xf32>
    %999 = vector.shape_cast %998 : vector<32xf32> to vector<32x1xf32>
    %1000 = vector.broadcast %999 : vector<32x1xf32> to vector<32x32xf32>
    %1001 = arith.mulf %978, %1000 : vector<32x32xf32>
    %cst_319 = arith.constant dense<0.000000e+00> : vector<32xf32>
    %1002 = vector.multi_reduction <add>, %1001, %cst_319 [0] : vector<32x32xf32> to vector<32xf32>
    %1003 = vector.shape_cast %1002 : vector<32xf32> to vector<1x32xf32>
    %1004 = vector.extract_strided_slice %749 {offsets = [2, 0], sizes = [1, 32], strides = [1, 1]} : vector<8x32xf32> to vector<1x32xf32>
    %cst_320 = arith.constant 2.000000e-01 : f32
    %1005 = vector.broadcast %cst_320 : f32 to vector<1x32xf32>
    %1006 = arith.mulf %1005, %1003 : vector<1x32xf32>
    %1007 = arith.addf %1004, %1006 : vector<1x32xf32>
    %cst_321 = arith.constant 0.904837429 : f32
    %1008 = vector.broadcast %cst_321 : f32 to vector<1x32xf32>
    %1009 = arith.mulf %1008, %946 : vector<1x32xf32>
    %cst_322 = arith.constant 0.0951625854 : f32
    %1010 = vector.broadcast %cst_322 : f32 to vector<1x32xf32>
    %1011 = arith.mulf %1010, %1007 : vector<1x32xf32>
    %1012 = arith.addf %1009, %1011 : vector<1x32xf32>
    %1013 = math.tanh %1012 : vector<1x32xf32>
    %1014 = arith.mulf %983, %1013 : vector<1x32xf32>
    %cst_323 = arith.constant 0.904837429 : f32
    %1015 = vector.broadcast %cst_323 : f32 to vector<1x32xf32>
    %1016 = arith.mulf %1015, %953 : vector<1x32xf32>
    %cst_324 = arith.constant 0.0951625854 : f32
    %1017 = vector.broadcast %cst_324 : f32 to vector<1x32xf32>
    %1018 = arith.mulf %1017, %1014 : vector<1x32xf32>
    %1019 = arith.addf %1016, %1018 : vector<1x32xf32>
    %1020 = math.tanh %1019 : vector<1x32xf32>
    %cst_325 = arith.constant 0.951229453 : f32
    %1021 = vector.broadcast %cst_325 : f32 to vector<1x32xf32>
    %1022 = arith.mulf %1021, %959 : vector<1x32xf32>
    %cst_326 = arith.constant 0.0487705767 : f32
    %1023 = vector.broadcast %cst_326 : f32 to vector<1x32xf32>
    %1024 = arith.mulf %1023, %1013 : vector<1x32xf32>
    %1025 = arith.addf %1022, %1024 : vector<1x32xf32>
    %cst_327 = arith.constant 0.951229453 : f32
    %1026 = vector.broadcast %cst_327 : f32 to vector<1x32xf32>
    %1027 = arith.mulf %1026, %964 : vector<1x32xf32>
    %cst_328 = arith.constant 0.0487705767 : f32
    %1028 = vector.broadcast %cst_328 : f32 to vector<1x32xf32>
    %1029 = arith.mulf %1028, %1020 : vector<1x32xf32>
    %1030 = arith.addf %1027, %1029 : vector<1x32xf32>
    %cst_329 = arith.constant 0.000000e+00 : f32
    %1031 = vector.shape_cast %1025 : vector<1x32xf32> to vector<1x32xf32>
    %1032 = vector.broadcast %1031 : vector<1x32xf32> to vector<32x32xf32>
    %1033 = vector.broadcast %cst_329 : f32 to vector<32x32xf32>
    %1034 = arith.select %2, %1032, %1033 : vector<32x32xi1>, vector<32x32xf32>
    %cst_330 = arith.constant dense<0.000000e+00> : vector<32xf32>
    %1035 = vector.multi_reduction <add>, %1034, %cst_330 [1] : vector<32x32xf32> to vector<32xf32>
    %1036 = vector.shape_cast %1035 : vector<32xf32> to vector<32x1xf32>
    %1037 = vector.extract_strided_slice %848 {offsets = [2, 0], sizes = [1, 32], strides = [1, 1]} : vector<8x32xf32> to vector<1x32xf32>
    %1038 = vector.broadcast %1036 : vector<32x1xf32> to vector<32x32xf32>
    %1039 = vector.broadcast %1037 : vector<1x32xf32> to vector<32x32xf32>
    %1040 = arith.mulf %1038, %1039 : vector<32x32xf32>
    %1041 = arith.subf %1040, %978 : vector<32x32xf32>
    %cst_331 = arith.constant 5.000000e-02 : f32
    %1042 = vector.broadcast %cst_331 : f32 to vector<32x32xf32>
    %1043 = arith.mulf %1042, %1041 : vector<32x32xf32>
    %1044 = arith.addf %978, %1043 : vector<32x32xf32>
    %1045 = arith.mulf %1025, %1030 : vector<1x32xf32>
    %1046 = arith.subf %1045, %983 : vector<1x32xf32>
    %cst_332 = arith.constant 5.000000e-02 : f32
    %1047 = vector.broadcast %cst_332 : f32 to vector<1x32xf32>
    %1048 = arith.mulf %1047, %1046 : vector<1x32xf32>
    %1049 = arith.addf %983, %1048 : vector<1x32xf32>
    %1050 = vector.broadcast %1036 : vector<32x1xf32> to vector<32x32xf32>
    %1051 = vector.broadcast %1030 : vector<1x32xf32> to vector<32x32xf32>
    %1052 = arith.mulf %1050, %1051 : vector<32x32xf32>
    %cst_333 = arith.constant 0.000000e+00 : f32
    %1053 = vector.broadcast %cst_333 : f32 to vector<32x32xf32>
    %1054 = arith.select %2, %1053, %1052 : vector<32x32xi1>, vector<32x32xf32>
    %1055 = arith.subf %1054, %992 : vector<32x32xf32>
    %cst_334 = arith.constant 5.000000e-02 : f32
    %1056 = vector.broadcast %cst_334 : f32 to vector<32x32xf32>
    %1057 = arith.mulf %1056, %1055 : vector<32x32xf32>
    %1058 = arith.addf %992, %1057 : vector<32x32xf32>
    %1059 = vector.extract_strided_slice %799 {offsets = [3, 0], sizes = [1, 32], strides = [1, 1]} : vector<8x32xf32> to vector<1x32xf32>
    %cst_335 = arith.constant 0.000000e+00 : f32
    %1060 = vector.shape_cast %1059 : vector<1x32xf32> to vector<1x32xf32>
    %1061 = vector.broadcast %1060 : vector<1x32xf32> to vector<32x32xf32>
    %1062 = vector.broadcast %cst_335 : f32 to vector<32x32xf32>
    %1063 = arith.select %2, %1061, %1062 : vector<32x32xi1>, vector<32x32xf32>
    %cst_336 = arith.constant dense<0.000000e+00> : vector<32xf32>
    %1064 = vector.multi_reduction <add>, %1063, %cst_336 [1] : vector<32x32xf32> to vector<32xf32>
    %1065 = vector.shape_cast %1064 : vector<32xf32> to vector<32x1xf32>
    %1066 = vector.broadcast %1065 : vector<32x1xf32> to vector<32x32xf32>
    %1067 = arith.mulf %1044, %1066 : vector<32x32xf32>
    %cst_337 = arith.constant dense<0.000000e+00> : vector<32xf32>
    %1068 = vector.multi_reduction <add>, %1067, %cst_337 [0] : vector<32x32xf32> to vector<32xf32>
    %1069 = vector.shape_cast %1068 : vector<32xf32> to vector<1x32xf32>
    %cst_338 = arith.constant 0.000000e+00 : f32
    %1070 = vector.shape_cast %888 : vector<1x32xf32> to vector<1x32xf32>
    %1071 = vector.broadcast %1070 : vector<1x32xf32> to vector<32x32xf32>
    %1072 = vector.broadcast %cst_338 : f32 to vector<32x32xf32>
    %1073 = arith.select %2, %1071, %1072 : vector<32x32xi1>, vector<32x32xf32>
    %cst_339 = arith.constant dense<0.000000e+00> : vector<32xf32>
    %1074 = vector.multi_reduction <add>, %1073, %cst_339 [1] : vector<32x32xf32> to vector<32xf32>
    %1075 = vector.shape_cast %1074 : vector<32xf32> to vector<32x1xf32>
    %1076 = vector.broadcast %1075 : vector<32x1xf32> to vector<32x32xf32>
    %1077 = arith.mulf %1058, %1076 : vector<32x32xf32>
    %cst_340 = arith.constant dense<0.000000e+00> : vector<32xf32>
    %1078 = vector.multi_reduction <add>, %1077, %cst_340 [0] : vector<32x32xf32> to vector<32xf32>
    %1079 = vector.shape_cast %1078 : vector<32xf32> to vector<1x32xf32>
    %1080 = vector.extract_strided_slice %749 {offsets = [3, 0], sizes = [1, 32], strides = [1, 1]} : vector<8x32xf32> to vector<1x32xf32>
    %cst_341 = arith.constant 2.000000e-01 : f32
    %1081 = vector.broadcast %cst_341 : f32 to vector<1x32xf32>
    %1082 = arith.mulf %1081, %1069 : vector<1x32xf32>
    %1083 = arith.addf %1080, %1082 : vector<1x32xf32>
    %1084 = arith.subf %1083, %1079 : vector<1x32xf32>
    %cst_342 = arith.constant 0.904837429 : f32
    %1085 = vector.broadcast %cst_342 : f32 to vector<1x32xf32>
    %1086 = arith.mulf %1085, %1012 : vector<1x32xf32>
    %cst_343 = arith.constant 0.0951625854 : f32
    %1087 = vector.broadcast %cst_343 : f32 to vector<1x32xf32>
    %1088 = arith.mulf %1087, %1084 : vector<1x32xf32>
    %1089 = arith.addf %1086, %1088 : vector<1x32xf32>
    %1090 = math.tanh %1089 : vector<1x32xf32>
    %1091 = arith.mulf %1049, %1090 : vector<1x32xf32>
    %cst_344 = arith.constant 0.904837429 : f32
    %1092 = vector.broadcast %cst_344 : f32 to vector<1x32xf32>
    %1093 = arith.mulf %1092, %1019 : vector<1x32xf32>
    %cst_345 = arith.constant 0.0951625854 : f32
    %1094 = vector.broadcast %cst_345 : f32 to vector<1x32xf32>
    %1095 = arith.mulf %1094, %1091 : vector<1x32xf32>
    %1096 = arith.addf %1093, %1095 : vector<1x32xf32>
    %1097 = math.tanh %1096 : vector<1x32xf32>
    %cst_346 = arith.constant 0.951229453 : f32
    %1098 = vector.broadcast %cst_346 : f32 to vector<1x32xf32>
    %1099 = arith.mulf %1098, %1025 : vector<1x32xf32>
    %cst_347 = arith.constant 0.0487705767 : f32
    %1100 = vector.broadcast %cst_347 : f32 to vector<1x32xf32>
    %1101 = arith.mulf %1100, %1090 : vector<1x32xf32>
    %1102 = arith.addf %1099, %1101 : vector<1x32xf32>
    %cst_348 = arith.constant 0.951229453 : f32
    %1103 = vector.broadcast %cst_348 : f32 to vector<1x32xf32>
    %1104 = arith.mulf %1103, %1030 : vector<1x32xf32>
    %cst_349 = arith.constant 0.0487705767 : f32
    %1105 = vector.broadcast %cst_349 : f32 to vector<1x32xf32>
    %1106 = arith.mulf %1105, %1097 : vector<1x32xf32>
    %1107 = arith.addf %1104, %1106 : vector<1x32xf32>
    %cst_350 = arith.constant 0.000000e+00 : f32
    %1108 = vector.shape_cast %1102 : vector<1x32xf32> to vector<1x32xf32>
    %1109 = vector.broadcast %1108 : vector<1x32xf32> to vector<32x32xf32>
    %1110 = vector.broadcast %cst_350 : f32 to vector<32x32xf32>
    %1111 = arith.select %2, %1109, %1110 : vector<32x32xi1>, vector<32x32xf32>
    %cst_351 = arith.constant dense<0.000000e+00> : vector<32xf32>
    %1112 = vector.multi_reduction <add>, %1111, %cst_351 [1] : vector<32x32xf32> to vector<32xf32>
    %1113 = vector.shape_cast %1112 : vector<32xf32> to vector<32x1xf32>
    %1114 = vector.extract_strided_slice %848 {offsets = [3, 0], sizes = [1, 32], strides = [1, 1]} : vector<8x32xf32> to vector<1x32xf32>
    %1115 = vector.broadcast %1113 : vector<32x1xf32> to vector<32x32xf32>
    %1116 = vector.broadcast %1114 : vector<1x32xf32> to vector<32x32xf32>
    %1117 = arith.mulf %1115, %1116 : vector<32x32xf32>
    %1118 = arith.subf %1117, %1044 : vector<32x32xf32>
    %cst_352 = arith.constant 5.000000e-02 : f32
    %1119 = vector.broadcast %cst_352 : f32 to vector<32x32xf32>
    %1120 = arith.mulf %1119, %1118 : vector<32x32xf32>
    %1121 = arith.addf %1044, %1120 : vector<32x32xf32>
    %1122 = arith.mulf %1102, %1107 : vector<1x32xf32>
    %1123 = arith.subf %1122, %1049 : vector<1x32xf32>
    %cst_353 = arith.constant 5.000000e-02 : f32
    %1124 = vector.broadcast %cst_353 : f32 to vector<1x32xf32>
    %1125 = arith.mulf %1124, %1123 : vector<1x32xf32>
    %1126 = arith.addf %1049, %1125 : vector<1x32xf32>
    %1127 = vector.broadcast %1113 : vector<32x1xf32> to vector<32x32xf32>
    %1128 = vector.broadcast %1107 : vector<1x32xf32> to vector<32x32xf32>
    %1129 = arith.mulf %1127, %1128 : vector<32x32xf32>
    %cst_354 = arith.constant 0.000000e+00 : f32
    %1130 = vector.broadcast %cst_354 : f32 to vector<32x32xf32>
    %1131 = arith.select %2, %1130, %1129 : vector<32x32xi1>, vector<32x32xf32>
    %1132 = arith.subf %1131, %1058 : vector<32x32xf32>
    %cst_355 = arith.constant 5.000000e-02 : f32
    %1133 = vector.broadcast %cst_355 : f32 to vector<32x32xf32>
    %1134 = arith.mulf %1133, %1132 : vector<32x32xf32>
    %1135 = arith.addf %1058, %1134 : vector<32x32xf32>
    %1136 = vector.extract_strided_slice %799 {offsets = [4, 0], sizes = [1, 32], strides = [1, 1]} : vector<8x32xf32> to vector<1x32xf32>
    %cst_356 = arith.constant 0.000000e+00 : f32
    %1137 = vector.shape_cast %1136 : vector<1x32xf32> to vector<1x32xf32>
    %1138 = vector.broadcast %1137 : vector<1x32xf32> to vector<32x32xf32>
    %1139 = vector.broadcast %cst_356 : f32 to vector<32x32xf32>
    %1140 = arith.select %2, %1138, %1139 : vector<32x32xi1>, vector<32x32xf32>
    %cst_357 = arith.constant dense<0.000000e+00> : vector<32xf32>
    %1141 = vector.multi_reduction <add>, %1140, %cst_357 [1] : vector<32x32xf32> to vector<32xf32>
    %1142 = vector.shape_cast %1141 : vector<32xf32> to vector<32x1xf32>
    %1143 = vector.broadcast %1142 : vector<32x1xf32> to vector<32x32xf32>
    %1144 = arith.mulf %1121, %1143 : vector<32x32xf32>
    %cst_358 = arith.constant dense<0.000000e+00> : vector<32xf32>
    %1145 = vector.multi_reduction <add>, %1144, %cst_358 [0] : vector<32x32xf32> to vector<32xf32>
    %1146 = vector.shape_cast %1145 : vector<32xf32> to vector<1x32xf32>
    %cst_359 = arith.constant 0.000000e+00 : f32
    %1147 = vector.shape_cast %954 : vector<1x32xf32> to vector<1x32xf32>
    %1148 = vector.broadcast %1147 : vector<1x32xf32> to vector<32x32xf32>
    %1149 = vector.broadcast %cst_359 : f32 to vector<32x32xf32>
    %1150 = arith.select %2, %1148, %1149 : vector<32x32xi1>, vector<32x32xf32>
    %cst_360 = arith.constant dense<0.000000e+00> : vector<32xf32>
    %1151 = vector.multi_reduction <add>, %1150, %cst_360 [1] : vector<32x32xf32> to vector<32xf32>
    %1152 = vector.shape_cast %1151 : vector<32xf32> to vector<32x1xf32>
    %1153 = vector.broadcast %1152 : vector<32x1xf32> to vector<32x32xf32>
    %1154 = arith.mulf %1135, %1153 : vector<32x32xf32>
    %cst_361 = arith.constant dense<0.000000e+00> : vector<32xf32>
    %1155 = vector.multi_reduction <add>, %1154, %cst_361 [0] : vector<32x32xf32> to vector<32xf32>
    %1156 = vector.shape_cast %1155 : vector<32xf32> to vector<1x32xf32>
    %1157 = vector.extract_strided_slice %749 {offsets = [4, 0], sizes = [1, 32], strides = [1, 1]} : vector<8x32xf32> to vector<1x32xf32>
    %cst_362 = arith.constant 2.000000e-01 : f32
    %1158 = vector.broadcast %cst_362 : f32 to vector<1x32xf32>
    %1159 = arith.mulf %1158, %1146 : vector<1x32xf32>
    %1160 = arith.addf %1157, %1159 : vector<1x32xf32>
    %1161 = arith.subf %1160, %1156 : vector<1x32xf32>
    %cst_363 = arith.constant 0.904837429 : f32
    %1162 = vector.broadcast %cst_363 : f32 to vector<1x32xf32>
    %1163 = arith.mulf %1162, %1089 : vector<1x32xf32>
    %cst_364 = arith.constant 0.0951625854 : f32
    %1164 = vector.broadcast %cst_364 : f32 to vector<1x32xf32>
    %1165 = arith.mulf %1164, %1161 : vector<1x32xf32>
    %1166 = arith.addf %1163, %1165 : vector<1x32xf32>
    %1167 = math.tanh %1166 : vector<1x32xf32>
    %1168 = arith.mulf %1126, %1167 : vector<1x32xf32>
    %cst_365 = arith.constant 0.904837429 : f32
    %1169 = vector.broadcast %cst_365 : f32 to vector<1x32xf32>
    %1170 = arith.mulf %1169, %1096 : vector<1x32xf32>
    %cst_366 = arith.constant 0.0951625854 : f32
    %1171 = vector.broadcast %cst_366 : f32 to vector<1x32xf32>
    %1172 = arith.mulf %1171, %1168 : vector<1x32xf32>
    %1173 = arith.addf %1170, %1172 : vector<1x32xf32>
    %1174 = math.tanh %1173 : vector<1x32xf32>
    %cst_367 = arith.constant 0.951229453 : f32
    %1175 = vector.broadcast %cst_367 : f32 to vector<1x32xf32>
    %1176 = arith.mulf %1175, %1102 : vector<1x32xf32>
    %cst_368 = arith.constant 0.0487705767 : f32
    %1177 = vector.broadcast %cst_368 : f32 to vector<1x32xf32>
    %1178 = arith.mulf %1177, %1167 : vector<1x32xf32>
    %1179 = arith.addf %1176, %1178 : vector<1x32xf32>
    %cst_369 = arith.constant 0.951229453 : f32
    %1180 = vector.broadcast %cst_369 : f32 to vector<1x32xf32>
    %1181 = arith.mulf %1180, %1107 : vector<1x32xf32>
    %cst_370 = arith.constant 0.0487705767 : f32
    %1182 = vector.broadcast %cst_370 : f32 to vector<1x32xf32>
    %1183 = arith.mulf %1182, %1174 : vector<1x32xf32>
    %1184 = arith.addf %1181, %1183 : vector<1x32xf32>
    %cst_371 = arith.constant 0.000000e+00 : f32
    %1185 = vector.shape_cast %1179 : vector<1x32xf32> to vector<1x32xf32>
    %1186 = vector.broadcast %1185 : vector<1x32xf32> to vector<32x32xf32>
    %1187 = vector.broadcast %cst_371 : f32 to vector<32x32xf32>
    %1188 = arith.select %2, %1186, %1187 : vector<32x32xi1>, vector<32x32xf32>
    %cst_372 = arith.constant dense<0.000000e+00> : vector<32xf32>
    %1189 = vector.multi_reduction <add>, %1188, %cst_372 [1] : vector<32x32xf32> to vector<32xf32>
    %1190 = vector.shape_cast %1189 : vector<32xf32> to vector<32x1xf32>
    %1191 = vector.extract_strided_slice %848 {offsets = [4, 0], sizes = [1, 32], strides = [1, 1]} : vector<8x32xf32> to vector<1x32xf32>
    %1192 = vector.broadcast %1190 : vector<32x1xf32> to vector<32x32xf32>
    %1193 = vector.broadcast %1191 : vector<1x32xf32> to vector<32x32xf32>
    %1194 = arith.mulf %1192, %1193 : vector<32x32xf32>
    %1195 = arith.subf %1194, %1121 : vector<32x32xf32>
    %cst_373 = arith.constant 5.000000e-02 : f32
    %1196 = vector.broadcast %cst_373 : f32 to vector<32x32xf32>
    %1197 = arith.mulf %1196, %1195 : vector<32x32xf32>
    %1198 = arith.addf %1121, %1197 : vector<32x32xf32>
    %1199 = arith.mulf %1179, %1184 : vector<1x32xf32>
    %1200 = arith.subf %1199, %1126 : vector<1x32xf32>
    %cst_374 = arith.constant 5.000000e-02 : f32
    %1201 = vector.broadcast %cst_374 : f32 to vector<1x32xf32>
    %1202 = arith.mulf %1201, %1200 : vector<1x32xf32>
    %1203 = arith.addf %1126, %1202 : vector<1x32xf32>
    %1204 = vector.broadcast %1190 : vector<32x1xf32> to vector<32x32xf32>
    %1205 = vector.broadcast %1184 : vector<1x32xf32> to vector<32x32xf32>
    %1206 = arith.mulf %1204, %1205 : vector<32x32xf32>
    %cst_375 = arith.constant 0.000000e+00 : f32
    %1207 = vector.broadcast %cst_375 : f32 to vector<32x32xf32>
    %1208 = arith.select %2, %1207, %1206 : vector<32x32xi1>, vector<32x32xf32>
    %1209 = arith.subf %1208, %1135 : vector<32x32xf32>
    %cst_376 = arith.constant 5.000000e-02 : f32
    %1210 = vector.broadcast %cst_376 : f32 to vector<32x32xf32>
    %1211 = arith.mulf %1210, %1209 : vector<32x32xf32>
    %1212 = arith.addf %1135, %1211 : vector<32x32xf32>
    %1213 = vector.extract_strided_slice %799 {offsets = [5, 0], sizes = [1, 32], strides = [1, 1]} : vector<8x32xf32> to vector<1x32xf32>
    %cst_377 = arith.constant 0.000000e+00 : f32
    %1214 = vector.shape_cast %1213 : vector<1x32xf32> to vector<1x32xf32>
    %1215 = vector.broadcast %1214 : vector<1x32xf32> to vector<32x32xf32>
    %1216 = vector.broadcast %cst_377 : f32 to vector<32x32xf32>
    %1217 = arith.select %2, %1215, %1216 : vector<32x32xi1>, vector<32x32xf32>
    %cst_378 = arith.constant dense<0.000000e+00> : vector<32xf32>
    %1218 = vector.multi_reduction <add>, %1217, %cst_378 [1] : vector<32x32xf32> to vector<32xf32>
    %1219 = vector.shape_cast %1218 : vector<32xf32> to vector<32x1xf32>
    %1220 = vector.broadcast %1219 : vector<32x1xf32> to vector<32x32xf32>
    %1221 = arith.mulf %1198, %1220 : vector<32x32xf32>
    %cst_379 = arith.constant dense<0.000000e+00> : vector<32xf32>
    %1222 = vector.multi_reduction <add>, %1221, %cst_379 [0] : vector<32x32xf32> to vector<32xf32>
    %1223 = vector.shape_cast %1222 : vector<32xf32> to vector<1x32xf32>
    %cst_380 = arith.constant 0.000000e+00 : f32
    %1224 = vector.shape_cast %1020 : vector<1x32xf32> to vector<1x32xf32>
    %1225 = vector.broadcast %1224 : vector<1x32xf32> to vector<32x32xf32>
    %1226 = vector.broadcast %cst_380 : f32 to vector<32x32xf32>
    %1227 = arith.select %2, %1225, %1226 : vector<32x32xi1>, vector<32x32xf32>
    %cst_381 = arith.constant dense<0.000000e+00> : vector<32xf32>
    %1228 = vector.multi_reduction <add>, %1227, %cst_381 [1] : vector<32x32xf32> to vector<32xf32>
    %1229 = vector.shape_cast %1228 : vector<32xf32> to vector<32x1xf32>
    %1230 = vector.broadcast %1229 : vector<32x1xf32> to vector<32x32xf32>
    %1231 = arith.mulf %1212, %1230 : vector<32x32xf32>
    %cst_382 = arith.constant dense<0.000000e+00> : vector<32xf32>
    %1232 = vector.multi_reduction <add>, %1231, %cst_382 [0] : vector<32x32xf32> to vector<32xf32>
    %1233 = vector.shape_cast %1232 : vector<32xf32> to vector<1x32xf32>
    %1234 = vector.extract_strided_slice %749 {offsets = [5, 0], sizes = [1, 32], strides = [1, 1]} : vector<8x32xf32> to vector<1x32xf32>
    %cst_383 = arith.constant 2.000000e-01 : f32
    %1235 = vector.broadcast %cst_383 : f32 to vector<1x32xf32>
    %1236 = arith.mulf %1235, %1223 : vector<1x32xf32>
    %1237 = arith.addf %1234, %1236 : vector<1x32xf32>
    %1238 = arith.subf %1237, %1233 : vector<1x32xf32>
    %cst_384 = arith.constant 0.904837429 : f32
    %1239 = vector.broadcast %cst_384 : f32 to vector<1x32xf32>
    %1240 = arith.mulf %1239, %1166 : vector<1x32xf32>
    %cst_385 = arith.constant 0.0951625854 : f32
    %1241 = vector.broadcast %cst_385 : f32 to vector<1x32xf32>
    %1242 = arith.mulf %1241, %1238 : vector<1x32xf32>
    %1243 = arith.addf %1240, %1242 : vector<1x32xf32>
    %1244 = math.tanh %1243 : vector<1x32xf32>
    %1245 = arith.mulf %1203, %1244 : vector<1x32xf32>
    %cst_386 = arith.constant 0.904837429 : f32
    %1246 = vector.broadcast %cst_386 : f32 to vector<1x32xf32>
    %1247 = arith.mulf %1246, %1173 : vector<1x32xf32>
    %cst_387 = arith.constant 0.0951625854 : f32
    %1248 = vector.broadcast %cst_387 : f32 to vector<1x32xf32>
    %1249 = arith.mulf %1248, %1245 : vector<1x32xf32>
    %1250 = arith.addf %1247, %1249 : vector<1x32xf32>
    %1251 = math.tanh %1250 : vector<1x32xf32>
    %cst_388 = arith.constant 0.951229453 : f32
    %1252 = vector.broadcast %cst_388 : f32 to vector<1x32xf32>
    %1253 = arith.mulf %1252, %1179 : vector<1x32xf32>
    %cst_389 = arith.constant 0.0487705767 : f32
    %1254 = vector.broadcast %cst_389 : f32 to vector<1x32xf32>
    %1255 = arith.mulf %1254, %1244 : vector<1x32xf32>
    %1256 = arith.addf %1253, %1255 : vector<1x32xf32>
    %cst_390 = arith.constant 0.951229453 : f32
    %1257 = vector.broadcast %cst_390 : f32 to vector<1x32xf32>
    %1258 = arith.mulf %1257, %1184 : vector<1x32xf32>
    %cst_391 = arith.constant 0.0487705767 : f32
    %1259 = vector.broadcast %cst_391 : f32 to vector<1x32xf32>
    %1260 = arith.mulf %1259, %1251 : vector<1x32xf32>
    %1261 = arith.addf %1258, %1260 : vector<1x32xf32>
    %cst_392 = arith.constant 0.000000e+00 : f32
    %1262 = vector.shape_cast %1256 : vector<1x32xf32> to vector<1x32xf32>
    %1263 = vector.broadcast %1262 : vector<1x32xf32> to vector<32x32xf32>
    %1264 = vector.broadcast %cst_392 : f32 to vector<32x32xf32>
    %1265 = arith.select %2, %1263, %1264 : vector<32x32xi1>, vector<32x32xf32>
    %cst_393 = arith.constant dense<0.000000e+00> : vector<32xf32>
    %1266 = vector.multi_reduction <add>, %1265, %cst_393 [1] : vector<32x32xf32> to vector<32xf32>
    %1267 = vector.shape_cast %1266 : vector<32xf32> to vector<32x1xf32>
    %1268 = vector.extract_strided_slice %848 {offsets = [5, 0], sizes = [1, 32], strides = [1, 1]} : vector<8x32xf32> to vector<1x32xf32>
    %1269 = vector.broadcast %1267 : vector<32x1xf32> to vector<32x32xf32>
    %1270 = vector.broadcast %1268 : vector<1x32xf32> to vector<32x32xf32>
    %1271 = arith.mulf %1269, %1270 : vector<32x32xf32>
    %1272 = arith.subf %1271, %1198 : vector<32x32xf32>
    %cst_394 = arith.constant 5.000000e-02 : f32
    %1273 = vector.broadcast %cst_394 : f32 to vector<32x32xf32>
    %1274 = arith.mulf %1273, %1272 : vector<32x32xf32>
    %1275 = arith.addf %1198, %1274 : vector<32x32xf32>
    %1276 = arith.mulf %1256, %1261 : vector<1x32xf32>
    %1277 = arith.subf %1276, %1203 : vector<1x32xf32>
    %cst_395 = arith.constant 5.000000e-02 : f32
    %1278 = vector.broadcast %cst_395 : f32 to vector<1x32xf32>
    %1279 = arith.mulf %1278, %1277 : vector<1x32xf32>
    %1280 = arith.addf %1203, %1279 : vector<1x32xf32>
    %1281 = vector.broadcast %1267 : vector<32x1xf32> to vector<32x32xf32>
    %1282 = vector.broadcast %1261 : vector<1x32xf32> to vector<32x32xf32>
    %1283 = arith.mulf %1281, %1282 : vector<32x32xf32>
    %cst_396 = arith.constant 0.000000e+00 : f32
    %1284 = vector.broadcast %cst_396 : f32 to vector<32x32xf32>
    %1285 = arith.select %2, %1284, %1283 : vector<32x32xi1>, vector<32x32xf32>
    %1286 = arith.subf %1285, %1212 : vector<32x32xf32>
    %cst_397 = arith.constant 5.000000e-02 : f32
    %1287 = vector.broadcast %cst_397 : f32 to vector<32x32xf32>
    %1288 = arith.mulf %1287, %1286 : vector<32x32xf32>
    %1289 = arith.addf %1212, %1288 : vector<32x32xf32>
    %1290 = vector.extract_strided_slice %799 {offsets = [6, 0], sizes = [1, 32], strides = [1, 1]} : vector<8x32xf32> to vector<1x32xf32>
    %cst_398 = arith.constant 0.000000e+00 : f32
    %1291 = vector.shape_cast %1290 : vector<1x32xf32> to vector<1x32xf32>
    %1292 = vector.broadcast %1291 : vector<1x32xf32> to vector<32x32xf32>
    %1293 = vector.broadcast %cst_398 : f32 to vector<32x32xf32>
    %1294 = arith.select %2, %1292, %1293 : vector<32x32xi1>, vector<32x32xf32>
    %cst_399 = arith.constant dense<0.000000e+00> : vector<32xf32>
    %1295 = vector.multi_reduction <add>, %1294, %cst_399 [1] : vector<32x32xf32> to vector<32xf32>
    %1296 = vector.shape_cast %1295 : vector<32xf32> to vector<32x1xf32>
    %1297 = vector.broadcast %1296 : vector<32x1xf32> to vector<32x32xf32>
    %1298 = arith.mulf %1275, %1297 : vector<32x32xf32>
    %cst_400 = arith.constant dense<0.000000e+00> : vector<32xf32>
    %1299 = vector.multi_reduction <add>, %1298, %cst_400 [0] : vector<32x32xf32> to vector<32xf32>
    %1300 = vector.shape_cast %1299 : vector<32xf32> to vector<1x32xf32>
    %cst_401 = arith.constant 0.000000e+00 : f32
    %1301 = vector.shape_cast %1097 : vector<1x32xf32> to vector<1x32xf32>
    %1302 = vector.broadcast %1301 : vector<1x32xf32> to vector<32x32xf32>
    %1303 = vector.broadcast %cst_401 : f32 to vector<32x32xf32>
    %1304 = arith.select %2, %1302, %1303 : vector<32x32xi1>, vector<32x32xf32>
    %cst_402 = arith.constant dense<0.000000e+00> : vector<32xf32>
    %1305 = vector.multi_reduction <add>, %1304, %cst_402 [1] : vector<32x32xf32> to vector<32xf32>
    %1306 = vector.shape_cast %1305 : vector<32xf32> to vector<32x1xf32>
    %1307 = vector.broadcast %1306 : vector<32x1xf32> to vector<32x32xf32>
    %1308 = arith.mulf %1289, %1307 : vector<32x32xf32>
    %cst_403 = arith.constant dense<0.000000e+00> : vector<32xf32>
    %1309 = vector.multi_reduction <add>, %1308, %cst_403 [0] : vector<32x32xf32> to vector<32xf32>
    %1310 = vector.shape_cast %1309 : vector<32xf32> to vector<1x32xf32>
    %1311 = vector.extract_strided_slice %749 {offsets = [6, 0], sizes = [1, 32], strides = [1, 1]} : vector<8x32xf32> to vector<1x32xf32>
    %cst_404 = arith.constant 2.000000e-01 : f32
    %1312 = vector.broadcast %cst_404 : f32 to vector<1x32xf32>
    %1313 = arith.mulf %1312, %1300 : vector<1x32xf32>
    %1314 = arith.addf %1311, %1313 : vector<1x32xf32>
    %1315 = arith.subf %1314, %1310 : vector<1x32xf32>
    %cst_405 = arith.constant 0.904837429 : f32
    %1316 = vector.broadcast %cst_405 : f32 to vector<1x32xf32>
    %1317 = arith.mulf %1316, %1243 : vector<1x32xf32>
    %cst_406 = arith.constant 0.0951625854 : f32
    %1318 = vector.broadcast %cst_406 : f32 to vector<1x32xf32>
    %1319 = arith.mulf %1318, %1315 : vector<1x32xf32>
    %1320 = arith.addf %1317, %1319 : vector<1x32xf32>
    %1321 = math.tanh %1320 : vector<1x32xf32>
    %1322 = arith.mulf %1280, %1321 : vector<1x32xf32>
    %cst_407 = arith.constant 0.904837429 : f32
    %1323 = vector.broadcast %cst_407 : f32 to vector<1x32xf32>
    %1324 = arith.mulf %1323, %1250 : vector<1x32xf32>
    %cst_408 = arith.constant 0.0951625854 : f32
    %1325 = vector.broadcast %cst_408 : f32 to vector<1x32xf32>
    %1326 = arith.mulf %1325, %1322 : vector<1x32xf32>
    %1327 = arith.addf %1324, %1326 : vector<1x32xf32>
    %1328 = math.tanh %1327 : vector<1x32xf32>
    %cst_409 = arith.constant 0.951229453 : f32
    %1329 = vector.broadcast %cst_409 : f32 to vector<1x32xf32>
    %1330 = arith.mulf %1329, %1256 : vector<1x32xf32>
    %cst_410 = arith.constant 0.0487705767 : f32
    %1331 = vector.broadcast %cst_410 : f32 to vector<1x32xf32>
    %1332 = arith.mulf %1331, %1321 : vector<1x32xf32>
    %1333 = arith.addf %1330, %1332 : vector<1x32xf32>
    %cst_411 = arith.constant 0.951229453 : f32
    %1334 = vector.broadcast %cst_411 : f32 to vector<1x32xf32>
    %1335 = arith.mulf %1334, %1261 : vector<1x32xf32>
    %cst_412 = arith.constant 0.0487705767 : f32
    %1336 = vector.broadcast %cst_412 : f32 to vector<1x32xf32>
    %1337 = arith.mulf %1336, %1328 : vector<1x32xf32>
    %1338 = arith.addf %1335, %1337 : vector<1x32xf32>
    %cst_413 = arith.constant 0.000000e+00 : f32
    %1339 = vector.shape_cast %1333 : vector<1x32xf32> to vector<1x32xf32>
    %1340 = vector.broadcast %1339 : vector<1x32xf32> to vector<32x32xf32>
    %1341 = vector.broadcast %cst_413 : f32 to vector<32x32xf32>
    %1342 = arith.select %2, %1340, %1341 : vector<32x32xi1>, vector<32x32xf32>
    %cst_414 = arith.constant dense<0.000000e+00> : vector<32xf32>
    %1343 = vector.multi_reduction <add>, %1342, %cst_414 [1] : vector<32x32xf32> to vector<32xf32>
    %1344 = vector.shape_cast %1343 : vector<32xf32> to vector<32x1xf32>
    %1345 = vector.extract_strided_slice %848 {offsets = [6, 0], sizes = [1, 32], strides = [1, 1]} : vector<8x32xf32> to vector<1x32xf32>
    %1346 = vector.broadcast %1344 : vector<32x1xf32> to vector<32x32xf32>
    %1347 = vector.broadcast %1345 : vector<1x32xf32> to vector<32x32xf32>
    %1348 = arith.mulf %1346, %1347 : vector<32x32xf32>
    %1349 = arith.subf %1348, %1275 : vector<32x32xf32>
    %cst_415 = arith.constant 5.000000e-02 : f32
    %1350 = vector.broadcast %cst_415 : f32 to vector<32x32xf32>
    %1351 = arith.mulf %1350, %1349 : vector<32x32xf32>
    %1352 = arith.addf %1275, %1351 : vector<32x32xf32>
    %1353 = arith.mulf %1333, %1338 : vector<1x32xf32>
    %1354 = arith.subf %1353, %1280 : vector<1x32xf32>
    %cst_416 = arith.constant 5.000000e-02 : f32
    %1355 = vector.broadcast %cst_416 : f32 to vector<1x32xf32>
    %1356 = arith.mulf %1355, %1354 : vector<1x32xf32>
    %1357 = arith.addf %1280, %1356 : vector<1x32xf32>
    %1358 = vector.broadcast %1344 : vector<32x1xf32> to vector<32x32xf32>
    %1359 = vector.broadcast %1338 : vector<1x32xf32> to vector<32x32xf32>
    %1360 = arith.mulf %1358, %1359 : vector<32x32xf32>
    %cst_417 = arith.constant 0.000000e+00 : f32
    %1361 = vector.broadcast %cst_417 : f32 to vector<32x32xf32>
    %1362 = arith.select %2, %1361, %1360 : vector<32x32xi1>, vector<32x32xf32>
    %1363 = arith.subf %1362, %1289 : vector<32x32xf32>
    %cst_418 = arith.constant 5.000000e-02 : f32
    %1364 = vector.broadcast %cst_418 : f32 to vector<32x32xf32>
    %1365 = arith.mulf %1364, %1363 : vector<32x32xf32>
    %1366 = arith.addf %1289, %1365 : vector<32x32xf32>
    %1367 = vector.extract_strided_slice %799 {offsets = [7, 0], sizes = [1, 32], strides = [1, 1]} : vector<8x32xf32> to vector<1x32xf32>
    %cst_419 = arith.constant 0.000000e+00 : f32
    %1368 = vector.shape_cast %1367 : vector<1x32xf32> to vector<1x32xf32>
    %1369 = vector.broadcast %1368 : vector<1x32xf32> to vector<32x32xf32>
    %1370 = vector.broadcast %cst_419 : f32 to vector<32x32xf32>
    %1371 = arith.select %2, %1369, %1370 : vector<32x32xi1>, vector<32x32xf32>
    %cst_420 = arith.constant dense<0.000000e+00> : vector<32xf32>
    %1372 = vector.multi_reduction <add>, %1371, %cst_420 [1] : vector<32x32xf32> to vector<32xf32>
    %1373 = vector.shape_cast %1372 : vector<32xf32> to vector<32x1xf32>
    %1374 = vector.broadcast %1373 : vector<32x1xf32> to vector<32x32xf32>
    %1375 = arith.mulf %1352, %1374 : vector<32x32xf32>
    %cst_421 = arith.constant dense<0.000000e+00> : vector<32xf32>
    %1376 = vector.multi_reduction <add>, %1375, %cst_421 [0] : vector<32x32xf32> to vector<32xf32>
    %1377 = vector.shape_cast %1376 : vector<32xf32> to vector<1x32xf32>
    %cst_422 = arith.constant 0.000000e+00 : f32
    %1378 = vector.shape_cast %1174 : vector<1x32xf32> to vector<1x32xf32>
    %1379 = vector.broadcast %1378 : vector<1x32xf32> to vector<32x32xf32>
    %1380 = vector.broadcast %cst_422 : f32 to vector<32x32xf32>
    %1381 = arith.select %2, %1379, %1380 : vector<32x32xi1>, vector<32x32xf32>
    %cst_423 = arith.constant dense<0.000000e+00> : vector<32xf32>
    %1382 = vector.multi_reduction <add>, %1381, %cst_423 [1] : vector<32x32xf32> to vector<32xf32>
    %1383 = vector.shape_cast %1382 : vector<32xf32> to vector<32x1xf32>
    %1384 = vector.broadcast %1383 : vector<32x1xf32> to vector<32x32xf32>
    %1385 = arith.mulf %1366, %1384 : vector<32x32xf32>
    %cst_424 = arith.constant dense<0.000000e+00> : vector<32xf32>
    %1386 = vector.multi_reduction <add>, %1385, %cst_424 [0] : vector<32x32xf32> to vector<32xf32>
    %1387 = vector.shape_cast %1386 : vector<32xf32> to vector<1x32xf32>
    %1388 = vector.extract_strided_slice %749 {offsets = [7, 0], sizes = [1, 32], strides = [1, 1]} : vector<8x32xf32> to vector<1x32xf32>
    %cst_425 = arith.constant 2.000000e-01 : f32
    %1389 = vector.broadcast %cst_425 : f32 to vector<1x32xf32>
    %1390 = arith.mulf %1389, %1377 : vector<1x32xf32>
    %1391 = arith.addf %1388, %1390 : vector<1x32xf32>
    %1392 = arith.subf %1391, %1387 : vector<1x32xf32>
    %cst_426 = arith.constant 0.904837429 : f32
    %1393 = vector.broadcast %cst_426 : f32 to vector<1x32xf32>
    %1394 = arith.mulf %1393, %1320 : vector<1x32xf32>
    %cst_427 = arith.constant 0.0951625854 : f32
    %1395 = vector.broadcast %cst_427 : f32 to vector<1x32xf32>
    %1396 = arith.mulf %1395, %1392 : vector<1x32xf32>
    %1397 = arith.addf %1394, %1396 : vector<1x32xf32>
    %1398 = math.tanh %1397 : vector<1x32xf32>
    %1399 = arith.mulf %1357, %1398 : vector<1x32xf32>
    %cst_428 = arith.constant 0.904837429 : f32
    %1400 = vector.broadcast %cst_428 : f32 to vector<1x32xf32>
    %1401 = arith.mulf %1400, %1327 : vector<1x32xf32>
    %cst_429 = arith.constant 0.0951625854 : f32
    %1402 = vector.broadcast %cst_429 : f32 to vector<1x32xf32>
    %1403 = arith.mulf %1402, %1399 : vector<1x32xf32>
    %1404 = arith.addf %1401, %1403 : vector<1x32xf32>
    %1405 = math.tanh %1404 : vector<1x32xf32>
    %cst_430 = arith.constant 0.951229453 : f32
    %1406 = vector.broadcast %cst_430 : f32 to vector<1x32xf32>
    %1407 = arith.mulf %1406, %1333 : vector<1x32xf32>
    %cst_431 = arith.constant 0.0487705767 : f32
    %1408 = vector.broadcast %cst_431 : f32 to vector<1x32xf32>
    %1409 = arith.mulf %1408, %1398 : vector<1x32xf32>
    %1410 = arith.addf %1407, %1409 : vector<1x32xf32>
    %cst_432 = arith.constant 0.951229453 : f32
    %1411 = vector.broadcast %cst_432 : f32 to vector<1x32xf32>
    %1412 = arith.mulf %1411, %1338 : vector<1x32xf32>
    %cst_433 = arith.constant 0.0487705767 : f32
    %1413 = vector.broadcast %cst_433 : f32 to vector<1x32xf32>
    %1414 = arith.mulf %1413, %1405 : vector<1x32xf32>
    %1415 = arith.addf %1412, %1414 : vector<1x32xf32>
    %cst_434 = arith.constant 0.000000e+00 : f32
    %1416 = vector.shape_cast %1410 : vector<1x32xf32> to vector<1x32xf32>
    %1417 = vector.broadcast %1416 : vector<1x32xf32> to vector<32x32xf32>
    %1418 = vector.broadcast %cst_434 : f32 to vector<32x32xf32>
    %1419 = arith.select %2, %1417, %1418 : vector<32x32xi1>, vector<32x32xf32>
    %cst_435 = arith.constant dense<0.000000e+00> : vector<32xf32>
    %1420 = vector.multi_reduction <add>, %1419, %cst_435 [1] : vector<32x32xf32> to vector<32xf32>
    %1421 = vector.shape_cast %1420 : vector<32xf32> to vector<32x1xf32>
    %1422 = vector.extract_strided_slice %848 {offsets = [7, 0], sizes = [1, 32], strides = [1, 1]} : vector<8x32xf32> to vector<1x32xf32>
    %1423 = vector.broadcast %1421 : vector<32x1xf32> to vector<32x32xf32>
    %1424 = vector.broadcast %1422 : vector<1x32xf32> to vector<32x32xf32>
    %1425 = arith.mulf %1423, %1424 : vector<32x32xf32>
    %1426 = arith.subf %1425, %1352 : vector<32x32xf32>
    %cst_436 = arith.constant 5.000000e-02 : f32
    %1427 = vector.broadcast %cst_436 : f32 to vector<32x32xf32>
    %1428 = arith.mulf %1427, %1426 : vector<32x32xf32>
    %1429 = arith.addf %1352, %1428 : vector<32x32xf32>
    %1430 = arith.mulf %1410, %1415 : vector<1x32xf32>
    %1431 = arith.subf %1430, %1357 : vector<1x32xf32>
    %cst_437 = arith.constant 5.000000e-02 : f32
    %1432 = vector.broadcast %cst_437 : f32 to vector<1x32xf32>
    %1433 = arith.mulf %1432, %1431 : vector<1x32xf32>
    %1434 = arith.addf %1357, %1433 : vector<1x32xf32>
    %1435 = vector.broadcast %1421 : vector<32x1xf32> to vector<32x32xf32>
    %1436 = vector.broadcast %1415 : vector<1x32xf32> to vector<32x32xf32>
    %1437 = arith.mulf %1435, %1436 : vector<32x32xf32>
    %cst_438 = arith.constant 0.000000e+00 : f32
    %1438 = vector.broadcast %cst_438 : f32 to vector<32x32xf32>
    %1439 = arith.select %2, %1438, %1437 : vector<32x32xi1>, vector<32x32xf32>
    %1440 = arith.subf %1439, %1366 : vector<32x32xf32>
    %cst_439 = arith.constant 5.000000e-02 : f32
    %1441 = vector.broadcast %cst_439 : f32 to vector<32x32xf32>
    %1442 = arith.mulf %1441, %1440 : vector<32x32xf32>
    %1443 = arith.addf %1366, %1442 : vector<32x32xf32>
    %1444 = tpu.concatenate %881, %947, %1013, %1090, %1167, %1244, %1321, %1398 in 0 : vector<1x32xf32>, vector<1x32xf32>, vector<1x32xf32>, vector<1x32xf32>, vector<1x32xf32>, vector<1x32xf32>, vector<1x32xf32>, vector<1x32xf32> -> vector<8x32xf32>
    %cst_440 = arith.constant 0.000000e+00 : f32
    %1445 = vector.shape_cast %1410 : vector<1x32xf32> to vector<1x32xf32>
    %1446 = vector.broadcast %1445 : vector<1x32xf32> to vector<32x32xf32>
    %1447 = vector.broadcast %cst_440 : f32 to vector<32x32xf32>
    %1448 = arith.select %2, %1446, %1447 : vector<32x32xi1>, vector<32x32xf32>
    %cst_441 = arith.constant dense<0.000000e+00> : vector<32xf32>
    %1449 = vector.multi_reduction <add>, %1448, %cst_441 [1] : vector<32x32xf32> to vector<32xf32>
    %1450 = vector.shape_cast %1449 : vector<32xf32> to vector<32x1xf32>
    %1451 = vector.broadcast %1450 : vector<32x1xf32> to vector<32x32xf32>
    %1452 = vector.broadcast %1415 : vector<1x32xf32> to vector<32x32xf32>
    %1453 = arith.mulf %1451, %1452 : vector<32x32xf32>
    %cst_442 = arith.constant 5.000000e-02 : f32
    %1454 = vector.broadcast %cst_442 : f32 to vector<32x32xf32>
    %1455 = arith.mulf %1454, %1453 : vector<32x32xf32>
    %1456 = vector.shape_cast %1434 : vector<1x32xf32> to vector<1x32xf32>
    %1457 = vector.broadcast %1456 : vector<1x32xf32> to vector<32x32xf32>
    %1458 = arith.select %2, %1457, %1455 : vector<32x32xi1>, vector<32x32xf32>
    %1459 = arith.mulf %1415, %1410 : vector<1x32xf32>
    %cst_443 = arith.constant 5.000000e-02 : f32
    %1460 = vector.broadcast %cst_443 : f32 to vector<1x32xf32>
    %1461 = arith.mulf %1460, %1459 : vector<1x32xf32>
    %1462 = vector.shape_cast %1461 : vector<1x32xf32> to vector<1x32xf32>
    %1463 = vector.broadcast %1462 : vector<1x32xf32> to vector<32x32xf32>
    %1464 = arith.select %2, %1463, %1443 : vector<32x32xi1>, vector<32x32xf32>
    %c1_444 = arith.constant 1 : index
    %c0_445 = arith.constant 0 : index
    %c0_446 = arith.constant 0 : index
    %c0_447 = arith.constant 0 : index
    %1465 = vector.load %arg6[%c1_444, %c0_445, %c0_446, %c0_447] : memref<2x3x32x32xf32, #tpu.memory_space<vmem>>, vector<1x1x32x32xf32>
    %1466 = vector.shape_cast %1465 : vector<1x1x32x32xf32> to vector<32x32xf32>
    %1467 = vector.shape_cast %1429 : vector<32x32xf32> to vector<1x1x32x32xf32>
    tpu.vector_store %arg6[%c1_444, %c0_445, %c0_446, %c0_447], %1467 {strides = array<i32>} : memref<2x3x32x32xf32, #tpu.memory_space<vmem>>, vector<1x1x32x32xf32>,
    %c1_448 = arith.constant 1 : index
    %c1_449 = arith.constant 1 : index
    %c0_450 = arith.constant 0 : index
    %c0_451 = arith.constant 0 : index
    %1468 = vector.load %arg6[%c1_448, %c1_449, %c0_450, %c0_451] : memref<2x3x32x32xf32, #tpu.memory_space<vmem>>, vector<1x1x32x32xf32>
    %1469 = vector.shape_cast %1468 : vector<1x1x32x32xf32> to vector<32x32xf32>
    %1470 = vector.shape_cast %1458 : vector<32x32xf32> to vector<1x1x32x32xf32>
    tpu.vector_store %arg6[%c1_448, %c1_449, %c0_450, %c0_451], %1470 {strides = array<i32>} : memref<2x3x32x32xf32, #tpu.memory_space<vmem>>, vector<1x1x32x32xf32>,
    %c1_452 = arith.constant 1 : index
    %c2_453 = arith.constant 2 : index
    %c0_454 = arith.constant 0 : index
    %c0_455 = arith.constant 0 : index
    %1471 = vector.load %arg6[%c1_452, %c2_453, %c0_454, %c0_455] : memref<2x3x32x32xf32, #tpu.memory_space<vmem>>, vector<1x1x32x32xf32>
    %1472 = vector.shape_cast %1471 : vector<1x1x32x32xf32> to vector<32x32xf32>
    %1473 = vector.shape_cast %1464 : vector<32x32xf32> to vector<1x1x32x32xf32>
    tpu.vector_store %arg6[%c1_452, %c2_453, %c0_454, %c0_455], %1473 {strides = array<i32>} : memref<2x3x32x32xf32, #tpu.memory_space<vmem>>, vector<1x1x32x32xf32>,
    %c1_456 = arith.constant 1 : index
    %c0_457 = arith.constant 0 : index
    %c0_458 = arith.constant 0 : index
    %c0_459 = arith.constant 0 : index
    %1474 = vector.load %arg7[%c1_456, %c0_457, %c0_458, %c0_459] : memref<2x2x8x32xf32, #tpu.memory_space<vmem>>, vector<1x1x8x32xf32>
    %1475 = vector.shape_cast %1474 : vector<1x1x8x32xf32> to vector<8x32xf32>
    %1476 = vector.shape_cast %799 : vector<8x32xf32> to vector<1x1x8x32xf32>
    tpu.vector_store %arg7[%c1_456, %c0_457, %c0_458, %c0_459], %1476 {strides = array<i32>} : memref<2x2x8x32xf32, #tpu.memory_space<vmem>>, vector<1x1x8x32xf32>,
    %c1_460 = arith.constant 1 : index
    %c1_461 = arith.constant 1 : index
    %c0_462 = arith.constant 0 : index
    %c0_463 = arith.constant 0 : index
    %1477 = vector.load %arg7[%c1_460, %c1_461, %c0_462, %c0_463] : memref<2x2x8x32xf32, #tpu.memory_space<vmem>>, vector<1x1x8x32xf32>
    %1478 = vector.shape_cast %1477 : vector<1x1x8x32xf32> to vector<8x32xf32>
    %1479 = vector.shape_cast %1444 : vector<8x32xf32> to vector<1x1x8x32xf32>
    tpu.vector_store %arg7[%c1_460, %c1_461, %c0_462, %c0_463], %1479 {strides = array<i32>} : memref<2x2x8x32xf32, #tpu.memory_space<vmem>>, vector<1x1x8x32xf32>,
    %1480 = vector.extract_strided_slice %848 {offsets = [7, 0], sizes = [1, 32], strides = [1, 1]} : vector<8x32xf32> to vector<1x32xf32>
    %1481 = tpu.concatenate %797, %1397, %1404, %1480, %1410, %1415, %1328, %1405, %1251 in 0 : vector<1x32xf32>, vector<1x32xf32>, vector<1x32xf32>, vector<1x32xf32>, vector<1x32xf32>, vector<1x32xf32>, vector<1x32xf32>, vector<1x32xf32>, vector<1x32xf32> -> vector<9x32xf32>
    %c1_464 = arith.constant 1 : index
    %c0_465 = arith.constant 0 : index
    %c0_466 = arith.constant 0 : index
    %1482 = vector.load %arg8[%c1_464, %c0_465, %c0_466] : memref<2x9x32xf32, #tpu.memory_space<vmem>>, vector<1x9x32xf32>
    %1483 = vector.shape_cast %1482 : vector<1x9x32xf32> to vector<9x32xf32>
    %1484 = vector.shape_cast %1481 : vector<9x32xf32> to vector<1x9x32xf32>
    tpu.vector_store %arg8[%c1_464, %c0_465, %c0_466], %1484 {strides = array<i32>} : memref<2x9x32xf32, #tpu.memory_space<vmem>>, vector<1x9x32xf32>,
    return
  }
  func.func @transform_0(%arg0: i32) -> (i32, i32, i32) {
    %c0_i32 = arith.constant 0 : i32
    %c0_i32_0 = arith.constant 0 : i32
    %c0_i32_1 = arith.constant 0 : i32
    %c0_i32_2 = arith.constant 0 : i32
    return %c0_i32, %c0_i32_0, %c0_i32_1 : i32, i32, i32
  }
  func.func @transform_1(%arg0: i32) -> (i32, i32) {
    %c0_i32 = arith.constant 0 : i32
    %c0_i32_0 = arith.constant 0 : i32
    %c0_i32_1 = arith.constant 0 : i32
    return %c0_i32, %c0_i32_0 : i32, i32
  }
  func.func @transform_2(%arg0: i32) -> (i32, i32, i32) {
    %c0_i32 = arith.constant 0 : i32
    %c0_i32_0 = arith.constant 0 : i32
    %c0_i32_1 = arith.constant 0 : i32
    %c0_i32_2 = arith.constant 0 : i32
    return %c0_i32, %c0_i32_0, %c0_i32_1 : i32, i32, i32
  }
  func.func @transform_3(%arg0: i32) -> (i32, i32, i32) {
    %c0_i32 = arith.constant 0 : i32
    %c0_i32_0 = arith.constant 0 : i32
    %c0_i32_1 = arith.constant 0 : i32
    %c0_i32_2 = arith.constant 0 : i32
    return %c0_i32, %c0_i32_0, %c0_i32_1 : i32, i32, i32
  }
  func.func @transform_4(%arg0: i32) -> (i32, i32, i32) {
    %c0_i32 = arith.constant 0 : i32
    %c0_i32_0 = arith.constant 0 : i32
    %c0_i32_1 = arith.constant 0 : i32
    %c0_i32_2 = arith.constant 0 : i32
    return %c0_i32, %c0_i32_0, %c0_i32_1 : i32, i32, i32
  }
  func.func @transform_5(%arg0: i32) -> (i32, i32, i32, i32) {
    %c0_i32 = arith.constant 0 : i32
    %c0_i32_0 = arith.constant 0 : i32
    %c0_i32_1 = arith.constant 0 : i32
    %c0_i32_2 = arith.constant 0 : i32
    %c0_i32_3 = arith.constant 0 : i32
    return %c0_i32, %c0_i32_0, %c0_i32_1, %c0_i32_2 : i32, i32, i32, i32
  }
  func.func @transform_6(%arg0: i32) -> (i32, i32, i32, i32) {
    %c0_i32 = arith.constant 0 : i32
    %c0_i32_0 = arith.constant 0 : i32
    %c0_i32_1 = arith.constant 0 : i32
    %c0_i32_2 = arith.constant 0 : i32
    %c0_i32_3 = arith.constant 0 : i32
    return %c0_i32, %c0_i32_0, %c0_i32_1, %c0_i32_2 : i32, i32, i32, i32
  }
  func.func @transform_7(%arg0: i32) -> (i32, i32, i32) {
    %c0_i32 = arith.constant 0 : i32
    %c0_i32_0 = arith.constant 0 : i32
    %c0_i32_1 = arith.constant 0 : i32
    %c0_i32_2 = arith.constant 0 : i32
    return %c0_i32, %c0_i32_0, %c0_i32_1 : i32, i32, i32
  }
}

</mosaic_0001>

<bundles_post_ra>
// kernel: tpu_custom_call.1
= control target key start
LH: loop header
LB: loop body
LE: loop exit
PB: predicated region body
PF: predicated region fallthrough
CT: control target
= control target key end

     0   :  { %13 = vsyncpa [#allocation3], 0  ;;  %s7817_s0 = inlined_call_operand.hbm [shape: f32[2,8,32], index: 0, kind: input, shape index: {}]   ;;  %s7818_s1 = inlined_call_operand.hbm [shape: f32[32,64], index: 1, kind: input, shape index: {}]   ;;  %s7819_s2 = inlined_call_operand.hbm [shape: f32[2,32,32], index: 2, kind: input, shape index: {}]   ;;  %s7820_s3 = inlined_call_operand.hbm [shape: f32[2,32,32], index: 3, kind: input, shape index: {}]   ;;  %s7821_s4 = inlined_call_operand.hbm [shape: f32[2,32,32], index: 4, kind: input, shape index: {}]   ;;  %s7822_s5 = inlined_call_operand.hbm [shape: f32[2,3,32,32], index: 5, kind: output, shape index: {0}]   ;;  %s7823_s6 = inlined_call_operand.hbm [shape: f32[2,2,8,32], index: 6, kind: output, shape index: {1}]   ;;  %s7824_s7 = inlined_call_operand.vmem [shape: f32[2,9,32], index: 7, kind: output, shape index: {2}]  }
   0x1   :  { %14 = vsyncpa [#allocation6], 0 }
   0x2   :  { %15 = vsyncpa [#allocation9], 0 }
   0x3   :  { %16 = vsyncpa [#allocation4], 0 }
   0x4   :  { %17 = vsyncpa [#allocation13], 0  ;;  %s4860_s24 = smov [#allocation5]   ;;  %s4861_s26 = smov [#allocation8]  }
   0x5   :  { %s35_s25 = sshll.u32 %s4860_s24, 4  ;;  %s59_s27 = sshll.u32 %s4861_s26, 4  ;;  %s36_s25 = int_to_ptr.vmem [resolvable:$true] %s35_s25  ;;  %s60_s27 = int_to_ptr.vmem [resolvable:$true] %s59_s27 }
   0x6   :  { %s4718_s28 = scalar_lea.vmem %s36_s25, 512  ;;  %p4723_p1 = scmp.lt.s32.totalorder %s36_s25, %s36_s25 }
   0x7   :  { %p4719_p0 = scmp.ne.s32.totalorder %s36_s25, %s4718_s28  ;;  %p4724_p2 = scmp.lt.s32.totalorder %s4718_s28, %s4718_s28 }
   0x9   :  { %p4725_p3 = por %p4724_p2, %p4723_p1 }
   0xb   :  { %p4726_p4 = pnand %p4725_p3, %p4719_p0 }
   0xd   :  { %4729 = shalt.err (!%p4726_p4)
}
   0xe   :  { %s4862_s29 = smov 128   ;;  %s4863_s30 = smov 8  }
   0xf   :  { %41 = dma.hbm_to_vmem [thread:$0]  %s7818_s1, 512, %s36_s25, [#allocation6], %s4862_s29, %s4862_s29, %s4863_s30  }
  0x10   :  { %s4738_s10 = scalar_lea.vmem %s60_s27, 1024  ;;  %p4743_p6 = scmp.lt.s32.totalorder %s60_s27, %s60_s27 }
  0x11   :  { %p4739_p5 = scmp.ne.s32.totalorder %s60_s27, %s4738_s10  ;;  %p4744_p7 = scmp.lt.s32.totalorder %s4738_s10, %s4738_s10 }
  0x13   :  { %p4745_p8 = por %p4744_p7, %p4743_p6 }
  0x15   :  { %p4746_p9 = pnand %p4745_p8, %p4739_p5 }
  0x17   :  { %4749 = shalt.err (!%p4746_p9)
}
  0x18   :  { %65 = dma.hbm_to_vmem [thread:$0]  %s7820_s3, 1024, %s60_s27, [#allocation9], %s4862_s29, %s4862_s29, %s4863_s30  }
  0x19   :  { %s4864_s13 = smov [#allocation2]   ;;  %s4865_s15 = smov [#allocation7]  }
  0x1a   :  { %s23_s14 = sshll.u32 %s4864_s13, 4  ;;  %s47_s16 = sshll.u32 %s4865_s15, 4  ;;  %s24_s14 = int_to_ptr.vmem [resolvable:$true] %s23_s14  ;;  %s48_s16 = int_to_ptr.vmem [resolvable:$true] %s47_s16 }
  0x1b   :  { %s4758_s1 = scalar_lea.vmem %s24_s14, 256  ;;  %p4763_p11 = scmp.lt.s32.totalorder %s24_s14, %s24_s14 }
  0x1c   :  { %p4759_p10 = scmp.ne.s32.totalorder %s24_s14, %s4758_s1  ;;  %p4764_p12 = scmp.lt.s32.totalorder %s4758_s1, %s4758_s1 }
  0x1e   :  { %p4765_p13 = por %p4764_p12, %p4763_p11 }
  0x20   :  { %p4766_p0 = pnand %p4765_p13, %p4759_p10 }
  0x22   :  { %4769 = shalt.err (!%p4766_p0)
}
  0x23   :  { %29 = dma.hbm_to_vmem [thread:$0]  %s7817_s0, 256, %s24_s14, [#allocation3], %s4862_s29, %s4862_s29, %s4863_s30  }
  0x24   :  { %s4778_s3 = scalar_lea.vmem %s48_s16, 1024  ;;  %p4783_p2 = scmp.lt.s32.totalorder %s48_s16, %s48_s16 }
  0x25   :  { %p4779_p1 = scmp.ne.s32.totalorder %s48_s16, %s4778_s3  ;;  %p4784_p3 = scmp.lt.s32.totalorder %s4778_s3, %s4778_s3 }
  0x27   :  { %p4785_p4 = por %p4784_p3, %p4783_p2 }
  0x29   :  { %p4786_p5 = pnand %p4785_p4, %p4779_p1 }
  0x2b   :  { %4789 = shalt.err (!%p4786_p5)
}
  0x2c   :  { %53 = dma.hbm_to_vmem [thread:$0]  %s7819_s2, 1024, %s48_s16, [#allocation6], %s4862_s29, %s4862_s29, %s4863_s30  }
  0x2d   :  { %s4866_s21 = smov [#allocation10]  }
  0x2e   :  { %s71_s22 = sshll.u32 %s4866_s21, 4  ;;  %s72_s22 = int_to_ptr.vmem [resolvable:$true] %s71_s22 }
  0x2f   :  { %s4798_s23 = scalar_lea.vmem %s72_s22, 1024  ;;  %p4803_p7 = scmp.lt.s32.totalorder %s72_s22, %s72_s22 }
  0x30   :  { %p4799_p6 = scmp.ne.s32.totalorder %s72_s22, %s4798_s23  ;;  %p4804_p8 = scmp.lt.s32.totalorder %s4798_s23, %s4798_s23 }
  0x32   :  { %p4805_p9 = por %p4804_p8, %p4803_p7 }
  0x34   :  { %p4806_p10 = pnand %p4805_p9, %p4799_p6 }
  0x36   :  { %4809 = shalt.err (!%p4806_p10)
}
  0x37   :  { %77 = dma.hbm_to_vmem [thread:$0]  %s7821_s4, 1024, %s72_s22, [#allocation9], %s4862_s29, %s4862_s29, %s4863_s30  }
  0x38   :  { %4850 = dma.done.wait [#allocation3], 256  }
  0x39   :  { %4851 = vsyncadd [#allocation3], 4294967040 }
  0x3a   :  { %4852 = dma.done.wait [#allocation6], 1536  }
  0x3b   :  { %4853 = vsyncadd [#allocation6], 4294965760 }
  0x3c   :  { %4854 = dma.done.wait [#allocation9], 2048  }
  0x3d   :  { %4855 = vsyncadd [#allocation9], 4294965248  ;;  %v4867_v0 = vmov 0.0   ;;  %vm4868_vm0 = vmmov 0   ;;  %vm109_vm1 = vcmask 261120   ;;  %v107_v1 = vld [vmem:[#allocation5 + $0x18] sm:$0xff] }
  0x3e   :  { %4497 = vmatprep.subr.mxu0 %v4867_v0  ;;  %4508 = vmatprep.subr.mxu1 %v4867_v0  ;;  %v106_v2 = vld [vmem:[#allocation5 + $0x10] sm:$0xff]  ;;  %v105_v3 = vld [vmem:[#allocation5 + $0x8] sm:$0xff]  ;;  %v4949_v4 = vand.u32 4294901760, %v107_v1  ;;  %v104_v7 = vld [vmem:[#allocation5] sm:$0xff]  ;;  %vm650_vm2 = vcmask 1040384   ;;  %vm652_vm3 = vcmask 1041408  }
  0x3f   :  { %4505 = vmatprep.mubr.msk.f32.mxu0 %vm4868_vm0, %v4867_v0  ;;  %4516 = vmatprep.mubr.msk.f32.mxu1 %vm4868_vm0, %v4867_v0  ;;  %v4951_v5 = vand.u32 4294901760, %v106_v2  ;;  %v4953_v6 = vand.u32 4294901760, %v105_v3  ;;  %v108_v8 = vld [vmem:[#allocation2] sm:$0xff]  ;;  %v4955_v9 = vand.u32 4294901760, %v104_v7  ;;  %v2254_v32 = vld [vmem:[#allocation2 + $0x8] sm:$0xff]  ;;  %vm654_vm4 = vcmask 1042432  }
  0x40   :  { %v111_v10 = vsel %vm109_vm1, %v108_v8, 0  ;;  %4498 = vmatpush3.msra.mxu0 %v4949_v4  ;;  %v4960_v11 = vsub.f32 %v107_v1, %v4949_v4  ;;  %v2256_v33 = vsel %vm109_vm1, %v2254_v32, 0  ;;  %vm656_vm5 = vcmask 1043456   ;;  %s4869_s2 = smov 32   ;;  %s4870_s4 = smov 96  }
  0x41   :  { %v4962_v12 = vand.u32 4294901760, %v111_v10  ;;  %v4965_v13 = vsub.f32 %v106_v2, %v4951_v5  ;;  %v4968_v14 = vsub.f32 %v105_v3, %v4953_v6  ;;  %4499 = vmatprep.subr.mxu0 %v4867_v0  ;;  %v4972_v15 = vsub.f32 %v104_v7, %v4955_v9  ;;  %s4871_s10 = smov [#allocation12]  }
  0x42   :  { %4500 = vmatpush3.msra.mxu0 %v4951_v5  ;;  %v4976_v16 = vand.u32 4294901760, %v4960_v11  ;;  %v5031_v34 = vand.u32 4294901760, %v2256_v33  ;;  %vm658_vm6 = vcmask 1044480   ;;  %vm660_vm7 = vcmask 1045504   ;;  %s4413_s11 = sshll.u32 %s4871_s10, 4  ;;  %s4414_s11 = int_to_ptr.vmem [resolvable:$true] %s4413_s11 }
  0x43   :  { %v183_v17 = vsub.f32 %v111_v10, %v4962_v12  ;;  %v4980_v18 = vand.u32 4294901760, %v4965_v13  ;;  %v4983_v19 = vand.u32 4294901760, %v4968_v14  ;;  %4501 = vmatprep.subr.mxu0 %v4867_v0  ;;  %v4987_v20 = vand.u32 4294901760, %v4972_v15  ;;  %s4810_s12 = scalar_lea.vmem %s4414_s11, 512  ;;  %p4815_p12 = scmp.lt.s32.totalorder %s4414_s11, %s4414_s11 }
  0x44   :  { %4502 = vmatpush3.msra.mxu0 %v4953_v6  ;;  %v220_v21 = vsub.f32 %v4960_v11, %v4976_v16  ;;  %v5042_v35 = vsub.f32 %v2256_v33, %v5031_v34  ;;  %vm662_vm8 = vcmask 1046528   ;;  %vm2251_vm13 = vcmask 253952   ;;  %p4811_p11 = scmp.ne.s32.totalorder %s4414_s11, %s4810_s12  ;;  %p4816_p13 = scmp.lt.s32.totalorder %s4810_s12, %s4810_s12 }
  0x45   :  { %v184_v22 = vand.u32 4294901760, %v183_v17  ;;  %v227_v23 = vsub.f32 %v4965_v13, %v4980_v18  ;;  %v234_v24 = vsub.f32 %v4968_v14, %v4983_v19  ;;  %4503 = vmatprep.subr.mxu0 %v4867_v0  ;;  %v241_v28 = vsub.f32 %v4972_v15, %v4987_v20 }
  0x46   :  { %4504 = vmatpush3.msra.mxu0 %v4955_v9  ;;  %v4998_v25 = vand.u32 4294901760, %v220_v21  ;;  %v2329_v36 = vand.u32 4294901760, %v5042_v35  ;;  %p4817_p0 = por %p4816_p13, %p4815_p12 }
  0x47   :  { %v185_v26 = vsub.f32 %v183_v17, %v184_v22  ;;  %v5000_v27 = vand.u32 4294901760, %v227_v23  ;;  %4519 = vmatprep.subr.mxu0 %v4867_v0  ;;  %v5006_v30 = vand.u32 4294901760, %v234_v24  ;;  %v5010_v31 = vand.u32 4294901760, %v241_v28 }
  0x48   :  { %4509 = vmatpush3.msra.mxu1 %v4998_v25  ;;  %v2330_v37 = vsub.f32 %v5042_v35, %v2329_v36  ;;  %p4818_p1 = pnand %p4817_p0, %p4811_p11 }
  0x49   :  { %v186_v29 = vand.u32 4294901760, %v185_v26  ;;  %4510 = vmatprep.subr.mxu1 %v4867_v0 }
  0x4a   :  { %4511 = vmatpush3.msra.mxu1 %v5000_v27  ;;  %v2331_v38 = vand.u32 4294901760, %v2330_v37 }
  0x4b   :  { %4506 = vmatmul.mubr.f32.vlgmr.msra.gmra.mxu0 %v186_v29  ;;  %4512 = vmatprep.subr.mxu1 %v4867_v0 }
  0x4c   :  { %4520 = vmatpush3.msra.mxu0 %v4960_v11  ;;  %4513 = vmatpush3.msra.mxu1 %v5006_v30 }
  0x4d   :  { %4521 = vmatprep.subr.mxu0 %v4867_v0  ;;  %4514 = vmatprep.subr.mxu1 %v4867_v0 }
  0x4e   :  { %4522 = vmatpush3.msra.mxu0 %v4965_v13  ;;  %4515 = vmatpush3.msra.mxu1 %v5010_v31 }
  0x4f   :  { %4523 = vmatprep.subr.mxu0 %v4867_v0  ;;  %4517 = vmatmul.mubr.f32.vlgmr.msra.gmra.mxu1 %v4962_v12 }
  0x50   :  { %4524 = vmatpush3.msra.mxu0 %v4968_v14  ;;  %4530 = vmatprep.subr.mxu1 %v4867_v0 }
  0x51   :  { %4525 = vmatprep.subr.mxu0 %v4867_v0  ;;  %4527 = vmatprep.mubr.msk.f32.mxu0 %vm4868_vm0, %v4867_v0 }
  0x52   :  { %4526 = vmatpush3.msra.mxu0 %v4972_v15  ;;  %4531 = vmatpush3.msra.mxu1 %v4949_v4 }
  0x53   :  { %4528 = vmatmul.mubr.f32.vlgmr.msra.gmra.mxu0 %v183_v17  ;;  %4532 = vmatprep.subr.mxu1 %v4867_v0 }
  0x54   :  { %4541 = vmatprep.subr.mxu0 %v4867_v0  ;;  %4533 = vmatpush3.msra.mxu1 %v4951_v5 }
  0x55   :  { %4542 = vmatpush3.msra.mxu0 %v4976_v16  ;;  %4534 = vmatprep.subr.mxu1 %v4867_v0 }
  0x56   :  { %4543 = vmatprep.subr.mxu0 %v4867_v0  ;;  %4535 = vmatpush3.msra.mxu1 %v4953_v6 }
  0x57   :  { %4544 = vmatpush3.msra.mxu0 %v4980_v18  ;;  %4536 = vmatprep.subr.mxu1 %v4867_v0 }
  0x58   :  { %4545 = vmatprep.subr.mxu0 %v4867_v0  ;;  %4537 = vmatpush3.msra.mxu1 %v4955_v9 }
  0x59   :  { %4538 = vmatprep.mubr.msk.f32.mxu1 %vm4868_vm0, %v4867_v0  ;;  %4546 = vmatpush3.msra.mxu0 %v4983_v19 }
  0x5a   :  { %4539 = vmatmul.mubr.f32.vlgmr.msra.gmra.mxu1 %v184_v22  ;;  %4547 = vmatprep.subr.mxu0 %v4867_v0 }
  0x5b   :  { %4552 = vmatprep.subr.mxu1 %v4867_v0  ;;  %4548 = vmatpush3.msra.mxu0 %v4987_v20 }
  0x5c   :  { %4549 = vmatprep.mubr.msk.f32.mxu0 %vm4868_vm0, %v4867_v0  ;;  %4553 = vmatpush3.msra.mxu1 %v4949_v4 }
  0x5d   :  { %4550 = vmatmul.mubr.f32.vlgmr.msra.gmra.mxu0 %v4962_v12  ;;  %4554 = vmatprep.subr.mxu1 %v4867_v0 }
  0x5e   :  { %4563 = vmatprep.subr.mxu0 %v4867_v0  ;;  %4555 = vmatpush3.msra.mxu1 %v4951_v5 }
  0x5f   :  { %4564 = vmatpush3.msra.mxu0 %v4949_v4  ;;  %4556 = vmatprep.subr.mxu1 %v4867_v0 }
  0x60   :  { %4565 = vmatprep.subr.mxu0 %v4867_v0  ;;  %4557 = vmatpush3.msra.mxu1 %v4953_v6 }
  0x61   :  { %4566 = vmatpush3.msra.mxu0 %v4951_v5  ;;  %4558 = vmatprep.subr.mxu1 %v4867_v0 }
  0x62   :  { %4567 = vmatprep.subr.mxu0 %v4867_v0  ;;  %4559 = vmatpush3.msra.mxu1 %v4955_v9 }
  0x63   :  { %4560 = vmatprep.mubr.msk.f32.mxu1 %vm4868_vm0, %v4867_v0  ;;  %4568 = vmatpush3.msra.mxu0 %v4953_v6 }
  0x64   :  { %4561 = vmatmul.mubr.f32.vlgmr.msra.gmra.mxu1 %v4962_v12  ;;  %4569 = vmatprep.subr.mxu0 %v4867_v0 }
  0x65   :  { %4574 = vmatprep.subr.mxu1 %v4867_v0  ;;  %4570 = vmatpush3.msra.mxu0 %v4955_v9 }
  0x66   :  { %4575 = vmatpush3.msra.mxu1 %v4998_v25  ;;  %4571 = vmatprep.mubr.msk.f32.mxu0 %vm4868_vm0, %v4867_v0 }
  0x67   :  { %4576 = vmatprep.subr.mxu1 %v4867_v0  ;;  %4585 = vmatprep.subr.mxu0 %v4867_v0 }
  0x68   :  { %4572 = vmatmul.mubr.f32.vlgmr.msra.gmra.mxu0 %v2331_v38  ;;  %4577 = vmatpush3.msra.mxu1 %v5000_v27 }
  0x69   :  { %4586 = vmatpush3.msra.mxu0 %v4960_v11  ;;  %4578 = vmatprep.subr.mxu1 %v4867_v0 }
  0x6a   :  { %4587 = vmatprep.subr.mxu0 %v4867_v0  ;;  %4579 = vmatpush3.msra.mxu1 %v5006_v30 }
  0x6b   :  { %4588 = vmatpush3.msra.mxu0 %v4965_v13  ;;  %4580 = vmatprep.subr.mxu1 %v4867_v0 }
  0x6c   :  { %4589 = vmatprep.subr.mxu0 %v4867_v0  ;;  %4581 = vmatpush3.msra.mxu1 %v5010_v31 }
  0x6d   :  { %4582 = vmatprep.mubr.msk.f32.mxu1 %vm4868_vm0, %v4867_v0  ;;  %4590 = vmatpush3.msra.mxu0 %v4968_v14 }
  0x6e   :  { %4583 = vmatmul.mubr.f32.vlgmr.msra.gmra.mxu1 %v5031_v34  ;;  %4591 = vmatprep.subr.mxu0 %v4867_v0 }
  0x6f   :  { %4596 = vmatprep.subr.mxu1 %v4867_v0  ;;  %4592 = vmatpush3.msra.mxu0 %v4972_v15 }
  0x70   :  { %4593 = vmatprep.mubr.msk.f32.mxu0 %vm4868_vm0, %v4867_v0  ;;  %4597 = vmatpush3.msra.mxu1 %v4949_v4 }
  0x71   :  { %4594 = vmatmul.mubr.f32.vlgmr.msra.gmra.mxu0 %v5042_v35  ;;  %4598 = vmatprep.subr.mxu1 %v4867_v0 }
  0x72   :  { %4607 = vmatprep.subr.mxu0 %v4867_v0  ;;  %4599 = vmatpush3.msra.mxu1 %v4951_v5 }
  0x73   :  { %4608 = vmatpush3.msra.mxu0 %v4976_v16  ;;  %4600 = vmatprep.subr.mxu1 %v4867_v0 }
  0x74   :  { %4609 = vmatprep.subr.mxu0 %v4867_v0  ;;  %4601 = vmatpush3.msra.mxu1 %v4953_v6 }
  0x75   :  { %4610 = vmatpush3.msra.mxu0 %v4980_v18  ;;  %4602 = vmatprep.subr.mxu1 %v4867_v0 }
  0x76   :  { %4611 = vmatprep.subr.mxu0 %v4867_v0  ;;  %4603 = vmatpush3.msra.mxu1 %v4955_v9 }
  0x77   :  { %4604 = vmatprep.mubr.msk.f32.mxu1 %vm4868_vm0, %v4867_v0  ;;  %4612 = vmatpush3.msra.mxu0 %v4983_v19 }
  0x78   :  { %4605 = vmatmul.mubr.f32.vlgmr.msra.gmra.mxu1 %v2329_v36  ;;  %4613 = vmatprep.subr.mxu0 %v4867_v0 }
  0x79   :  { %4618 = vmatprep.subr.mxu1 %v4867_v0  ;;  %4614 = vmatpush3.msra.mxu0 %v4987_v20 }
  0x7a   :  { %4615 = vmatprep.mubr.msk.f32.mxu0 %vm4868_vm0, %v4867_v0  ;;  %4619 = vmatpush3.msra.mxu1 %v4949_v4 }
  0x7b   :  { %4616 = vmatmul.mubr.f32.vlgmr.msra.gmra.mxu0 %v5031_v34  ;;  %4620 = vmatprep.subr.mxu1 %v4867_v0 }
  0x7c   :  { %4626 = vmatprep.mubr.msk.f32.mxu1 %vm4868_vm0, %v4867_v0  ;;  %4621 = vmatpush3.msra.mxu1 %v4951_v5 }
  0x7d   :  { %4622 = vmatprep.subr.mxu1 %v4867_v0 }
  0x7e   :  { %4623 = vmatpush3.msra.mxu1 %v4953_v6 }
  0x7f   :  { %4624 = vmatprep.subr.mxu1 %v4867_v0 }
  0x80   :  { %4625 = vmatpush3.msra.mxu1 %v4955_v9 }
  0x81   :  { %4627 = vmatmul.mubr.f32.vlgmr.msra.gmra.mxu1 %v5031_v34 }
 0x10b   :  { %v188_v39 = vpop.f32.mrf.mxu0 }
 0x10d   :  { %v4507_v40 = vpop.f32.mrf.mxu0 }
 0x10f   :  { %v279_v41 = vpop.f32.mrf.mxu1 }
 0x110   :  { %v280_v45 = vadd.f32 %v279_v41, %v188_v39 }
 0x111   :  { %v4518_v42 = vpop.f32.mrf.mxu1 }
 0x113   :  { %v359_v43 = vpop.f32.mrf.mxu0 }
 0x114   :  { %v360_v48 = vadd.f32 %v359_v43, %v280_v45 }
 0x115   :  { %v4529_v44 = vpop.f32.mrf.mxu0 }
 0x11a   :  { %v436_v46 = vpop.f32.mrf.mxu1 }
 0x11b   :  { %v437_v50 = vadd.f32 %v436_v46, %v360_v48 }
 0x11c   :  { %v4540_v47 = vpop.f32.mrf.mxu1 }
 0x11d   :  { %v519_v49 = vpop.f32.mrf.mxu0 }
 0x11e   :  { %v520_v52 = vadd.f32 %v519_v49, %v437_v50  ;;  %v93_v49 = vlaneseq }
 0x11f   :  { %v4551_v51 = vpop.f32.mrf.mxu0 }
 0x124   :  { %v594_v53 = vpop.f32.mrf.mxu1 }
 0x125   :  { %v5130_v54 = vadd.f32 %v594_v53, %v520_v52  ;;  %v5146_v53 = vshrl.u32 %v93_v49, 7 }
 0x126   :  { %v4562_v55 = vpop.f32.mrf.mxu1 }
 0x127   :  { %7910 = vst [vmem:[#allocation19_spill] sm:$0xff] %v5130_v54  ;;  %v598_v56 = vmul.f32 0.095162585, %v5130_v54  ;;  %7913 = vst [vmem:[#allocation22_spill] sm:$0xff] %v5146_v53 }
 0x128   :  { %v2333_v57 = vpop.f32.mrf.mxu0 }
 0x129   :  { %v600_v58 = vmul.f32 0.9048374, %v598_v56  ;;  %v602_v59 = vrot.slane %v598_v56, 1  ;;  %v606_v63 = vrot.slane %v598_v56, 2  ;;  %v610_v4 = vrot.slane %v598_v56, 3 }
 0x12a   :  { %v4573_v60 = vpop.f32.mrf.mxu0  ;;  %v614_v9 = vrot.slane %v598_v56, 4  ;;  %v618_v14 = vrot.slane %v598_v56, 5  ;;  %v622_v20 = vrot.slane %v598_v56, 6  ;;  %v626_v27 = vrot.slane %v598_v56, 7 }
 0x12b   :  { %v604_v61 = vadd.f32 %v602_v59, %v600_v58  ;;  %v99_v58 = vand.u32 127, %v93_v49  ;;  %v5149_v59 = vsub.s32 0, %v5146_v53  ;;  %v5212_v49 = vsub.s32 6, %v5146_v53 }
 0x12d   :  { %v605_v62 = vmul.f32 0.9048374, %v604_v61  ;;  %v630_v21 = vrot.slane %v604_v61, 7  ;;  %vm5155_vm9 = vcmp.eq.s32.totalorder %v5146_v53, %v99_v58 }
 0x12e   :  { %v2424_v0 = vpop.f32.mrf.mxu1 }
 0x12f   :  { %v608_v1 = vadd.f32 %v606_v63, %v605_v62  ;;  %v2425_v11 = vadd.f32 %v2424_v0, %v2333_v57  ;;  %v651_v31 = vsel %vm650_vm2, %v598_v56, %v630_v21  ;;  %v95_v62 = vadd.s32 8, %v5146_v53 }
 0x130   :  { %v4584_v2 = vpop.f32.mrf.mxu1 }
 0x131   :  { %v609_v3 = vmul.f32 0.9048374, %v608_v1  ;;  %v2504_v5 = vpop.f32.mrf.mxu0  ;;  %v633_v24 = vrot.slane %v608_v1, 6  ;;  %v7915_v1 = vmov 0  ;;  %vm5163_vm10 = vcmp.eq.s32.totalorder %v95_v62, %v99_v58 }
 0x132   :  { %v2505_v17 = vadd.f32 %v2504_v5, %v2425_v11  ;;  %v7916_v1 = vsel %vm5155_vm9, 4294967295, %v7915_v1 }
 0x133   :  { %v612_v6 = vadd.f32 %v610_v4, %v609_v3  ;;  %v4595_v7 = vpop.f32.mrf.mxu0  ;;  %v653_v34 = vsel %vm652_vm3, %v651_v31, %v633_v24  ;;  %7917 = vst [vmem:[#allocation24_spill] sm:$0xff] %v7916_v1 }
 0x135   :  { %v613_v8 = vmul.f32 0.9048374, %v612_v6  ;;  %v636_v26 = vrot.slane %v612_v6, 5  ;;  %v96_v6 = vadd.s32 16, %v5146_v53 }
 0x137   :  { %v616_v10 = vadd.f32 %v614_v9, %v613_v8  ;;  %v655_v37 = vsel %vm654_vm4, %v653_v34, %v636_v26  ;;  %vm5177_vm11 = vcmp.eq.s32.totalorder %v96_v6, %v99_v58 }
 0x138   :  { %v2581_v12 = vpop.f32.mrf.mxu1 }
 0x139   :  { %v617_v13 = vmul.f32 0.9048374, %v616_v10  ;;  %v2582_v22 = vadd.f32 %v2581_v12, %v2505_v17  ;;  %v639_v28 = vrot.slane %v616_v10, 4  ;;  %v97_v12 = vadd.s32 24, %v5146_v53 }
 0x13a   :  { %v4606_v15 = vpop.f32.mrf.mxu1 }
 0x13b   :  { %v620_v16 = vadd.f32 %v618_v14, %v617_v13  ;;  %v2664_v18 = vpop.f32.mrf.mxu0  ;;  %v657_v39 = vsel %vm656_vm5, %v655_v37, %v639_v28  ;;  %vm5185_vm12 = vcmp.eq.s32.totalorder %v97_v12, %v99_v58 }
 0x13c   :  { %v2665_v32 = vadd.f32 %v2664_v18, %v2582_v22 }
 0x13d   :  { %v621_v19 = vmul.f32 0.9048374, %v620_v16  ;;  %v4617_v23 = vpop.f32.mrf.mxu0  ;;  %v642_v30 = vrot.slane %v620_v16, 3 }
 0x13f   :  { %v624_v25 = vadd.f32 %v622_v20, %v621_v19  ;;  %v659_v42 = vsel %vm658_vm6, %v657_v39, %v642_v30 }
 0x141   :  { %v625_v29 = vmul.f32 0.9048374, %v624_v25  ;;  %v645_v33 = vrot.slane %v624_v25, 2  ;;  %v2739_v35 = vpop.f32.mrf.mxu1 }
 0x142   :  { %v5138_v38 = vadd.f32 %v2739_v35, %v2665_v32 }
 0x143   :  { %v5135_v36 = vadd.f32 %v626_v27, %v625_v29  ;;  %v4628_v40 = vpop.f32.mrf.mxu1  ;;  %v661_v44 = vsel %vm660_vm7, %v659_v42, %v645_v33 }
 0x144   :  { %7912 = vst [vmem:[#allocation21_spill] sm:$0xff] %v5138_v38  ;;  %v2743_v43 = vmul.f32 0.095162585, %v5138_v38 }
 0x145   :  { %7911 = vst [vmem:[#allocation20_spill] sm:$0xff] %v5135_v36  ;;  %v648_v41 = vrot.slane %v5135_v36, 1 }
 0x146   :  { %v2745_v46 = vmul.f32 0.9048374, %v2743_v43  ;;  %v2747_v47 = vrot.slane %v2743_v43, 1  ;;  %v2751_v51 = vrot.slane %v2743_v43, 2  ;;  %v2755_v56 = vrot.slane %v2743_v43, 3 }
 0x147   :  { %v663_v45 = vsel %vm662_vm8, %v661_v44, %v648_v41  ;;  %v2759_v61 = vrot.slane %v2743_v43, 4  ;;  %v2763_v4 = vrot.slane %v2743_v43, 5  ;;  %v2767_v14 = vrot.slane %v2743_v43, 6 }
 0x148   :  { %4642 = vtanh.f32 %v663_v45  ;;  %v2749_v48 = vadd.f32 %v2747_v47, %v2745_v46  ;;  %v2771_v27 = vrot.slane %v2743_v43, 7  ;;  %v5207_v46 = vsub.s32 5, %v5146_v53 }
 0x14a   :  { %v2750_v50 = vmul.f32 0.9048374, %v2749_v48  ;;  %v2775_v15 = vrot.slane %v2749_v48, 7 }
 0x14c   :  { %v2753_v52 = vadd.f32 %v2751_v51, %v2750_v50  ;;  %v2795_v29 = vsel %vm650_vm2, %v2743_v43, %v2775_v15  ;;  %v5215_v50 = vsub.s32 7, %v5146_v53 }
 0x14e   :  { %v2754_v55 = vmul.f32 0.9048374, %v2753_v52  ;;  %v2778_v17 = vrot.slane %v2753_v52, 6 }
 0x150   :  { %v2757_v57 = vadd.f32 %v2755_v56, %v2754_v55  ;;  %v2796_v31 = vsel %vm652_vm3, %v2795_v29, %v2778_v17 }
 0x152   :  { %v2758_v60 = vmul.f32 0.9048374, %v2757_v57  ;;  %v2781_v20 = vrot.slane %v2757_v57, 5 }
 0x154   :  { %v2761_v0 = vadd.f32 %v2759_v61, %v2758_v60  ;;  %v2797_v34 = vsel %vm654_vm4, %v2796_v31, %v2781_v20 }
 0x155   :  { %v5152_v63 = vpop.eup %4642 }
 0x156   :  { %7914 = vst [vmem:[#allocation23_spill] sm:$0xff] %v5152_v63  ;;  %2212 = vst.msk [vmem:[#allocation12] sm:$0xff] %vm109_vm1, %v5152_v63  ;;  %v760_v2 = vrot.slane %v5152_v63, %v5149_v59  ;;  %v2762_v3 = vmul.f32 0.9048374, %v2761_v0  ;;  %v5171_v8 = vmul.f32 0.048770577, %v5152_v63  ;;  %v5220_v56 = vrot.slane %v5152_v63, %v5207_v46 }
 0x157   :  { %v2784_v22 = vrot.slane %v2761_v0, 4  ;;  %v5224_v57 = vrot.slane %v5152_v63, %v5212_v49  ;;  %v5228_v58 = vrot.slane %v5152_v63, %v5215_v50 }
 0x158   :  { %v761_v7 = vsel %vm5155_vm9, %v760_v2, 0.0  ;;  %v2765_v9 = vadd.f32 %v2763_v4, %v2762_v3  ;;  %v762_v11 = vsel %vm5163_vm10, %v760_v2, 0.0  ;;  %v667_v18 = vmul.f32 0.95122945, %v5171_v8  ;;  %7925 = vst [vmem:[#allocation26_spill] sm:$0xff] %v5220_v56 }
 0x159   :  { %v765_v10 = vsel %vm109_vm1, %v761_v7, 0.0  ;;  %v768_v21 = vsel %vm109_vm1, %v762_v11, 0.0  ;;  %v763_v23 = vsel %vm5177_vm11, %v760_v2, 0.0  ;;  %v669_v25 = vrot.slane %v5171_v8, 1  ;;  %7926 = vst [vmem:[#allocation27_spill] sm:$0xff] %v5224_v57  ;;  %7927 = vst [vmem:[#allocation28_spill] sm:$0xff] %v5228_v58 }
 0x15a   :  { %766 = vadd.xlane.f32.xlu0 %v765_v10  ;;  %v2766_v13 = vmul.f32 0.9048374, %v2765_v9  ;;  %v2787_v28 = vrot.slane %v2765_v9, 3  ;;  %v771_v35 = vsel %vm109_vm1, %v763_v23, 0.0  ;;  %v2798_v37 = vsel %vm656_vm5, %v2797_v34, %v2784_v22 }
 0x15b   :  { %v5192_v32 = vadd.f32 %v669_v25, %v667_v18  ;;  %v764_v39 = vsel %vm5185_vm12, %v760_v2, 0.0  ;;  %v673_v41 = vrot.slane %v5171_v8, 2  ;;  %v677_v52 = vrot.slane %v5171_v8, 3 }
 0x15c   :  { %v2769_v19 = vadd.f32 %v2767_v14, %v2766_v13  ;;  %v2799_v43 = vsel %vm658_vm6, %v2798_v37, %v2787_v28  ;;  %v774_v48 = vsel %vm109_vm1, %v764_v39, 0.0  ;;  %v681_v61 = vrot.slane %v5171_v8, 4 }
 0x15d   :  { %v672_v40 = vmul.f32 0.95122945, %v5192_v32  ;;  %v685_v2 = vrot.slane %v5171_v8, 5  ;;  %v689_v11 = vrot.slane %v5171_v8, 6  ;;  %v697_v22 = vrot.slane %v5192_v32, 7 }
 0x15e   :  { %769 = vadd.xlane.f32.xlu0 %v768_v21  ;;  %v2770_v26 = vmul.f32 0.9048374, %v2769_v19  ;;  %v2790_v30 = vrot.slane %v2769_v19, 2  ;;  %v693_v25 = vrot.slane %v5171_v8, 7 }
 0x15f   :  { %v675_v45 = vadd.f32 %v673_v41, %v672_v40  ;;  %v717_v37 = vsel %vm650_vm2, %v5171_v8, %v697_v22 }
 0x160   :  { %v5194_v33 = vadd.f32 %v2771_v27, %v2770_v26  ;;  %v2800_v44 = vsel %vm660_vm7, %v2799_v43, %v2790_v30 }
 0x161   :  { %v676_v51 = vmul.f32 0.95122945, %v675_v45  ;;  %v700_v29 = vrot.slane %v675_v45, 6 }
 0x162   :  { %7924 = vst [vmem:[#allocation25_spill] sm:$0xff] %v5194_v33  ;;  %772 = vadd.xlane.f32.xlu0 %v771_v35  ;;  %v2793_v42 = vrot.slane %v5194_v33, 1 }
 0x163   :  { %v679_v55 = vadd.f32 %v677_v52, %v676_v51  ;;  %v718_v43 = vsel %vm652_vm3, %v717_v37, %v700_v29 }
 0x164   :  { %v2801_v47 = vsel %vm662_vm8, %v2800_v44, %v2793_v42 }
 0x165   :  { %4644 = vtanh.f32 %v2801_v47  ;;  %v680_v60 = vmul.f32 0.95122945, %v679_v55  ;;  %v703_v31 = vrot.slane %v679_v55, 5 }
 0x166   :  { %775 = vadd.xlane.f32.xlu0 %v774_v48 }
 0x167   :  { %v683_v62 = vadd.f32 %v681_v61, %v680_v60  ;;  %v719_v45 = vsel %vm654_vm4, %v718_v43, %v703_v31 }
 0x169   :  { %v684_v0 = vmul.f32 0.95122945, %v683_v62  ;;  %v706_v35 = vrot.slane %v683_v62, 4 }
 0x16b   :  { %v687_v3 = vadd.f32 %v685_v2, %v684_v0  ;;  %v720_v48 = vsel %vm656_vm5, %v719_v45, %v706_v35  ;;  %v5325_v45 = vld [vmem:[#allocation7 + $0x10] sm:$0xff] }
 0x16d   :  { %v688_v7 = vmul.f32 0.95122945, %v687_v3  ;;  %v709_v39 = vrot.slane %v687_v3, 3 }
 0x16f   :  { %v691_v14 = vadd.f32 %v689_v11, %v688_v7  ;;  %v721_v8 = vsel %vm658_vm6, %v720_v48, %v709_v39 }
 0x171   :  { %v692_v20 = vmul.f32 0.95122945, %v691_v14  ;;  %v712_v42 = vrot.slane %v691_v14, 2 }
 0x172   :  { %v5232_v4 = vpop.eup %4644 }
 0x173   :  { %7928 = vst [vmem:[#allocation29_spill] sm:$0xff] %v5232_v4  ;;  %4355 = vst.msk [vmem:[#allocation12 + $0x10] sm:$0xff] %vm109_vm1, %v5232_v4  ;;  %v2901_v6 = vrot.slane %v5232_v4, %v5149_v59  ;;  %v5243_v12 = vmul.f32 0.048770577, %v5232_v4  ;;  %v695_v30 = vadd.f32 %v693_v25, %v692_v20  ;;  %v5267_v51 = vrot.slane %v5232_v4, %v5207_v46 }
 0x174   :  { %v5273_v60 = vrot.slane %v5232_v4, %v5212_v49  ;;  %v722_v61 = vsel %vm660_vm7, %v721_v8, %v712_v42  ;;  %v5286_v7 = vrot.slane %v5232_v4, %v5215_v50  ;;  %v5322_v42 = vld [vmem:[#allocation7] sm:$0xff]  ;;  %v5330_v8 = vld [vmem:[#allocation7 + $0x18] sm:$0xff] }
 0x175   :  { %v2902_v9 = vsel %vm5155_vm9, %v2901_v6, 0.0  ;;  %v2903_v13 = vsel %vm5163_vm10, %v2901_v6, 0.0  ;;  %v2805_v17 = vmul.f32 0.95122945, %v5243_v12  ;;  %v2807_v18 = vrot.slane %v5243_v12, 1  ;;  %7929 = vst [vmem:[#allocation30_spill] sm:$0xff] %v5267_v51 }
 0x176   :  { %v2906_v10 = vsel %vm109_vm1, %v2902_v9, 0.0  ;;  %v2909_v15 = vsel %vm109_vm1, %v2903_v13, 0.0  ;;  %v2904_v19 = vsel %vm5177_vm11, %v2901_v6, 0.0  ;;  %v2811_v27 = vrot.slane %v5243_v12, 2  ;;  %7930 = vst [vmem:[#allocation31_spill] sm:$0xff] %v5273_v60  ;;  %7933 = vst [vmem:[#allocation34_spill] sm:$0xff] %v5286_v7 }
 0x177   :  { %2907 = vadd.xlane.f32.xlu1 %v2906_v10  ;;  %v2809_v21 = vadd.f32 %v2807_v18, %v2805_v17  ;;  %v2912_v23 = vsel %vm109_vm1, %v2904_v19, 0.0  ;;  %v2905_v28 = vsel %vm5185_vm12, %v2901_v6, 0.0  ;;  %v2815_v41 = vrot.slane %v5243_v12, 3 }
 0x178   :  { %v2915_v32 = vsel %vm109_vm1, %v2905_v28, 0.0  ;;  %v715_v44 = vrot.slane %v695_v30, 1  ;;  %v2819_v55 = vrot.slane %v5243_v12, 4  ;;  %v2823_v3 = vrot.slane %v5243_v12, 5 }
 0x179   :  { %v2810_v26 = vmul.f32 0.95122945, %v2809_v21  ;;  %v2827_v13 = vrot.slane %v5243_v12, 6  ;;  %v2835_v14 = vrot.slane %v2809_v21, 7 }
 0x17a   :  { %v5277_v62 = vsel %vm662_vm8, %v722_v61, %v715_v44 }
 0x17b   :  { %2910 = vadd.xlane.f32.xlu1 %v2909_v15  ;;  %v2813_v34 = vadd.f32 %v2811_v27, %v2810_v26  ;;  %7931 = vst [vmem:[#allocation32_spill] sm:$0xff] %v5277_v62  ;;  %v5282_v6 = vrot.slane %v5277_v62, %v5207_v46  ;;  %v5290_v10 = vrot.slane %v5277_v62, %v5212_v49 }
 0x17c   :  { %v5295_v17 = vrot.slane %v5277_v62, %v5215_v50  ;;  %v2855_v26 = vsel %vm650_vm2, %v5243_v12, %v2835_v14 }
 0x17d   :  { %v2814_v40 = vmul.f32 0.95122945, %v2813_v34  ;;  %7932 = vst [vmem:[#allocation33_spill] sm:$0xff] %v5282_v6  ;;  %7934 = vst [vmem:[#allocation35_spill] sm:$0xff] %v5290_v10  ;;  %v2838_v15 = vrot.slane %v2813_v34, 6 }
 0x17e   :  { %7935 = vst [vmem:[#allocation36_spill] sm:$0xff] %v5295_v17 }
 0x17f   :  { %2913 = vadd.xlane.f32.xlu1 %v2912_v23  ;;  %v2817_v47 = vadd.f32 %v2815_v41, %v2814_v40  ;;  %v2831_v23 = vrot.slane %v5243_v12, 7  ;;  %v2856_v28 = vsel %vm652_vm3, %v2855_v26, %v2838_v15  ;;  %v5320_v41 = vld [vmem:[#allocation7 + $0x8] sm:$0xff] }
 0x181   :  { %v2818_v52 = vmul.f32 0.95122945, %v2817_v47  ;;  %v2841_v19 = vrot.slane %v2817_v47, 5 }
 0x183   :  { %2916 = vadd.xlane.f32.xlu1 %v2915_v32  ;;  %v2821_v0 = vadd.f32 %v2819_v55, %v2818_v52  ;;  %v2857_v21 = vsel %vm654_vm4, %v2856_v28, %v2841_v19  ;;  %v5342_v28 = vld [vmem:[#allocation7 + $0x30] sm:$0xff] }
 0x185   :  { %v2822_v2 = vmul.f32 0.95122945, %v2821_v0  ;;  %v2844_v20 = vrot.slane %v2821_v0, 4 }
 0x187   :  { %v2825_v9 = vadd.f32 %v2823_v3, %v2822_v2  ;;  %v2858_v30 = vsel %vm656_vm5, %v2857_v21, %v2844_v20 }
 0x189   :  { %v2826_v11 = vmul.f32 0.95122945, %v2825_v9  ;;  %v2847_v25 = vrot.slane %v2825_v9, 3 }
 0x18b   :  { %v2829_v18 = vadd.f32 %v2827_v13, %v2826_v11  ;;  %v2859_v34 = vsel %vm658_vm6, %v2858_v30, %v2847_v25  ;;  %v5339_v25 = vld [vmem:[#allocation7 + $0x20] sm:$0xff] }
 0x18d   :  { %v2830_v22 = vmul.f32 0.95122945, %v2829_v18  ;;  %v2850_v27 = vrot.slane %v2829_v18, 2 }
 0x18f   :  { %v2833_v29 = vadd.f32 %v2831_v23, %v2830_v22  ;;  %v2860_v35 = vsel %vm660_vm7, %v2859_v34, %v2850_v27  ;;  %v5336_v23 = vld [vmem:[#allocation7 + $0x28] sm:$0xff]  ;;  %v5347_v34 = vld [vmem:[#allocation7 + $0x38] sm:$0xff] }
 0x191   :  { %v2853_v31 = vrot.slane %v2833_v29, 1 }
 0x193   :  { %v5306_v37 = vsel %vm662_vm8, %v2860_v35, %v2853_v31 }
 0x194   :  { %7936 = vst [vmem:[#allocation37_spill] sm:$0xff] %v5306_v37  ;;  %v5310_v32 = vrot.slane %v5306_v37, %v5207_v46  ;;  %v5314_v12 = vrot.slane %v5306_v37, %v5212_v49  ;;  %v5318_v39 = vrot.slane %v5306_v37, %v5215_v50 }
 0x196   :  { %7937 = vst [vmem:[#allocation38_spill] sm:$0xff] %v5310_v32  ;;  %7938 = vst [vmem:[#allocation39_spill] sm:$0xff] %v5314_v12 }
 0x197   :  { %7939 = vst [vmem:[#allocation40_spill] sm:$0xff] %v5318_v39 }
 0x1e3   :  { %v767_v40 = vpop.xlane.xlu0 %766 }
 0x1e4   :  { %v777_v46 = vmul.f32 %v767_v40, %v5322_v42 }
 0x1e6   :  { %v781_v50 = vsel %vm109_vm1, %v777_v46, 0.0 }
 0x1e7   :  { %v770_v43 = vpop.xlane.xlu0 %769 }
 0x1e8   :  { %v778_v44 = vmul.f32 %v770_v43, %v5320_v41 }
 0x1ea   :  { %v782_v49 = vsel %vm109_vm1, %v778_v44, 0.0 }
 0x1eb   :  { %v773_v47 = vpop.xlane.xlu0 %772  ;;  %v783_v55 = vadd.f32 %v782_v49, %v781_v50 }
 0x1ec   :  { %v779_v48 = vmul.f32 %v773_v47, %v5325_v45 }
 0x1ee   :  { %v784_v52 = vsel %vm109_vm1, %v779_v48, 0.0 }
 0x1ef   :  { %v776_v61 = vpop.xlane.xlu0 %775  ;;  %v785_v2 = vadd.f32 %v784_v52, %v783_v55  ;;  %v5354_v55 = vsub.s32 1, %v5146_v53 }
 0x1f0   :  { %v780_v0 = vmul.f32 %v776_v61, %v5330_v8 }
 0x1f2   :  { %v786_v3 = vsel %vm109_vm1, %v780_v0, 0.0 }
 0x1f3   :  { %v787_v9 = vadd.f32 %v786_v3, %v785_v2  ;;  %v5358_v2 = vrot.slane %v5152_v63, %v5354_v55 }
 0x1f5   :  { %v788_v11 = vrot.slane %v787_v9, 4 }
 0x1f7   :  { %v789_v13 = vadd.f32 %v788_v11, %v787_v9  ;;  %v903_v11 = vsel %vm5155_vm9, %v5358_v2, 0.0 }
 0x1f9   :  { %v790_v14 = vrot.slane %v789_v13, 2 }
 0x1fb   :  { %v791_v15 = vadd.f32 %v790_v14, %v789_v13  ;;  %v907_v14 = vsel %vm109_vm1, %v903_v11, 0.0 }
 0x1fd   :  { %v792_v18 = vrot.slane %v791_v15, 1 }
 0x1ff   :  { %v793_v19 = vadd.f32 %v792_v18, %v791_v15 }
 0x200   :  { %v2908_v20 = vpop.xlane.xlu1 %2907 }
 0x201   :  { %v794_v22 = vmul.f32 0.2, %v793_v19  ;;  %v2918_v29 = vmul.f32 %v2908_v20, %v5339_v25 }
 0x203   :  { %796 = vrot.lane.b32.xlu0 %v794_v22, %s4869_s2  ;;  %v2922_v35 = vsel %vm109_vm1, %v2918_v29, 0.0 }
 0x204   :  { %v2911_v26 = vpop.xlane.xlu1 %2910 }
 0x205   :  { %v2919_v27 = vmul.f32 %v2911_v26, %v5336_v23 }
 0x207   :  { %v2923_v30 = vsel %vm109_vm1, %v2919_v27, 0.0 }
 0x208   :  { %v2914_v21 = vpop.xlane.xlu1 %2913  ;;  %v2924_v43 = vadd.f32 %v2923_v30, %v2922_v35 }
 0x209   :  { %v2920_v31 = vmul.f32 %v2914_v21, %v5342_v28 }
 0x20b   :  { %v2925_v40 = vsel %vm109_vm1, %v2920_v31, 0.0 }
 0x20c   :  { %v2917_v44 = vpop.xlane.xlu1 %2916  ;;  %v2926_v47 = vadd.f32 %v2925_v40, %v2924_v43  ;;  %v904_v40 = vsel %vm5163_vm10, %v5358_v2, 0.0 }
 0x20d   :  { %v2921_v46 = vmul.f32 %v2917_v44, %v5347_v34  ;;  %v910_v43 = vsel %vm109_vm1, %v904_v40, 0.0  ;;  %v3043_v44 = vrot.slane %v5232_v4, %v5354_v55 }
 0x20f   :  { %v2927_v49 = vsel %vm109_vm1, %v2921_v46, 0.0 }
 0x210   :  { %v2928_v48 = vadd.f32 %v2927_v49, %v2926_v47 }
 0x212   :  { %v2929_v50 = vrot.slane %v2928_v48, 4 }
 0x214   :  { %v2930_v52 = vadd.f32 %v2929_v50, %v2928_v48 }
 0x216   :  { %v2931_v61 = vrot.slane %v2930_v52, 2 }
 0x218   :  { %v2932_v0 = vadd.f32 %v2931_v61, %v2930_v52  ;;  %v3045_v52 = vsel %vm5163_vm10, %v3043_v44, 0.0 }
 0x21a   :  { %v2933_v3 = vrot.slane %v2932_v0, 1 }
 0x21c   :  { %v2934_v9 = vadd.f32 %v2933_v3, %v2932_v0  ;;  %v3051_v0 = vsel %vm109_vm1, %v3045_v52, 0.0  ;;  %v905_v52 = vsel %vm5177_vm11, %v5358_v2, 0.0 }
 0x21e   :  { %v2935_v13 = vmul.f32 0.2, %v2934_v9  ;;  %v3046_v9 = vsel %vm5177_vm11, %v3043_v44, 0.0 }
 0x220   :  { %2937 = vrot.lane.b32.xlu1 %v2935_v13, %s4869_s2  ;;  %v3054_v13 = vsel %vm109_vm1, %v3046_v9, 0.0 }
 0x222   :  { %908 = vadd.xlane.f32.xlu0 %v907_v14 }
 0x275   :  { %v797_v15 = vpop.permute.xlu0 %796 }
 0x276   :  { %v799_v18 = vadd.f32 %v797_v15, %v5130_v54  ;;  %v3047_v15 = vsel %vm5185_vm12, %v3043_v44, 0.0 }
 0x278   :  { %v5366_v19 = vmul.f32 0.095162585, %v799_v18  ;;  %v3057_v18 = vsel %vm109_vm1, %v3047_v15, 0.0 }
 0x27a   :  { %4646 = vtanh.f32 %v5366_v19 }
 0x287   :  { %v5369_v20 = vpop.eup %4646 }
 0x288   :  { %7940 = vst [vmem:[#allocation41_spill] sm:$0xff] %v5369_v20  ;;  %v5372_v22 = vmul.f32 0.048770577, %v5369_v20 }
 0x28a   :  { %v818_v26 = vrot.slane %v5372_v22, %v5149_v59 }
 0x28c   :  { %820 = vrot.lane.b32.xlu1 %v818_v26, %s4870_s4 }
 0x292   :  { %v2938_v27 = vpop.permute.xlu1 %2937 }
 0x293   :  { %v2940_v29 = vadd.f32 %v2938_v27, %v5138_v38 }
 0x295   :  { %v5378_v21 = vmul.f32 0.095162585, %v2940_v29 }
 0x297   :  { %4648 = vtanh.f32 %v5378_v21 }
 0x2a4   :  { %v5381_v30 = vpop.eup %4648 }
 0x2a5   :  { %7941 = vst [vmem:[#allocation42_spill] sm:$0xff] %v5381_v30  ;;  %v5384_v31 = vmul.f32 0.048770577, %v5381_v30 }
 0x2a7   :  { %v2959_v35 = vrot.slane %v5384_v31, %v5149_v59 }
 0x2a9   :  { %2961 = vrot.lane.b32.xlu1 %v2959_v35, %s4870_s4 }
 0x2cd   :  { %911 = vadd.xlane.f32.xlu1 %v910_v43 }
 0x2fe   :  { %v821_v46 = vpop.permute.xlu1 %820 }
 0x2ff   :  { %v824_v47 = vsel %vm5163_vm10, %v821_v46, 0.0  ;;  %v823_v49 = vsel %vm5155_vm9, %v821_v46, 0.0  ;;  %v825_v61 = vsel %vm5177_vm11, %v821_v46, 0.0  ;;  %v826_v11 = vsel %vm5185_vm12, %v821_v46, 0.0 }
 0x300   :  { %v830_v48 = vsel %vm109_vm1, %v824_v47, 0.0  ;;  %v827_v50 = vsel %vm109_vm1, %v823_v49, 0.0  ;;  %v833_v3 = vsel %vm109_vm1, %v825_v61, 0.0  ;;  %v836_v14 = vsel %vm109_vm1, %v826_v11, 0.0 }
 0x301   :  { %831 = vadd.xlane.f32.xlu1 %v830_v48  ;;  %828 = vadd.xlane.f32.xlu0 %v827_v50  ;;  %v3044_v48 = vsel %vm5155_vm9, %v3043_v44, 0.0  ;;  %v913_v61 = vsel %vm109_vm1, %v905_v52, 0.0  ;;  %v5442_v44 = vsub.s32 2, %v5146_v53 }
 0x302   :  { %v3048_v50 = vsel %vm109_vm1, %v3044_v48, 0.0 }
 0x303   :  { %7942 = vst [vmem:[#allocation43_spill] sm:$0xff] %v5442_v44  ;;  %v5446_v9 = vrot.slane %v5152_v63, %v5442_v44 }
 0x305   :  { %3052 = vadd.xlane.f32.xlu1 %v3051_v0  ;;  %834 = vadd.xlane.f32.xlu0 %v833_v3  ;;  %v906_v0 = vsel %vm5185_vm12, %v5358_v2, 0.0  ;;  %v1053_v11 = vsel %vm5163_vm10, %v5446_v9, 0.0  ;;  %v5453_v2 = vrot.slane %v5232_v4, %v5442_v44 }
 0x306   :  { %v916_v3 = vsel %vm109_vm1, %v906_v0, 0.0 }
 0x309   :  { %3055 = vadd.xlane.f32.xlu1 %v3054_v13  ;;  %837 = vadd.xlane.f32.xlu0 %v836_v14  ;;  %v1059_v13 = vsel %vm109_vm1, %v1053_v11, 0.0  ;;  %v3194_v14 = vsel %vm5163_vm10, %v5453_v2, 0.0 }
 0x30a   :  { %v3200_v15 = vsel %vm109_vm1, %v3194_v14, 0.0 }
 0x30d   :  { %3058 = vadd.xlane.f32.xlu1 %v3057_v18  ;;  %v3195_v18 = vsel %vm5177_vm11, %v5453_v2, 0.0 }
 0x31b   :  { %v2962_v26 = vpop.permute.xlu1 %2961 }
 0x31c   :  { %v2966_v27 = vsel %vm5177_vm11, %v2962_v26, 0.0  ;;  %v2964_v29 = vsel %vm5155_vm9, %v2962_v26, 0.0  ;;  %v2967_v43 = vsel %vm5185_vm12, %v2962_v26, 0.0  ;;  %v2965_v46 = vsel %vm5163_vm10, %v2962_v26, 0.0 }
 0x31d   :  { %v2974_v35 = vsel %vm109_vm1, %v2966_v27, 0.0  ;;  %v2968_v40 = vsel %vm109_vm1, %v2964_v29, 0.0  ;;  %v2977_v47 = vsel %vm109_vm1, %v2967_v43, 0.0  ;;  %v2971_v49 = vsel %vm109_vm1, %v2965_v46, 0.0 }
 0x31e   :  { %2975 = vadd.xlane.f32.xlu1 %v2974_v35  ;;  %2969 = vadd.xlane.f32.xlu0 %v2968_v40  ;;  %v3203_v26 = vsel %vm109_vm1, %v3195_v18, 0.0  ;;  %v909_v35 = vpop.xlane.xlu0 %908  ;;  %v842_v46 = vrot.slane %v5277_v62, %v5149_v59 }
 0x322   :  { %2978 = vadd.xlane.f32.xlu1 %v2977_v47  ;;  %2972 = vadd.xlane.f32.xlu0 %v2971_v49 }
 0x326   :  { %3049 = vadd.xlane.f32.xlu0 %v3048_v50 }
 0x32a   :  { %914 = vadd.xlane.f32.xlu0 %v913_v61 }
 0x32e   :  { %917 = vadd.xlane.f32.xlu0 %v916_v3 }
 0x333   :  { %2945 = vrot.lane.b32.xlu1 %v5381_v30, %s4870_s4 }
 0x356   :  { %v912_v27 = vpop.xlane.xlu1 %911 }
 0x357   :  { %1060 = vadd.xlane.f32.xlu1 %v1059_v13  ;;  %v2983_v13 = vrot.slane %v5306_v37, %v5149_v59 }
 0x35b   :  { %3201 = vadd.xlane.f32.xlu1 %v3200_v15 }
 0x35f   :  { %3204 = vadd.xlane.f32.xlu1 %v3203_v26 }
 0x38a   :  { %v5464_v29 = vpop.xlane.xlu1 %831  ;;  %v5466_v40 = vpop.xlane.xlu0 %828 }
 0x38b   :  { %v843_v48 = vmul.f32 %v842_v46, %v5466_v40  ;;  %v844_v50 = vmul.f32 %v842_v46, %v5464_v29 }
 0x38d   :  { %v847_v52 = vsub.f32 %v843_v48, %v5322_v42  ;;  %v848_v61 = vsub.f32 %v844_v50, %v5320_v41 }
 0x38e   :  { %v3053_v43 = vpop.xlane.xlu1 %3052  ;;  %v5470_v47 = vpop.xlane.xlu0 %834 }
 0x38f   :  { %v845_v11 = vmul.f32 %v842_v46, %v5470_v47  ;;  %v851_v14 = vmul.f32 0.05, %v847_v52  ;;  %v852_v15 = vmul.f32 0.05, %v848_v61 }
 0x391   :  { %v849_v39 = vsub.f32 %v845_v11, %v5325_v45  ;;  %v5492_v12 = vadd.f32 %v851_v14, %v5322_v42  ;;  %v5495_v52 = vadd.f32 %v852_v15, %v5320_v41 }
 0x392   :  { %v3056_v49 = vpop.xlane.xlu1 %3055  ;;  %v5476_v0 = vpop.xlane.xlu0 %837 }
 0x393   :  { %v846_v50 = vmul.f32 %v842_v46, %v5476_v0  ;;  %v853_v6 = vmul.f32 0.05, %v849_v39  ;;  %v919_v15 = vmul.f32 %v909_v35, %v5492_v12 }
 0x395   :  { %v923_v35 = vsel %vm109_vm1, %v919_v15, 0.0 }
 0x396   :  { %v3059_v3 = vpop.xlane.xlu1 %3058 }
 0x3a7   :  { %v5481_v18 = vpop.xlane.xlu0 %2969  ;;  %v5483_v26 = vpop.xlane.xlu1 %2975 }
 0x3a8   :  { %7943 = vst [vmem:[#allocation44_spill] sm:$0xff] %v5483_v26  ;;  %v2984_v33 = vmul.f32 %v2983_v13, %v5481_v18  ;;  %v2986_v48 = vmul.f32 %v2983_v13, %v5483_v26 }
 0x3aa   :  { %v2988_v17 = vsub.f32 %v2984_v33, %v5339_v25  ;;  %v2990_v36 = vsub.f32 %v2986_v48, %v5342_v28  ;;  %v850_v33 = vsub.f32 %v846_v50, %v5330_v8 }
 0x3ab   :  { %v5497_v61 = vpop.xlane.xlu0 %2972  ;;  %v5499_v10 = vpop.xlane.xlu1 %2978 }
 0x3ac   :  { %7944 = vst [vmem:[#allocation45_spill] sm:$0xff] %v5497_v61  ;;  %7945 = vst [vmem:[#allocation46_spill] sm:$0xff] %v5499_v10  ;;  %v2992_v7 = vmul.f32 0.05, %v2988_v17  ;;  %v2994_v32 = vmul.f32 0.05, %v2990_v36  ;;  %v2985_v46 = vmul.f32 %v2983_v13, %v5497_v61  ;;  %v2987_v11 = vmul.f32 %v2983_v13, %v5499_v10 }
 0x3ad   :  { %v920_v13 = vmul.f32 %v912_v27, %v5495_v52  ;;  %v854_v60 = vmul.f32 0.05, %v850_v33 }
 0x3ae   :  { %v2989_v48 = vsub.f32 %v2985_v46, %v5336_v23  ;;  %v2991_v42 = vsub.f32 %v2987_v11, %v5347_v34  ;;  %v5507_v41 = vadd.f32 %v2992_v7, %v5339_v25  ;;  %v5511_v17 = vadd.f32 %v2994_v32, %v5342_v28 }
 0x3af   :  { %v3050_v14 = vpop.xlane.xlu0 %3049  ;;  %v5522_v25 = vadd.f32 %v853_v6, %v5325_v45  ;;  %v5530_v11 = vadd.f32 %v854_v60, %v5330_v8 }
 0x3b0   :  { %v2993_v36 = vmul.f32 0.05, %v2989_v48  ;;  %v2995_v58 = vmul.f32 0.05, %v2991_v42  ;;  %v3060_v7 = vmul.f32 %v3050_v14, %v5507_v41  ;;  %v3062_v46 = vmul.f32 %v3056_v49, %v5511_v17 }
 0x3b2   :  { %v5515_v39 = vadd.f32 %v2993_v36, %v5336_v23  ;;  %v5518_v50 = vadd.f32 %v2995_v58, %v5347_v34  ;;  %v924_v23 = vsel %vm109_vm1, %v920_v13, 0.0  ;;  %v3064_v34 = vsel %vm109_vm1, %v3060_v7, 0.0 }
 0x3b3   :  { %v915_v32 = vpop.xlane.xlu0 %914  ;;  %v925_v48 = vadd.f32 %v924_v23, %v923_v35  ;;  %v3067_v49 = vsel %vm109_vm1, %v3062_v46, 0.0 }
 0x3b4   :  { %v3061_v28 = vmul.f32 %v3053_v43, %v5515_v39  ;;  %v921_v27 = vmul.f32 %v915_v32, %v5522_v25  ;;  %v3063_v58 = vmul.f32 %v3059_v3, %v5518_v50 }
 0x3b6   :  { %v3065_v6 = vsel %vm109_vm1, %v3061_v28, 0.0  ;;  %v926_v45 = vsel %vm109_vm1, %v921_v27, 0.0  ;;  %v3069_v60 = vsel %vm109_vm1, %v3063_v58, 0.0  ;;  %v1052_v58 = vsel %vm5155_vm9, %v5446_v9, 0.0 }
 0x3b7   :  { %v3066_v33 = vadd.f32 %v3065_v6, %v3064_v34  ;;  %v918_v43 = vpop.xlane.xlu0 %917  ;;  %v927_v15 = vadd.f32 %v926_v45, %v925_v48  ;;  %v3196_v48 = vsel %vm5185_vm12, %v5453_v2, 0.0 }
 0x3b8   :  { %v922_v42 = vmul.f32 %v918_v43, %v5530_v11 }
 0x3b9   :  { %v3068_v14 = vadd.f32 %v3067_v49, %v3066_v33  ;;  %v1056_v49 = vsel %vm109_vm1, %v1052_v58, 0.0 }
 0x3ba   :  { %v928_v8 = vsel %vm109_vm1, %v922_v42, 0.0  ;;  %v3193_v42 = vsel %vm5155_vm9, %v5453_v2, 0.0 }
 0x3bb   :  { %v3070_v3 = vadd.f32 %v3069_v60, %v3068_v14  ;;  %v929_v36 = vadd.f32 %v928_v8, %v927_v15  ;;  %v3197_v14 = vsel %vm109_vm1, %v3193_v42, 0.0  ;;  %v1054_v15 = vsel %vm5177_vm11, %v5446_v9, 0.0 }
 0x3bc   :  { %v1062_v60 = vsel %vm109_vm1, %v1054_v15, 0.0  ;;  %v1055_v8 = vsel %vm5185_vm12, %v5446_v9, 0.0  ;;  %v942_v9 = vmul.f32 0.9048374, %v5366_v19  ;;  %v3099_v42 = vmul.f32 0.95122945, %v5384_v31 }
 0x3bd   :  { %v930_v13 = vrot.slane %v929_v36, 4  ;;  %v3071_v7 = vrot.slane %v3070_v3, 4 }
 0x3bf   :  { %v931_v32 = vadd.f32 %v930_v13, %v929_v36  ;;  %v3072_v28 = vadd.f32 %v3071_v7, %v3070_v3  ;;  %v1065_v3 = vsel %vm109_vm1, %v1055_v8, 0.0  ;;  %v5564_v36 = vpop.permute.xlu1 %2945  ;;  %v2877_v8 = vld [vmem:[#allocation8 + $0x20] sm:$0xff] }
 0x3c1   :  { %v932_v27 = vrot.slane %v931_v32, 2  ;;  %v3073_v34 = vrot.slane %v3072_v28, 2 }
 0x3c3   :  { %v933_v35 = vadd.f32 %v932_v27, %v931_v32  ;;  %v3074_v23 = vadd.f32 %v3073_v34, %v3072_v28 }
 0x3c5   :  { %v934_v6 = vrot.slane %v933_v35, 1  ;;  %v3075_v46 = vrot.slane %v3074_v23, 1 }
 0x3c7   :  { %v935_v57 = vadd.f32 %v934_v6, %v933_v35  ;;  %v3076_v43 = vadd.f32 %v3075_v46, %v3074_v23  ;;  %v3083_v6 = vmul.f32 0.9048374, %v5378_v21 }
 0x3c9   :  { %v936_v33 = vmul.f32 0.2, %v935_v57  ;;  %v3077_v45 = vmul.f32 0.2, %v3076_v43  ;;  %v3206_v57 = vsel %vm109_vm1, %v3196_v48, 0.0 }
 0x3cb   :  { %938 = vrot.lane.b32.xlu0 %v936_v33, %s4869_s2  ;;  %3079 = vrot.lane.b32.xlu1 %v3077_v45, %s4869_s2 }
 0x3cf   :  { %804 = vrot.lane.b32.xlu0 %v5369_v20, %s4870_s4 }
 0x3e0   :  { %v5566_v2 = vpop.xlane.xlu1 %1060 }
 0x3e4   :  { %v5568_v13 = vpop.xlane.xlu1 %3201 }
 0x3e8   :  { %v5570_v7 = vpop.xlane.xlu1 %3204 }
 0x3ee   :  { %1057 = vadd.xlane.f32.xlu0 %v1056_v49  ;;  %v958_v49 = vmul.f32 0.95122945, %v5372_v22 }
 0x3ef   :  { %3207 = vadd.xlane.f32.xlu1 %v3206_v57 }
 0x3f2   :  { %3198 = vadd.xlane.f32.xlu0 %v3197_v14 }
 0x3f6   :  { %1063 = vadd.xlane.f32.xlu0 %v1062_v60 }
 0x3fa   :  { %1066 = vadd.xlane.f32.xlu0 %v1065_v3  ;;  %v2878_v3 = vld [vmem:[#allocation8 + $0x28] sm:$0xff] }
 0x43d   :  { %v939_v32 = vpop.permute.xlu0 %938  ;;  %v3080_v28 = vpop.permute.xlu1 %3079 }
 0x43e   :  { %v941_v27 = vadd.f32 %v939_v32, %v5130_v54  ;;  %v3082_v34 = vadd.f32 %v3080_v28, %v5138_v38  ;;  %v2881_v32 = vsel %vm5155_vm9, %v2877_v8, 0.0  ;;  %v2882_v28 = vsel %vm5163_vm10, %v2878_v3, 0.0 }
 0x440   :  { %v943_v35 = vmul.f32 0.095162585, %v941_v27  ;;  %v3084_v23 = vmul.f32 0.095162585, %v3082_v34  ;;  %v2879_v27 = vld [vmem:[#allocation8 + $0x30] sm:$0xff]  ;;  %v2885_v34 = vsel %vm109_vm1, %v2881_v32, 0.0 }
 0x442   :  { %v945_v46 = vrot.slane %v943_v35, 1  ;;  %v3086_v43 = vrot.slane %v3084_v23, 1  ;;  %v2886_v35 = vsel %vm109_vm1, %v2882_v28, 0.0  ;;  %v2883_v23 = vsel %vm5177_vm11, %v2879_v27, 0.0  ;;  %v738_v28 = vld [vmem:[#allocation8 + $0x10] sm:$0xff] }
 0x444   :  { %v5576_v33 = vadd.f32 %v945_v46, %v942_v9  ;;  %v5578_v45 = vadd.f32 %v3086_v43, %v3083_v6  ;;  %v2880_v9 = vld [vmem:[#allocation8 + $0x38] sm:$0xff]  ;;  %v2887_v6 = vadd.f32 %v2886_v35, %v2885_v34  ;;  %v2888_v46 = vsel %vm109_vm1, %v2883_v23, 0.0 }
 0x445   :  { %v2884_v43 = vsel %vm5185_vm12, %v2880_v9, 0.0  ;;  %v742_v35 = vsel %vm5177_vm11, %v738_v28, 0.0  ;;  %v739_v9 = vld [vmem:[#allocation8 + $0x18] sm:$0xff] }
 0x446   :  { %4650 = vtanh.f32 %v5576_v33 }
 0x447   :  { %4652 = vtanh.f32 %v5578_v45 }
 0x453   :  { %v5582_v58 = vpop.eup %4650 }
 0x454   :  { %7946 = vst [vmem:[#allocation47_spill] sm:$0xff] %v5582_v58  ;;  %v5584_v48 = vpop.eup %4652  ;;  %v959_v19 = vmul.f32 0.048770577, %v5582_v58 }
 0x455   :  { %7947 = vst [vmem:[#allocation48_spill] sm:$0xff] %v5584_v48  ;;  %v3100_v21 = vmul.f32 0.048770577, %v5584_v48 }
 0x456   :  { %v5589_v57 = vadd.f32 %v959_v19, %v958_v49  ;;  %v2889_v49 = vadd.f32 %v2888_v46, %v2887_v6  ;;  %v2890_v19 = vsel %vm109_vm1, %v2884_v43, 0.0  ;;  %v747_v46 = vsel %vm109_vm1, %v742_v35, 0.0 }
 0x457   :  { %v5594_v15 = vadd.f32 %v3100_v21, %v3099_v42  ;;  %v743_v43 = vsel %vm5185_vm12, %v739_v9, 0.0 }
 0x458   :  { %v967_v14 = vrot.slane %v5589_v57, %v5149_v59  ;;  %v2891_v21 = vadd.f32 %v2890_v19, %v2889_v49 }
 0x459   :  { %v3108_v60 = vrot.slane %v5594_v15, %v5149_v59 }
 0x45a   :  { %969 = vrot.lane.b32.xlu1 %v967_v14, %s4870_s4  ;;  %v2892_v42 = vrot.slane %v2891_v21, 4  ;;  %v736_v14 = vld [vmem:[#allocation8] sm:$0xff] }
 0x45b   :  { %v740_v8 = vsel %vm5155_vm9, %v736_v14, 0.0 }
 0x45c   :  { %v2893_v32 = vadd.f32 %v2892_v42, %v2891_v21  ;;  %v744_v27 = vsel %vm109_vm1, %v740_v8, 0.0  ;;  %v749_v21 = vsel %vm109_vm1, %v743_v43, 0.0 }
 0x45e   :  { %3110 = vrot.lane.b32.xlu1 %v3108_v60, %s4870_s4  ;;  %v737_v60 = vld [vmem:[#allocation8 + $0x8] sm:$0xff]  ;;  %v2894_v23 = vrot.slane %v2893_v32, 2 }
 0x45f   :  { %v741_v3 = vsel %vm5163_vm10, %v737_v60, 0.0 }
 0x460   :  { %v745_v34 = vsel %vm109_vm1, %v741_v3, 0.0  ;;  %v2895_v49 = vadd.f32 %v2894_v23, %v2893_v32 }
 0x461   :  { %v746_v6 = vadd.f32 %v745_v34, %v744_v27 }
 0x462   :  { %v2896_v42 = vrot.slane %v2895_v49, 1 }
 0x463   :  { %v748_v19 = vadd.f32 %v747_v46, %v746_v6 }
 0x464   :  { %v5624_v60 = vadd.f32 %v2896_v42, %v2895_v49 }
 0x465   :  { %v750_v14 = vadd.f32 %v749_v21, %v748_v19 }
 0x466   :  { %v2948_v3 = vmul.f32 %v5564_v36, %v5624_v60 }
 0x467   :  { %v751_v8 = vrot.slane %v750_v14, 4 }
 0x468   :  { %v5630_v27 = vmul.f32 0.095162585, %v2948_v3  ;;  %v805_v3 = vpop.permute.xlu0 %804 }
 0x469   :  { %v752_v28 = vadd.f32 %v751_v8, %v750_v14 }
 0x46a   :  { %4654 = vtanh.f32 %v5630_v27 }
 0x46b   :  { %v753_v34 = vrot.slane %v752_v28, 2 }
 0x46d   :  { %v754_v36 = vadd.f32 %v753_v34, %v752_v28 }
 0x46f   :  { %v755_v49 = vrot.slane %v754_v36, 1 }
 0x471   :  { %v5645_v14 = vadd.f32 %v755_v49, %v754_v36 }
 0x477   :  { %v5650_v34 = vpop.eup %4654 }
 0x478   :  { %v5628_v51 = vpop.xlane.xlu1 %3207 }
 0x4cc   :  { %v970_v35 = vpop.permute.xlu1 %969 }
 0x4cd   :  { %v973_v32 = vsel %vm5163_vm10, %v970_v35, 0.0  ;;  %v972_v23 = vsel %vm5155_vm9, %v970_v35, 0.0  ;;  %v974_v46 = vsel %vm5177_vm11, %v970_v35, 0.0  ;;  %v975_v19 = vsel %vm5185_vm12, %v970_v35, 0.0 }
 0x4ce   :  { %v979_v9 = vsel %vm109_vm1, %v973_v32, 0.0  ;;  %v976_v6 = vsel %vm109_vm1, %v972_v23, 0.0  ;;  %v982_v43 = vsel %vm109_vm1, %v974_v46, 0.0  ;;  %v985_v42 = vsel %vm109_vm1, %v975_v19, 0.0 }
 0x4cf   :  { %980 = vadd.xlane.f32.xlu1 %v979_v9  ;;  %977 = vadd.xlane.f32.xlu0 %v976_v6  ;;  %v807_v32 = vmul.f32 %v805_v3, %v5645_v14  ;;  %v5657_v9 = vmul.f32 0.048770577, %v5650_v34 }
 0x4d0   :  { %v3111_v21 = vpop.permute.xlu1 %3110 }
 0x4d1   :  { %v3113_v8 = vsel %vm5155_vm9, %v3111_v21, 0.0  ;;  %v3114_v35 = vsel %vm5163_vm10, %v3111_v21, 0.0  ;;  %v5659_v6 = vmul.f32 0.095162585, %v807_v32  ;;  %v3116_v19 = vsel %vm5185_vm12, %v3111_v21, 0.0 }
 0x4d2   :  { %v3117_v28 = vsel %vm109_vm1, %v3113_v8, 0.0  ;;  %v3120_v23 = vsel %vm109_vm1, %v3114_v35, 0.0  ;;  %v1058_v8 = vpop.xlane.xlu0 %1057  ;;  %v991_v35 = vrot.slane %v5277_v62, %v5354_v55 }
 0x4d3   :  { %983 = vadd.xlane.f32.xlu0 %v982_v43  ;;  %4656 = vtanh.f32 %v5659_v6  ;;  %v3115_v43 = vsel %vm5177_vm11, %v3111_v21, 0.0 }
 0x4d4   :  { %v3123_v49 = vsel %vm109_vm1, %v3115_v43, 0.0 }
 0x4d6   :  { %v5681_v3 = vpop.xlane.xlu0 %3198 }
 0x4d7   :  { %986 = vadd.xlane.f32.xlu0 %v985_v42  ;;  %v3126_v42 = vsel %vm109_vm1, %v3116_v19, 0.0 }
 0x4db   :  { %3118 = vadd.xlane.f32.xlu0 %v3117_v28  ;;  %v1064_v28 = vpop.xlane.xlu0 %1063 }
 0x4df   :  { %3121 = vadd.xlane.f32.xlu0 %v3120_v23  ;;  %v1067_v32 = vpop.xlane.xlu0 %1066 }
 0x4e0   :  { %3001 = vrot.lane.b32.xlu1 %v5657_v9, %s4869_s2  ;;  %v5666_v36 = vpop.eup %4656 }
 0x4e1   :  { %v5669_v46 = vmul.f32 0.048770577, %v5666_v36 }
 0x4e4   :  { %865 = vrot.lane.b32.xlu1 %v5645_v14, %s4869_s2 }
 0x4f5   :  { %860 = vrot.lane.b32.xlu0 %v5669_v46, %s4869_s2 }
 0x508   :  { %3124 = vadd.xlane.f32.xlu1 %v3123_v49 }
 0x50c   :  { %3127 = vadd.xlane.f32.xlu1 %v3126_v42 }
 0x51d   :  { %3006 = vrot.lane.b32.xlu1 %v5624_v60, %s4869_s2 }
 0x558   :  { %v5685_v23 = vpop.xlane.xlu0 %977  ;;  %v5687_v43 = vpop.xlane.xlu1 %980 }
 0x559   :  { %7948 = vst [vmem:[#allocation49_spill] sm:$0xff] %v5685_v23  ;;  %7949 = vst [vmem:[#allocation50_spill] sm:$0xff] %v5687_v43  ;;  %v992_v21 = vmul.f32 %v991_v35, %v5685_v23  ;;  %v993_v49 = vmul.f32 %v991_v35, %v5687_v43 }
 0x55b   :  { %v996_v19 = vsub.f32 %v992_v21, %v5492_v12  ;;  %v997_v42 = vsub.f32 %v993_v49, %v5495_v52 }
 0x55c   :  { %v5693_v56 = vpop.xlane.xlu0 %983 }
 0x55d   :  { %7950 = vst [vmem:[#allocation51_spill] sm:$0xff] %v5693_v56  ;;  %v1000_v30 = vmul.f32 0.05, %v996_v19  ;;  %v1001_v20 = vmul.f32 0.05, %v997_v42  ;;  %v994_v44 = vmul.f32 %v991_v35, %v5693_v56 }
 0x55f   :  { %v5697_v62 = vadd.f32 %v1000_v30, %v5492_v12  ;;  %v5700_v10 = vadd.f32 %v1001_v20, %v5495_v52  ;;  %v998_v23 = vsub.f32 %v994_v44, %v5522_v25 }
 0x560   :  { %v5703_v26 = vpop.xlane.xlu0 %986 }
 0x561   :  { %7951 = vst [vmem:[#allocation52_spill] sm:$0xff] %v5697_v62  ;;  %7952 = vst [vmem:[#allocation53_spill] sm:$0xff] %v5700_v10  ;;  %v1068_v21 = vmul.f32 %v1058_v8, %v5697_v62  ;;  %v1069_v49 = vmul.f32 %v5566_v2, %v5700_v10  ;;  %v1002_v43 = vmul.f32 0.05, %v998_v23  ;;  %v995_v19 = vmul.f32 %v991_v35, %v5703_v26  ;;  %v3002_v35 = vpop.permute.xlu1 %3001 }
 0x562   :  { %7953 = vst [vmem:[#allocation54_spill] sm:$0xff] %v5703_v26 }
 0x563   :  { %v5710_v42 = vadd.f32 %v1002_v43, %v5522_v25  ;;  %v999_v12 = vsub.f32 %v995_v19, %v5530_v11  ;;  %v1072_v20 = vsel %vm109_vm1, %v1068_v21, 0.0  ;;  %v1073_v44 = vsel %vm109_vm1, %v1069_v49, 0.0 }
 0x564   :  { %v5713_v30 = vpop.xlane.xlu0 %3118  ;;  %v1074_v25 = vadd.f32 %v1073_v44, %v1072_v20 }
 0x565   :  { %7954 = vst [vmem:[#allocation55_spill] sm:$0xff] %v5710_v42  ;;  %v1070_v52 = vmul.f32 %v1064_v28, %v5710_v42  ;;  %v1003_v8 = vmul.f32 0.05, %v999_v12  ;;  %v866_v28 = vpop.permute.xlu1 %865 }
 0x567   :  { %v5719_v62 = vadd.f32 %v1003_v8, %v5530_v11  ;;  %v1075_v2 = vsel %vm109_vm1, %v1070_v52, 0.0 }
 0x568   :  { %v5722_v23 = vpop.xlane.xlu0 %3121  ;;  %v1076_v19 = vadd.f32 %v1075_v2, %v1074_v25 }
 0x569   :  { %v1071_v43 = vmul.f32 %v1067_v32, %v5719_v62 }
 0x56b   :  { %v1077_v10 = vsel %vm109_vm1, %v1071_v43, 0.0 }
 0x56c   :  { %v861_v21 = vpop.permute.xlu0 %860  ;;  %v1078_v26 = vadd.f32 %v1077_v10, %v1076_v19  ;;  %v3132_v10 = vrot.slane %v5306_v37, %v5354_v55 }
 0x56d   :  { %v863_v49 = vmul.f32 %v861_v21, %v5372_v22 }
 0x56e   :  { %v1079_v12 = vrot.slane %v1078_v26, 4  ;;  %v3134_v22 = vmul.f32 %v3132_v10, %v5722_v23 }
 0x56f   :  { %v868_v42 = vsub.f32 %v863_v49, %v866_v28 }
 0x570   :  { %v1080_v11 = vadd.f32 %v1079_v12, %v1078_v26  ;;  %v3133_v26 = vmul.f32 %v3132_v10, %v5713_v30 }
 0x571   :  { %v869_v8 = vmul.f32 0.05, %v868_v42  ;;  %v3138_v42 = vsub.f32 %v3134_v22, %v5515_v39 }
 0x572   :  { %v1081_v56 = vrot.slane %v1080_v11, 2  ;;  %v3137_v44 = vsub.f32 %v3133_v26, %v5507_v41 }
 0x573   :  { %871 = vrot.lane.b32.xlu0 %v869_v8, %s4870_s4 }
 0x574   :  { %v1082_v52 = vadd.f32 %v1081_v56, %v1080_v11  ;;  %v3142_v56 = vmul.f32 0.05, %v3138_v42  ;;  %v3141_v2 = vmul.f32 0.05, %v3137_v44  ;;  %v3004_v11 = vmul.f32 %v3002_v35, %v5384_v31 }
 0x576   :  { %v1083_v61 = vrot.slane %v1082_v52, 1  ;;  %v5744_v19 = vadd.f32 %v3141_v2, %v5507_v41 }
 0x577   :  { %950 = vrot.lane.b32.xlu0 %v5582_v58, %s4870_s4  ;;  %v2871_v58 = vld [vmem:[#allocation10 + $0x38] sm:$0xff] }
 0x578   :  { %v1084_v32 = vadd.f32 %v1083_v61, %v1082_v52  ;;  %v5740_v61 = vadd.f32 %v3142_v56, %v5515_v39  ;;  %v3209_v39 = vmul.f32 %v5681_v3, %v5744_v19 }
 0x57a   :  { %v1085_v20 = vmul.f32 0.2, %v1084_v32  ;;  %v3210_v49 = vmul.f32 %v5568_v13, %v5740_v61 }
 0x57c   :  { %1087 = vrot.lane.b32.xlu0 %v1085_v20, %s4869_s2  ;;  %v3214_v32 = vsel %vm109_vm1, %v3210_v49, 0.0 }
 0x591   :  { %v5737_v25 = vpop.xlane.xlu1 %3124 }
 0x592   :  { %v3135_v43 = vmul.f32 %v3132_v10, %v5737_v25 }
 0x594   :  { %v3139_v55 = vsub.f32 %v3135_v43, %v5511_v17 }
 0x595   :  { %v5747_v21 = vpop.xlane.xlu1 %3127 }
 0x596   :  { %v3143_v28 = vmul.f32 0.05, %v3139_v55  ;;  %v3136_v12 = vmul.f32 %v3132_v10, %v5747_v21  ;;  %v3213_v10 = vsel %vm109_vm1, %v3209_v39, 0.0 }
 0x598   :  { %v5756_v8 = vadd.f32 %v3143_v28, %v5511_v17  ;;  %v3140_v41 = vsub.f32 %v3136_v12, %v5518_v50  ;;  %v3215_v17 = vadd.f32 %v3214_v32, %v3213_v10  ;;  %v1091_v10 = vmul.f32 0.9048374, %v5576_v33 }
 0x599   :  { %v3007_v52 = vpop.permute.xlu1 %3006  ;;  %v1107_v33 = vmul.f32 0.95122945, %v5589_v57 }
 0x59a   :  { %v3211_v20 = vmul.f32 %v5570_v7, %v5756_v8  ;;  %v3144_v13 = vmul.f32 0.05, %v3140_v41  ;;  %v3009_v22 = vsub.f32 %v3004_v11, %v3007_v52  ;;  %v954_v41 = vmul.f32 0.9048374, %v5659_v6 }
 0x59b   :  { %v961_v6 = vmul.f32 0.95122945, %v5669_v46 }
 0x59c   :  { %v5764_v31 = vadd.f32 %v3144_v13, %v5518_v50  ;;  %v3010_v35 = vmul.f32 0.05, %v3009_v22  ;;  %v3216_v3 = vsel %vm109_vm1, %v3211_v20, 0.0 }
 0x59d   :  { %v3217_v42 = vadd.f32 %v3216_v3, %v3215_v17 }
 0x59e   :  { %v3212_v26 = vmul.f32 %v5628_v51, %v5764_v31  ;;  %3012 = vrot.lane.b32.xlu1 %v3010_v35, %s4870_s4 }
 0x5a0   :  { %v3218_v44 = vsel %vm109_vm1, %v3212_v26, 0.0 }
 0x5a1   :  { %v3219_v7 = vadd.f32 %v3218_v44, %v3217_v42 }
 0x5a2   :  { %3091 = vrot.lane.b32.xlu1 %v5584_v48, %s4870_s4 }
 0x5a3   :  { %v3220_v56 = vrot.slane %v3219_v7, 4 }
 0x5a5   :  { %v3221_v2 = vadd.f32 %v3220_v56, %v3219_v7 }
 0x5a7   :  { %v3222_v50 = vrot.slane %v3221_v2, 2 }
 0x5a9   :  { %v3223_v43 = vadd.f32 %v3222_v50, %v3221_v2 }
 0x5ab   :  { %v3224_v55 = vrot.slane %v3223_v43, 1 }
 0x5ad   :  { %v3225_v49 = vadd.f32 %v3224_v55, %v3223_v43 }
 0x5af   :  { %v3226_v28 = vmul.f32 0.2, %v3225_v49  ;;  %v3095_v49 = vmul.f32 0.9048374, %v5630_v27 }
 0x5b1   :  { %3228 = vrot.lane.b32.xlu1 %v3226_v28, %s4869_s2 }
 0x5e5   :  { %v872_v12 = vpop.permute.xlu0 %871 }
 0x5e6   :  { %v5775_v51 = vadd.f32 %v872_v12, %v5645_v14 }
 0x5e9   :  { %v951_v11 = vpop.permute.xlu0 %950 }
 0x5ea   :  { %v953_v39 = vmul.f32 %v951_v11, %v5775_v51 }
 0x5ec   :  { %v955_v52 = vmul.f32 0.095162585, %v953_v39 }
 0x5ee   :  { %v5779_v32 = vadd.f32 %v955_v52, %v954_v41  ;;  %v1088_v20 = vpop.permute.xlu0 %1087 }
 0x5ef   :  { %v1090_v13 = vadd.f32 %v1088_v20, %v5130_v54  ;;  %v3232_v20 = vmul.f32 0.9048374, %v5578_v45  ;;  %v3248_v45 = vmul.f32 0.95122945, %v5594_v15 }
 0x5f0   :  { %4658 = vtanh.f32 %v5779_v32 }
 0x5f1   :  { %v1092_v22 = vmul.f32 0.095162585, %v1090_v13  ;;  %v3102_v13 = vmul.f32 0.95122945, %v5657_v9 }
 0x5f3   :  { %v1094_v35 = vrot.slane %v1092_v22, 2 }
 0x5f5   :  { %v5784_v3 = vadd.f32 %v1094_v35, %v1091_v10 }
 0x5f7   :  { %7955 = vst [vmem:[#allocation56_spill] sm:$0xff] %v5784_v3  ;;  %4660 = vtanh.f32 %v5784_v3 }
 0x5fd   :  { %v5787_v14 = vpop.eup %4658 }
 0x5fe   :  { %7956 = vst [vmem:[#allocation57_spill] sm:$0xff] %v5787_v14  ;;  %v962_v17 = vmul.f32 0.048770577, %v5787_v14 }
 0x600   :  { %v5791_v26 = vadd.f32 %v962_v17, %v961_v6 }
 0x602   :  { %1009 = vrot.lane.b32.xlu0 %v5791_v26, %s4869_s2 }
 0x604   :  { %v5795_v42 = vpop.eup %4660 }
 0x605   :  { %7957 = vst [vmem:[#allocation58_spill] sm:$0xff] %v5795_v42  ;;  %v1108_v44 = vmul.f32 0.048770577, %v5795_v42 }
 0x606   :  { %1014 = vrot.lane.b32.xlu0 %v5775_v51, %s4869_s2 }
 0x607   :  { %v5801_v7 = vadd.f32 %v1108_v44, %v1107_v33 }
 0x609   :  { %7958 = vst [vmem:[#allocation59_spill] sm:$0xff] %v5801_v7  ;;  %v1116_v56 = vrot.slane %v5801_v7, %v5149_v59 }
 0x60b   :  { %1118 = vrot.lane.b32.xlu0 %v1116_v56, %s4870_s4 }
 0x610   :  { %v3013_v2 = vpop.permute.xlu1 %3012 }
 0x611   :  { %v5807_v50 = vadd.f32 %v3013_v2, %v5624_v60 }
 0x614   :  { %v3092_v43 = vpop.permute.xlu1 %3091 }
 0x615   :  { %v3094_v55 = vmul.f32 %v3092_v43, %v5807_v50 }
 0x617   :  { %v3096_v28 = vmul.f32 0.095162585, %v3094_v55 }
 0x619   :  { %v5811_v12 = vadd.f32 %v3096_v28, %v3095_v49  ;;  %v5843_v49 = vsub.s32 3, %v5146_v53 }
 0x61b   :  { %4662 = vtanh.f32 %v5811_v12  ;;  %7963 = vst [vmem:[#allocation64_spill] sm:$0xff] %v5843_v49  ;;  %v1200_v28 = vrot.slane %v5152_v63, %v5843_v49 }
 0x623   :  { %v3229_v11 = vpop.permute.xlu1 %3228 }
 0x624   :  { %v3231_v39 = vadd.f32 %v3229_v11, %v5138_v38  ;;  %v1201_v11 = vsel %vm5155_vm9, %v1200_v28, 0.0  ;;  %v7975_v38 = vld [vmem:[#allocation32_spill] sm:$0xff] }
 0x626   :  { %v3233_v41 = vmul.f32 0.095162585, %v3231_v39 }
 0x628   :  { %v5815_v52 = vpop.eup %4662  ;;  %v3235_v60 = vrot.slane %v3233_v41, 2  ;;  %v1205_v41 = vsel %vm109_vm1, %v1201_v11, 0.0 }
 0x629   :  { %7959 = vst [vmem:[#allocation60_spill] sm:$0xff] %v5815_v52  ;;  %v3103_v22 = vmul.f32 0.048770577, %v5815_v52  ;;  %v7971_v52 = vld [vmem:[#allocation49_spill] sm:$0xff] }
 0x62a   :  { %v5820_v10 = vadd.f32 %v3235_v60, %v3232_v20 }
 0x62b   :  { %v5822_v27 = vadd.f32 %v3103_v22, %v3102_v13 }
 0x62c   :  { %7960 = vst [vmem:[#allocation61_spill] sm:$0xff] %v5820_v10  ;;  %4664 = vtanh.f32 %v5820_v10 }
 0x62d   :  { %3150 = vrot.lane.b32.xlu1 %v5822_v27, %s4869_s2 }
 0x631   :  { %3155 = vrot.lane.b32.xlu1 %v5807_v50, %s4869_s2 }
 0x639   :  { %v5829_v35 = vpop.eup %4664 }
 0x63a   :  { %7961 = vst [vmem:[#allocation62_spill] sm:$0xff] %v5829_v35  ;;  %v3249_v6 = vmul.f32 0.048770577, %v5829_v35 }
 0x63c   :  { %v5833_v17 = vadd.f32 %v3249_v6, %v3248_v45  ;;  %v1203_v6 = vsel %vm5177_vm11, %v1200_v28, 0.0 }
 0x63e   :  { %7962 = vst [vmem:[#allocation63_spill] sm:$0xff] %v5833_v17  ;;  %v3257_v33 = vrot.slane %v5833_v17, %v5149_v59 }
 0x640   :  { %3259 = vrot.lane.b32.xlu1 %v3257_v33, %s4870_s4 }
 0x674   :  { %v1010_v44 = vpop.permute.xlu0 %1009 }
 0x675   :  { %v1012_v56 = vmul.f32 %v1010_v44, %v5589_v57  ;;  %v5851_v57 = vrot.slane %v5232_v4, %v5843_v49  ;;  %v1211_v44 = vsel %vm109_vm1, %v1203_v6, 0.0  ;;  %v1237_v6 = vrot.slane %v5666_v36, %v5149_v59  ;;  %v7972_v4 = vld [vmem:[#allocation51_spill] sm:$0xff] }
 0x677   :  { %v3342_v20 = vsel %vm5155_vm9, %v5851_v57, 0.0  ;;  %v1240_v36 = vsel %vm5177_vm11, %v1237_v6, 0.0 }
 0x678   :  { %v1015_v2 = vpop.permute.xlu0 %1014  ;;  %v3346_v22 = vsel %vm109_vm1, %v3342_v20, 0.0 }
 0x679   :  { %v1017_v43 = vsub.f32 %v1012_v56, %v1015_v2  ;;  %v1204_v56 = vsel %vm5185_vm12, %v1200_v28, 0.0 }
 0x67b   :  { %v1018_v55 = vmul.f32 0.05, %v1017_v43 }
 0x67d   :  { %1020 = vrot.lane.b32.xlu0 %v1018_v55, %s4870_s4  ;;  %v1119_v2 = vpop.permute.xlu0 %1118 }
 0x67e   :  { %v1121_v43 = vsel %vm5155_vm9, %v1119_v2, 0.0  ;;  %v1123_v11 = vsel %vm5177_vm11, %v1119_v2, 0.0 }
 0x67f   :  { %v1125_v55 = vsel %vm109_vm1, %v1121_v43, 0.0 }
 0x681   :  { %1099 = vrot.lane.b32.xlu0 %v5795_v42, %s4870_s4 }
 0x69f   :  { %v3151_v39 = vpop.permute.xlu1 %3150 }
 0x6a0   :  { %1206 = vadd.xlane.f32.xlu0 %v1205_v41  ;;  %v3153_v60 = vmul.f32 %v3151_v39, %v5594_v15  ;;  %v1214_v15 = vsel %vm109_vm1, %v1204_v56, 0.0  ;;  %v1131_v39 = vsel %vm109_vm1, %v1123_v11, 0.0  ;;  %v1124_v41 = vsel %vm5185_vm12, %v1119_v2, 0.0 }
 0x6a1   :  { %v3378_v56 = vrot.slane %v5650_v34, %v5149_v59  ;;  %v1248_v11 = vsel %vm109_vm1, %v1240_v36, 0.0  ;;  %v1241_v34 = vsel %vm5185_vm12, %v1237_v6, 0.0 }
 0x6a3   :  { %v3156_v13 = vpop.permute.xlu1 %3155  ;;  %v3379_v43 = vsel %vm5155_vm9, %v3378_v56, 0.0 }
 0x6a4   :  { %v3158_v45 = vsub.f32 %v3153_v60, %v3156_v13  ;;  %3347 = vadd.xlane.f32.xlu0 %v3346_v22  ;;  %v1134_v60 = vsel %vm109_vm1, %v1124_v41, 0.0 }
 0x6a6   :  { %v3159_v33 = vmul.f32 0.05, %v3158_v45 }
 0x6a8   :  { %1212 = vadd.xlane.f32.xlu0 %v1211_v44  ;;  %3161 = vrot.lane.b32.xlu1 %v3159_v33, %s4870_s4  ;;  %v1239_v44 = vsel %vm5163_vm10, %v1237_v6, 0.0 }
 0x6ac   :  { %1215 = vadd.xlane.f32.xlu0 %v1214_v15  ;;  %3240 = vrot.lane.b32.xlu1 %v5829_v35, %s4870_s4  ;;  %v1245_v15 = vsel %vm109_vm1, %v1239_v44, 0.0  ;;  %v7968_v35 = vld [vmem:[#allocation45_spill] sm:$0xff] }
 0x6b0   :  { %1126 = vadd.xlane.f32.xlu0 %v1125_v55  ;;  %v3383_v55 = vsel %vm109_vm1, %v3379_v43, 0.0 }
 0x6b2   :  { %v3260_v20 = vpop.permute.xlu1 %3259 }
 0x6b3   :  { %v3262_v13 = vsel %vm5155_vm9, %v3260_v20, 0.0  ;;  %v3263_v45 = vsel %vm5163_vm10, %v3260_v20, 0.0 }
 0x6b4   :  { %1132 = vadd.xlane.f32.xlu0 %v1131_v39  ;;  %v3266_v22 = vsel %vm109_vm1, %v3262_v13, 0.0  ;;  %v3269_v33 = vsel %vm109_vm1, %v3263_v45, 0.0  ;;  %v1202_v39 = vsel %vm5163_vm10, %v1200_v28, 0.0  ;;  %v3343_v13 = vsel %vm5163_vm10, %v5851_v57, 0.0 }
 0x6b5   :  { %v1208_v41 = vsel %vm109_vm1, %v1202_v39, 0.0  ;;  %v3344_v28 = vsel %vm5177_vm11, %v5851_v57, 0.0  ;;  %v3265_v39 = vsel %vm5185_vm12, %v3260_v20, 0.0 }
 0x6b6   :  { %v3352_v45 = vsel %vm109_vm1, %v3344_v28, 0.0 }
 0x6b8   :  { %1135 = vadd.xlane.f32.xlu0 %v1134_v60  ;;  %v1251_v60 = vsel %vm109_vm1, %v1241_v34, 0.0  ;;  %v3380_v34 = vsel %vm5163_vm10, %v3378_v56, 0.0 }
 0x6bc   :  { %3267 = vadd.xlane.f32.xlu0 %v3266_v22  ;;  %v3349_v22 = vsel %vm109_vm1, %v3343_v13, 0.0 }
 0x6c0   :  { %3270 = vadd.xlane.f32.xlu0 %v3269_v33  ;;  %v1238_v33 = vsel %vm5155_vm9, %v1237_v6, 0.0 }
 0x6c1   :  { %v1242_v44 = vsel %vm109_vm1, %v1238_v33, 0.0  ;;  %v1103_v33 = vmul.f32 0.9048374, %v5779_v32 }
 0x6c4   :  { %1246 = vadd.xlane.f32.xlu0 %v1245_v15  ;;  %v1122_v15 = vsel %vm5163_vm10, %v1119_v2, 0.0  ;;  %v3275_v2 = vsel %vm109_vm1, %v3265_v39, 0.0 }
 0x6c5   :  { %v1128_v43 = vsel %vm109_vm1, %v1122_v15, 0.0 }
 0x6c8   :  { %3384 = vadd.xlane.f32.xlu0 %v3383_v55  ;;  %v3345_v55 = vsel %vm5185_vm12, %v5851_v57, 0.0  ;;  %v3386_v57 = vsel %vm109_vm1, %v3380_v34, 0.0 }
 0x6c9   :  { %v3355_v36 = vsel %vm109_vm1, %v3345_v55, 0.0  ;;  %v1110_v55 = vmul.f32 0.95122945, %v5791_v26 }
 0x6cc   :  { %1249 = vadd.xlane.f32.xlu0 %v1248_v11  ;;  %v3264_v11 = vsel %vm5177_vm11, %v3260_v20, 0.0 }
 0x6cd   :  { %v3272_v6 = vsel %vm109_vm1, %v3264_v11, 0.0 }
 0x6d0   :  { %1209 = vadd.xlane.f32.xlu1 %v1208_v41  ;;  %1252 = vadd.xlane.f32.xlu0 %v1251_v60  ;;  %v3381_v60 = vsel %vm5177_vm11, %v3378_v56, 0.0 }
 0x6d1   :  { %v3389_v28 = vsel %vm109_vm1, %v3381_v60, 0.0 }
 0x6d4   :  { %3350 = vadd.xlane.f32.xlu1 %v3349_v22 }
 0x6d8   :  { %3353 = vadd.xlane.f32.xlu1 %v3352_v45  ;;  %v3382_v45 = vsel %vm5185_vm12, %v3378_v56, 0.0 }
 0x6d9   :  { %v3392_v15 = vsel %vm109_vm1, %v3382_v45, 0.0 }
 0x6dc   :  { %1243 = vadd.xlane.f32.xlu1 %v1242_v44 }
 0x6e0   :  { %1129 = vadd.xlane.f32.xlu1 %v1128_v43 }
 0x6e4   :  { %3356 = vadd.xlane.f32.xlu1 %v3355_v36 }
 0x6e8   :  { %3273 = vadd.xlane.f32.xlu1 %v3272_v6 }
 0x6ec   :  { %3276 = vadd.xlane.f32.xlu1 %v3275_v2  ;;  %v3244_v2 = vmul.f32 0.9048374, %v5811_v12 }
 0x6ef   :  { %v1021_v41 = vpop.permute.xlu0 %1020 }
 0x6f0   :  { %3387 = vadd.xlane.f32.xlu1 %v3386_v57  ;;  %v5932_v13 = vadd.f32 %v1021_v41, %v5775_v51 }
 0x6f3   :  { %v1100_v22 = vpop.permute.xlu0 %1099 }
 0x6f4   :  { %v1102_v20 = vmul.f32 %v1100_v22, %v5932_v13  ;;  %3390 = vadd.xlane.f32.xlu1 %v3389_v28  ;;  %v3251_v28 = vmul.f32 0.95122945, %v5822_v27 }
 0x6f6   :  { %v1104_v44 = vmul.f32 0.095162585, %v1102_v20 }
 0x6f8   :  { %v5940_v43 = vadd.f32 %v1104_v44, %v1103_v33  ;;  %3393 = vadd.xlane.f32.xlu1 %v3392_v15  ;;  %v878_v44 = vrot.slane %v5669_v46, %v5149_v59  ;;  %v3019_v15 = vrot.slane %v5657_v9, %v5149_v59 }
 0x6fa   :  { %7964 = vst [vmem:[#allocation65_spill] sm:$0xff] %v5940_v43  ;;  %4666 = vtanh.f32 %v5940_v43  ;;  %v3021_v48 = vmul.f32 %v3019_v15, %v7968_v35 }
 0x707   :  { %v5943_v51 = vpop.eup %4666 }
 0x708   :  { %7965 = vst [vmem:[#allocation66_spill] sm:$0xff] %v5943_v51  ;;  %v1111_v36 = vmul.f32 0.048770577, %v5943_v51 }
 0x70a   :  { %v5947_v11 = vadd.f32 %v1111_v36, %v1110_v55  ;;  %v879_v36 = vmul.f32 %v878_v44, %v5466_v40 }
 0x70c   :  { %v883_v9 = vsel %vm5155_vm9, 0.0, %v879_v36  ;;  %v7970_v36 = vld [vmem:[#allocation46_spill] sm:$0xff] }
 0x70d   :  { %v3023_v49 = vmul.f32 %v3019_v15, %v7970_v36 }
 0x71a   :  { %v3162_v6 = vpop.permute.xlu1 %3161 }
 0x71b   :  { %v5950_v56 = vadd.f32 %v3162_v6, %v5807_v50  ;;  %v728_v6 = vld [vmem:[#allocation10] sm:$0xff] }
 0x71c   :  { %v732_v46 = vsel %vm5155_vm9, 0.0, %v728_v6  ;;  %v7969_v6 = vld [vmem:[#allocation44_spill] sm:$0xff] }
 0x71d   :  { %v3022_v42 = vmul.f32 %v3019_v15, %v7969_v6  ;;  %v887_v43 = vsub.f32 %v883_v9, %v732_v46 }
 0x71e   :  { %v3241_v32 = vpop.permute.xlu1 %3240 }
 0x71f   :  { %v3243_v39 = vmul.f32 %v3241_v32, %v5950_v56  ;;  %v881_v32 = vmul.f32 %v878_v44, %v5470_v47  ;;  %v2869_v47 = vld [vmem:[#allocation10 + $0x28] sm:$0xff] }
 0x721   :  { %v3245_v34 = vmul.f32 0.095162585, %v3243_v39  ;;  %v2868_v39 = vld [vmem:[#allocation10 + $0x20] sm:$0xff] }
 0x722   :  { %v2872_v40 = vsel %vm5155_vm9, 0.0, %v2868_v39 }
 0x723   :  { %v5954_v41 = vadd.f32 %v3245_v34, %v3244_v2  ;;  %v730_v2 = vld [vmem:[#allocation10 + $0x10] sm:$0xff]  ;;  %v882_v34 = vmul.f32 %v878_v44, %v5476_v0  ;;  %v729_v0 = vld [vmem:[#allocation10 + $0x8] sm:$0xff] }
 0x724   :  { %v733_v6 = vsel %vm5163_vm10, 0.0, %v729_v0  ;;  %v3027_v0 = vsel %vm5185_vm12, 0.0, %v3023_v49  ;;  %v7974_v49 = vld [vmem:[#allocation43_spill] sm:$0xff] }
 0x725   :  { %7966 = vst [vmem:[#allocation67_spill] sm:$0xff] %v5954_v41  ;;  %4668 = vtanh.f32 %v5954_v41  ;;  %v1027_v41 = vrot.slane %v5791_v26, %v5149_v59  ;;  %v886_v35 = vsel %vm5185_vm12, 0.0, %v882_v34 }
 0x727   :  { %v1030_v63 = vmul.f32 %v1027_v41, %v7972_v4 }
 0x729   :  { %v5957_v57 = vpop.xlane.xlu0 %1206  ;;  %v1034_v4 = vsel %vm5177_vm11, 0.0, %v1030_v63 }
 0x72d   :  { %v5959_v60 = vpop.xlane.xlu0 %3347 }
 0x731   :  { %v5965_v20 = vpop.xlane.xlu0 %1212 }
 0x732   :  { %v5961_v22 = vpop.eup %4668 }
 0x733   :  { %7967 = vst [vmem:[#allocation68_spill] sm:$0xff] %v5961_v22  ;;  %v3252_v50 = vmul.f32 0.048770577, %v5961_v22  ;;  %v880_v22 = vmul.f32 %v878_v44, %v5464_v29  ;;  %v885_v29 = vsel %vm5177_vm11, 0.0, %v881_v32  ;;  %v2870_v44 = vld [vmem:[#allocation10 + $0x30] sm:$0xff]  ;;  %v2873_v32 = vsel %vm5163_vm10, 0.0, %v2869_v47 }
 0x734   :  { %v2874_v34 = vsel %vm5177_vm11, 0.0, %v2870_v44  ;;  %v3026_v47 = vsel %vm5177_vm11, 0.0, %v3022_v42  ;;  %v891_v44 = vmul.f32 0.05, %v887_v43 }
 0x735   :  { %v5967_v45 = vadd.f32 %v3252_v50, %v3251_v28  ;;  %v5969_v12 = vpop.xlane.xlu0 %1215  ;;  %v3020_v28 = vmul.f32 %v3019_v15, %v5481_v18  ;;  %v731_v50 = vld [vmem:[#allocation10 + $0x18] sm:$0xff]  ;;  %v734_v18 = vsel %vm5177_vm11, 0.0, %v730_v2  ;;  %v884_v15 = vsel %vm5163_vm10, 0.0, %v880_v22 }
 0x736   :  { %v735_v39 = vsel %vm5185_vm12, 0.0, %v731_v50  ;;  %v889_v26 = vsub.f32 %v885_v29, %v734_v18  ;;  %v3025_v50 = vsel %vm5163_vm10, 0.0, %v3021_v48  ;;  %v1028_v22 = vmul.f32 %v1027_v41, %v7971_v52 }
 0x737   :  { %v3024_v2 = vsel %vm5155_vm9, 0.0, %v3020_v28  ;;  %v2875_v28 = vsel %vm5185_vm12, 0.0, %v2871_v58  ;;  %v890_v9 = vsub.f32 %v886_v35, %v735_v39  ;;  %v888_v14 = vsub.f32 %v884_v15, %v733_v6 }
 0x738   :  { %v3028_v36 = vsub.f32 %v3024_v2, %v2872_v40  ;;  %v3168_v48 = vrot.slane %v5822_v27, %v5149_v59  ;;  %v3029_v58 = vsub.f32 %v3025_v50, %v2873_v32  ;;  %v893_v35 = vmul.f32 0.05, %v889_v26  ;;  %v7973_v2 = vld [vmem:[#allocation54_spill] sm:$0xff] }
 0x739   :  { %v5971_v33 = vpop.xlane.xlu0 %1126  ;;  %v1031_v53 = vmul.f32 %v1027_v41, %v7973_v2  ;;  %v3030_v17 = vsub.f32 %v3026_v47, %v2874_v34  ;;  %v3031_v42 = vsub.f32 %v3027_v0, %v2875_v28  ;;  %v894_v7 = vmul.f32 0.05, %v890_v9  ;;  %v7976_v27 = vld [vmem:[#allocation50_spill] sm:$0xff] }
 0x73a   :  { %v3032_v10 = vmul.f32 0.05, %v3028_v36  ;;  %v1032_v52 = vsel %vm5155_vm9, 0.0, %v1028_v22  ;;  %v6034_v15 = vrot.slane %v7975_v38, %v7974_v49  ;;  %v892_v3 = vmul.f32 0.05, %v888_v14 }
 0x73b   :  { %v1029_v43 = vmul.f32 %v1027_v41, %v7976_v27  ;;  %v895_v54 = vadd.f32 %v891_v44, %v732_v46  ;;  %v3169_v26 = vmul.f32 %v3168_v48, %v5713_v30  ;;  %v3033_v50 = vmul.f32 0.05, %v3029_v58 }
 0x73c   :  { %v897_v47 = vadd.f32 %v893_v35, %v734_v18  ;;  %v1035_v9 = vsel %vm5185_vm12, 0.0, %v1031_v53  ;;  %v3034_v0 = vmul.f32 0.05, %v3030_v17  ;;  %v3035_v22 = vmul.f32 0.05, %v3031_v42 }
 0x73d   :  { %v5977_v55 = vpop.xlane.xlu0 %1132  ;;  %v1036_v2 = vsub.f32 %v1032_v52, %v895_v54  ;;  %v898_v38 = vadd.f32 %v894_v7, %v735_v39  ;;  %v3036_v14 = vadd.f32 %v3032_v10, %v2872_v40  ;;  %v6046_v41 = vrot.slane %v5306_v37, %v7974_v49 }
 0x73e   :  { %v1038_v63 = vsub.f32 %v1034_v4, %v897_v47  ;;  %v3170_v30 = vmul.f32 %v3168_v48, %v5722_v23  ;;  %v896_v18 = vadd.f32 %v892_v3, %v733_v6  ;;  %v1033_v53 = vsel %vm5163_vm10, 0.0, %v1029_v43 }
 0x73f   :  { %v1141_v17 = vmul.f32 %v6034_v15, %v5971_v33  ;;  %v1143_v7 = vmul.f32 %v6034_v15, %v5977_v55  ;;  %v1039_v10 = vsub.f32 %v1035_v9, %v898_v38  ;;  %v3173_v40 = vsel %vm5155_vm9, 0.0, %v3169_v26 }
 0x740   :  { %v3037_v44 = vadd.f32 %v3033_v50, %v2873_v32  ;;  %v6061_v58 = vadd.f32 %v3034_v0, %v2874_v34  ;;  %v6063_v23 = vadd.f32 %v3035_v22, %v2875_v28  ;;  %v1040_v3 = vmul.f32 0.05, %v1036_v2  ;;  %v7977_v34 = vld [vmem:[#allocation52_spill] sm:$0xff]  ;;  %v7978_v50 = vld [vmem:[#allocation55_spill] sm:$0xff] }
 0x741   :  { %v5988_v51 = vpop.xlane.xlu0 %1135  ;;  %v1176_v6 = vrot.slane %v5947_v11, %v5149_v59  ;;  %v1037_v42 = vsub.f32 %v1033_v53, %v896_v18  ;;  %v3171_v52 = vmul.f32 %v3168_v48, %v5737_v25  ;;  %v1042_v49 = vmul.f32 0.05, %v1038_v63 }
 0x742   :  { %v1144_v39 = vmul.f32 %v6034_v15, %v5988_v51  ;;  %v3177_v27 = vsub.f32 %v3173_v40, %v3036_v14  ;;  %v3174_v43 = vsel %vm5163_vm10, 0.0, %v3170_v30  ;;  %v3172_v32 = vmul.f32 %v3168_v48, %v5747_v21 }
 0x743   :  { %v1145_v28 = vsub.f32 %v1141_v17, %v7977_v34  ;;  %v1177_v26 = vmul.f32 %v1176_v6, %v5971_v33  ;;  %v1147_v9 = vsub.f32 %v1143_v7, %v7978_v50  ;;  %v1043_v0 = vmul.f32 0.05, %v1039_v10 }
 0x744   :  { %v1179_v22 = vmul.f32 %v1176_v6, %v5977_v55  ;;  %v1148_v25 = vsub.f32 %v1144_v39, %v5719_v62  ;;  %v1180_v2 = vmul.f32 %v1176_v6, %v5988_v51  ;;  %v6083_v63 = vrot.slane %v5967_v45, %v5149_v59 }
 0x745   :  { %v6024_v29 = vpop.xlane.xlu0 %3267  ;;  %v3178_v48 = vsub.f32 %v3174_v43, %v3037_v44  ;;  %v1041_v33 = vmul.f32 0.05, %v1037_v42  ;;  %v3175_v53 = vsel %vm5177_vm11, 0.0, %v3171_v52  ;;  %v1044_v17 = vadd.f32 %v1040_v3, %v895_v54 }
 0x746   :  { %v3282_v21 = vmul.f32 %v6046_v41, %v6024_v29  ;;  %v3181_v55 = vmul.f32 0.05, %v3177_v27  ;;  %v3318_v7 = vmul.f32 %v6083_v63, %v6024_v29  ;;  %v3176_v51 = vsel %vm5185_vm12, 0.0, %v3172_v32 }
 0x747   :  { %v1149_v10 = vmul.f32 0.05, %v1145_v28  ;;  %v1181_v40 = vsel %vm5155_vm9, 0.0, %v1177_v26  ;;  %v1046_v39 = vadd.f32 %v1042_v49, %v897_v47  ;;  %v1151_v43 = vmul.f32 0.05, %v1147_v9 }
 0x748   :  { %v1183_v42 = vsel %vm5177_vm11, 0.0, %v1179_v22  ;;  %v1152_v37 = vmul.f32 0.05, %v1148_v25  ;;  %v1184_v54 = vsel %vm5185_vm12, 0.0, %v1180_v2  ;;  %v3179_v29 = vsub.f32 %v3175_v53, %v6061_v58 }
 0x749   :  { %v6042_v36 = vpop.xlane.xlu0 %3270  ;;  %v1047_v52 = vadd.f32 %v1043_v0, %v898_v38  ;;  %v3286_v27 = vsub.f32 %v3282_v21, %v5744_v19  ;;  %v3182_v32 = vmul.f32 0.05, %v3178_v48  ;;  %v3180_v26 = vsub.f32 %v3176_v51, %v6063_v23 }
 0x74a   :  { %v1185_v47 = vsub.f32 %v1181_v40, %v1044_v17  ;;  %v3185_v49 = vadd.f32 %v3181_v55, %v3036_v14  ;;  %v3322_v9 = vsel %vm5155_vm9, 0.0, %v3318_v7  ;;  %v3283_v22 = vmul.f32 %v6046_v41, %v6042_v36 }
 0x74b   :  { %v6111_v25 = vadd.f32 %v1149_v10, %v7977_v34  ;;  %v6114_v2 = vadd.f32 %v1151_v43, %v7978_v50  ;;  %v1187_v38 = vsub.f32 %v1183_v42, %v1046_v39  ;;  %v1188_v0 = vsub.f32 %v1184_v54, %v1047_v52  ;;  %v7979_v54 = vld [vmem:[#allocation53_spill] sm:$0xff] }
 0x74c   :  { %v6117_v21 = vadd.f32 %v1152_v37, %v5719_v62  ;;  %v3319_v14 = vmul.f32 %v6083_v63, %v6042_v36  ;;  %v1045_v48 = vadd.f32 %v1041_v33, %v896_v18  ;;  %v3183_v53 = vmul.f32 0.05, %v3179_v29 }
 0x74d   :  { %v6072_v4 = vpop.xlane.xlu0 %1246  ;;  %v3290_v55 = vmul.f32 0.05, %v3286_v27  ;;  %v3326_v7 = vsub.f32 %v3322_v9, %v3185_v49  ;;  %v3186_v51 = vadd.f32 %v3182_v32, %v3037_v44  ;;  %v3184_v1 = vmul.f32 0.05, %v3180_v26 }
 0x74e   :  { %v1189_v34 = vmul.f32 0.05, %v1185_v47  ;;  %v3287_v10 = vsub.f32 %v3283_v22, %v5740_v61  ;;  %v1217_v62 = vmul.f32 %v5957_v57, %v6111_v25  ;;  %v1191_v37 = vmul.f32 0.05, %v1187_v38 }
 0x74f   :  { %v1219_v36 = vmul.f32 %v5965_v20, %v6114_v2  ;;  %v1192_v18 = vmul.f32 0.05, %v1188_v0  ;;  %v1220_v44 = vmul.f32 %v5969_v12, %v6117_v21  ;;  %v3323_v33 = vsel %vm5163_vm10, 0.0, %v3319_v14 }
 0x750   :  { %v3330_v57 = vmul.f32 0.05, %v3326_v7  ;;  %v3187_v20 = vadd.f32 %v3183_v53, %v6061_v58  ;;  %v3291_v26 = vmul.f32 0.05, %v3287_v10  ;;  %v6140_v47 = vadd.f32 %v1189_v34, %v1044_v17 }
 0x751   :  { %v6101_v3 = vpop.xlane.xlu0 %3384  ;;  %v6143_v9 = vadd.f32 %v3184_v1, %v6063_v23  ;;  %v1221_v22 = vsel %vm109_vm1, %v1217_v62, 0.0  ;;  %v3327_v38 = vsub.f32 %v3323_v33, %v3186_v51  ;;  %v6146_v0 = vadd.f32 %v1191_v37, %v1046_v39 }
 0x752   :  { %v6148_v14 = vadd.f32 %v1192_v18, %v1047_v52  ;;  %v1224_v58 = vsel %vm109_vm1, %v1219_v36, 0.0  ;;  %v1226_v17 = vsel %vm109_vm1, %v1220_v44, 0.0  ;;  %v6155_v53 = vadd.f32 %v3330_v57, %v3185_v49 }
 0x753   :  { %v6163_v52 = vadd.f32 %v3291_v26, %v5740_v61  ;;  %v3331_v49 = vmul.f32 0.05, %v3327_v38 }
 0x755   :  { %v1250_v50 = vpop.xlane.xlu0 %1249  ;;  %v6184_v57 = vadd.f32 %v3331_v49, %v3186_v51 }
 0x759   :  { %v6048_v46 = vpop.xlane.xlu1 %1209 }
 0x75d   :  { %v6067_v35 = vpop.xlane.xlu1 %3350 }
 0x761   :  { %v6087_v30 = vpop.xlane.xlu1 %3353 }
 0x765   :  { %v1244_v28 = vpop.xlane.xlu1 %1243 }
 0x766   :  { %v1254_v23 = vmul.f32 %v1244_v28, %v6140_v47 }
 0x768   :  { %v1258_v37 = vsel %vm109_vm1, %v1254_v23, 0.0 }
 0x769   :  { %v1130_v40 = vpop.xlane.xlu1 %1129 }
 0x76a   :  { %v1142_v43 = vmul.f32 %v6034_v15, %v1130_v40  ;;  %v1178_v42 = vmul.f32 %v1176_v6, %v1130_v40  ;;  %v6135_v6 = vadd.f32 %v3290_v55, %v5744_v19  ;;  %v1253_v55 = vpop.xlane.xlu0 %1252 }
 0x76c   :  { %v1146_v29 = vsub.f32 %v1142_v43, %v7979_v54  ;;  %v1182_v15 = vsel %vm5163_vm10, 0.0, %v1178_v42  ;;  %v3358_v1 = vmul.f32 %v5959_v60, %v6135_v6  ;;  %v1256_v42 = vmul.f32 %v1250_v50, %v6146_v0 }
 0x76d   :  { %v1186_v27 = vsub.f32 %v1182_v15, %v1045_v48  ;;  %v6137_v32 = vpop.xlane.xlu1 %3356  ;;  %v1257_v60 = vmul.f32 %v1253_v55, %v6148_v14 }
 0x76e   :  { %v1150_v12 = vmul.f32 0.05, %v1146_v29  ;;  %v1261_v29 = vsel %vm109_vm1, %v1256_v42, 0.0 }
 0x76f   :  { %v1190_v19 = vmul.f32 0.05, %v1186_v27 }
 0x770   :  { %v6151_v7 = vadd.f32 %v1150_v12, %v7979_v54 }
 0x771   :  { %v6160_v39 = vadd.f32 %v1190_v19, %v1045_v48  ;;  %v3274_v40 = vpop.xlane.xlu1 %3273  ;;  %v3359_v48 = vmul.f32 %v6067_v35, %v6163_v52 }
 0x772   :  { %v1218_v34 = vmul.f32 %v6048_v46, %v6151_v7  ;;  %v3284_v10 = vmul.f32 %v6046_v41, %v3274_v40  ;;  %v3320_v43 = vmul.f32 %v6083_v63, %v3274_v40 }
 0x773   :  { %v1255_v28 = vmul.f32 %v6072_v4, %v6160_v39 }
 0x774   :  { %v1222_v61 = vsel %vm109_vm1, %v1218_v34, 0.0  ;;  %v3288_v62 = vsub.f32 %v3284_v10, %v5756_v8  ;;  %v3324_v46 = vsel %vm5177_vm11, 0.0, %v3320_v43  ;;  %v3395_v34 = vmul.f32 %v6101_v3, %v6155_v53 }
 0x775   :  { %v3328_v36 = vsub.f32 %v3324_v46, %v3187_v20  ;;  %v3277_v18 = vpop.xlane.xlu1 %3276  ;;  %v1259_v50 = vsel %vm109_vm1, %v1255_v28, 0.0  ;;  %v1223_v44 = vadd.f32 %v1222_v61, %v1221_v22  ;;  %v3362_v10 = vsel %vm109_vm1, %v3358_v1, 0.0 }
 0x776   :  { %v3292_v33 = vmul.f32 0.05, %v3288_v62  ;;  %v3285_v4 = vmul.f32 %v6046_v41, %v3277_v18  ;;  %v3321_v54 = vmul.f32 %v6083_v63, %v3277_v18  ;;  %v1260_v35 = vadd.f32 %v1259_v50, %v1258_v37 }
 0x777   :  { %v3332_v15 = vmul.f32 0.05, %v3328_v36  ;;  %v1225_v27 = vadd.f32 %v1224_v58, %v1223_v44  ;;  %v1263_v41 = vsel %vm109_vm1, %v1257_v60, 0.0  ;;  %v3363_v63 = vsel %vm109_vm1, %v3359_v48, 0.0 }
 0x778   :  { %v6187_v26 = vadd.f32 %v3292_v33, %v5756_v8  ;;  %v3289_v12 = vsub.f32 %v3285_v4, %v5764_v31  ;;  %v3325_v22 = vsel %vm5185_vm12, 0.0, %v3321_v54  ;;  %v1262_v38 = vadd.f32 %v1261_v29, %v1260_v35 }
 0x779   :  { %v3329_v19 = vsub.f32 %v3325_v22, %v6143_v9  ;;  %v3388_v55 = vpop.xlane.xlu1 %3387  ;;  %v1227_v23 = vadd.f32 %v1226_v17, %v1225_v27  ;;  %v6201_v43 = vadd.f32 %v3332_v15, %v3187_v20  ;;  %v3399_v46 = vsel %vm109_vm1, %v3395_v34, 0.0 }
 0x77a   :  { %v3360_v51 = vmul.f32 %v6087_v30, %v6187_v26  ;;  %v3293_v58 = vmul.f32 0.05, %v3289_v12  ;;  %v3396_v8 = vmul.f32 %v3388_v55, %v6184_v57  ;;  %v1264_v40 = vadd.f32 %v1263_v41, %v1262_v38 }
 0x77b   :  { %v1228_v49 = vrot.slane %v1227_v23, 4  ;;  %v3333_v60 = vmul.f32 0.05, %v3329_v19  ;;  %v3364_v30 = vadd.f32 %v3363_v63, %v3362_v10 }
 0x77c   :  { %v6204_v42 = vadd.f32 %v3293_v58, %v5764_v31  ;;  %v1265_v17 = vrot.slane %v1264_v40, 4  ;;  %v3365_v28 = vsel %vm109_vm1, %v3360_v51, 0.0  ;;  %v3400_v3 = vsel %vm109_vm1, %v3396_v8, 0.0 }
 0x77d   :  { %v3391_v48 = vpop.xlane.xlu1 %3390  ;;  %v1229_v61 = vadd.f32 %v1228_v49, %v1227_v23  ;;  %v3366_v31 = vadd.f32 %v3365_v28, %v3364_v30  ;;  %v6214_v18 = vadd.f32 %v3333_v60, %v6143_v9  ;;  %v3401_v33 = vadd.f32 %v3400_v3, %v3399_v46 }
 0x77e   :  { %v3361_v62 = vmul.f32 %v6137_v32, %v6204_v42  ;;  %v3397_v1 = vmul.f32 %v3391_v48, %v6201_v43  ;;  %v1266_v20 = vadd.f32 %v1265_v17, %v1264_v40  ;;  %v7980_v48 = vld [vmem:[#allocation19_spill] sm:$0xff] }
 0x77f   :  { %v1230_v37 = vrot.slane %v1229_v61, 2 }
 0x780   :  { %v3402_v36 = vsel %vm109_vm1, %v3397_v1, 0.0  ;;  %v1267_v50 = vrot.slane %v1266_v20, 2  ;;  %v3367_v44 = vsel %vm109_vm1, %v3361_v62, 0.0 }
 0x781   :  { %v3394_v4 = vpop.xlane.xlu1 %3393  ;;  %v1231_v32 = vadd.f32 %v1230_v37, %v1229_v61  ;;  %v3368_v54 = vadd.f32 %v3367_v44, %v3366_v31  ;;  %v3403_v15 = vadd.f32 %v3402_v36, %v3401_v33 }
 0x782   :  { %v3398_v35 = vmul.f32 %v3394_v4, %v6214_v18  ;;  %v1268_v29 = vadd.f32 %v1267_v50, %v1266_v20  ;;  %v7981_v20 = vld [vmem:[#allocation56_spill] sm:$0xff]  ;;  %v7982_v50 = vld [vmem:[#allocation21_spill] sm:$0xff] }
 0x783   :  { %v1232_v27 = vrot.slane %v1231_v32, 1  ;;  %v3369_v12 = vrot.slane %v3368_v54, 4  ;;  %v1282_v46 = vmul.f32 0.9048374, %v7981_v20 }
 0x784   :  { %v3404_v22 = vsel %vm109_vm1, %v3398_v35, 0.0  ;;  %v1269_v38 = vrot.slane %v1268_v29, 1 }
 0x785   :  { %v3405_v41 = vadd.f32 %v3404_v22, %v3403_v15  ;;  %v1233_v63 = vadd.f32 %v1232_v27, %v1231_v32  ;;  %v3370_v9 = vadd.f32 %v3369_v12, %v3368_v54  ;;  %v7983_v54 = vld [vmem:[#allocation61_spill] sm:$0xff]  ;;  %v7984_v22 = vld [vmem:[#allocation59_spill] sm:$0xff] }
 0x786   :  { %v1270_v19 = vadd.f32 %v1269_v38, %v1268_v29  ;;  %v3423_v35 = vmul.f32 0.9048374, %v7983_v54  ;;  %v1298_v38 = vmul.f32 0.95122945, %v7984_v22 }
 0x787   :  { %v3406_v55 = vrot.slane %v3405_v41, 4  ;;  %v1271_v23 = vmul.f32 0.2, %v1233_v63  ;;  %v3371_v51 = vrot.slane %v3370_v9, 2 }
 0x788   :  { %1278 = vrot.lane.b32.xlu1 %v1270_v19, %s4869_s2 }
 0x789   :  { %v3407_v58 = vadd.f32 %v3406_v55, %v3405_v41  ;;  %1273 = vrot.lane.b32.xlu0 %v1271_v23, %s4869_s2  ;;  %v3372_v8 = vadd.f32 %v3371_v51, %v3370_v9 }
 0x78b   :  { %v3408_v40 = vrot.slane %v3407_v58, 2  ;;  %v3373_v34 = vrot.slane %v3372_v8, 1 }
 0x78d   :  { %v3409_v10 = vadd.f32 %v3408_v40, %v3407_v58  ;;  %1158 = vrot.lane.b32.xlu0 %v5947_v11, %s4869_s2  ;;  %v3374_v49 = vadd.f32 %v3373_v34, %v3372_v8  ;;  %v7985_v40 = vld [vmem:[#allocation63_spill] sm:$0xff] }
 0x78e   :  { %v3439_v34 = vmul.f32 0.95122945, %v7985_v40 }
 0x78f   :  { %v3412_v60 = vmul.f32 0.2, %v3374_v49  ;;  %v3410_v17 = vrot.slane %v3409_v10, 1 }
 0x791   :  { %1163 = vrot.lane.b32.xlu0 %v5932_v13, %s4869_s2  ;;  %3414 = vrot.lane.b32.xlu1 %v3412_v60, %s4869_s2  ;;  %v3411_v28 = vadd.f32 %v3410_v17, %v3409_v10 }
 0x795   :  { %3419 = vrot.lane.b32.xlu1 %v3411_v28, %s4869_s2 }
 0x799   :  { %3299 = vrot.lane.b32.xlu1 %v5967_v45, %s4869_s2 }
 0x79d   :  { %3304 = vrot.lane.b32.xlu1 %v5950_v56, %s4869_s2 }
 0x7fa   :  { %v1279_v62 = vpop.permute.xlu1 %1278 }
 0x7fb   :  { %v1274_v30 = vpop.permute.xlu0 %1273 }
 0x7fc   :  { %v1276_v61 = vadd.f32 %v1274_v30, %v7980_v48 }
 0x7fe   :  { %v1281_v3 = vsub.f32 %v1276_v61, %v1279_v62  ;;  %v7986_v62 = vld [vmem:[#allocation22_spill] sm:$0xff] }
 0x7ff   :  { %v1159_v27 = vpop.permute.xlu0 %1158 }
 0x800   :  { %v1283_v1 = vmul.f32 0.095162585, %v1281_v3  ;;  %v1161_v9 = vmul.f32 %v1159_v27, %v7984_v22  ;;  %v6268_v3 = vsub.s32 4, %v7986_v62 }
 0x802   :  { %v1285_v37 = vrot.slane %v1283_v1, 3  ;;  %7987 = vst [vmem:[#allocation45_spill] sm:$0xff] %v6268_v3  ;;  %v7988_v1 = vld [vmem:[#allocation23_spill] sm:$0xff] }
 0x803   :  { %v3415_v31 = vpop.permute.xlu1 %3414  ;;  %v1164_v63 = vpop.permute.xlu0 %1163  ;;  %v1391_v20 = vrot.slane %v7988_v1, %v6268_v3 }
 0x804   :  { %v6233_v36 = vadd.f32 %v1285_v37, %v1282_v46  ;;  %v3417_v44 = vadd.f32 %v3415_v31, %v7982_v50  ;;  %v1166_v55 = vsub.f32 %v1161_v9, %v1164_v63  ;;  %v7990_v31 = vld [vmem:[#allocation29_spill] sm:$0xff] }
 0x805   :  { %v1392_v37 = vsel %vm5155_vm9, %v1391_v20, 0.0  ;;  %v1394_v54 = vsel %vm5177_vm11, %v1391_v20, 0.0  ;;  %v1393_v22 = vsel %vm5163_vm10, %v1391_v20, 0.0 }
 0x806   :  { %4670 = vtanh.f32 %v6233_v36  ;;  %v1167_v58 = vmul.f32 0.05, %v1166_v55  ;;  %v7991_v55 = vld [vmem:[#allocation57_spill] sm:$0xff] }
 0x807   :  { %v3420_v33 = vpop.permute.xlu1 %3419 }
 0x808   :  { %v3422_v4 = vsub.f32 %v3417_v44, %v3420_v33  ;;  %v3532_v44 = vrot.slane %v7990_v31, %v6268_v3  ;;  %v1396_v33 = vsel %vm109_vm1, %v1392_v37, 0.0 }
 0x80a   :  { %v3424_v32 = vmul.f32 0.095162585, %v3422_v4  ;;  %v3533_v4 = vsel %vm5155_vm9, %v3532_v44, 0.0  ;;  %v3535_v9 = vsel %vm5177_vm11, %v3532_v44, 0.0 }
 0x80b   :  { %v3300_v51 = vpop.permute.xlu1 %3299 }
 0x80c   :  { %v3426_v29 = vrot.slane %v3424_v32, 3  ;;  %v3302_v60 = vmul.f32 %v3300_v51, %v7985_v40  ;;  %v3537_v32 = vsel %vm109_vm1, %v3533_v4, 0.0  ;;  %v3543_v51 = vsel %vm109_vm1, %v3535_v9, 0.0 }
 0x80e   :  { %v6238_v15 = vadd.f32 %v3426_v29, %v3423_v35  ;;  %v1402_v35 = vsel %vm109_vm1, %v1394_v54, 0.0  ;;  %v1395_v29 = vsel %vm5185_vm12, %v1391_v20, 0.0  ;;  %v7992_v54 = vld [vmem:[#allocation60_spill] sm:$0xff] }
 0x80f   :  { %v3305_v49 = vpop.permute.xlu1 %3304  ;;  %v1405_v27 = vsel %vm109_vm1, %v1395_v29, 0.0 }
 0x810   :  { %4672 = vtanh.f32 %v6238_v15  ;;  %v3307_v28 = vsub.f32 %v3302_v60, %v3305_v49 }
 0x812   :  { %v3308_v61 = vmul.f32 0.05, %v3307_v28 }
 0x813   :  { %v6241_v12 = vpop.eup %4670 }
 0x814   :  { %v1299_v41 = vmul.f32 0.048770577, %v6241_v12 }
 0x816   :  { %v6246_v19 = vadd.f32 %v1299_v41, %v1298_v38  ;;  %v1399_v38 = vsel %vm109_vm1, %v1393_v22, 0.0  ;;  %v3534_v41 = vsel %vm5163_vm10, %v3532_v44, 0.0 }
 0x817   :  { %v3540_v63 = vsel %vm109_vm1, %v3534_v41, 0.0 }
 0x818   :  { %v1307_v23 = vrot.slane %v6246_v19, %v5149_v59 }
 0x81a   :  { %1309 = vrot.lane.b32.xlu0 %v1307_v23, %s4870_s4  ;;  %v1428_v23 = vrot.slane %v7991_v55, %v5149_v59 }
 0x81d   :  { %v6251_v8 = vpop.eup %4672 }
 0x81e   :  { %1169 = vrot.lane.b32.xlu0 %v1167_v58, %s4870_s4  ;;  %v3440_v10 = vmul.f32 0.048770577, %v6251_v8  ;;  %v1429_v58 = vsel %vm5155_vm9, %v1428_v23, 0.0 }
 0x81f   :  { %v1433_v40 = vsel %vm109_vm1, %v1429_v58, 0.0 }
 0x820   :  { %v6257_v17 = vadd.f32 %v3440_v10, %v3439_v34 }
 0x822   :  { %1290 = vrot.lane.b32.xlu0 %v6241_v12, %s4870_s4  ;;  %v3448_v30 = vrot.slane %v6257_v17, %v5149_v59 }
 0x824   :  { %3450 = vrot.lane.b32.xlu1 %v3448_v30, %s4870_s4 }
 0x828   :  { %3310 = vrot.lane.b32.xlu1 %v3308_v61, %s4870_s4  ;;  %v3536_v61 = vsel %vm5185_vm12, %v3532_v44, 0.0 }
 0x829   :  { %v3546_v1 = vsel %vm109_vm1, %v3536_v61, 0.0 }
 0x82c   :  { %3431 = vrot.lane.b32.xlu1 %v6251_v8, %s4870_s4 }
 0x841   :  { %1397 = vadd.xlane.f32.xlu0 %v1396_v33 }
 0x845   :  { %3538 = vadd.xlane.f32.xlu0 %v3537_v32 }
 0x849   :  { %1403 = vadd.xlane.f32.xlu0 %v1402_v35  ;;  %v3569_v35 = vrot.slane %v7992_v54, %v5149_v59 }
 0x84b   :  { %v3572_v55 = vsel %vm5177_vm11, %v3569_v35, 0.0  ;;  %v3570_v58 = vsel %vm5155_vm9, %v3569_v35, 0.0 }
 0x84d   :  { %1406 = vadd.xlane.f32.xlu0 %v1405_v27 }
 0x850   :  { %1400 = vadd.xlane.f32.xlu1 %v1399_v38  ;;  %v3571_v38 = vsel %vm5163_vm10, %v3569_v35, 0.0 }
 0x851   :  { %v3577_v9 = vsel %vm109_vm1, %v3571_v38, 0.0 }
 0x854   :  { %3541 = vadd.xlane.f32.xlu1 %v3540_v63  ;;  %v1430_v63 = vsel %vm5163_vm10, %v1428_v23, 0.0 }
 0x858   :  { %3544 = vadd.xlane.f32.xlu1 %v3543_v51  ;;  %v1436_v51 = vsel %vm109_vm1, %v1430_v63, 0.0 }
 0x85c   :  { %1434 = vadd.xlane.f32.xlu1 %v1433_v40  ;;  %v3580_v40 = vsel %vm109_vm1, %v3572_v55, 0.0 }
 0x88c   :  { %v1310_v34 = vpop.permute.xlu0 %1309 }
 0x88d   :  { %v1312_v10 = vsel %vm5155_vm9, %v1310_v34, 0.0  ;;  %v1313_v49 = vsel %vm5163_vm10, %v1310_v34, 0.0  ;;  %v1314_v30 = vsel %vm5177_vm11, %v1310_v34, 0.0  ;;  %v1315_v20 = vsel %vm5185_vm12, %v1310_v34, 0.0 }
 0x88e   :  { %v1316_v60 = vsel %vm109_vm1, %v1312_v10, 0.0  ;;  %v1319_v28 = vsel %vm109_vm1, %v1313_v49, 0.0  ;;  %v1322_v62 = vsel %vm109_vm1, %v1314_v30, 0.0  ;;  %v1325_v31 = vsel %vm109_vm1, %v1315_v20, 0.0 }
 0x88f   :  { %1317 = vadd.xlane.f32.xlu0 %v1316_v60  ;;  %1320 = vadd.xlane.f32.xlu1 %v1319_v28  ;;  %v3573_v34 = vsel %vm5185_vm12, %v3569_v35, 0.0  ;;  %v3574_v10 = vsel %vm109_vm1, %v3570_v58, 0.0  ;;  %v1431_v49 = vsel %vm5177_vm11, %v1428_v23, 0.0  ;;  %v1432_v30 = vsel %vm5185_vm12, %v1428_v23, 0.0 }
 0x890   :  { %v3583_v60 = vsel %vm109_vm1, %v3573_v34, 0.0  ;;  %v1439_v28 = vsel %vm109_vm1, %v1431_v49, 0.0  ;;  %v1442_v61 = vsel %vm109_vm1, %v1432_v30, 0.0  ;;  %v7999_v30 = vld [vmem:[#allocation32_spill] sm:$0xff] }
 0x893   :  { %1323 = vadd.xlane.f32.xlu0 %v1322_v62  ;;  %3547 = vadd.xlane.f32.xlu1 %v3546_v1  ;;  %v1170_v62 = vpop.permute.xlu0 %1169 }
 0x894   :  { %v6351_v20 = vadd.f32 %v1170_v62, %v5932_v13 }
 0x896   :  { %v3451_v37 = vpop.permute.xlu1 %3450 }
 0x897   :  { %1326 = vadd.xlane.f32.xlu0 %v1325_v31  ;;  %v3455_v33 = vsel %vm5177_vm11, %v3451_v37, 0.0  ;;  %v3453_v4 = vsel %vm5155_vm9, %v3451_v37, 0.0  ;;  %v3456_v32 = vsel %vm5185_vm12, %v3451_v37, 0.0  ;;  %v3454_v27 = vsel %vm5163_vm10, %v3451_v37, 0.0  ;;  %v1291_v1 = vpop.permute.xlu0 %1290 }
 0x898   :  { %v3463_v44 = vsel %vm109_vm1, %v3455_v33, 0.0  ;;  %v3457_v29 = vsel %vm109_vm1, %v3453_v4, 0.0  ;;  %v3466_v22 = vsel %vm109_vm1, %v3456_v32, 0.0  ;;  %v3460_v41 = vsel %vm109_vm1, %v3454_v27, 0.0  ;;  %v7993_v4 = vld [vmem:[#allocation65_spill] sm:$0xff] }
 0x899   :  { %3464 = vadd.xlane.f32.xlu1 %v3463_v44  ;;  %v1293_v37 = vmul.f32 %v1291_v1, %v6351_v20  ;;  %v1294_v44 = vmul.f32 0.9048374, %v7993_v4 }
 0x89a   :  { %v3311_v31 = vpop.permute.xlu1 %3310 }
 0x89b   :  { %3458 = vadd.xlane.f32.xlu0 %v3457_v29  ;;  %v1295_v33 = vmul.f32 0.095162585, %v1293_v37  ;;  %v6358_v35 = vadd.f32 %v3311_v31, %v5950_v56 }
 0x89d   :  { %3467 = vadd.xlane.f32.xlu1 %v3466_v22  ;;  %v6355_v32 = vadd.f32 %v1295_v33, %v1294_v44  ;;  %v7994_v22 = vld [vmem:[#allocation67_spill] sm:$0xff] }
 0x89e   :  { %v3432_v54 = vpop.permute.xlu1 %3431  ;;  %v3435_v38 = vmul.f32 0.9048374, %v7994_v22 }
 0x89f   :  { %3461 = vadd.xlane.f32.xlu0 %v3460_v41  ;;  %v3434_v23 = vmul.f32 %v3432_v54, %v6358_v35  ;;  %4674 = vtanh.f32 %v6355_v32 }
 0x8a1   :  { %3578 = vadd.xlane.f32.xlu1 %v3577_v9  ;;  %v3436_v29 = vmul.f32 0.095162585, %v3434_v23 }
 0x8a3   :  { %1437 = vadd.xlane.f32.xlu0 %v1436_v51  ;;  %v6363_v41 = vadd.f32 %v3436_v29, %v3435_v38 }
 0x8a5   :  { %3581 = vadd.xlane.f32.xlu1 %v3580_v40  ;;  %7995 = vst [vmem:[#allocation44_spill] sm:$0xff] %v6363_v41  ;;  %4676 = vtanh.f32 %v6363_v41  ;;  %v1301_v40 = vmul.f32 0.95122945, %v5947_v11 }
 0x8a7   :  { %3575 = vadd.xlane.f32.xlu0 %v3574_v10 }
 0x8a9   :  { %3584 = vadd.xlane.f32.xlu1 %v3583_v60 }
 0x8ab   :  { %1440 = vadd.xlane.f32.xlu0 %v1439_v28  ;;  %v7998_v28 = vld [vmem:[#allocation64_spill] sm:$0xff] }
 0x8ac   :  { %v6370_v55 = vpop.eup %4674 }
 0x8ad   :  { %7996 = vst [vmem:[#allocation46_spill] sm:$0xff] %v6370_v55  ;;  %v1302_v58 = vmul.f32 0.048770577, %v6370_v55 }
 0x8af   :  { %1443 = vadd.xlane.f32.xlu0 %v1442_v61  ;;  %v6376_v34 = vadd.f32 %v1302_v58, %v1301_v40  ;;  %v1331_v61 = vrot.slane %v7999_v30, %v7998_v28  ;;  %v3442_v40 = vmul.f32 0.95122945, %v5967_v45 }
 0x8b1   :  { %v1367_v62 = vrot.slane %v6376_v34, %v5149_v59 }
 0x8b2   :  { %v6382_v60 = vpop.eup %4676 }
 0x8b3   :  { %7997 = vst [vmem:[#allocation49_spill] sm:$0xff] %v6382_v60  ;;  %v3443_v44 = vmul.f32 0.048770577, %v6382_v60 }
 0x8b5   :  { %v6399_v60 = vadd.f32 %v3443_v44, %v3442_v40 }
 0x8ca   :  { %v1398_v27 = vpop.xlane.xlu0 %1397 }
 0x8ce   :  { %v6365_v63 = vpop.xlane.xlu0 %3538 }
 0x8d2   :  { %v1404_v56 = vpop.xlane.xlu0 %1403 }
 0x8d6   :  { %v6378_v10 = vpop.xlane.xlu0 %1406 }
 0x8d9   :  { %v1401_v13 = vpop.xlane.xlu1 %1400 }
 0x8dd   :  { %v6367_v9 = vpop.xlane.xlu1 %3541 }
 0x8e1   :  { %v6372_v51 = vpop.xlane.xlu1 %3544 }
 0x8e5   :  { %v6380_v49 = vpop.xlane.xlu1 %1434 }
 0x918   :  { %v1318_v1 = vpop.xlane.xlu0 %1317  ;;  %v1321_v37 = vpop.xlane.xlu1 %1320 }
 0x919   :  { %v1332_v31 = vmul.f32 %v1331_v61, %v1318_v1  ;;  %v1368_v33 = vmul.f32 %v1367_v62, %v1318_v1  ;;  %v1333_v4 = vmul.f32 %v1331_v61, %v1321_v37  ;;  %v1369_v11 = vmul.f32 %v1367_v62, %v1321_v37 }
 0x91b   :  { %v1336_v54 = vsub.f32 %v1332_v31, %v6111_v25  ;;  %v1372_v23 = vsel %vm5155_vm9, 0.0, %v1368_v33  ;;  %v1337_v29 = vsub.f32 %v1333_v4, %v6151_v7  ;;  %v1373_v38 = vsel %vm5163_vm10, 0.0, %v1369_v11 }
 0x91c   :  { %v1376_v22 = vsub.f32 %v1372_v23, %v6140_v47  ;;  %v1324_v58 = vpop.xlane.xlu0 %1323  ;;  %v6397_v30 = vpop.xlane.xlu1 %3547  ;;  %v1377_v4 = vsub.f32 %v1373_v38, %v6160_v39 }
 0x91d   :  { %v1340_v1 = vmul.f32 0.05, %v1336_v54  ;;  %v1341_v55 = vmul.f32 0.05, %v1337_v29  ;;  %v1334_v37 = vmul.f32 %v1331_v61, %v1324_v58  ;;  %v1370_v3 = vmul.f32 %v1367_v62, %v1324_v58 }
 0x91e   :  { %v1380_v23 = vmul.f32 0.05, %v1376_v22  ;;  %v1381_v38 = vmul.f32 0.05, %v1377_v4 }
 0x91f   :  { %v6402_v31 = vadd.f32 %v1340_v1, %v6111_v25  ;;  %v6405_v33 = vadd.f32 %v1341_v55, %v6151_v7  ;;  %v1338_v11 = vsub.f32 %v1334_v37, %v6114_v2  ;;  %v8002_v25 = vld [vmem:[#allocation37_spill] sm:$0xff]  ;;  %v3508_v7 = vrot.slane %v6399_v60, %v5149_v59 }
 0x920   :  { %v1327_v45 = vpop.xlane.xlu0 %1326  ;;  %v3472_v1 = vrot.slane %v8002_v25, %v7998_v28 }
 0x921   :  { %8000 = vst [vmem:[#allocation51_spill] sm:$0xff] %v6402_v31  ;;  %8001 = vst [vmem:[#allocation54_spill] sm:$0xff] %v6405_v33  ;;  %v1408_v54 = vmul.f32 %v1398_v27, %v6402_v31  ;;  %v1409_v29 = vmul.f32 %v1401_v13, %v6405_v33  ;;  %v1342_v41 = vmul.f32 0.05, %v1338_v11  ;;  %v1335_v44 = vmul.f32 %v1331_v61, %v1327_v45 }
 0x922   :  { %v1371_v40 = vmul.f32 %v1367_v62, %v1327_v45  ;;  %v3465_v55 = vpop.xlane.xlu1 %3464  ;;  %v6420_v27 = vadd.f32 %v1380_v23, %v6140_v47  ;;  %v1374_v13 = vsel %vm5177_vm11, 0.0, %v1370_v3 }
 0x923   :  { %v6416_v37 = vadd.f32 %v1342_v41, %v6114_v2  ;;  %v1339_v22 = vsub.f32 %v1335_v44, %v6117_v21  ;;  %v3475_v61 = vmul.f32 %v3472_v1, %v3465_v55  ;;  %v3511_v62 = vmul.f32 %v3508_v7, %v3465_v55 }
 0x924   :  { %v3459_v58 = vpop.xlane.xlu0 %3458  ;;  %v1412_v28 = vsel %vm109_vm1, %v1408_v54, 0.0  ;;  %v1413_v11 = vsel %vm109_vm1, %v1409_v29, 0.0  ;;  %v1375_v2 = vsel %vm5185_vm12, 0.0, %v1371_v40  ;;  %v1378_v3 = vsub.f32 %v1374_v13, %v6146_v0 }
 0x925   :  { %8003 = vst [vmem:[#allocation43_spill] sm:$0xff] %v6416_v37  ;;  %v1343_v45 = vmul.f32 0.05, %v1339_v22  ;;  %v3473_v4 = vmul.f32 %v3472_v1, %v3459_v58  ;;  %v3479_v41 = vsub.f32 %v3475_v61, %v6187_v26  ;;  %v3515_v47 = vsel %vm5177_vm11, 0.0, %v3511_v62 }
 0x926   :  { %v3509_v23 = vmul.f32 %v3508_v7, %v3459_v58  ;;  %v3468_v44 = vpop.xlane.xlu1 %3467  ;;  %v1410_v55 = vmul.f32 %v1404_v56, %v6416_v37  ;;  %v6437_v29 = vadd.f32 %v1381_v38, %v6160_v39  ;;  %v3519_v22 = vsub.f32 %v3515_v47, %v6201_v43 }
 0x927   :  { %v6434_v54 = vadd.f32 %v1343_v45, %v6117_v21  ;;  %v3477_v40 = vsub.f32 %v3473_v4, %v6135_v6  ;;  %v1445_v58 = vmul.f32 %v6380_v49, %v6420_v27  ;;  %v1414_v13 = vadd.f32 %v1413_v11, %v1412_v28 }
 0x928   :  { %v3513_v61 = vsel %vm5155_vm9, 0.0, %v3509_v23  ;;  %v3462_v62 = vpop.xlane.xlu0 %3461  ;;  %v1379_v56 = vsub.f32 %v1375_v2, %v6148_v14  ;;  %v3476_v45 = vmul.f32 %v3472_v1, %v3468_v44  ;;  %v3483_v25 = vmul.f32 0.05, %v3479_v41 }
 0x929   :  { %v3517_v21 = vsub.f32 %v3513_v61, %v6155_v53  ;;  %v3481_v39 = vmul.f32 0.05, %v3477_v40  ;;  %v3512_v38 = vmul.f32 %v3508_v7, %v3468_v44  ;;  %v3474_v37 = vmul.f32 %v3472_v1, %v3462_v62 }
 0x92a   :  { %v3579_v47 = vpop.xlane.xlu1 %3578  ;;  %v1415_v4 = vsel %vm109_vm1, %v1410_v55, 0.0  ;;  %v1411_v23 = vmul.f32 %v6378_v10, %v6434_v54  ;;  %v3480_v33 = vsub.f32 %v3476_v45, %v6204_v42  ;;  %v3510_v31 = vmul.f32 %v3508_v7, %v3462_v62 }
 0x92b   :  { %v3523_v49 = vmul.f32 0.05, %v3519_v22  ;;  %v6452_v28 = vadd.f32 %v3481_v39, %v6135_v6  ;;  %v3516_v11 = vsel %vm5185_vm12, 0.0, %v3512_v38  ;;  %v3478_v2 = vsub.f32 %v3474_v37, %v6163_v52 }
 0x92c   :  { %v1438_v41 = vpop.xlane.xlu0 %1437  ;;  %v3521_v1 = vmul.f32 0.05, %v3517_v21  ;;  %v3484_v44 = vmul.f32 0.05, %v3480_v33  ;;  %v3520_v55 = vsub.f32 %v3516_v11, %v6214_v18  ;;  %v3514_v10 = vsel %vm5163_vm10, 0.0, %v3510_v31 }
 0x92d   :  { %v6461_v40 = vadd.f32 %v3483_v25, %v6187_v26  ;;  %v3549_v6 = vmul.f32 %v6365_v63, %v6452_v28  ;;  %v3482_v7 = vmul.f32 0.05, %v3478_v2  ;;  %v3518_v22 = vsub.f32 %v3514_v10, %v6184_v57 }
 0x92e   :  { %v3582_v61 = vpop.xlane.xlu1 %3581  ;;  %v1382_v62 = vmul.f32 0.05, %v1378_v3  ;;  %v1383_v37 = vmul.f32 0.05, %v1379_v56  ;;  %v6467_v21 = vadd.f32 %v3484_v44, %v6204_v42  ;;  %v1449_v33 = vsel %vm109_vm1, %v1445_v58, 0.0 }
 0x92f   :  { %v1416_v45 = vadd.f32 %v1415_v4, %v1414_v13  ;;  %v3524_v39 = vmul.f32 0.05, %v3520_v55  ;;  %v6471_v31 = vadd.f32 %v3482_v7, %v6163_v52  ;;  %v3522_v26 = vmul.f32 0.05, %v3518_v22 }
 0x930   :  { %v3576_v25 = vpop.xlane.xlu0 %3575  ;;  %v1417_v63 = vsel %vm109_vm1, %v1411_v23, 0.0  ;;  %v1446_v38 = vmul.f32 %v1438_v41, %v6437_v29  ;;  %v6476_v11 = vadd.f32 %v3523_v49, %v6201_v43  ;;  %v6479_v3 = vadd.f32 %v3521_v1, %v6155_v53 }
 0x931   :  { %v3551_v42 = vmul.f32 %v6372_v51, %v6461_v40  ;;  %v3553_v58 = vsel %vm109_vm1, %v3549_v6, 0.0  ;;  %v3550_v52 = vmul.f32 %v6367_v9, %v6471_v31  ;;  %v6487_v13 = vadd.f32 %v3522_v26, %v6184_v57 }
 0x932   :  { %v3552_v56 = vmul.f32 %v6397_v30, %v6467_v21  ;;  %v3588_v43 = vmul.f32 %v3582_v61, %v6476_v11  ;;  %v3586_v4 = vmul.f32 %v3576_v25, %v6479_v3  ;;  %v3585_v53 = vpop.xlane.xlu1 %3584  ;;  %v6494_v23 = vadd.f32 %v1382_v62, %v6146_v0 }
 0x933   :  { %v3554_v51 = vsel %vm109_vm1, %v3550_v52, 0.0  ;;  %v3587_v49 = vmul.f32 %v3579_v47, %v6487_v13  ;;  %v6499_v9 = vadd.f32 %v3524_v39, %v6214_v18  ;;  %v1418_v2 = vadd.f32 %v1417_v63, %v1416_v45 }
 0x934   :  { %v1441_v57 = vpop.xlane.xlu0 %1440  ;;  %v3555_v41 = vadd.f32 %v3554_v51, %v3553_v58  ;;  %v1450_v30 = vsel %vm109_vm1, %v1446_v38, 0.0  ;;  %v3590_v1 = vsel %vm109_vm1, %v3586_v4, 0.0  ;;  %v3556_v55 = vsel %vm109_vm1, %v3551_v42, 0.0 }
 0x935   :  { %v1447_v44 = vmul.f32 %v1441_v57, %v6494_v23  ;;  %v3591_v0 = vsel %vm109_vm1, %v3587_v49, 0.0  ;;  %v3589_v10 = vmul.f32 %v3585_v53, %v6499_v9  ;;  %v1419_v6 = vrot.slane %v1418_v2, 4 }
 0x936   :  { %v3592_v47 = vadd.f32 %v3591_v0, %v3590_v1  ;;  %v6509_v7 = vadd.f32 %v1383_v37, %v6148_v14  ;;  %v3557_v22 = vadd.f32 %v3556_v55, %v3555_v41  ;;  %v3558_v61 = vsel %vm109_vm1, %v3552_v56, 0.0 }
 0x937   :  { %v1452_v18 = vsel %vm109_vm1, %v1447_v44, 0.0  ;;  %v1451_v62 = vadd.f32 %v1450_v30, %v1449_v33  ;;  %v3593_v45 = vsel %vm109_vm1, %v3588_v43, 0.0  ;;  %v1420_v26 = vadd.f32 %v1419_v6, %v1418_v2 }
 0x938   :  { %v1444_v39 = vpop.xlane.xlu0 %1443  ;;  %v3594_v25 = vadd.f32 %v3593_v45, %v3592_v47  ;;  %v3559_v38 = vadd.f32 %v3558_v61, %v3557_v22  ;;  %v3595_v42 = vsel %vm109_vm1, %v3589_v10, 0.0 }
 0x939   :  { %v1448_v63 = vmul.f32 %v1444_v39, %v6509_v7  ;;  %v1453_v58 = vadd.f32 %v1452_v18, %v1451_v62  ;;  %v1421_v52 = vrot.slane %v1420_v26, 2 }
 0x93a   :  { %v3596_v4 = vadd.f32 %v3595_v42, %v3594_v25  ;;  %v3560_v37 = vrot.slane %v3559_v38, 4 }
 0x93b   :  { %v1454_v14 = vsel %vm109_vm1, %v1448_v63, 0.0  ;;  %v1422_v51 = vadd.f32 %v1421_v52, %v1420_v26  ;;  %v1473_v52 = vmul.f32 0.9048374, %v6233_v36 }
 0x93c   :  { %v1455_v53 = vadd.f32 %v1454_v14, %v1453_v58  ;;  %v3597_v56 = vrot.slane %v3596_v4, 4  ;;  %v3561_v33 = vadd.f32 %v3560_v37, %v3559_v38 }
 0x93d   :  { %v1423_v43 = vrot.slane %v1422_v51, 1 }
 0x93e   :  { %v1456_v49 = vrot.slane %v1455_v53, 4  ;;  %v3562_v57 = vrot.slane %v3561_v33, 2  ;;  %v3598_v2 = vadd.f32 %v3597_v56, %v3596_v4 }
 0x93f   :  { %v1424_v30 = vadd.f32 %v1423_v43, %v1422_v51 }
 0x940   :  { %v1457_v41 = vadd.f32 %v1456_v49, %v1455_v53  ;;  %v3563_v1 = vadd.f32 %v3562_v57, %v3561_v33  ;;  %v3599_v0 = vrot.slane %v3598_v2, 2  ;;  %v3614_v33 = vmul.f32 0.9048374, %v6238_v15 }
 0x941   :  { %v1462_v55 = vmul.f32 0.2, %v1424_v30 }
 0x942   :  { %v1458_v44 = vrot.slane %v1457_v41, 2  ;;  %v3564_v6 = vrot.slane %v3563_v1, 1  ;;  %v3600_v18 = vadd.f32 %v3599_v0, %v3598_v2  ;;  %v8005_v2 = vld [vmem:[#allocation47_spill] sm:$0xff] }
 0x943   :  { %1464 = vrot.lane.b32.xlu0 %v1462_v55, %s4869_s2  ;;  %v2152_v36 = vrot.slane %v8005_v2, 7  ;;  %v8007_v55 = vld [vmem:[#allocation41_spill] sm:$0xff] }
 0x944   :  { %v1459_v10 = vadd.f32 %v1458_v44, %v1457_v41  ;;  %v3565_v61 = vadd.f32 %v3564_v6, %v3563_v1  ;;  %v3601_v45 = vrot.slane %v3600_v18, 1  ;;  %v8006_v41 = vld [vmem:[#allocation58_spill] sm:$0xff]  ;;  %v2156_v1 = vrot.slane %v6241_v12, 5 }
 0x945   :  { %v2154_v30 = vrot.slane %v8006_v41, 6  ;;  %v2166_v0 = vsel %vm650_vm2, %v8007_v55, %v2152_v36 }
 0x946   :  { %v1460_v47 = vrot.slane %v1459_v10, 1  ;;  %v3603_v62 = vmul.f32 0.2, %v3565_v61  ;;  %v3602_v39 = vadd.f32 %v3601_v45, %v3600_v18 }
 0x947   :  { %1349 = vrot.lane.b32.xlu0 %v6376_v34, %s4869_s2 }
 0x948   :  { %v1461_v22 = vadd.f32 %v1460_v47, %v1459_v10  ;;  %v1489_v10 = vmul.f32 0.95122945, %v6246_v19  ;;  %v2167_v47 = vsel %vm652_vm3, %v2166_v0, %v2154_v30 }
 0x94a   :  { %1469 = vrot.lane.b32.xlu1 %v1461_v22, %s4869_s2  ;;  %v2168_v22 = vsel %vm654_vm4, %v2167_v47, %v2156_v1 }
 0x94b   :  { %1354 = vrot.lane.b32.xlu0 %v6351_v20, %s4869_s2 }
 0x94e   :  { %3605 = vrot.lane.b32.xlu1 %v3603_v62, %s4869_s2 }
 0x952   :  { %3610 = vrot.lane.b32.xlu1 %v3602_v39, %s4869_s2  ;;  %v8008_v39 = vld [vmem:[#allocation48_spill] sm:$0xff] }
 0x956   :  { %3490 = vrot.lane.b32.xlu1 %v6399_v60, %s4869_s2 }
 0x95a   :  { %3495 = vrot.lane.b32.xlu1 %v6358_v35, %s4869_s2 }
 0x9b5   :  { %v1465_v26 = vpop.permute.xlu0 %1464 }
 0x9b6   :  { %v1467_v25 = vadd.f32 %v1465_v26, %v7980_v48  ;;  %v4293_v26 = vrot.slane %v8008_v39, 7 }
 0x9b9   :  { %v1350_v57 = vpop.permute.xlu0 %1349 }
 0x9ba   :  { %v1352_v61 = vmul.f32 %v1350_v57, %v6246_v19  ;;  %v3630_v19 = vmul.f32 0.95122945, %v6257_v17 }
 0x9bc   :  { %v1470_v63 = vpop.permute.xlu1 %1469 }
 0x9bd   :  { %v1472_v38 = vsub.f32 %v1467_v25, %v1470_v63  ;;  %v1355_v18 = vpop.permute.xlu0 %1354 }
 0x9be   :  { %v1357_v25 = vsub.f32 %v1352_v61, %v1355_v18 }
 0x9bf   :  { %v1474_v42 = vmul.f32 0.095162585, %v1472_v38  ;;  %v8009_v38 = vld [vmem:[#allocation62_spill] sm:$0xff] }
 0x9c0   :  { %v3606_v58 = vpop.permute.xlu1 %3605 }
 0x9c1   :  { %v1476_v4 = vrot.slane %v1474_v42, 4  ;;  %v3608_v37 = vadd.f32 %v3606_v58, %v7982_v50  ;;  %v4295_v42 = vrot.slane %v8009_v38, 6  ;;  %v4297_v58 = vrot.slane %v6251_v8, 5 }
 0x9c3   :  { %v6530_v14 = vadd.f32 %v1476_v4, %v1473_v52  ;;  %v8010_v4 = vld [vmem:[#allocation42_spill] sm:$0xff] }
 0x9c4   :  { %v3611_v53 = vpop.permute.xlu1 %3610 }
 0x9c5   :  { %4678 = vtanh.f32 %v6530_v14  ;;  %v3613_v51 = vsub.f32 %v3608_v37, %v3611_v53  ;;  %v4307_v37 = vsel %vm650_vm2, %v8010_v4, %v4293_v26  ;;  %v1358_v53 = vmul.f32 0.05, %v1357_v25 }
 0x9c7   :  { %v3615_v56 = vmul.f32 0.095162585, %v3613_v51 }
 0x9c8   :  { %v3491_v12 = vpop.permute.xlu1 %3490 }
 0x9c9   :  { %v3617_v49 = vrot.slane %v3615_v56, 4  ;;  %v3493_v2 = vmul.f32 %v3491_v12, %v6257_v17  ;;  %v8012_v17 = vld [vmem:[#allocation26_spill] sm:$0xff] }
 0x9ca   :  { %v1583_v55 = vsel %vm5155_vm9, %v8012_v17, 0.0  ;;  %v1586_v18 = vsel %vm5185_vm12, %v8012_v17, 0.0  ;;  %v1584_v12 = vsel %vm5163_vm10, %v8012_v17, 0.0 }
 0x9cb   :  { %v6535_v43 = vadd.f32 %v3617_v49, %v3614_v33  ;;  %v4308_v33 = vsel %vm652_vm3, %v4307_v37, %v4295_v42  ;;  %v1587_v0 = vsel %vm109_vm1, %v1583_v55, 0.0  ;;  %v1596_v39 = vsel %vm109_vm1, %v1586_v18, 0.0 }
 0x9cc   :  { %v3496_v49 = vpop.permute.xlu1 %3495  ;;  %v4309_v57 = vsel %vm654_vm4, %v4308_v33, %v4297_v58  ;;  %v1590_v26 = vsel %vm109_vm1, %v1584_v12, 0.0 }
 0x9cd   :  { %8004 = vst [vmem:[#allocation50_spill] sm:$0xff] %v6535_v43  ;;  %4680 = vtanh.f32 %v6535_v43  ;;  %v3498_v41 = vsub.f32 %v3493_v2, %v3496_v49 }
 0x9cf   :  { %v3499_v1 = vmul.f32 0.05, %v3498_v41 }
 0x9d2   :  { %v4679_v44 = vpop.eup %4678 }
 0x9d3   :  { %v1490_v6 = vmul.f32 0.048770577, %v4679_v44  ;;  %v2158_v15 = vrot.slane %v4679_v44, 4 }
 0x9d5   :  { %v6547_v62 = vadd.f32 %v1490_v6, %v1489_v10  ;;  %v6550_v45 = vsel %vm656_vm5, %v2168_v22, %v2158_v15  ;;  %v8013_v10 = vld [vmem:[#allocation30_spill] sm:$0xff]  ;;  %v1585_v15 = vsel %vm5177_vm11, %v8012_v17, 0.0 }
 0x9d6   :  { %v3724_v6 = vsel %vm5155_vm9, %v8013_v10, 0.0  ;;  %v1593_v47 = vsel %vm109_vm1, %v1585_v15, 0.0  ;;  %v8014_v22 = vld [vmem:[#allocation66_spill] sm:$0xff]  ;;  %v3725_v42 = vsel %vm5163_vm10, %v8013_v10, 0.0  ;;  %v3726_v4 = vsel %vm5177_vm11, %v8013_v10, 0.0 }
 0x9d7   :  { %v1498_v63 = vrot.slane %v6547_v62, %v5149_v59  ;;  %v6593_v61 = vrot.slane %v8014_v22, %v5149_v59  ;;  %v3727_v33 = vsel %vm5185_vm12, %v8013_v10, 0.0 }
 0x9d8   :  { %v3737_v49 = vsel %vm109_vm1, %v3727_v33, 0.0 }
 0x9d9   :  { %1500 = vrot.lane.b32.xlu0 %v1498_v63, %s4870_s4  ;;  %v1621_v25 = vsel %vm5163_vm10, %v6593_v61, 0.0  ;;  %v8015_v63 = vld [vmem:[#allocation68_spill] sm:$0xff] }
 0x9da   :  { %v4681_v52 = vpop.eup %4680  ;;  %v6605_v38 = vrot.slane %v8015_v63, %v5149_v59  ;;  %v1627_v58 = vsel %vm109_vm1, %v1621_v25, 0.0 }
 0x9db   :  { %v3631_v51 = vmul.f32 0.048770577, %v4681_v52  ;;  %v4299_v56 = vrot.slane %v4681_v52, 4 }
 0x9dd   :  { %1360 = vrot.lane.b32.xlu0 %v1358_v53, %s4870_s4  ;;  %v6565_v8 = vadd.f32 %v3631_v51, %v3630_v19  ;;  %v6568_v36 = vsel %vm656_vm5, %v4309_v57, %v4299_v56  ;;  %v3761_v19 = vsel %vm5155_vm9, %v6605_v38, 0.0  ;;  %v3734_v53 = vsel %vm109_vm1, %v3726_v4, 0.0 }
 0x9de   :  { %8011 = vst [vmem:[#allocation52_spill] sm:$0xff] %v6568_v36  ;;  %v3765_v37 = vsel %vm109_vm1, %v3761_v19, 0.0  ;;  %v1620_v51 = vsel %vm5155_vm9, %v6593_v61, 0.0  ;;  %v3763_v4 = vsel %vm5177_vm11, %v6605_v38, 0.0 }
 0x9df   :  { %v3639_v30 = vrot.slane %v6565_v8, %v5149_v59  ;;  %v1624_v56 = vsel %vm109_vm1, %v1620_v51, 0.0  ;;  %v3771_v51 = vsel %vm109_vm1, %v3763_v4, 0.0 }
 0x9e1   :  { %1481 = vrot.lane.b32.xlu0 %v4679_v44, %s4870_s4  ;;  %3641 = vrot.lane.b32.xlu1 %v3639_v30, %s4870_s4  ;;  %v3728_v44 = vsel %vm109_vm1, %v3724_v6, 0.0 }
 0x9e5   :  { %3501 = vrot.lane.b32.xlu1 %v3499_v1, %s4870_s4 }
 0x9e9   :  { %3622 = vrot.lane.b32.xlu1 %v4681_v52, %s4870_s4  ;;  %v3731_v52 = vsel %vm109_vm1, %v3725_v42, 0.0  ;;  %v3762_v42 = vsel %vm5163_vm10, %v6605_v38, 0.0 }
 0xa00   :  { %1588 = vadd.xlane.f32.xlu0 %v1587_v0 }
 0xa04   :  { %3729 = vadd.xlane.f32.xlu0 %v3728_v44 }
 0xa08   :  { %1594 = vadd.xlane.f32.xlu0 %v1593_v47 }
 0xa0c   :  { %1597 = vadd.xlane.f32.xlu0 %v1596_v39 }
 0xa0d   :  { %1591 = vadd.xlane.f32.xlu1 %v1590_v26 }
 0xa10   :  { %1628 = vadd.xlane.f32.xlu0 %v1627_v58 }
 0xa11   :  { %3732 = vadd.xlane.f32.xlu1 %v3731_v52  ;;  %v3768_v52 = vsel %vm109_vm1, %v3762_v42, 0.0 }
 0xa14   :  { %3766 = vadd.xlane.f32.xlu0 %v3765_v37  ;;  %v1622_v37 = vsel %vm5177_vm11, %v6593_v61, 0.0 }
 0xa15   :  { %3735 = vadd.xlane.f32.xlu1 %v3734_v53  ;;  %v1485_v53 = vmul.f32 0.9048374, %v6355_v32 }
 0xa19   :  { %1625 = vadd.xlane.f32.xlu1 %v1624_v56  ;;  %v1630_v56 = vsel %vm109_vm1, %v1622_v37, 0.0 }
 0xa1d   :  { %3738 = vadd.xlane.f32.xlu1 %v3737_v49  ;;  %v3764_v49 = vsel %vm5185_vm12, %v6605_v38, 0.0  ;;  %v1492_v38 = vmul.f32 0.95122945, %v6376_v34 }
 0xa4b   :  { %v1501_v57 = vpop.permute.xlu0 %1500 }
 0xa4c   :  { %v1503_v2 = vsel %vm5155_vm9, %v1501_v57, 0.0  ;;  %v1504_v41 = vsel %vm5163_vm10, %v1501_v57, 0.0  ;;  %v1505_v17 = vsel %vm5177_vm11, %v1501_v57, 0.0  ;;  %v1506_v10 = vsel %vm5185_vm12, %v1501_v57, 0.0 }
 0xa4d   :  { %v1507_v30 = vsel %vm109_vm1, %v1503_v2, 0.0  ;;  %v1510_v1 = vsel %vm109_vm1, %v1504_v41, 0.0  ;;  %v1513_v0 = vsel %vm109_vm1, %v1505_v17, 0.0  ;;  %v1516_v15 = vsel %vm109_vm1, %v1506_v10, 0.0 }
 0xa4e   :  { %1508 = vadd.xlane.f32.xlu0 %v1507_v30  ;;  %1511 = vadd.xlane.f32.xlu1 %v1510_v1  ;;  %v1623_v57 = vsel %vm5185_vm12, %v6593_v61, 0.0  ;;  %v3774_v2 = vsel %vm109_vm1, %v3764_v49, 0.0 }
 0xa4f   :  { %v1361_v55 = vpop.permute.xlu0 %1360  ;;  %v1633_v32 = vsel %vm109_vm1, %v1623_v57, 0.0 }
 0xa50   :  { %v6648_v39 = vadd.f32 %v1361_v55, %v6351_v20 }
 0xa52   :  { %1514 = vadd.xlane.f32.xlu0 %v1513_v0 }
 0xa53   :  { %v3642_v6 = vpop.permute.xlu1 %3641  ;;  %v1482_v12 = vpop.permute.xlu0 %1481 }
 0xa54   :  { %v3646_v44 = vsel %vm5177_vm11, %v3642_v6, 0.0  ;;  %v3647_v18 = vsel %vm5185_vm12, %v3642_v6, 0.0  ;;  %v3644_v22 = vsel %vm5155_vm9, %v3642_v6, 0.0  ;;  %v1484_v63 = vmul.f32 %v1482_v12, %v6648_v39 }
 0xa55   :  { %v3654_v47 = vsel %vm109_vm1, %v3646_v44, 0.0  ;;  %v3657_v26 = vsel %vm109_vm1, %v3647_v18, 0.0  ;;  %v3648_v25 = vsel %vm109_vm1, %v3644_v22, 0.0  ;;  %v3645_v58 = vsel %vm5163_vm10, %v3642_v6, 0.0  ;;  %v8019_v18 = vld [vmem:[#allocation44_spill] sm:$0xff] }
 0xa56   :  { %1517 = vadd.xlane.f32.xlu0 %v1516_v15  ;;  %3655 = vadd.xlane.f32.xlu1 %v3654_v47  ;;  %v3651_v20 = vsel %vm109_vm1, %v3645_v58, 0.0  ;;  %v1486_v19 = vmul.f32 0.095162585, %v1484_v63  ;;  %v3626_v22 = vmul.f32 0.9048374, %v8019_v18 }
 0xa57   :  { %v3502_v61 = vpop.permute.xlu1 %3501 }
 0xa58   :  { %v6669_v33 = vadd.f32 %v1486_v19, %v1485_v53  ;;  %v6691_v0 = vadd.f32 %v3502_v61, %v6358_v35  ;;  %v8023_v19 = vld [vmem:[#allocation32_spill] sm:$0xff]  ;;  %v8025_v61 = vld [vmem:[#allocation54_spill] sm:$0xff] }
 0xa5a   :  { %3658 = vadd.xlane.f32.xlu1 %v3657_v26  ;;  %3649 = vadd.xlane.f32.xlu0 %v3648_v25  ;;  %8016 = vst [vmem:[#allocation55_spill] sm:$0xff] %v6669_v33  ;;  %4682 = vtanh.f32 %v6669_v33 }
 0xa5b   :  { %v3623_v55 = vpop.permute.xlu1 %3622 }
 0xa5c   :  { %v3625_v44 = vmul.f32 %v3623_v55, %v6691_v0 }
 0xa5e   :  { %3769 = vadd.xlane.f32.xlu1 %v3768_v52  ;;  %3652 = vadd.xlane.f32.xlu0 %v3651_v20  ;;  %v3627_v15 = vmul.f32 0.095162585, %v3625_v44  ;;  %v8022_v20 = vld [vmem:[#allocation45_spill] sm:$0xff]  ;;  %v3633_v44 = vmul.f32 0.95122945, %v6399_v60 }
 0xa5f   :  { %v1522_v4 = vrot.slane %v8023_v19, %v8022_v20 }
 0xa60   :  { %v6701_v12 = vadd.f32 %v3627_v15, %v3626_v22 }
 0xa62   :  { %3772 = vadd.xlane.f32.xlu1 %v3771_v51  ;;  %1631 = vadd.xlane.f32.xlu0 %v1630_v56  ;;  %8020 = vst [vmem:[#allocation56_spill] sm:$0xff] %v6701_v12  ;;  %4684 = vtanh.f32 %v6701_v12 }
 0xa66   :  { %3775 = vadd.xlane.f32.xlu1 %v3774_v2  ;;  %1634 = vadd.xlane.f32.xlu0 %v1633_v32 }
 0xa67   :  { %v6680_v41 = vpop.eup %4682 }
 0xa68   :  { %8017 = vst [vmem:[#allocation53_spill] sm:$0xff] %v6680_v41  ;;  %v1493_v30 = vmul.f32 0.048770577, %v6680_v41 }
 0xa6a   :  { %v6686_v1 = vadd.f32 %v1493_v30, %v1492_v38  ;;  %v8024_v30 = vld [vmem:[#allocation51_spill] sm:$0xff] }
 0xa6c   :  { %8018 = vst [vmem:[#allocation19_spill] sm:$0xff] %v6686_v1  ;;  %v1558_v37 = vrot.slane %v6686_v1, %v5149_v59 }
 0xa6f   :  { %v6716_v52 = vpop.eup %4684 }
 0xa70   :  { %8021 = vst [vmem:[#allocation21_spill] sm:$0xff] %v6716_v52  ;;  %v3634_v2 = vmul.f32 0.048770577, %v6716_v52 }
 0xa72   :  { %v6728_v19 = vadd.f32 %v3634_v2, %v3633_v44 }
 0xa74   :  { %v3699_v2 = vrot.slane %v6728_v19, %v5149_v59 }
 0xa77   :  { %1545 = vrot.lane.b32.xlu1 %v6648_v39, %s4869_s2 }
 0xa7c   :  { %1540 = vrot.lane.b32.xlu0 %v6686_v1, %s4869_s2 }
 0xa89   :  { %v1589_v17 = vpop.xlane.xlu0 %1588 }
 0xa8d   :  { %v6693_v10 = vpop.xlane.xlu0 %3729 }
 0xa91   :  { %v6696_v47 = vpop.xlane.xlu0 %1594 }
 0xa95   :  { %v6703_v26 = vpop.xlane.xlu0 %1597 }
 0xa96   :  { %v1592_v6 = vpop.xlane.xlu1 %1591 }
 0xa99   :  { %v6708_v35 = vpop.xlane.xlu0 %1628 }
 0xa9a   :  { %v6698_v34 = vpop.xlane.xlu1 %3732 }
 0xa9d   :  { %v6712_v42 = vpop.xlane.xlu0 %3766 }
 0xa9e   :  { %v6705_v25 = vpop.xlane.xlu1 %3735 }
 0xaa2   :  { %v6710_v63 = vpop.xlane.xlu1 %1625 }
 0xaa6   :  { %v6714_v58 = vpop.xlane.xlu1 %3738 }
 0xad7   :  { %v1509_v53 = vpop.xlane.xlu0 %1508  ;;  %v1512_v51 = vpop.xlane.xlu1 %1511 }
 0xad8   :  { %v1523_v56 = vmul.f32 %v1522_v4, %v1509_v53  ;;  %v1559_v49 = vmul.f32 %v1558_v37, %v1509_v53  ;;  %v1524_v57 = vmul.f32 %v1522_v4, %v1512_v51  ;;  %v1560_v32 = vmul.f32 %v1558_v37, %v1512_v51 }
 0xada   :  { %v1527_v38 = vsub.f32 %v1523_v56, %v8024_v30  ;;  %v1528_v55 = vsub.f32 %v1524_v57, %v8025_v61  ;;  %v1563_v15 = vsel %vm5155_vm9, 0.0, %v1559_v49  ;;  %v1564_v53 = vsel %vm5163_vm10, 0.0, %v1560_v32  ;;  %v8026_v56 = vld [vmem:[#allocation43_spill] sm:$0xff] }
 0xadb   :  { %v1515_v18 = vpop.xlane.xlu0 %1514  ;;  %v1567_v51 = vsub.f32 %v1563_v15, %v6420_v27  ;;  %v1568_v60 = vsub.f32 %v1564_v53, %v6437_v29 }
 0xadc   :  { %v1525_v22 = vmul.f32 %v1522_v4, %v1515_v18  ;;  %v1531_v41 = vmul.f32 0.05, %v1527_v38  ;;  %v1532_v12 = vmul.f32 0.05, %v1528_v55  ;;  %v1561_v52 = vmul.f32 %v1558_v37, %v1515_v18 }
 0xadd   :  { %v1571_v15 = vmul.f32 0.05, %v1567_v51  ;;  %v1572_v43 = vmul.f32 0.05, %v1568_v60 }
 0xade   :  { %v1529_v1 = vsub.f32 %v1525_v22, %v8026_v56  ;;  %v6740_v38 = vadd.f32 %v1531_v41, %v8024_v30  ;;  %v6743_v55 = vadd.f32 %v1532_v12, %v8025_v61  ;;  %v1565_v44 = vsel %vm5177_vm11, 0.0, %v1561_v52 }
 0xadf   :  { %v1518_v57 = vpop.xlane.xlu0 %1517  ;;  %v6734_v33 = vpop.xlane.xlu1 %3655  ;;  %v1569_v41 = vsub.f32 %v1565_v44, %v6494_v23 }
 0xae0   :  { %v1526_v49 = vmul.f32 %v1522_v4, %v1518_v57  ;;  %v1533_v32 = vmul.f32 0.05, %v1529_v1  ;;  %v1562_v22 = vmul.f32 %v1558_v37, %v1518_v57  ;;  %v3702_v53 = vmul.f32 %v3699_v2, %v6734_v33 }
 0xae1   :  { %v1599_v12 = vmul.f32 %v1589_v17, %v6740_v38  ;;  %v1600_v1 = vmul.f32 %v1592_v6, %v6743_v55  ;;  %v6761_v37 = vadd.f32 %v1571_v15, %v6420_v27  ;;  %v1573_v27 = vmul.f32 0.05, %v1569_v41 }
 0xae2   :  { %v1530_v18 = vsub.f32 %v1526_v49, %v6434_v54  ;;  %v6757_v52 = vadd.f32 %v1533_v32, %v8026_v56  ;;  %v1566_v57 = vsel %vm5185_vm12, 0.0, %v1562_v22  ;;  %v3706_v60 = vsel %vm5177_vm11, 0.0, %v3702_v53 }
 0xae3   :  { %v6749_v4 = vpop.xlane.xlu0 %3649  ;;  %v6751_v36 = vpop.xlane.xlu1 %3658  ;;  %v6775_v49 = vadd.f32 %v1572_v43, %v6437_v29  ;;  %v1603_v44 = vsel %vm109_vm1, %v1599_v12, 0.0  ;;  %v1604_v15 = vsel %vm109_vm1, %v1600_v1, 0.0  ;;  %v1570_v53 = vsub.f32 %v1566_v57, %v6509_v7 }
 0xae4   :  { %v1534_v30 = vmul.f32 0.05, %v1530_v18  ;;  %8027 = vst [vmem:[#allocation61_spill] sm:$0xff] %v6757_v52  ;;  %v3700_v61 = vmul.f32 %v3699_v2, %v6749_v4  ;;  %v1601_v18 = vmul.f32 %v6696_v47, %v6757_v52 }
 0xae6   :  { %v6764_v51 = vadd.f32 %v1534_v30, %v6434_v54  ;;  %v3704_v17 = vsel %vm5155_vm9, 0.0, %v3700_v61  ;;  %v3703_v54 = vmul.f32 %v3699_v2, %v6751_v36  ;;  %v3710_v30 = vsub.f32 %v3706_v60, %v6476_v11 }
 0xae7   :  { %v6772_v6 = vpop.xlane.xlu0 %3652  ;;  %v3770_v56 = vpop.xlane.xlu1 %3769  ;;  %v3708_v32 = vsub.f32 %v3704_v17, %v6479_v3  ;;  %v1606_v57 = vsel %vm109_vm1, %v1601_v18, 0.0 }
 0xae8   :  { %v3701_v22 = vmul.f32 %v3699_v2, %v6772_v6  ;;  %v3707_v43 = vsel %vm5185_vm12, 0.0, %v3703_v54  ;;  %v1602_v41 = vmul.f32 %v6703_v26, %v6764_v51  ;;  %v1605_v2 = vadd.f32 %v1604_v15, %v1603_v44 }
 0xae9   :  { %v3712_v29 = vmul.f32 0.05, %v3708_v32  ;;  %v3711_v12 = vsub.f32 %v3707_v43, %v6499_v9  ;;  %v6799_v32 = vadd.f32 %v1573_v27, %v6494_v23  ;;  %v1574_v54 = vmul.f32 0.05, %v1570_v53 }
 0xaea   :  { %v3705_v47 = vsel %vm5163_vm10, 0.0, %v3701_v22  ;;  %v3714_v26 = vmul.f32 0.05, %v3710_v30  ;;  %v1636_v43 = vmul.f32 %v6710_v63, %v6761_v37  ;;  %v1607_v18 = vadd.f32 %v1606_v57, %v1605_v2 }
 0xaeb   :  { %v1632_v61 = vpop.xlane.xlu0 %1631  ;;  %v3773_v1 = vpop.xlane.xlu1 %3772  ;;  %v6792_v17 = vadd.f32 %v3712_v29, %v6479_v3  ;;  %v3709_v60 = vsub.f32 %v3705_v47, %v6487_v13  ;;  %v1637_v3 = vmul.f32 %v6708_v35, %v6775_v49  ;;  %v1608_v29 = vsel %vm109_vm1, %v1602_v41, 0.0 }
 0xaec   :  { %v3715_v52 = vmul.f32 0.05, %v3711_v12  ;;  %v1638_v44 = vmul.f32 %v1632_v61, %v6799_v32  ;;  %v1640_v27 = vsel %vm109_vm1, %v1636_v43, 0.0  ;;  %v6816_v12 = vadd.f32 %v3714_v26, %v6476_v11 }
 0xaed   :  { %v3713_v22 = vmul.f32 0.05, %v3709_v60  ;;  %v3777_v23 = vmul.f32 %v6712_v42, %v6792_v17  ;;  %v1641_v53 = vsel %vm109_vm1, %v1637_v3, 0.0  ;;  %v6819_v61 = vadd.f32 %v1574_v54, %v6509_v7 }
 0xaee   :  { %v1643_v35 = vsel %vm109_vm1, %v1638_v44, 0.0  ;;  %v1642_v41 = vadd.f32 %v1641_v53, %v1640_v27  ;;  %v1609_v47 = vadd.f32 %v1608_v29, %v1607_v18  ;;  %v6823_v2 = vadd.f32 %v3715_v52, %v6499_v9 }
 0xaef   :  { %v1635_v15 = vpop.xlane.xlu0 %1634  ;;  %v3776_v30 = vpop.xlane.xlu1 %3775  ;;  %v6812_v63 = vadd.f32 %v3713_v22, %v6487_v13  ;;  %v3781_v60 = vsel %vm109_vm1, %v3777_v23, 0.0  ;;  %v3779_v43 = vmul.f32 %v3773_v1, %v6816_v12 }
 0xaf0   :  { %v1644_v13 = vadd.f32 %v1643_v35, %v1642_v41  ;;  %v1639_v3 = vmul.f32 %v1635_v15, %v6819_v61  ;;  %v3780_v26 = vmul.f32 %v3776_v30, %v6823_v2  ;;  %v1610_v54 = vrot.slane %v1609_v47, 4 }
 0xaf1   :  { %v3778_v42 = vmul.f32 %v3770_v56, %v6812_v63  ;;  %v3784_v52 = vsel %vm109_vm1, %v3779_v43, 0.0 }
 0xaf2   :  { %v1645_v56 = vsel %vm109_vm1, %v1639_v3, 0.0  ;;  %v1611_v18 = vadd.f32 %v1610_v54, %v1609_v47  ;;  %v3786_v15 = vsel %vm109_vm1, %v3780_v26, 0.0 }
 0xaf3   :  { %v1541_v57 = vpop.permute.xlu0 %1540  ;;  %v3782_v11 = vsel %vm109_vm1, %v3778_v42, 0.0  ;;  %v1546_v9 = vpop.permute.xlu1 %1545  ;;  %v1646_v22 = vadd.f32 %v1645_v56, %v1644_v13 }
 0xaf4   :  { %v1543_v7 = vmul.f32 %v1541_v57, %v6547_v62  ;;  %v3783_v29 = vadd.f32 %v3782_v11, %v3781_v60  ;;  %v1612_v53 = vrot.slane %v1611_v18, 2 }
 0xaf5   :  { %v1647_v1 = vrot.slane %v1646_v22, 4 }
 0xaf6   :  { %v1548_v44 = vsub.f32 %v1543_v7, %v1546_v9  ;;  %v3785_v23 = vadd.f32 %v3784_v52, %v3783_v29  ;;  %v1613_v41 = vadd.f32 %v1612_v53, %v1611_v18  ;;  %v8028_v9 = vld [vmem:[#allocation37_spill] sm:$0xff] }
 0xaf7   :  { %v1648_v30 = vadd.f32 %v1647_v1, %v1646_v22  ;;  %v3663_v52 = vrot.slane %v8028_v9, %v8022_v20 }
 0xaf8   :  { %v1549_v27 = vmul.f32 0.05, %v1548_v44  ;;  %v3787_v35 = vadd.f32 %v3786_v15, %v3785_v23  ;;  %v1614_v60 = vrot.slane %v1613_v41, 1 }
 0xaf9   :  { %v1649_v57 = vrot.slane %v1648_v30, 2  ;;  %v3665_v22 = vmul.f32 %v3663_v52, %v6772_v6  ;;  %v3664_v44 = vmul.f32 %v3663_v52, %v6749_v4  ;;  %v3666_v23 = vmul.f32 %v3663_v52, %v6734_v33 }
 0xafa   :  { %1551 = vrot.lane.b32.xlu1 %v1549_v27, %s4870_s4  ;;  %v3788_v42 = vrot.slane %v3787_v35, 4  ;;  %v1615_v43 = vadd.f32 %v1614_v60, %v1613_v41 }
 0xafb   :  { %v1650_v11 = vadd.f32 %v1649_v57, %v1648_v30  ;;  %v3669_v18 = vsub.f32 %v3665_v22, %v6471_v31  ;;  %v3668_v1 = vsub.f32 %v3664_v44, %v6452_v28  ;;  %v3670_v27 = vsub.f32 %v3666_v23, %v6461_v40 }
 0xafc   :  { %v3789_v3 = vadd.f32 %v3788_v42, %v3787_v35  ;;  %v1653_v7 = vmul.f32 0.2, %v1615_v43  ;;  %v3667_v35 = vmul.f32 %v3663_v52, %v6751_v36  ;;  %v8029_v36 = vld [vmem:[#allocation27_spill] sm:$0xff] }
 0xafd   :  { %v1651_v47 = vrot.slane %v1650_v11, 1  ;;  %v3673_v15 = vmul.f32 0.05, %v3669_v18  ;;  %v3672_v53 = vmul.f32 0.05, %v3668_v1 }
 0xafe   :  { %v3790_v13 = vrot.slane %v3789_v3, 2  ;;  %1655 = vrot.lane.b32.xlu1 %v1653_v7, %s4869_s2  ;;  %v3674_v20 = vmul.f32 0.05, %v3670_v27  ;;  %v3671_v4 = vsub.f32 %v3667_v35, %v6467_v21  ;;  %v1775_v7 = vsel %vm5163_vm10, %v8029_v36, 0.0 }
 0xaff   :  { %v1652_v26 = vadd.f32 %v1651_v47, %v1650_v11  ;;  %v6848_v30 = vadd.f32 %v3673_v15, %v6471_v31  ;;  %v6851_v6 = vadd.f32 %v3672_v53, %v6452_v28  ;;  %v1774_v31 = vsel %vm5155_vm9, %v8029_v36, 0.0  ;;  %v8030_v47 = vld [vmem:[#allocation46_spill] sm:$0xff] }
 0xb00   :  { %v3791_v54 = vadd.f32 %v3790_v13, %v3789_v3  ;;  %v6857_v41 = vadd.f32 %v3674_v20, %v6461_v40  ;;  %v3675_v57 = vmul.f32 0.05, %v3671_v4  ;;  %v1778_v40 = vsel %vm109_vm1, %v1774_v31, 0.0 }
 0xb01   :  { %1660 = vrot.lane.b32.xlu0 %v1652_v26, %s4869_s2  ;;  %v3741_v33 = vmul.f32 %v6698_v34, %v6848_v30  ;;  %v3740_v42 = vmul.f32 %v6693_v10, %v6851_v6  ;;  %v1776_v10 = vsel %vm5177_vm11, %v8029_v36, 0.0 }
 0xb02   :  { %v3792_v29 = vrot.slane %v3791_v54, 1  ;;  %v3742_v28 = vmul.f32 %v6705_v25, %v6857_v41  ;;  %v6869_v34 = vadd.f32 %v3675_v57, %v6467_v21  ;;  %v1784_v25 = vsel %vm109_vm1, %v1776_v10, 0.0 }
 0xb03   :  { %v3745_v60 = vsel %vm109_vm1, %v3741_v33, 0.0  ;;  %v3744_v3 = vsel %vm109_vm1, %v3740_v42, 0.0  ;;  %v1777_v21 = vsel %vm5185_vm12, %v8029_v36, 0.0 }
 0xb04   :  { %v3793_v56 = vadd.f32 %v3792_v29, %v3791_v54  ;;  %v3746_v11 = vadd.f32 %v3745_v60, %v3744_v3  ;;  %v3747_v43 = vsel %vm109_vm1, %v3742_v28, 0.0  ;;  %v3743_v13 = vmul.f32 %v6714_v58, %v6869_v34 }
 0xb05   :  { %v1810_v54 = vrot.slane %v8030_v47, %v5149_v59  ;;  %v1781_v58 = vsel %vm109_vm1, %v1775_v7, 0.0 }
 0xb06   :  { %3801 = vrot.lane.b32.xlu1 %v3793_v56, %s4869_s2  ;;  %v3748_v26 = vadd.f32 %v3747_v43, %v3746_v11  ;;  %v3749_v29 = vsel %vm109_vm1, %v3743_v13, 0.0  ;;  %v1787_v56 = vsel %vm109_vm1, %v1777_v21, 0.0  ;;  %v1664_v43 = vmul.f32 0.9048374, %v6530_v14 }
 0xb07   :  { %v1811_v52 = vsel %vm5155_vm9, %v1810_v54, 0.0  ;;  %v1812_v22 = vsel %vm5163_vm10, %v1810_v54, 0.0  ;;  %v1813_v33 = vsel %vm5177_vm11, %v1810_v54, 0.0  ;;  %v1814_v57 = vsel %vm5185_vm12, %v1810_v54, 0.0 }
 0xb08   :  { %v3750_v44 = vadd.f32 %v3749_v29, %v3748_v26  ;;  %v1815_v18 = vsel %vm109_vm1, %v1811_v52, 0.0  ;;  %v1818_v23 = vsel %vm109_vm1, %v1812_v22, 0.0  ;;  %v1821_v42 = vsel %vm109_vm1, %v1813_v33, 0.0  ;;  %v8031_v33 = vld [vmem:[#allocation50_spill] sm:$0xff] }
 0xb09   :  { %v1824_v36 = vsel %vm109_vm1, %v1814_v57, 0.0 }
 0xb0a   :  { %v3751_v1 = vrot.slane %v3750_v44, 4 }
 0xb0c   :  { %v3752_v15 = vadd.f32 %v3751_v1, %v3750_v44 }
 0xb0e   :  { %v3753_v27 = vrot.slane %v3752_v15, 2 }
 0xb10   :  { %v3754_v53 = vadd.f32 %v3753_v27, %v3752_v15 }
 0xb12   :  { %v3755_v35 = vrot.slane %v3754_v53, 1 }
 0xb14   :  { %v3756_v20 = vadd.f32 %v3755_v35, %v3754_v53 }
 0xb16   :  { %v3794_v4 = vmul.f32 0.2, %v3756_v20 }
 0xb20   :  { %1779 = vadd.xlane.f32.xlu0 %v1778_v40 }
 0xb24   :  { %1785 = vadd.xlane.f32.xlu0 %v1784_v25 }
 0xb28   :  { %1788 = vadd.xlane.f32.xlu0 %v1787_v56 }
 0xb2a   :  { %1782 = vadd.xlane.f32.xlu1 %v1781_v58 }
 0xb2c   :  { %1816 = vadd.xlane.f32.xlu0 %v1815_v18 }
 0xb2e   :  { %1819 = vadd.xlane.f32.xlu1 %v1818_v23  ;;  %v1680_v23 = vmul.f32 0.95122945, %v6547_v62 }
 0xb3f   :  { %3686 = vrot.lane.b32.xlu1 %v6691_v0, %s4869_s2 }
 0xb42   :  { %3681 = vrot.lane.b32.xlu0 %v6728_v19, %s4869_s2 }
 0xb46   :  { %3796 = vrot.lane.b32.xlu0 %v3794_v4, %s4869_s2 }
 0xb63   :  { %1822 = vadd.xlane.f32.xlu1 %v1821_v42  ;;  %v3805_v42 = vmul.f32 0.9048374, %v8031_v33 }
 0xb65   :  { %1825 = vadd.xlane.f32.xlu0 %v1824_v36 }
 0xb6c   :  { %v1552_v31 = vpop.permute.xlu1 %1551 }
 0xb6d   :  { %v6908_v60 = vadd.f32 %v1552_v31, %v6648_v39  ;;  %v3821_v31 = vmul.f32 0.95122945, %v6565_v8 }
 0xb70   :  { %v1656_v28 = vpop.permute.xlu1 %1655 }
 0xb71   :  { %v1658_v3 = vadd.f32 %v1656_v28, %v7980_v48 }
 0xb73   :  { %v1661_v40 = vpop.permute.xlu0 %1660 }
 0xb74   :  { %1736 = vrot.lane.b32.xlu1 %v6908_v60, %s4869_s2  ;;  %v1663_v11 = vsub.f32 %v1658_v3, %v1661_v40 }
 0xb76   :  { %v1665_v10 = vmul.f32 0.095162585, %v1663_v11  ;;  %v8032_v11 = vld [vmem:[#allocation52_spill] sm:$0xff] }
 0xb78   :  { %v1667_v13 = vrot.slane %v1665_v10, 5  ;;  %v3802_v54 = vpop.permute.xlu1 %3801 }
 0xb7a   :  { %v6914_v25 = vadd.f32 %v1667_v13, %v1664_v43 }
 0xb7c   :  { %4686 = vtanh.f32 %v6914_v25 }
 0xb89   :  { %v4687_v21 = vpop.eup %4686 }
 0xb8a   :  { %1672 = vrot.lane.b32.xlu1 %v4687_v21, %s4870_s4  ;;  %v2160_v39 = vrot.slane %v4687_v21, 3  ;;  %v1681_v18 = vmul.f32 0.048770577, %v4687_v21 }
 0xb8c   :  { %v6920_v7 = vsel %vm658_vm6, %v6550_v45, %v2160_v39  ;;  %v6937_v53 = vadd.f32 %v1681_v18, %v1680_v23 }
 0xb8e   :  { %v1689_v4 = vrot.slane %v6937_v53, %v5149_v59 }
 0xba9   :  { %v6922_v47 = vpop.xlane.xlu0 %1779 }
 0xbad   :  { %v6924_v26 = vpop.xlane.xlu0 %1785 }
 0xbb1   :  { %v6926_v29 = vpop.xlane.xlu0 %1788 }
 0xbb3   :  { %v6928_v14 = vpop.xlane.xlu1 %1782 }
 0xbb5   :  { %v6930_v56 = vpop.xlane.xlu0 %1816 }
 0xbb7   :  { %v6932_v58 = vpop.xlane.xlu1 %1819 }
 0xbb9   :  { %v3682_v52 = vpop.permute.xlu0 %3681 }
 0xbba   :  { %v3684_v44 = vmul.f32 %v3682_v52, %v6565_v8 }
 0xbbb   :  { %v3687_v22 = vpop.permute.xlu1 %3686 }
 0xbbc   :  { %v3689_v45 = vsub.f32 %v3684_v44, %v3687_v22 }
 0xbbd   :  { %v3797_v1 = vpop.permute.xlu0 %3796 }
 0xbbe   :  { %v3690_v15 = vmul.f32 0.05, %v3689_v45  ;;  %v3799_v27 = vadd.f32 %v3797_v1, %v7982_v50  ;;  %v8034_v45 = vld [vmem:[#allocation19_spill] sm:$0xff] }
 0xbbf   :  { %v1683_v23 = vmul.f32 0.95122945, %v8034_v45 }
 0xbc0   :  { %v3804_v35 = vsub.f32 %v3799_v27, %v3802_v54  ;;  %3692 = vrot.lane.b32.xlu0 %v3690_v15, %s4870_s4  ;;  %v8033_v54 = vld [vmem:[#allocation55_spill] sm:$0xff] }
 0xbc1   :  { %v1676_v52 = vmul.f32 0.9048374, %v8033_v54 }
 0xbc2   :  { %v3806_v20 = vmul.f32 0.095162585, %v3804_v35 }
 0xbc4   :  { %v3808_v57 = vrot.slane %v3806_v20, 5  ;;  %1691 = vrot.lane.b32.xlu0 %v1689_v4, %s4870_s4 }
 0xbc6   :  { %v6944_v36 = vadd.f32 %v3808_v57, %v3805_v42 }
 0xbc8   :  { %4688 = vtanh.f32 %v6944_v36 }
 0xbd5   :  { %v4689_v62 = vpop.eup %4688 }
 0xbd6   :  { %3813 = vrot.lane.b32.xlu1 %v4689_v62, %s4870_s4  ;;  %v3822_v28 = vmul.f32 0.048770577, %v4689_v62  ;;  %v4301_v3 = vrot.slane %v4689_v62, 3 }
 0xbd8   :  { %v6949_v40 = vadd.f32 %v3822_v28, %v3821_v31  ;;  %v6953_v10 = vsel %vm658_vm6, %v8032_v11, %v4301_v3 }
 0xbda   :  { %v3830_v43 = vrot.slane %v6949_v40, %v5149_v59 }
 0xbdc   :  { %3832 = vrot.lane.b32.xlu0 %v3830_v43, %s4870_s4 }
 0xbec   :  { %v6958_v13 = vpop.xlane.xlu1 %1822 }
 0xbee   :  { %v6974_v27 = vpop.xlane.xlu0 %1825 }
 0xbf0   :  { %v6960_v21 = vpop.permute.xlu1 %1736 }
 0xbfc   :  { %v1673_v39 = vpop.permute.xlu1 %1672 }
 0xbfd   :  { %v1675_v8 = vmul.f32 %v1673_v39, %v6908_v60 }
 0xbff   :  { %v1677_v22 = vmul.f32 0.095162585, %v1675_v8  ;;  %v8035_v8 = vld [vmem:[#allocation56_spill] sm:$0xff] }
 0xc00   :  { %v3817_v54 = vmul.f32 0.9048374, %v8035_v8 }
 0xc01   :  { %v6964_v44 = vadd.f32 %v1677_v22, %v1676_v52 }
 0xc03   :  { %4690 = vtanh.f32 %v6964_v44 }
 0xc10   :  { %v4691_v18 = vpop.eup %4690 }
 0xc11   :  { %2252 = vst.msk [vmem:[%s7824_s7 + $0x8] sm:$0x1] %vm2251_vm13, %v4691_v18  ;;  %v1684_v1 = vmul.f32 0.048770577, %v4691_v18 }
 0xc13   :  { %v6972_v15 = vadd.f32 %v1684_v1, %v1683_v23  ;;  %v8036_v1 = vld [vmem:[#allocation31_spill] sm:$0xff] }
 0xc32   :  { %v3693_v35 = vpop.permute.xlu0 %3692 }
 0xc33   :  { %v6989_v11 = vadd.f32 %v3693_v35, %v6691_v0  ;;  %v3915_v0 = vsel %vm5155_vm9, %v8036_v1, 0.0 }
 0xc34   :  { %v3919_v35 = vsel %vm109_vm1, %v3915_v0, 0.0 }
 0xc36   :  { %v1692_v20 = vpop.permute.xlu0 %1691 }
 0xc37   :  { %v1695_v4 = vsel %vm5163_vm10, %v1692_v20, 0.0  ;;  %v1694_v33 = vsel %vm5155_vm9, %v1692_v20, 0.0  ;;  %v1697_v62 = vsel %vm5185_vm12, %v1692_v20, 0.0  ;;  %v1696_v31 = vsel %vm5177_vm11, %v1692_v20, 0.0 }
 0xc38   :  { %v1701_v42 = vsel %vm109_vm1, %v1695_v4, 0.0  ;;  %v1698_v57 = vsel %vm109_vm1, %v1694_v33, 0.0  ;;  %v1707_v28 = vsel %vm109_vm1, %v1697_v62, 0.0  ;;  %v1704_v3 = vsel %vm109_vm1, %v1696_v31, 0.0  ;;  %v8037_v4 = vld [vmem:[#allocation49_spill] sm:$0xff] }
 0xc39   :  { %1702 = vadd.xlane.f32.xlu0 %v1701_v42  ;;  %1699 = vadd.xlane.f32.xlu1 %v1698_v57  ;;  %v3917_v20 = vsel %vm5177_vm11, %v8036_v1, 0.0  ;;  %v3951_v33 = vrot.slane %v8037_v4, %v5149_v59  ;;  %v3916_v4 = vsel %vm5163_vm10, %v8036_v1, 0.0 }
 0xc3a   :  { %v3925_v42 = vsel %vm109_vm1, %v3917_v20, 0.0 }
 0xc3b   :  { %v3952_v57 = vsel %vm5155_vm9, %v3951_v33, 0.0 }
 0xc3c   :  { %v3956_v31 = vsel %vm109_vm1, %v3952_v57, 0.0  ;;  %v3922_v57 = vsel %vm109_vm1, %v3916_v4, 0.0 }
 0xc3d   :  { %1708 = vadd.xlane.f32.xlu0 %v1707_v28  ;;  %1705 = vadd.xlane.f32.xlu1 %v1704_v3  ;;  %v3954_v28 = vsel %vm5177_vm11, %v3951_v33, 0.0 }
 0xc3e   :  { %v3962_v3 = vsel %vm109_vm1, %v3954_v28, 0.0 }
 0xc48   :  { %v3814_v43 = vpop.permute.xlu1 %3813 }
 0xc49   :  { %v3816_v39 = vmul.f32 %v3814_v43, %v6989_v11  ;;  %v8038_v43 = vld [vmem:[#allocation28_spill] sm:$0xff] }
 0xc4a   :  { %v1966_v4 = vsel %vm5163_vm10, %v8038_v43, 0.0 }
 0xc4b   :  { %v3818_v52 = vmul.f32 0.095162585, %v3816_v39  ;;  %v1965_v39 = vsel %vm5155_vm9, %v8038_v43, 0.0 }
 0xc4c   :  { %v1969_v8 = vsel %vm109_vm1, %v1965_v39, 0.0 }
 0xc4d   :  { %v6993_v22 = vadd.f32 %v3818_v52, %v3817_v54  ;;  %v1968_v54 = vsel %vm5185_vm12, %v8038_v43, 0.0  ;;  %v8039_v52 = vld [vmem:[#allocation53_spill] sm:$0xff] }
 0xc4e   :  { %v3833_v18 = vpop.permute.xlu0 %3832 }
 0xc4f   :  { %4692 = vtanh.f32 %v6993_v22  ;;  %v3835_v45 = vsel %vm5155_vm9, %v3833_v18, 0.0 }
 0xc50   :  { %v3839_v23 = vsel %vm109_vm1, %v3835_v45, 0.0  ;;  %v2001_v45 = vrot.slane %v8039_v52, %v5149_v59  ;;  %v3918_v52 = vsel %vm5185_vm12, %v8036_v1, 0.0  ;;  %v1972_v1 = vsel %vm109_vm1, %v1966_v4, 0.0 }
 0xc51   :  { %3840 = vadd.xlane.f32.xlu1 %v3839_v23  ;;  %v1978_v23 = vsel %vm109_vm1, %v1968_v54, 0.0 }
 0xc52   :  { %v2003_v0 = vsel %vm5163_vm10, %v2001_v45, 0.0  ;;  %v2005_v20 = vsel %vm5185_vm12, %v2001_v45, 0.0 }
 0xc53   :  { %1731 = vrot.lane.b32.xlu0 %v6972_v15, %s4869_s2 }
 0xc55   :  { %3920 = vadd.xlane.f32.xlu1 %v3919_v35  ;;  %v2009_v35 = vsel %vm109_vm1, %v2003_v0, 0.0  ;;  %v3953_v0 = vsel %vm5163_vm10, %v3951_v33, 0.0 }
 0xc59   :  { %3926 = vadd.xlane.f32.xlu1 %v3925_v42  ;;  %v2015_v42 = vsel %vm109_vm1, %v2005_v20, 0.0  ;;  %v3955_v20 = vsel %vm5185_vm12, %v3951_v33, 0.0  ;;  %v2002_v33 = vsel %vm5155_vm9, %v2001_v45, 0.0 }
 0xc5c   :  { %v7013_v62 = vpop.eup %4692 }
 0xc5d   :  { %4436 = vst.msk [vmem:[%s7824_s7 + $0x18] sm:$0x1] %vm2251_vm13, %v7013_v62  ;;  %3957 = vadd.xlane.f32.xlu1 %v3956_v31  ;;  %v3836_v31 = vsel %vm5163_vm10, %v3833_v18, 0.0 }
 0xc5e   :  { %v3842_v28 = vsel %vm109_vm1, %v3836_v31, 0.0  ;;  %v2006_v31 = vsel %vm109_vm1, %v2002_v33, 0.0 }
 0xc61   :  { %3963 = vadd.xlane.f32.xlu1 %v3962_v3  ;;  %v3837_v3 = vsel %vm5177_vm11, %v3833_v18, 0.0 }
 0xc62   :  { %v3845_v39 = vsel %vm109_vm1, %v3837_v3, 0.0 }
 0xc65   :  { %1970 = vadd.xlane.f32.xlu1 %v1969_v8  ;;  %v3838_v8 = vsel %vm5185_vm12, %v3833_v18, 0.0  ;;  %v3965_v18 = vsel %vm109_vm1, %v3955_v20, 0.0 }
 0xc66   :  { %v3848_v54 = vsel %vm109_vm1, %v3838_v8, 0.0 }
 0xc69   :  { %1979 = vadd.xlane.f32.xlu1 %v1978_v23  ;;  %v3928_v23 = vsel %vm109_vm1, %v3918_v52, 0.0 }
 0xc6d   :  { %2010 = vadd.xlane.f32.xlu1 %v2009_v35  ;;  %v3959_v35 = vsel %vm109_vm1, %v3953_v0, 0.0 }
 0xc71   :  { %2016 = vadd.xlane.f32.xlu1 %v2015_v42  ;;  %v1967_v42 = vsel %vm5177_vm11, %v8038_v43, 0.0 }
 0xc72   :  { %3923 = vadd.xlane.f32.xlu0 %v3922_v57  ;;  %v1975_v57 = vsel %vm109_vm1, %v1967_v42, 0.0 }
 0xc76   :  { %3843 = vadd.xlane.f32.xlu0 %v3842_v28  ;;  %v2004_v28 = vsel %vm5177_vm11, %v2001_v45, 0.0 }
 0xc77   :  { %v2012_v3 = vsel %vm109_vm1, %v2004_v28, 0.0 }
 0xc7a   :  { %3846 = vadd.xlane.f32.xlu0 %v3845_v39  ;;  %v1749_v39 = vrot.slane %v6972_v15, %v5149_v59 }
 0xc7e   :  { %3849 = vadd.xlane.f32.xlu0 %v3848_v54  ;;  %v8040_v54 = vld [vmem:[#allocation33_spill] sm:$0xff] }
 0xc82   :  { %3929 = vadd.xlane.f32.xlu0 %v3928_v23 }
 0xc86   :  { %3960 = vadd.xlane.f32.xlu0 %v3959_v35 }
 0xc8a   :  { %3966 = vadd.xlane.f32.xlu0 %v3965_v18 }
 0xc8e   :  { %1973 = vadd.xlane.f32.xlu0 %v1972_v1 }
 0xc92   :  { %1976 = vadd.xlane.f32.xlu0 %v1975_v57 }
 0xc96   :  { %2007 = vadd.xlane.f32.xlu0 %v2006_v31 }
 0xc9a   :  { %2013 = vadd.xlane.f32.xlu0 %v2012_v3 }
 0xcc2   :  { %v1703_v8 = vpop.xlane.xlu0 %1702  ;;  %v1700_v43 = vpop.xlane.xlu1 %1699 }
 0xcc3   :  { %v1715_v52 = vmul.f32 %v8040_v54, %v1703_v8  ;;  %v1751_v23 = vmul.f32 %v1749_v39, %v1703_v8  ;;  %v1714_v0 = vmul.f32 %v8040_v54, %v1700_v43  ;;  %v1750_v35 = vmul.f32 %v1749_v39, %v1700_v43 }
 0xcc5   :  { %v1719_v20 = vsub.f32 %v1715_v52, %v6743_v55  ;;  %v1755_v18 = vsel %vm5163_vm10, 0.0, %v1751_v23  ;;  %v1718_v45 = vsub.f32 %v1714_v0, %v6740_v38  ;;  %v1754_v4 = vsel %vm5155_vm9, 0.0, %v1750_v35 }
 0xcc6   :  { %v1759_v1 = vsub.f32 %v1755_v18, %v6775_v49  ;;  %v1758_v42 = vsub.f32 %v1754_v4, %v6761_v37  ;;  %v1709_v57 = vpop.xlane.xlu0 %1708  ;;  %v1706_v33 = vpop.xlane.xlu1 %1705 }
 0xcc7   :  { %v1723_v31 = vmul.f32 0.05, %v1719_v20  ;;  %v1722_v28 = vmul.f32 0.05, %v1718_v45  ;;  %v1717_v3 = vmul.f32 %v8040_v54, %v1709_v57  ;;  %v1753_v8 = vmul.f32 %v1749_v39, %v1709_v57 }
 0xcc8   :  { %v1763_v43 = vmul.f32 0.05, %v1759_v1  ;;  %v1762_v52 = vmul.f32 0.05, %v1758_v42  ;;  %v1716_v23 = vmul.f32 %v8040_v54, %v1706_v33  ;;  %v1752_v9 = vmul.f32 %v1749_v39, %v1706_v33  ;;  %v8041_v39 = vld [vmem:[#allocation61_spill] sm:$0xff] }
 0xcc9   :  { %v7092_v0 = vadd.f32 %v1723_v31, %v6743_v55  ;;  %v7095_v35 = vadd.f32 %v1722_v28, %v6740_v38  ;;  %v1721_v18 = vsub.f32 %v1717_v3, %v6764_v51  ;;  %v1757_v20 = vsel %vm5185_vm12, 0.0, %v1753_v8 }
 0xcca   :  { %v7101_v45 = vadd.f32 %v1763_v43, %v6775_v49  ;;  %v7104_v4 = vadd.f32 %v1762_v52, %v6761_v37  ;;  %v1761_v54 = vsub.f32 %v1757_v20, %v6819_v61  ;;  %v1720_v1 = vsub.f32 %v1716_v23, %v8041_v39  ;;  %v1732_v3 = vpop.permute.xlu0 %1731 }
 0xccb   :  { %v1791_v55 = vmul.f32 %v6928_v14, %v7092_v0  ;;  %v1790_v38 = vmul.f32 %v6922_v47, %v7095_v35  ;;  %v1725_v42 = vmul.f32 0.05, %v1721_v18  ;;  %v1756_v57 = vsel %vm5177_vm11, 0.0, %v1752_v9 }
 0xccc   :  { %v1828_v49 = vmul.f32 %v6932_v58, %v7101_v45  ;;  %v1765_v33 = vmul.f32 0.05, %v1761_v54  ;;  %v1724_v37 = vmul.f32 0.05, %v1720_v1  ;;  %v1827_v31 = vmul.f32 %v6930_v56, %v7104_v4 }
 0xccd   :  { %v7119_v28 = vadd.f32 %v1725_v42, %v6764_v51  ;;  %v1760_v14 = vsub.f32 %v1756_v57, %v6799_v32  ;;  %v1795_v47 = vsel %vm109_vm1, %v1791_v55, 0.0  ;;  %v1794_v8 = vsel %vm109_vm1, %v1790_v38, 0.0 }
 0xcce   :  { %v7125_v9 = vadd.f32 %v1765_v33, %v6819_v61  ;;  %v7128_v58 = vadd.f32 %v1724_v37, %v8041_v39  ;;  %v1832_v52 = vsel %vm109_vm1, %v1828_v49, 0.0  ;;  %v1734_v56 = vmul.f32 %v1732_v3, %v6937_v53 }
 0xccf   :  { %v1764_v43 = vmul.f32 0.05, %v1760_v14  ;;  %v1831_v51 = vsel %vm109_vm1, %v1827_v31, 0.0  ;;  %v1793_v23 = vmul.f32 %v6926_v29, %v7119_v28  ;;  %v1796_v20 = vadd.f32 %v1795_v47, %v1794_v8 }
 0xcd0   :  { %v1792_v61 = vmul.f32 %v6924_v26, %v7128_v58  ;;  %v1739_v54 = vsub.f32 %v1734_v56, %v6960_v21  ;;  %v1830_v39 = vmul.f32 %v6974_v27, %v7125_v9  ;;  %v1833_v38 = vadd.f32 %v1832_v52, %v1831_v51 }
 0xcd1   :  { %v7136_v18 = vadd.f32 %v1764_v43, %v6799_v32  ;;  %v1799_v32 = vsel %vm109_vm1, %v1793_v23, 0.0 }
 0xcd2   :  { %v1797_v1 = vsel %vm109_vm1, %v1792_v61, 0.0  ;;  %v1740_v29 = vmul.f32 0.05, %v1739_v54  ;;  %v1836_v21 = vsel %vm109_vm1, %v1830_v39, 0.0  ;;  %v3825_v61 = vmul.f32 0.048770577, %v7013_v62 }
 0xcd3   :  { %v1829_v55 = vmul.f32 %v6958_v13, %v7136_v18  ;;  %v1798_v42 = vadd.f32 %v1797_v1, %v1796_v20  ;;  %v3824_v20 = vmul.f32 0.95122945, %v6728_v19  ;;  %v8042_v1 = vld [vmem:[#allocation38_spill] sm:$0xff] }
 0xcd4   :  { %1742 = vrot.lane.b32.xlu1 %v1740_v29, %s4870_s4 }
 0xcd5   :  { %v1834_v57 = vsel %vm109_vm1, %v1829_v55, 0.0  ;;  %v1800_v26 = vadd.f32 %v1799_v32, %v1798_v42  ;;  %v7154_v54 = vadd.f32 %v3825_v61, %v3824_v20 }
 0xcd6   :  { %v1835_v49 = vadd.f32 %v1834_v57, %v1833_v38 }
 0xcd7   :  { %v1801_v27 = vrot.slane %v1800_v26, 4  ;;  %v3890_v38 = vrot.slane %v7154_v54, %v5149_v59 }
 0xcd8   :  { %v1837_v33 = vadd.f32 %v1836_v21, %v1835_v49 }
 0xcd9   :  { %v1802_v31 = vadd.f32 %v1801_v27, %v1800_v26 }
 0xcda   :  { %v1838_v37 = vrot.slane %v1837_v33, 4  ;;  %v3841_v39 = vpop.xlane.xlu1 %3840 }
 0xcdb   :  { %v1803_v3 = vrot.slane %v1802_v31, 2  ;;  %v3855_v55 = vmul.f32 %v8042_v1, %v3841_v39  ;;  %v3891_v29 = vmul.f32 %v3890_v38, %v3841_v39 }
 0xcdc   :  { %v1839_v14 = vadd.f32 %v1838_v37, %v1837_v33 }
 0xcdd   :  { %v1804_v47 = vadd.f32 %v1803_v3, %v1802_v31  ;;  %v3859_v32 = vsub.f32 %v3855_v55, %v6851_v6  ;;  %v3895_v26 = vsel %vm5155_vm9, 0.0, %v3891_v29 }
 0xcde   :  { %v1840_v13 = vrot.slane %v1839_v14, 2  ;;  %v3921_v57 = vpop.xlane.xlu1 %3920  ;;  %v3899_v27 = vsub.f32 %v3895_v26, %v6792_v17 }
 0xcdf   :  { %v1805_v43 = vrot.slane %v1804_v47, 1  ;;  %v3863_v21 = vmul.f32 0.05, %v3859_v32 }
 0xce0   :  { %v1841_v8 = vadd.f32 %v1840_v13, %v1839_v14 }
 0xce1   :  { %v1806_v51 = vadd.f32 %v1805_v43, %v1804_v47 }
 0xce2   :  { %v1842_v52 = vrot.slane %v1841_v8, 1  ;;  %v3927_v37 = vpop.xlane.xlu1 %3926 }
 0xce3   :  { %v1844_v23 = vmul.f32 0.2, %v1806_v51 }
 0xce4   :  { %v1843_v56 = vadd.f32 %v1842_v52, %v1841_v8  ;;  %v7169_v8 = vadd.f32 %v3863_v21, %v6851_v6 }
 0xce6   :  { %1851 = vrot.lane.b32.xlu1 %v1843_v56, %s4869_s2  ;;  %v3958_v32 = vpop.xlane.xlu1 %3957 }
 0xcea   :  { %1846 = vrot.lane.b32.xlu1 %v1844_v23, %s4869_s2  ;;  %v3903_v23 = vmul.f32 0.05, %v3899_v27 }
 0xcfb   :  { %v3924_v42 = vpop.xlane.xlu0 %3923 }
 0xcff   :  { %v3844_v49 = vpop.xlane.xlu0 %3843 }
 0xd00   :  { %v3856_v62 = vmul.f32 %v8042_v1, %v3844_v49  ;;  %v3892_v19 = vmul.f32 %v3890_v38, %v3844_v49 }
 0xd02   :  { %v3860_v33 = vsub.f32 %v3856_v62, %v6848_v30  ;;  %v3896_v31 = vsel %vm5163_vm10, 0.0, %v3892_v19 }
 0xd03   :  { %v3847_v14 = vpop.xlane.xlu0 %3846  ;;  %v3900_v52 = vsub.f32 %v3896_v31, %v6812_v63 }
 0xd04   :  { %v3864_v3 = vmul.f32 0.05, %v3860_v33  ;;  %v3857_v13 = vmul.f32 %v8042_v1, %v3847_v14  ;;  %v3893_v47 = vmul.f32 %v3890_v38, %v3847_v14  ;;  %v7189_v33 = vadd.f32 %v3903_v23, %v6792_v17 }
 0xd05   :  { %v3904_v26 = vmul.f32 0.05, %v3900_v52 }
 0xd06   :  { %v7172_v43 = vadd.f32 %v3864_v3, %v6848_v30  ;;  %v3861_v56 = vsub.f32 %v3857_v13, %v6857_v41  ;;  %v3897_v51 = vsel %vm5177_vm11, 0.0, %v3893_v47  ;;  %v3931_v30 = vmul.f32 %v3921_v57, %v7169_v8 }
 0xd07   :  { %v3901_v61 = vsub.f32 %v3897_v51, %v6816_v12  ;;  %v3850_v20 = vpop.xlane.xlu0 %3849  ;;  %v3968_v14 = vmul.f32 %v3958_v32, %v7189_v33  ;;  %v7204_v47 = vadd.f32 %v3904_v26, %v6812_v63 }
 0xd08   :  { %v3865_v39 = vmul.f32 0.05, %v3861_v56  ;;  %v3858_v55 = vmul.f32 %v8042_v1, %v3850_v20  ;;  %v3894_v29 = vmul.f32 %v3890_v38, %v3850_v20  ;;  %v3932_v6 = vmul.f32 %v3924_v42, %v7172_v43 }
 0xd09   :  { %v3905_v49 = vmul.f32 0.05, %v3901_v61  ;;  %v3935_v31 = vsel %vm109_vm1, %v3931_v30, 0.0  ;;  %v3972_v20 = vsel %vm109_vm1, %v3968_v14, 0.0 }
 0xd0a   :  { %v7183_v62 = vadd.f32 %v3865_v39, %v6857_v41  ;;  %v3862_v19 = vsub.f32 %v3858_v55, %v6869_v34  ;;  %v3898_v21 = vsel %vm5185_vm12, 0.0, %v3894_v29  ;;  %v3936_v27 = vsel %vm109_vm1, %v3932_v6, 0.0 }
 0xd0b   :  { %v3902_v1 = vsub.f32 %v3898_v21, %v6823_v2  ;;  %v3930_v38 = vpop.xlane.xlu0 %3929  ;;  %v7193_v42 = vadd.f32 %v3905_v49, %v6816_v12  ;;  %v3964_v12 = vpop.xlane.xlu1 %3963  ;;  %v3937_v52 = vadd.f32 %v3936_v27, %v3935_v31 }
 0xd0c   :  { %v3866_v57 = vmul.f32 0.05, %v3862_v19  ;;  %v3933_v41 = vmul.f32 %v3927_v37, %v7183_v62 }
 0xd0d   :  { %v3906_v3 = vmul.f32 0.05, %v3902_v1  ;;  %v3970_v23 = vmul.f32 %v3964_v12, %v7193_v42 }
 0xd0e   :  { %v7200_v13 = vadd.f32 %v3866_v57, %v6869_v34  ;;  %v3938_v17 = vsel %vm109_vm1, %v3933_v41, 0.0 }
 0xd0f   :  { %v3961_v56 = vpop.xlane.xlu0 %3960  ;;  %v3939_v61 = vadd.f32 %v3938_v17, %v3937_v52  ;;  %v7213_v55 = vadd.f32 %v3906_v3, %v6823_v2  ;;  %v3975_v32 = vsel %vm109_vm1, %v3970_v23, 0.0 }
 0xd10   :  { %v3934_v51 = vmul.f32 %v3930_v38, %v7200_v13  ;;  %v3969_v37 = vmul.f32 %v3961_v56, %v7204_v47  ;;  %v7222_v56 = vpop.xlane.xlu1 %1970 }
 0xd12   :  { %v3940_v34 = vsel %vm109_vm1, %v3934_v51, 0.0  ;;  %v3973_v39 = vsel %vm109_vm1, %v3969_v37, 0.0 }
 0xd13   :  { %v3941_v63 = vadd.f32 %v3940_v34, %v3939_v61  ;;  %v3974_v29 = vadd.f32 %v3973_v39, %v3972_v20  ;;  %v3967_v6 = vpop.xlane.xlu0 %3966 }
 0xd14   :  { %v3971_v30 = vmul.f32 %v3967_v6, %v7213_v55  ;;  %v7224_v51 = vpop.xlane.xlu1 %1979 }
 0xd15   :  { %v3942_v49 = vrot.slane %v3941_v63, 4  ;;  %v3976_v26 = vadd.f32 %v3975_v32, %v3974_v29 }
 0xd16   :  { %v3977_v19 = vsel %vm109_vm1, %v3971_v30, 0.0  ;;  %v1855_v30 = vmul.f32 0.9048374, %v6914_v25 }
 0xd17   :  { %v3943_v21 = vadd.f32 %v3942_v49, %v3941_v63  ;;  %v3978_v1 = vadd.f32 %v3977_v19, %v3976_v26 }
 0xd18   :  { %v7226_v37 = vpop.xlane.xlu1 %2010 }
 0xd19   :  { %v3944_v38 = vrot.slane %v3943_v21, 2  ;;  %v3979_v57 = vrot.slane %v3978_v1, 4 }
 0xd1b   :  { %v3945_v27 = vadd.f32 %v3944_v38, %v3943_v21  ;;  %v3980_v41 = vadd.f32 %v3979_v57, %v3978_v1 }
 0xd1c   :  { %v7228_v23 = vpop.xlane.xlu1 %2016 }
 0xd1d   :  { %v3946_v31 = vrot.slane %v3945_v27, 1  ;;  %v3981_v2 = vrot.slane %v3980_v41, 2 }
 0xd1f   :  { %v3982_v14 = vadd.f32 %v3981_v2, %v3980_v41  ;;  %v3947_v3 = vadd.f32 %v3946_v31, %v3945_v27  ;;  %v3996_v2 = vmul.f32 0.9048374, %v6944_v36 }
 0xd21   :  { %v3985_v17 = vmul.f32 0.2, %v3947_v3  ;;  %v3983_v12 = vrot.slane %v3982_v14, 1 }
 0xd23   :  { %3987 = vrot.lane.b32.xlu1 %v3985_v17, %s4869_s2  ;;  %v3984_v52 = vadd.f32 %v3983_v12, %v3982_v14 }
 0xd27   :  { %3992 = vrot.lane.b32.xlu1 %v3984_v52, %s4869_s2  ;;  %v7263_v52 = vpop.xlane.xlu0 %1973 }
 0xd2b   :  { %3872 = vrot.lane.b32.xlu1 %v7154_v54, %s4869_s2 }
 0xd46   :  { %v1743_v61 = vpop.permute.xlu1 %1742 }
 0xd47   :  { %v7231_v20 = vadd.f32 %v1743_v61, %v6908_v60  ;;  %v1871_v60 = vmul.f32 0.95122945, %v6937_v53  ;;  %v7265_v61 = vpop.xlane.xlu0 %1976 }
 0xd49   :  { %1927 = vrot.lane.b32.xlu0 %v7231_v20, %s4869_s2 }
 0xd58   :  { %v1852_v34 = vpop.permute.xlu1 %1851 }
 0xd5c   :  { %v1847_v39 = vpop.permute.xlu1 %1846 }
 0xd5d   :  { %v1849_v63 = vadd.f32 %v1847_v39, %v7980_v48 }
 0xd5f   :  { %v1854_v29 = vsub.f32 %v1849_v63, %v1852_v34  ;;  %v7267_v34 = vpop.xlane.xlu0 %2007 }
 0xd61   :  { %v1856_v6 = vmul.f32 0.095162585, %v1854_v29 }
 0xd63   :  { %v1858_v32 = vrot.slane %v1856_v6, 6  ;;  %v7269_v39 = vpop.xlane.xlu0 %2013 }
 0xd65   :  { %v7237_v49 = vadd.f32 %v1858_v32, %v1855_v30  ;;  %v1867_v30 = vmul.f32 0.9048374, %v6964_v44 }
 0xd67   :  { %4694 = vtanh.f32 %v7237_v49 }
 0xd74   :  { %v4695_v26 = vpop.eup %4694 }
 0xd75   :  { %1863 = vrot.lane.b32.xlu1 %v4695_v26, %s4870_s4  ;;  %v1872_v19 = vmul.f32 0.048770577, %v4695_v26  ;;  %v2162_v21 = vrot.slane %v4695_v26, 2 }
 0xd77   :  { %v7242_v1 = vadd.f32 %v1872_v19, %v1871_v60  ;;  %v7246_v38 = vsel %vm660_vm7, %v6920_v7, %v2162_v21 }
 0xd79   :  { %v1880_v25 = vrot.slane %v7242_v1, %v5149_v59 }
 0xd7b   :  { %1882 = vrot.lane.b32.xlu0 %v1880_v25, %s4870_s4 }
 0xd7f   :  { %3877 = vrot.lane.b32.xlu0 %v6989_v11, %s4869_s2 }
 0xd95   :  { %v3988_v57 = vpop.permute.xlu1 %3987 }
 0xd96   :  { %v3990_v27 = vadd.f32 %v3988_v57, %v7982_v50 }
 0xd99   :  { %v3993_v53 = vpop.permute.xlu1 %3992 }
 0xd9a   :  { %v3995_v41 = vsub.f32 %v3990_v27, %v3993_v53  ;;  %v4012_v53 = vmul.f32 0.95122945, %v6949_v40 }
 0xd9c   :  { %v3997_v31 = vmul.f32 0.095162585, %v3995_v41 }
 0xd9d   :  { %v3873_v36 = vpop.permute.xlu1 %3872 }
 0xd9e   :  { %v3999_v14 = vrot.slane %v3997_v31, 6  ;;  %v3875_v21 = vmul.f32 %v3873_v36, %v6949_v40 }
 0xda0   :  { %v7255_v3 = vadd.f32 %v3999_v14, %v3996_v2 }
 0xda2   :  { %4696 = vtanh.f32 %v7255_v3 }
 0xdaf   :  { %v4697_v7 = vpop.eup %4696 }
 0xdb0   :  { %4004 = vrot.lane.b32.xlu0 %v4697_v7, %s4870_s4  ;;  %v4303_v17 = vrot.slane %v4697_v7, 2  ;;  %v4013_v57 = vmul.f32 0.048770577, %v4697_v7  ;;  %v1874_v7 = vmul.f32 0.95122945, %v6972_v15 }
 0xdb2   :  { %v7261_v12 = vsel %vm660_vm7, %v6953_v10, %v4303_v17  ;;  %v7286_v2 = vadd.f32 %v4013_v57, %v4012_v53 }
 0xdb4   :  { %v4021_v14 = vrot.slane %v7286_v2, %v5149_v59 }
 0xdbb   :  { %v7272_v6 = vpop.permute.xlu0 %1927 }
 0xde7   :  { %v1864_v63 = vpop.permute.xlu1 %1863 }
 0xde8   :  { %v1866_v29 = vmul.f32 %v1864_v63, %v7231_v20 }
 0xdea   :  { %v1868_v32 = vmul.f32 0.095162585, %v1866_v29 }
 0xdec   :  { %v7275_v26 = vadd.f32 %v1868_v32, %v1867_v30 }
 0xded   :  { %v1883_v10 = vpop.permute.xlu0 %1882 }
 0xdee   :  { %4698 = vtanh.f32 %v7275_v26  ;;  %v1886_v60 = vsel %vm5163_vm10, %v1883_v10, 0.0  ;;  %v1888_v25 = vsel %vm5185_vm12, %v1883_v10, 0.0  ;;  %v1885_v63 = vsel %vm5155_vm9, %v1883_v10, 0.0 }
 0xdef   :  { %v1892_v19 = vsel %vm109_vm1, %v1886_v60, 0.0  ;;  %v1898_v41 = vsel %vm109_vm1, %v1888_v25, 0.0  ;;  %v1889_v29 = vsel %vm109_vm1, %v1885_v63, 0.0  ;;  %v1887_v30 = vsel %vm5177_vm11, %v1883_v10, 0.0  ;;  %v8043_v10 = vld [vmem:[#allocation34_spill] sm:$0xff] }
 0xdf0   :  { %1893 = vadd.xlane.f32.xlu0 %v1892_v19  ;;  %v1895_v32 = vsel %vm109_vm1, %v1887_v30, 0.0  ;;  %v4108_v53 = vsel %vm5177_vm11, %v8043_v10, 0.0 }
 0xdf1   :  { %v3878_v27 = vpop.permute.xlu0 %3877 }
 0xdf2   :  { %v3880_v44 = vsub.f32 %v3875_v21, %v3878_v27  ;;  %v4107_v27 = vsel %vm5163_vm10, %v8043_v10, 0.0 }
 0xdf4   :  { %v3881_v31 = vmul.f32 0.05, %v3880_v44  ;;  %1899 = vadd.xlane.f32.xlu0 %v1898_v41  ;;  %v4113_v44 = vsel %vm109_vm1, %v4107_v27, 0.0 }
 0xdf6   :  { %3883 = vrot.lane.b32.xlu1 %v3881_v31, %s4870_s4  ;;  %v4116_v31 = vsel %vm109_vm1, %v4108_v53, 0.0 }
 0xdfa   :  { %4023 = vrot.lane.b32.xlu1 %v4021_v14, %s4870_s4 }
 0xdfb   :  { %v7292_v17 = vpop.eup %4698 }
 0xdfc   :  { %v1875_v36 = vmul.f32 0.048770577, %v7292_v17 }
 0xdfe   :  { %v7296_v40 = vadd.f32 %v1875_v36, %v1874_v7 }
 0xe00   :  { %v7324_v7 = vrot.slane %v7296_v40, %v5149_v59 }
 0xe1e   :  { %1890 = vadd.xlane.f32.xlu1 %v1889_v29 }
 0xe22   :  { %1896 = vadd.xlane.f32.xlu1 %v1895_v32  ;;  %v4005_v41 = vpop.permute.xlu0 %4004 }
 0xe33   :  { %1922 = vrot.lane.b32.xlu1 %v7296_v40, %s4869_s2 }
 0xe68   :  { %v3884_v15 = vpop.permute.xlu1 %3883 }
 0xe69   :  { %v7331_v30 = vadd.f32 %v3884_v15, %v6989_v11 }
 0xe6c   :  { %v4024_v60 = vpop.permute.xlu1 %4023 }
 0xe6d   :  { %v4027_v19 = vsel %vm5163_vm10, %v4024_v60, 0.0  ;;  %v4026_v21 = vsel %vm5155_vm9, %v4024_v60, 0.0  ;;  %v4028_v14 = vsel %vm5177_vm11, %v4024_v60, 0.0  ;;  %v4029_v32 = vsel %vm5185_vm12, %v4024_v60, 0.0 }
 0xe6e   :  { %v4033_v25 = vsel %vm109_vm1, %v4027_v19, 0.0  ;;  %v4030_v57 = vsel %vm109_vm1, %v4026_v21, 0.0  ;;  %v4036_v29 = vsel %vm109_vm1, %v4028_v14, 0.0  ;;  %v4039_v19 = vsel %vm109_vm1, %v4029_v32, 0.0 }
 0xe6f   :  { %4034 = vadd.xlane.f32.xlu1 %v4033_v25  ;;  %4031 = vadd.xlane.f32.xlu0 %v4030_v57  ;;  %v4007_v21 = vmul.f32 %v4005_v41, %v7331_v30  ;;  %v4109_v25 = vsel %vm5185_vm12, %v8043_v10, 0.0  ;;  %v8044_v57 = vld [vmem:[#allocation21_spill] sm:$0xff] }
 0xe70   :  { %v4142_v27 = vrot.slane %v8044_v57, %v5149_v59  ;;  %v4119_v11 = vsel %vm109_vm1, %v4109_v25, 0.0  ;;  %v4106_v57 = vsel %vm5155_vm9, %v8043_v10, 0.0 }
 0xe71   :  { %v4009_v15 = vmul.f32 0.095162585, %v4007_v21 }
 0xe72   :  { %v4144_v60 = vsel %vm5163_vm10, %v4142_v27, 0.0 }
 0xe73   :  { %4114 = vadd.xlane.f32.xlu0 %v4113_v44  ;;  %v4008_v44 = vmul.f32 0.9048374, %v6993_v22  ;;  %v4150_v53 = vsel %vm109_vm1, %v4144_v60, 0.0  ;;  %v8047_v22 = vld [vmem:[#allocation35_spill] sm:$0xff]  ;;  %v4110_v60 = vsel %vm109_vm1, %v4106_v57, 0.0 }
 0xe75   :  { %v7349_v41 = vadd.f32 %v4009_v15, %v4008_v44 }
 0xe77   :  { %4117 = vadd.xlane.f32.xlu0 %v4116_v31  ;;  %8045 = vst [vmem:[#allocation59_spill] sm:$0xff] %v7349_v41  ;;  %v4146_v31 = vsel %vm5185_vm12, %v4142_v27, 0.0  ;;  %4700 = vtanh.f32 %v7349_v41 }
 0xe78   :  { %v4156_v14 = vsel %vm109_vm1, %v4146_v31, 0.0 }
 0xe79   :  { %v1894_v36 = vpop.xlane.xlu0 %1893 }
 0xe7a   :  { %v7327_v63 = vmul.f32 %v7324_v7, %v1894_v36  ;;  %v1906_v21 = vmul.f32 %v8047_v22, %v1894_v36 }
 0xe7b   :  { %4037 = vadd.xlane.f32.xlu0 %v4036_v29 }
 0xe7c   :  { %v1910_v15 = vsub.f32 %v1906_v21, %v7092_v0 }
 0xe7e   :  { %v1914_v36 = vmul.f32 0.05, %v1910_v15 }
 0xe7f   :  { %4040 = vadd.xlane.f32.xlu0 %v4039_v19  ;;  %v4015_v19 = vmul.f32 0.95122945, %v7154_v54  ;;  %v4143_v54 = vsel %vm5155_vm9, %v4142_v27, 0.0 }
 0xe80   :  { %4068 = vrot.lane.b32.xlu1 %v7331_v30, %s4869_s2  ;;  %v4147_v31 = vsel %vm109_vm1, %v4143_v54, 0.0  ;;  %v7380_v57 = vadd.f32 %v1914_v36, %v7092_v0 }
 0xe83   :  { %4120 = vadd.xlane.f32.xlu0 %v4119_v11  ;;  %v1900_v11 = vpop.xlane.xlu0 %1899 }
 0xe84   :  { %v7355_v29 = vpop.eup %4700  ;;  %v1908_v44 = vmul.f32 %v8047_v22, %v1900_v11 }
 0xe85   :  { %8046 = vst [vmem:[#allocation63_spill] sm:$0xff] %v7355_v29  ;;  %v4016_v32 = vmul.f32 0.048770577, %v7355_v29 }
 0xe86   :  { %v1912_v10 = vsub.f32 %v1908_v44, %v7119_v28 }
 0xe87   :  { %4151 = vadd.xlane.f32.xlu0 %v4150_v53  ;;  %v7360_v25 = vadd.f32 %v4016_v32, %v4015_v19  ;;  %v4145_v19 = vsel %vm5177_vm11, %v4142_v27, 0.0 }
 0xe88   :  { %v4153_v15 = vsel %vm109_vm1, %v4145_v19, 0.0  ;;  %v1916_v29 = vmul.f32 0.05, %v1912_v10 }
 0xe8a   :  { %v7392_v0 = vadd.f32 %v1916_v29, %v7119_v28 }
 0xe8b   :  { %4157 = vadd.xlane.f32.xlu0 %v4156_v14 }
 0xe8c   :  { %8048 = vst [vmem:[#allocation22_spill] sm:$0xff] %v7392_v0 }
 0xea1   :  { %4063 = vrot.lane.b32.xlu0 %v7360_v25, %s4869_s2 }
 0xea4   :  { %4111 = vadd.xlane.f32.xlu1 %v4110_v60 }
 0xea7   :  { %v1891_v53 = vpop.xlane.xlu1 %1890 }
 0xea8   :  { %v1905_v14 = vmul.f32 %v8047_v22, %v1891_v53  ;;  %v1941_v32 = vmul.f32 %v7324_v7, %v1891_v53  ;;  %4148 = vadd.xlane.f32.xlu1 %v4147_v31  ;;  %v1982_v31 = vmul.f32 %v7263_v52, %v7380_v57  ;;  %v1984_v52 = vmul.f32 %v7224_v51, %v7392_v0 }
 0xeaa   :  { %v1909_v21 = vsub.f32 %v1905_v14, %v7095_v35 }
 0xeab   :  { %v1897_v60 = vpop.xlane.xlu1 %1896 }
 0xeac   :  { %v1913_v54 = vmul.f32 0.05, %v1909_v21  ;;  %v1907_v44 = vmul.f32 %v8047_v22, %v1897_v60  ;;  %v1943_v41 = vmul.f32 %v7324_v7, %v1897_v60  ;;  %4154 = vadd.xlane.f32.xlu1 %v4153_v15  ;;  %v1986_v21 = vsel %vm109_vm1, %v1982_v31, 0.0 }
 0xeae   :  { %v7386_v53 = vadd.f32 %v1913_v54, %v7095_v35  ;;  %v1911_v27 = vsub.f32 %v1907_v44, %v7128_v58  ;;  %v1990_v54 = vsel %vm109_vm1, %v1984_v52, 0.0 }
 0xeaf   :  { %v1923_v14 = vpop.permute.xlu1 %1922 }
 0xeb0   :  { %v1981_v36 = vmul.f32 %v7222_v56, %v7386_v53  ;;  %v1915_v10 = vmul.f32 0.05, %v1911_v27  ;;  %v1925_v35 = vmul.f32 %v1923_v14, %v7242_v1 }
 0xeb2   :  { %v1985_v22 = vsel %vm109_vm1, %v1981_v36, 0.0  ;;  %v7398_v19 = vadd.f32 %v1915_v10, %v7128_v58  ;;  %v1930_v15 = vsub.f32 %v1925_v35, %v7272_v6  ;;  %v1946_v6 = vsel %vm5163_vm10, 0.0, %v7327_v63 }
 0xeb3   :  { %v1987_v29 = vadd.f32 %v1986_v21, %v1985_v22  ;;  %v1947_v22 = vsel %vm5177_vm11, 0.0, %v1943_v41  ;;  %v1944_v21 = vmul.f32 %v7324_v7, %v1900_v11  ;;  %v1950_v52 = vsub.f32 %v1946_v6, %v7101_v45 }
 0xeb4   :  { %v1983_v28 = vmul.f32 %v7265_v61, %v7398_v19  ;;  %v1931_v44 = vmul.f32 0.05, %v1930_v15  ;;  %v1945_v61 = vsel %vm5155_vm9, 0.0, %v1941_v32 }
 0xeb5   :  { %v1949_v35 = vsub.f32 %v1945_v61, %v7104_v4  ;;  %v1954_v32 = vmul.f32 0.05, %v1950_v52 }
 0xeb6   :  { %v1988_v56 = vsel %vm109_vm1, %v1983_v28, 0.0  ;;  %v1951_v28 = vsub.f32 %v1947_v22, %v7136_v18 }
 0xeb7   :  { %v1989_v60 = vadd.f32 %v1988_v56, %v1987_v29  ;;  %v1953_v29 = vmul.f32 0.05, %v1949_v35  ;;  %v7429_v15 = vadd.f32 %v1954_v32, %v7101_v45 }
 0xeb8   :  { %v1955_v56 = vmul.f32 0.05, %v1951_v28 }
 0xeb9   :  { %v1991_v58 = vadd.f32 %v1990_v54, %v1989_v60  ;;  %v7426_v63 = vadd.f32 %v1953_v29, %v7104_v4 }
 0xeba   :  { %v7432_v7 = vadd.f32 %v1955_v56, %v7136_v18 }
 0xebb   :  { %v1992_v27 = vrot.slane %v1991_v58, 4  ;;  %v2018_v54 = vmul.f32 %v7267_v34, %v7426_v63 }
 0xebd   :  { %1933 = vrot.lane.b32.xlu1 %v1931_v44, %s4870_s4  ;;  %v1993_v31 = vadd.f32 %v1992_v27, %v1991_v58  ;;  %v2019_v44 = vmul.f32 %v7226_v37, %v7429_v15  ;;  %v2020_v27 = vmul.f32 %v7269_v39, %v7432_v7  ;;  %v2022_v45 = vsel %vm109_vm1, %v2018_v54, 0.0 }
 0xebf   :  { %v1994_v36 = vrot.slane %v1993_v31, 2  ;;  %v2023_v18 = vsel %vm109_vm1, %v2019_v44, 0.0 }
 0xec1   :  { %v1995_v10 = vadd.f32 %v1994_v36, %v1993_v31  ;;  %v2025_v36 = vsel %vm109_vm1, %v2020_v27, 0.0  ;;  %v4081_v27 = vrot.slane %v7360_v25, %v5149_v59 }
 0xec3   :  { %v1996_v51 = vrot.slane %v1995_v10, 1 }
 0xec5   :  { %v1997_v14 = vadd.f32 %v1996_v51, %v1995_v10  ;;  %v2024_v10 = vadd.f32 %v2023_v18, %v2022_v45 }
 0xec7   :  { %v2035_v0 = vmul.f32 0.2, %v1997_v14  ;;  %v2026_v14 = vadd.f32 %v2025_v36, %v2024_v10 }
 0xec9   :  { %2037 = vrot.lane.b32.xlu0 %v2035_v0, %s4869_s2  ;;  %v1948_v0 = vsel %vm5185_vm12, 0.0, %v1944_v21 }
 0xeca   :  { %v1952_v60 = vsub.f32 %v1948_v0, %v7125_v9 }
 0xecc   :  { %v1956_v11 = vmul.f32 0.05, %v1952_v60 }
 0xece   :  { %v7441_v4 = vadd.f32 %v1956_v11, %v7125_v9 }
 0xed0   :  { %v2021_v34 = vmul.f32 %v7228_v23, %v7441_v4  ;;  %v8049_v23 = vld [vmem:[#allocation39_spill] sm:$0xff] }
 0xed2   :  { %v2027_v37 = vsel %vm109_vm1, %v2021_v34, 0.0 }
 0xed3   :  { %v2028_v39 = vadd.f32 %v2027_v37, %v2026_v14 }
 0xed5   :  { %v2029_v9 = vrot.slane %v2028_v39, 4 }
 0xed7   :  { %v2030_v35 = vadd.f32 %v2029_v9, %v2028_v39 }
 0xed9   :  { %v2031_v28 = vrot.slane %v2030_v35, 2 }
 0xedb   :  { %v2032_v32 = vadd.f32 %v2031_v28, %v2030_v35 }
 0xedd   :  { %v2033_v44 = vrot.slane %v2032_v32, 1 }
 0xedf   :  { %v2034_v37 = vadd.f32 %v2033_v44, %v2032_v32 }
 0xef8   :  { %v4032_v41 = vpop.xlane.xlu0 %4031  ;;  %v4035_v21 = vpop.xlane.xlu1 %4034 }
 0xef9   :  { %v4047_v60 = vmul.f32 %v8049_v23, %v4035_v21  ;;  %v4046_v36 = vmul.f32 %v8049_v23, %v4032_v41  ;;  %v4082_v10 = vmul.f32 %v4081_v27, %v4032_v41  ;;  %v4083_v34 = vmul.f32 %v4081_v27, %v4035_v21 }
 0xefb   :  { %v4051_v18 = vsub.f32 %v4047_v60, %v7172_v43  ;;  %v4050_v35 = vsub.f32 %v4046_v36, %v7169_v8  ;;  %v4086_v28 = vsel %vm5155_vm9, 0.0, %v4082_v10 }
 0xefc   :  { %v4115_v58 = vpop.xlane.xlu0 %4114  ;;  %v4069_v56 = vpop.permute.xlu1 %4068  ;;  %v4090_v32 = vsub.f32 %v4086_v28, %v7189_v33 }
 0xefd   :  { %v4055_v9 = vmul.f32 0.05, %v4051_v18 }
 0xeff   :  { %v7471_v60 = vadd.f32 %v4055_v9, %v7172_v43 }
 0xf00   :  { %v4118_v31 = vpop.xlane.xlu0 %4117 }
 0xf04   :  { %v4038_v51 = vpop.xlane.xlu0 %4037 }
 0xf05   :  { %v4048_v45 = vmul.f32 %v8049_v23, %v4038_v51  ;;  %v4084_v41 = vmul.f32 %v4081_v27, %v4038_v51  ;;  %v4094_v51 = vmul.f32 0.05, %v4090_v32 }
 0xf07   :  { %v4052_v39 = vsub.f32 %v4048_v45, %v7183_v62  ;;  %v4088_v44 = vsel %vm5177_vm11, 0.0, %v4084_v41 }
 0xf08   :  { %v4041_v61 = vpop.xlane.xlu0 %4040  ;;  %v4092_v36 = vsub.f32 %v4088_v44, %v7193_v42 }
 0xf09   :  { %v4049_v14 = vmul.f32 %v8049_v23, %v4041_v61  ;;  %v4085_v21 = vmul.f32 %v4081_v27, %v4041_v61  ;;  %v4123_v27 = vmul.f32 %v4115_v58, %v7471_v60  ;;  %v7496_v58 = vadd.f32 %v4094_v51, %v7189_v33 }
 0xf0b   :  { %v4089_v45 = vsel %vm5185_vm12, 0.0, %v4085_v21 }
 0xf0c   :  { %v4121_v6 = vpop.xlane.xlu0 %4120  ;;  %v4093_v43 = vsub.f32 %v4089_v45, %v7213_v55 }
 0xf0e   :  { %v4097_v28 = vmul.f32 0.05, %v4093_v43 }
 0xf10   :  { %v4152_v22 = vpop.xlane.xlu0 %4151  ;;  %v7505_v33 = vadd.f32 %v4097_v28, %v7213_v55 }
 0xf14   :  { %v7449_v52 = vpop.xlane.xlu0 %4157 }
 0xf18   :  { %v4064_v29 = vpop.permute.xlu0 %4063 }
 0xf19   :  { %v4066_v0 = vmul.f32 %v4064_v29, %v7286_v2  ;;  %v4087_v29 = vsel %vm5163_vm10, 0.0, %v4083_v34 }
 0xf1a   :  { %v4091_v23 = vsub.f32 %v4087_v29, %v7204_v47 }
 0xf1b   :  { %v4071_v11 = vsub.f32 %v4066_v0, %v4069_v56  ;;  %v4053_v0 = vsub.f32 %v4049_v14, %v7200_v13  ;;  %v4056_v56 = vmul.f32 0.05, %v4052_v39  ;;  %v4127_v39 = vsel %vm109_vm1, %v4123_v27, 0.0 }
 0xf1c   :  { %v4095_v61 = vmul.f32 0.05, %v4091_v23 }
 0xf1d   :  { %v4072_v54 = vmul.f32 0.05, %v4071_v11  ;;  %v4054_v11 = vmul.f32 0.05, %v4050_v35  ;;  %v7478_v18 = vadd.f32 %v4056_v56, %v7183_v62  ;;  %v4096_v35 = vmul.f32 0.05, %v4092_v36 }
 0xf1e   :  { %v7493_v9 = vadd.f32 %v4095_v61, %v7204_v47 }
 0xf1f   :  { %4074 = vrot.lane.b32.xlu1 %v4072_v54, %s4870_s4  ;;  %v4057_v54 = vmul.f32 0.05, %v4053_v0  ;;  %v7487_v34 = vadd.f32 %v4054_v11, %v7169_v8 }
 0xf21   :  { %v7484_v10 = vadd.f32 %v4057_v54, %v7200_v13 }
 0xf23   :  { %2042 = vrot.lane.b32.xlu1 %v2034_v37, %s4869_s2  ;;  %v4124_v37 = vmul.f32 %v4118_v31, %v7478_v18  ;;  %v4125_v13 = vmul.f32 %v4121_v6, %v7484_v10  ;;  %v4160_v31 = vmul.f32 %v4152_v22, %v7493_v9  ;;  %v7509_v6 = vadd.f32 %v4096_v35, %v7193_v42 }
 0xf24   :  { %v4162_v22 = vmul.f32 %v7449_v52, %v7505_v33 }
 0xf25   :  { %v4129_v41 = vsel %vm109_vm1, %v4124_v37, 0.0  ;;  %v4131_v47 = vsel %vm109_vm1, %v4125_v13, 0.0  ;;  %v4164_v54 = vsel %vm109_vm1, %v4160_v31, 0.0 }
 0xf26   :  { %v4168_v36 = vsel %vm109_vm1, %v4162_v22, 0.0 }
 0xf2d   :  { %v4112_v14 = vpop.xlane.xlu1 %4111 }
 0xf2e   :  { %v4122_v62 = vmul.f32 %v4112_v14, %v7487_v34 }
 0xf30   :  { %v4126_v8 = vsel %vm109_vm1, %v4122_v62, 0.0 }
 0xf31   :  { %v4128_v29 = vadd.f32 %v4127_v39, %v4126_v8  ;;  %v4149_v0 = vpop.xlane.xlu1 %4148 }
 0xf32   :  { %v4159_v21 = vmul.f32 %v4149_v0, %v7496_v58 }
 0xf33   :  { %v4130_v56 = vadd.f32 %v4129_v41, %v4128_v29 }
 0xf34   :  { %v4163_v32 = vsel %vm109_vm1, %v4159_v21, 0.0 }
 0xf35   :  { %v4132_v23 = vadd.f32 %v4131_v47, %v4130_v56  ;;  %v4155_v11 = vpop.xlane.xlu1 %4154  ;;  %v4165_v51 = vadd.f32 %v4164_v54, %v4163_v32 }
 0xf36   :  { %v4161_v44 = vmul.f32 %v4155_v11, %v7509_v6  ;;  %v2046_v11 = vmul.f32 0.9048374, %v7237_v49 }
 0xf37   :  { %v4133_v45 = vrot.slane %v4132_v23, 4 }
 0xf38   :  { %v4166_v61 = vsel %vm109_vm1, %v4161_v44, 0.0 }
 0xf39   :  { %v4134_v55 = vadd.f32 %v4133_v45, %v4132_v23  ;;  %v4167_v27 = vadd.f32 %v4166_v61, %v4165_v51  ;;  %v1934_v8 = vpop.permute.xlu1 %1933  ;;  %v2062_v51 = vmul.f32 0.95122945, %v7242_v1 }
 0xf3a   :  { %v7519_v0 = vadd.f32 %v1934_v8, %v7231_v20 }
 0xf3b   :  { %v4135_v43 = vrot.slane %v4134_v55, 2  ;;  %v4169_v42 = vadd.f32 %v4168_v36, %v4167_v27  ;;  %v2038_v41 = vpop.permute.xlu0 %2037 }
 0xf3c   :  { %v2040_v56 = vadd.f32 %v2038_v41, %v7980_v48 }
 0xf3d   :  { %v4170_v14 = vrot.slane %v4169_v42, 4  ;;  %v4136_v37 = vadd.f32 %v4135_v43, %v4134_v55 }
 0xf3f   :  { %v4171_v62 = vadd.f32 %v4170_v14, %v4169_v42  ;;  %v4137_v39 = vrot.slane %v4136_v37, 1 }
 0xf41   :  { %v4172_v35 = vrot.slane %v4171_v62, 2  ;;  %v4138_v28 = vadd.f32 %v4137_v39, %v4136_v37 }
 0xf43   :  { %v4176_v13 = vmul.f32 0.2, %v4138_v28  ;;  %v4173_v52 = vadd.f32 %v4172_v35, %v4171_v62  ;;  %v4203_v35 = vmul.f32 0.95122945, %v7286_v2  ;;  %v2058_v2 = vmul.f32 0.9048374, %v7275_v26 }
 0xf45   :  { %4178 = vrot.lane.b32.xlu1 %v4176_v13, %s4869_s2  ;;  %v4174_v29 = vrot.slane %v4173_v52, 1 }
 0xf47   :  { %v4175_v31 = vadd.f32 %v4174_v29, %v4173_v52 }
 0xf49   :  { %4183 = vrot.lane.b32.xlu0 %v4175_v31, %s4869_s2  ;;  %2118 = vrot.lane.b32.xlu1 %v7519_v0, %s4869_s2 }
 0xf91   :  { %v7524_v21 = vpop.permute.xlu1 %4074 }
 0xf95   :  { %v2043_v47 = vpop.permute.xlu1 %2042 }
 0xf96   :  { %v2045_v32 = vsub.f32 %v2040_v56, %v2043_v47 }
 0xf98   :  { %v2047_v23 = vmul.f32 0.095162585, %v2045_v32 }
 0xf9a   :  { %v2049_v54 = vrot.slane %v2047_v23, 7 }
 0xf9c   :  { %v2051_v22 = vadd.f32 %v2049_v54, %v2046_v11 }
 0xf9e   :  { %4702 = vtanh.f32 %v2051_v22  ;;  %v2220_v20 = vrot.slane %v2051_v22, 7  ;;  %v8050_v22 = vld [vmem:[#allocation20_spill] sm:$0xff] }
 0xfa0   :  { %2221 = vrot.lane.b32.xlu1 %v2220_v20, %s4870_s4 }
 0xfab   :  { %v4703_v44 = vpop.eup %4702 }
 0xfac   :  { %2054 = vrot.lane.b32.xlu0 %v4703_v44, %s4870_s4  ;;  %v2164_v45 = vrot.slane %v4703_v44, 1  ;;  %v2063_v61 = vmul.f32 0.048770577, %v4703_v44  ;;  %v8051_v44 = vld [vmem:[#allocation32_spill] sm:$0xff] }
 0xfae   :  { %v2172_v48 = vsel %vm662_vm8, %v7246_v38, %v2164_v45  ;;  %v7533_v55 = vadd.f32 %v2063_v61, %v2062_v51  ;;  %v4187_v38 = vmul.f32 0.9048374, %v7255_v3  ;;  %v2228_v45 = vrot.slane %v8051_v44, 4 }
 0xfb0   :  { %2214 = vrot.lane.b32.xlu0 %v2172_v48, %s4870_s4  ;;  %v2071_v49 = vrot.slane %v7533_v55, %v5149_v59  ;;  %v2231_v27 = vrot.slane %v7533_v55, 4 }
 0xfb2   :  { %2073 = vrot.lane.b32.xlu1 %v2071_v49, %s4870_s4 }
 0xfb4   :  { %2232 = vrot.lane.b32.xlu0 %v2231_v27, %s4870_s4 }
 0xfb7   :  { %v4179_v36 = vpop.permute.xlu1 %4178 }
 0xfb8   :  { %v4181_v1 = vadd.f32 %v4179_v36, %v7982_v50 }
 0xfbb   :  { %v4184_v43 = vpop.permute.xlu0 %4183  ;;  %v7555_v8 = vpop.permute.xlu1 %2118 }
 0xfbc   :  { %v4186_v42 = vsub.f32 %v4181_v1, %v4184_v43 }
 0xfbe   :  { %v4188_v14 = vmul.f32 0.095162585, %v4186_v42  ;;  %v2065_v42 = vmul.f32 0.95122945, %v7296_v40  ;;  %v7589_v40 = vadd.f32 %v7524_v21, %v7331_v30  ;;  %v4206_v21 = vmul.f32 0.95122945, %v7360_v25 }
 0xfc0   :  { %v4190_v37 = vrot.slane %v4188_v14, 7 }
 0xfc2   :  { %v7543_v62 = vadd.f32 %v4190_v37, %v4187_v38 }
 0xfc4   :  { %4704 = vtanh.f32 %v7543_v62 }
 0xfd1   :  { %v4705_v39 = vpop.eup %4704 }
 0xfd2   :  { %4195 = vrot.lane.b32.xlu1 %v4705_v39, %s4870_s4  ;;  %v4204_v28 = vmul.f32 0.048770577, %v4705_v39  ;;  %v4305_v13 = vrot.slane %v4705_v39, 1 }
 0xfd4   :  { %v7548_v52 = vadd.f32 %v4204_v28, %v4203_v35  ;;  %v4313_v50 = vsel %vm662_vm8, %v7261_v12, %v4305_v13  ;;  %v2238_v35 = vrot.slane %v7292_v17, 2 }
 0xfd6   :  { %v4212_v3 = vrot.slane %v7548_v52, %v5149_v59 }
 0xfd8   :  { %4214 = vrot.lane.b32.xlu1 %v4212_v3, %s4870_s4 }
0x1012   :  { %v2222_v41 = vpop.permute.xlu1 %2221 }
0x1013   :  { %v2243_v20 = vsel %vm650_vm2, %v8050_v22, %v2222_v41 }
0x101e   :  { %v2055_v29 = vpop.permute.xlu0 %2054 }
0x101f   :  { %v2057_v31 = vmul.f32 %v2055_v29, %v7519_v0 }
0x1021   :  { %v2059_v56 = vmul.f32 0.095162585, %v2057_v31 }
0x1022   :  { %v2215_v47 = vpop.permute.xlu0 %2214 }
0x1023   :  { %v2060_v32 = vadd.f32 %v2059_v56, %v2058_v2  ;;  %2218 = vst.msk [vmem:[#allocation12 + $0x8] sm:$0xff] %vm109_vm1, %v2215_v47  ;;  %v8052_v2 = vld [vmem:[#allocation59_spill] sm:$0xff] }
0x1024   :  { %v2074_v23 = vpop.permute.xlu1 %2073  ;;  %v4199_v56 = vmul.f32 0.9048374, %v8052_v2 }
0x1025   :  { %4706 = vtanh.f32 %v2060_v32  ;;  %v2225_v12 = vrot.slane %v2060_v32, 6  ;;  %v2077_v11 = vsel %vm5163_vm10, %v2074_v23, 0.0  ;;  %v2076_v54 = vsel %vm5155_vm9, %v2074_v23, 0.0 }
0x1026   :  { %v2083_v26 = vsel %vm109_vm1, %v2077_v11, 0.0  ;;  %v2080_v51 = vsel %vm109_vm1, %v2076_v54, 0.0  ;;  %v2078_v48 = vsel %vm5177_vm11, %v2074_v23, 0.0  ;;  %v2079_v36 = vsel %vm5185_vm12, %v2074_v23, 0.0  ;;  %v2233_v39 = vpop.permute.xlu0 %2232 }
0x1027   :  { %v2244_v61 = vsel %vm652_vm3, %v2243_v20, %v2225_v12  ;;  %2084 = vadd.xlane.f32.xlu1 %v2083_v26  ;;  %2081 = vadd.xlane.f32.xlu0 %v2080_v51  ;;  %v2086_v27 = vsel %vm109_vm1, %v2078_v48, 0.0  ;;  %v2089_v1 = vsel %vm109_vm1, %v2079_v36, 0.0 }
0x1028   :  { %v2245_v49 = vsel %vm654_vm4, %v2244_v61, %v2228_v45 }
0x1029   :  { %v2246_v28 = vsel %vm656_vm5, %v2245_v49, %v2233_v39 }
0x102b   :  { %2087 = vadd.xlane.f32.xlu0 %v2086_v27  ;;  %v8053_v27 = vld [vmem:[#allocation36_spill] sm:$0xff] }
0x102f   :  { %2090 = vadd.xlane.f32.xlu0 %v2089_v1 }
0x1032   :  { %v4707_v43 = vpop.eup %4706 }
0x1033   :  { %v2066_v14 = vmul.f32 0.048770577, %v4707_v43  ;;  %v2241_v13 = vrot.slane %v4707_v43, 1 }
0x1035   :  { %v2067_v38 = vadd.f32 %v2066_v14, %v2065_v42 }
0x1037   :  { %v2235_v37 = vrot.slane %v2067_v38, 3  ;;  %v2131_v61 = vrot.slane %v2067_v38, %v5149_v59 }
0x1039   :  { %v2247_v3 = vsel %vm658_vm6, %v2246_v28, %v2235_v37 }
0x103a   :  { %v2248_v29 = vsel %vm660_vm7, %v2247_v3, %v2238_v35 }
0x103b   :  { %v2249_v31 = vsel %vm662_vm8, %v2248_v29, %v2241_v13 }
0x103c   :  { %2250 = vst.msk [vmem:[%s7824_s7] sm:$0xff] %vm109_vm1, %v2249_v31 }
0x1044   :  { %v4196_v41 = vpop.permute.xlu1 %4195 }
0x1045   :  { %v4198_v17 = vmul.f32 %v4196_v41, %v7589_v40  ;;  %2113 = vrot.lane.b32.xlu0 %v2067_v38, %s4869_s2 }
0x1047   :  { %v4200_v47 = vmul.f32 0.095162585, %v4198_v17 }
0x1049   :  { %v7594_v32 = vadd.f32 %v4200_v47, %v4199_v56  ;;  %v8054_v47 = vld [vmem:[#allocation22_spill] sm:$0xff] }
0x104a   :  { %v4215_v23 = vpop.permute.xlu1 %4214 }
0x104b   :  { %4708 = vtanh.f32 %v7594_v32  ;;  %v4217_v12 = vsel %vm5155_vm9, %v4215_v23, 0.0  ;;  %v4218_v20 = vsel %vm5163_vm10, %v4215_v23, 0.0  ;;  %v4219_v45 = vsel %vm5177_vm11, %v4215_v23, 0.0 }
0x104c   :  { %v4221_v11 = vsel %vm109_vm1, %v4217_v12, 0.0  ;;  %v4224_v44 = vsel %vm109_vm1, %v4218_v20, 0.0  ;;  %v4227_v25 = vsel %vm109_vm1, %v4219_v45, 0.0  ;;  %v4220_v26 = vsel %vm5185_vm12, %v4215_v23, 0.0 }
0x104d   :  { %4222 = vadd.xlane.f32.xlu1 %v4221_v11  ;;  %v4230_v51 = vsel %vm109_vm1, %v4220_v26, 0.0 }
0x1058   :  { %v7600_v30 = vpop.eup %4708 }
0x1059   :  { %v4207_v54 = vmul.f32 0.048770577, %v7600_v30 }
0x105b   :  { %v7604_v22 = vadd.f32 %v4207_v54, %v4206_v21 }
0x105e   :  { %4254 = vrot.lane.b32.xlu1 %v7604_v22, %s4869_s2 }
0x1062   :  { %4357 = vrot.lane.b32.xlu1 %v4313_v50, %s4870_s4  ;;  %v4363_v50 = vrot.slane %v7543_v62, 7 }
0x1064   :  { %4225 = vadd.xlane.f32.xlu0 %v4224_v44  ;;  %v4272_v44 = vrot.slane %v7604_v22, %v5149_v59 }
0x1068   :  { %4228 = vadd.xlane.f32.xlu0 %v4227_v25  ;;  %v8055_v25 = vld [vmem:[#allocation40_spill] sm:$0xff] }
0x106c   :  { %4231 = vadd.xlane.f32.xlu0 %v4230_v51 }
0x1082   :  { %4259 = vrot.lane.b32.xlu0 %v7589_v40, %s4869_s2 }
0x1086   :  { %4364 = vrot.lane.b32.xlu0 %v4363_v50, %s4870_s4 }
0x10b0   :  { %v2082_v48 = vpop.xlane.xlu0 %2081  ;;  %v2085_v49 = vpop.xlane.xlu1 %2084 }
0x10b1   :  { %v2096_v36 = vmul.f32 %v8053_v27, %v2082_v48  ;;  %v7624_v1 = vmul.f32 %v2131_v61, %v2082_v48  ;;  %v2097_v43 = vmul.f32 %v8053_v27, %v2085_v49  ;;  %v7627_v42 = vmul.f32 %v2131_v61, %v2085_v49 }
0x10b3   :  { %v2100_v14 = vsub.f32 %v2096_v36, %v7386_v53  ;;  %v2101_v37 = vsub.f32 %v2097_v43, %v7380_v57 }
0x10b4   :  { %v2088_v39 = vpop.xlane.xlu0 %2087 }
0x10b5   :  { %v2104_v62 = vmul.f32 0.05, %v2100_v14  ;;  %v2105_v35 = vmul.f32 0.05, %v2101_v37  ;;  %v2098_v28 = vmul.f32 %v8053_v27, %v2088_v39  ;;  %v7632_v38 = vmul.f32 %v2131_v61, %v2088_v39 }
0x10b7   :  { %v2108_v13 = vadd.f32 %v2104_v62, %v7386_v53  ;;  %v2109_v3 = vadd.f32 %v2105_v35, %v7380_v57  ;;  %v2102_v29 = vsub.f32 %v2098_v28, %v7398_v19 }
0x10b8   :  { %v2091_v31 = vpop.xlane.xlu0 %2090 }
0x10b9   :  { %2198 = vst.msk [vmem:[#allocation11] sm:$0xff] %vm109_vm1, %v2108_v13  ;;  %2199 = vst.msk [vmem:[#allocation11 + $0x8] sm:$0xff] %vm109_vm1, %v2109_v3  ;;  %v2106_v41 = vmul.f32 0.05, %v2102_v29  ;;  %v2099_v17 = vmul.f32 %v8053_v27, %v2091_v31  ;;  %v7640_v2 = vmul.f32 %v2131_v61, %v2091_v31 }
0x10bb   :  { %v2110_v56 = vadd.f32 %v2106_v41, %v7398_v19  ;;  %v2103_v23 = vsub.f32 %v2099_v17, %v8054_v47 }
0x10bc   :  { %v2114_v12 = vpop.permute.xlu0 %2113 }
0x10bd   :  { %2200 = vst.msk [vmem:[#allocation11 + $0x10] sm:$0xff] %vm109_vm1, %v2110_v56  ;;  %v2107_v57 = vmul.f32 0.05, %v2103_v23  ;;  %v2116_v53 = vmul.f32 %v2114_v12, %v7533_v55 }
0x10bf   :  { %v2111_v11 = vadd.f32 %v2107_v57, %v8054_v47  ;;  %v2121_v21 = vsub.f32 %v2116_v53, %v7555_v8  ;;  %v2185_v20 = vmul.f32 0.05, %v2116_v53  ;;  %v4368_v53 = vrot.slane %v7594_v32, 6 }
0x10c1   :  { %2201 = vst.msk [vmem:[#allocation11 + $0x18] sm:$0xff] %vm109_vm1, %v2111_v11  ;;  %v2122_v54 = vmul.f32 0.05, %v2121_v21  ;;  %v2189_v19 = vrot.slane %v2185_v20, %v5149_v59  ;;  %v8056_v21 = vld [vmem:[#allocation25_spill] sm:$0xff] }
0x10c3   :  { %2124 = vrot.lane.b32.xlu1 %v2122_v54, %s4870_s4 }
0x10c7   :  { %2191 = vrot.lane.b32.xlu1 %v2189_v19, %s4870_s4 }
0x10d6   :  { %v4223_v45 = vpop.xlane.xlu1 %4222 }
0x10d7   :  { %v4237_v55 = vmul.f32 %v8055_v25, %v4223_v45  ;;  %v7655_v26 = vmul.f32 %v4272_v44, %v4223_v45 }
0x10d9   :  { %v4241_v8 = vsub.f32 %v4237_v55, %v7487_v34 }
0x10da   :  { %v4255_v51 = vpop.permute.xlu1 %4254 }
0x10db   :  { %v4245_v50 = vmul.f32 0.05, %v4241_v8  ;;  %v4257_v31 = vmul.f32 %v4255_v51, %v7548_v52 }
0x10dd   :  { %v4249_v61 = vadd.f32 %v4245_v50, %v7487_v34  ;;  %v4326_v23 = vmul.f32 0.05, %v4257_v31 }
0x10de   :  { %v4358_v48 = vpop.permute.xlu1 %4357 }
0x10df   :  { %4340 = vst.msk [vmem:[#allocation11 + $0x60] sm:$0xff] %vm109_vm1, %v4249_v61  ;;  %4361 = vst.msk [vmem:[#allocation12 + $0x18] sm:$0xff] %vm109_vm1, %v4358_v48 }
0x10ed   :  { %v4226_v49 = vpop.xlane.xlu0 %4225 }
0x10ee   :  { %v4238_v27 = vmul.f32 %v8055_v25, %v4226_v49  ;;  %v7662_v36 = vmul.f32 %v4272_v44, %v4226_v49 }
0x10f0   :  { %v4242_v43 = vsub.f32 %v4238_v27, %v7471_v60 }
0x10f1   :  { %v4229_v14 = vpop.xlane.xlu0 %4228 }
0x10f2   :  { %v4246_v37 = vmul.f32 0.05, %v4242_v43  ;;  %v4239_v39 = vmul.f32 %v8055_v25, %v4229_v14  ;;  %v7666_v62 = vmul.f32 %v4272_v44, %v4229_v14 }
0x10f4   :  { %v4250_v34 = vadd.f32 %v4246_v37, %v7471_v60  ;;  %v4243_v35 = vsub.f32 %v4239_v39, %v7478_v18 }
0x10f5   :  { %v4232_v28 = vpop.xlane.xlu0 %4231 }
0x10f6   :  { %4341 = vst.msk [vmem:[#allocation11 + $0x68] sm:$0xff] %vm109_vm1, %v4250_v34  ;;  %v4247_v13 = vmul.f32 0.05, %v4243_v35  ;;  %v4240_v3 = vmul.f32 %v8055_v25, %v4232_v28  ;;  %v7672_v29 = vmul.f32 %v4272_v44, %v4232_v28 }
0x10f8   :  { %v4251_v41 = vadd.f32 %v4247_v13, %v7478_v18  ;;  %v4244_v17 = vsub.f32 %v4240_v3, %v7484_v10  ;;  %v8057_v18 = vld [vmem:[#allocation37_spill] sm:$0xff] }
0x10f9   :  { %v4260_v56 = vpop.permute.xlu0 %4259  ;;  %v4371_v20 = vrot.slane %v8057_v18, 4 }
0x10fa   :  { %4342 = vst.msk [vmem:[#allocation11 + $0x70] sm:$0xff] %vm109_vm1, %v4251_v41  ;;  %v4248_v60 = vmul.f32 0.05, %v4244_v17  ;;  %v4262_v47 = vsub.f32 %v4257_v31, %v4260_v56 }
0x10fc   :  { %v4252_v12 = vadd.f32 %v4248_v60, %v7484_v10  ;;  %v4263_v57 = vmul.f32 0.05, %v4262_v47  ;;  %v4330_v10 = vrot.slane %v4326_v23, %v5149_v59 }
0x10fd   :  { %v4365_v11 = vpop.permute.xlu0 %4364 }
0x10fe   :  { %4343 = vst.msk [vmem:[#allocation11 + $0x78] sm:$0xff] %vm109_vm1, %v4252_v12  ;;  %v4386_v54 = vsel %vm650_vm2, %v8056_v21, %v4365_v11  ;;  %4265 = vrot.lane.b32.xlu1 %v4263_v57, %s4870_s4 }
0x10ff   :  { %v4387_v19 = vsel %vm652_vm3, %v4386_v54, %v4368_v53 }
0x1100   :  { %v7688_v44 = vsel %vm654_vm4, %v4387_v19, %v4371_v20 }
0x1101   :  { %4821 = shalt.err (!%p4818_p1)
}
0x1102   :  { %4419 = dma.vmem_to_hbm [thread:$0]  %s4414_s11, 512, %s7823_s6, [#allocation13], %s4862_s29, %s4862_s29, %s4863_s30   ;;  %v4374_v32 = vrot.slane %v7548_v52, 4  ;;  %v2136_v45 = vsel %vm5155_vm9, 0.0, %v7624_v1  ;;  %v2137_v25 = vsel %vm5163_vm10, 0.0, %v7627_v42  ;;  %v2138_v55 = vsel %vm5177_vm11, 0.0, %v7632_v38 }
0x1103   :  { %4332 = vrot.lane.b32.xlu1 %v4330_v10, %s4870_s4  ;;  %v2139_v8 = vsel %vm5185_vm12, 0.0, %v7640_v2  ;;  %v2140_v52 = vsub.f32 %v2136_v45, %v7426_v63  ;;  %v2141_v51 = vsub.f32 %v2137_v25, %v7429_v15  ;;  %v2142_v50 = vsub.f32 %v2138_v55, %v7432_v7  ;;  %s4872_s6 = smov [#allocation11]  }
0x1104   :  { %v2143_v61 = vsub.f32 %v2139_v8, %v7441_v4  ;;  %v2173_v39 = vmul.f32 0.05, %v7624_v1  ;;  %v2174_v34 = vmul.f32 0.05, %v7627_v42  ;;  %v2175_v35 = vmul.f32 0.05, %v7632_v38 }
0x1105   :  { %v2144_v48 = vmul.f32 0.05, %v2140_v52  ;;  %v2145_v49 = vmul.f32 0.05, %v2141_v51  ;;  %v2146_v27 = vmul.f32 0.05, %v2142_v50 }
0x1106   :  { %v2147_v43 = vmul.f32 0.05, %v2143_v61  ;;  %v2176_v28 = vmul.f32 0.05, %v7640_v2  ;;  %v4277_v2 = vsel %vm5155_vm9, 0.0, %v7655_v26  ;;  %v4278_v60 = vsel %vm5163_vm10, 0.0, %v7662_v36 }
0x1107   :  { %4375 = vrot.lane.b32.xlu1 %v4374_v32, %s4870_s4  ;;  %v2148_v3 = vadd.f32 %v2144_v48, %v7426_v63  ;;  %v2149_v31 = vadd.f32 %v2145_v49, %v7429_v15  ;;  %v2150_v41 = vadd.f32 %v2146_v27, %v7432_v7  ;;  %v4279_v47 = vsel %vm5177_vm11, 0.0, %v7666_v62  ;;  %s4401_s15 = sshll.u32 %s4872_s6, 4  ;;  %s4402_s15 = int_to_ptr.vmem [resolvable:$true] %s4401_s15 }
0x1108   :  { %v2151_v17 = vadd.f32 %v2147_v43, %v7441_v4  ;;  %v4280_v23 = vsel %vm5185_vm12, 0.0, %v7672_v29  ;;  %v4281_v12 = vsub.f32 %v4277_v2, %v7496_v58  ;;  %v4282_v57 = vsub.f32 %v4278_v60, %v7493_v9  ;;  %s4830_s16 = scalar_lea.vmem %s4402_s15, 3072  ;;  %p4835_p3 = scmp.lt.s32.totalorder %s4402_s15, %s4402_s15 }
0x1109   :  { %v4283_v53 = vsub.f32 %v4279_v47, %v7509_v6  ;;  %v4284_v11 = vsub.f32 %v4280_v23, %v7505_v33  ;;  %v4314_v32 = vmul.f32 0.05, %v7655_v26  ;;  %v4315_v45 = vmul.f32 0.05, %v7662_v36  ;;  %p4831_p2 = scmp.ne.s32.totalorder %s4402_s15, %s4830_s16  ;;  %p4836_p4 = scmp.lt.s32.totalorder %s4830_s16, %s4830_s16 }
0x110a   :  { %v4285_v21 = vmul.f32 0.05, %v4281_v12  ;;  %v4286_v54 = vmul.f32 0.05, %v4282_v57  ;;  %v4316_v25 = vmul.f32 0.05, %v7666_v62 }
0x110b   :  { %v4287_v18 = vmul.f32 0.05, %v4283_v53  ;;  %v4288_v20 = vmul.f32 0.05, %v4284_v11  ;;  %v4317_v55 = vmul.f32 0.05, %v7672_v29  ;;  %p4837_p5 = por %p4836_p4, %p4835_p3 }
0x110c   :  { %v4289_v52 = vadd.f32 %v4285_v21, %v7496_v58  ;;  %v4290_v51 = vadd.f32 %v4286_v54, %v7493_v9  ;;  %v4378_v46 = vrot.slane %v7604_v22, 3 }
0x110d   :  { %v4291_v50 = vadd.f32 %v4287_v18, %v7509_v6  ;;  %p4838_p6 = pnand %p4837_p5, %p4831_p2 }
0x1135   :  { %v2125_v14 = vpop.permute.xlu1 %2124 }
0x1136   :  { %v2127_v37 = vadd.f32 %v2125_v14, %v7519_v0 }
0x1138   :  { %v2180_v13 = vrot.slane %v2127_v37, %v5149_v59 }
0x1139   :  { %v2192_v56 = vpop.permute.xlu1 %2191 }
0x113a   :  { %v2181_v0 = vsel %vm5155_vm9, %v2180_v13, %v2173_v39  ;;  %v2182_v1 = vsel %vm5163_vm10, %v2180_v13, %v2174_v34  ;;  %v2183_v42 = vsel %vm5177_vm11, %v2180_v13, %v2175_v35  ;;  %v2184_v38 = vsel %vm5185_vm12, %v2180_v13, %v2176_v28 }
0x113b   :  { %2203 = vst.msk [vmem:[#allocation11 + $0x20] sm:$0xff] %vm109_vm1, %v2181_v0  ;;  %2204 = vst.msk [vmem:[#allocation11 + $0x28] sm:$0xff] %vm109_vm1, %v2182_v1  ;;  %v2194_v63 = vsel %vm5155_vm9, %v2192_v56, %v2148_v3  ;;  %v2195_v15 = vsel %vm5163_vm10, %v2192_v56, %v2149_v31  ;;  %v2196_v7 = vsel %vm5177_vm11, %v2192_v56, %v2150_v41 }
0x113c   :  { %2205 = vst.msk [vmem:[#allocation11 + $0x30] sm:$0xff] %vm109_vm1, %v2183_v42  ;;  %2206 = vst.msk [vmem:[#allocation11 + $0x38] sm:$0xff] %vm109_vm1, %v2184_v38  ;;  %v2197_v4 = vsel %vm5185_vm12, %v2192_v56, %v2151_v17 }
0x113d   :  { %2208 = vst.msk [vmem:[#allocation11 + $0x40] sm:$0xff] %vm109_vm1, %v2194_v63  ;;  %2209 = vst.msk [vmem:[#allocation11 + $0x48] sm:$0xff] %vm109_vm1, %v2195_v15 }
0x113e   :  { %2210 = vst.msk [vmem:[#allocation11 + $0x50] sm:$0xff] %vm109_vm1, %v2196_v7  ;;  %2211 = vst.msk [vmem:[#allocation11 + $0x58] sm:$0xff] %vm109_vm1, %v2197_v4 }
0x1170   :  { %v4266_v19 = vpop.permute.xlu1 %4265 }
0x1171   :  { %v4268_v10 = vadd.f32 %v4266_v19, %v7589_v40  ;;  %v4292_v40 = vadd.f32 %v4288_v20, %v7505_v33 }
0x1173   :  { %v4321_v8 = vrot.slane %v4268_v10, %v5149_v59 }
0x1175   :  { %v4333_v61 = vpop.permute.xlu1 %4332  ;;  %v4322_v26 = vsel %vm5155_vm9, %v4321_v8, %v4314_v32  ;;  %v4323_v36 = vsel %vm5163_vm10, %v4321_v8, %v4315_v45  ;;  %v4324_v62 = vsel %vm5177_vm11, %v4321_v8, %v4316_v25  ;;  %v4325_v59 = vsel %vm5185_vm12, %v4321_v8, %v4317_v55 }
0x1176   :  { %4345 = vst.msk [vmem:[#allocation11 + $0x80] sm:$0xff] %vm109_vm1, %v4322_v26  ;;  %4346 = vst.msk [vmem:[#allocation11 + $0x88] sm:$0xff] %vm109_vm1, %v4323_v36  ;;  %v4335_v9 = vsel %vm5155_vm9, %v4333_v61, %v4289_v52  ;;  %v4336_v58 = vsel %vm5163_vm10, %v4333_v61, %v4290_v51  ;;  %v4337_v33 = vsel %vm5177_vm11, %v4333_v61, %v4291_v50 }
0x1177   :  { %4347 = vst.msk [vmem:[#allocation11 + $0x90] sm:$0xff] %vm109_vm1, %v4324_v62  ;;  %4348 = vst.msk [vmem:[#allocation11 + $0x98] sm:$0xff] %vm109_vm1, %v4325_v59  ;;  %v4338_v6 = vsel %vm5185_vm12, %v4333_v61, %v4292_v40 }
0x1178   :  { %4350 = vst.msk [vmem:[#allocation11 + $0xa0] sm:$0xff] %vm109_vm1, %v4335_v9  ;;  %4351 = vst.msk [vmem:[#allocation11 + $0xa8] sm:$0xff] %vm109_vm1, %v4336_v58 }
0x1179   :  { %4352 = vst.msk [vmem:[#allocation11 + $0xb0] sm:$0xff] %vm109_vm1, %v4337_v33  ;;  %4353 = vst.msk [vmem:[#allocation11 + $0xb8] sm:$0xff] %vm109_vm1, %v4338_v6  ;;  %v4376_v29 = vpop.permute.xlu1 %4375 }
0x117a   :  { %4841 = shalt.err (!%p4838_p6)
}
0x117b   :  { %4407 = dma.vmem_to_hbm [thread:$0]  %s4402_s15, 3072, %s7822_s5, [#allocation4], %s4862_s29, %s4862_s29, %s4863_s30   ;;  %v8058_v5 = vld [vmem:[#allocation63_spill] sm:$0xff]  ;;  %v4389_v24 = vsel %vm656_vm5, %v7688_v44, %v4376_v29  ;;  %v4384_v22 = vrot.slane %v7600_v30, 1 }
0x117c   :  { %v4381_v16 = vrot.slane %v8058_v5, 2  ;;  %v4390_v48 = vsel %vm658_vm6, %v4389_v24, %v4378_v46 }
0x117e   :  { %v4391_v49 = vsel %vm660_vm7, %v4390_v48, %v4381_v16 }
0x117f   :  { %v4392_v27 = vsel %vm662_vm8, %v4391_v49, %v4384_v22 }
0x1180   :  { %4435 = vst.msk [vmem:[%s7824_s7 + $0x10] sm:$0xff] %vm109_vm1, %v4392_v27 }
0x1181   :  { %4856 = dma.done.wait [#allocation4], 3072  }
0x1182   :  { %4857 = vsyncadd [#allocation4], 4294964224 }
0x1183   :  { %4858 = dma.done.wait [#allocation13], 512  }
0x1184   :  { %4859 = vsyncadd [#allocation13], 4294966784 }
0x1185   :  { %4430 = vsyncpa [#allocation3], 1 }
0x1186   :  { %4431 = vsyncpa [#allocation6], 1 }
0x1187   :  { %4432 = vsyncpa [#allocation9], 1 }
0x1188   :  { %4433 = vsyncpa [#allocation4], 1 }
0x1189   :  { %4434 = vsyncpa [#allocation13], 1 }

</bundles_post_ra>
